<compile_context>
chip_gen: v6e
topology: v6e:2x2x1
jax: 0.10.0
libtpu: 0.0.40
codegen_flags: <defaults>
</compile_context>

<pallas_src>
import jax
import jax.numpy as jnp
import numpy as np
from jax.experimental import pallas as pl
from jax.experimental.pallas import tpu as pltpu

# ---------------------------------------------------------------------------
# Architecture constants (fixed by the PyTorch module)
# ---------------------------------------------------------------------------
_K = 5          # conv kernel size
_H0 = 28        # input spatial size
_C1 = 10        # conv1 out channels
_C2 = 20        # conv2 out channels
_H1 = 24        # conv1 out spatial (28 - 5 + 1)
_P1 = 12        # pool1 out spatial
_H2 = 8         # conv2 out spatial (12 - 5 + 1)
_P2 = 4         # pool2 out spatial
_L1 = _H1 * _C1     # 240 : conv1 lanes,  index = ow*10 + co
_LP1 = _P1 * _C1    # 120 : pool1 lanes,  index = pw*10 + ci
_L2 = _H2 * _C2     # 160 : conv2 lanes,  index = v*20 + co
_LP2 = _P2 * _C2    # 80  : pool2 lanes,  index = t*20 + c
_NCLS = 10
_TB = 8         # images per grid step (batch tile)


# ---------------------------------------------------------------------------
# Fused forward kernel: conv1 -> pool+relu -> conv2 -> pool+relu -> fc -> lsm
# ---------------------------------------------------------------------------
def _fused_net_cnn_kernel(x_ref, t1_ref, vk1_ref, b1_ref, sw1_ref, sh1_ref,
                          t2_ref, v2k_ref, b2_ref, sw2_ref, sh2_ref,
                          ssel_ref, wfc_ref, bfc_ref, o_ref):
    f32 = jnp.float32
    x = x_ref[...]                                   # (TB*28, 28) rows=(n,h)

    # ---- conv1 (1->10, k5, valid) + bias ---------------------------------
    # For each kh: select rows (n, oh+kh), then contract kw via the
    # horizontal Toeplitz matrix T1[:, kh-block].
    acc1 = None
    for kh in range(_K):
        xk = jnp.dot(vk1_ref[kh], x, preferred_element_type=f32)       # (TB*24, 28)
        ck = jnp.dot(xk, t1_ref[:, kh * _L1:(kh + 1) * _L1],
                     preferred_element_type=f32)                       # (TB*24, 240)
        acc1 = ck if acc1 is None else acc1 + ck
    a1 = acc1 + b1_ref[...]                          # rows=(n,oh), lanes=ow*10+co

    # ---- maxpool 2x2 (stride 2) + relu -----------------------------------
    m1 = jnp.maximum(jnp.dot(a1, sw1_ref[0], preferred_element_type=f32),
                     jnp.dot(a1, sw1_ref[1], preferred_element_type=f32))   # (TB*24, 120)
    p1 = jnp.maximum(jnp.dot(sh1_ref[0], m1, preferred_element_type=f32),
                     jnp.dot(sh1_ref[1], m1, preferred_element_type=f32))   # (TB*12, 120)
    p1 = jnp.maximum(p1, 0.0)                        # rows=(n,ph), lanes=pw*10+ci

    # ---- conv2 (10->20, k5, valid) + bias --------------------------------
    acc2 = None
    for kh in range(_K):
        pk = jnp.dot(v2k_ref[kh], p1, preferred_element_type=f32)      # (TB*8, 120)
        ck = jnp.dot(pk, t2_ref[:, kh * _L2:(kh + 1) * _L2],
                     preferred_element_type=f32)                       # (TB*8, 160)
        acc2 = ck if acc2 is None else acc2 + ck
    a2 = acc2 + b2_ref[...]                          # rows=(n,u), lanes=v*20+co

    # ---- maxpool 2x2 (stride 2) + relu -----------------------------------
    m2 = jnp.maximum(jnp.dot(a2, sw2_ref[0], preferred_element_type=f32),
                     jnp.dot(a2, sw2_ref[1], preferred_element_type=f32))   # (TB*8, 80)
    p2 = jnp.maximum(jnp.dot(sh2_ref[0], m2, preferred_element_type=f32),
                     jnp.dot(sh2_ref[1], m2, preferred_element_type=f32))   # (TB*4, 80)
    p2 = jnp.maximum(p2, 0.0)                        # rows=(n,s), lanes=t*20+c

    # ---- flatten (torch c*16+s*4+t order folded into fc weights) + fc ----
    acc3 = None
    for s in range(_P2):
        rows = jnp.dot(ssel_ref[s], p2, preferred_element_type=f32)    # (TB, 80)
        ck = jnp.dot(rows, wfc_ref[s], preferred_element_type=f32)     # (TB, 10)
        acc3 = ck if acc3 is None else acc3 + ck
    logits = acc3 + bfc_ref[...]                                       # (TB, 10)

    # ---- log_softmax(dim=1) ----------------------------------------------
    zmax = jnp.max(logits, axis=-1, keepdims=True)
    z = logits - zmax
    lse = jnp.log(jnp.sum(jnp.exp(z), axis=-1, keepdims=True))
    o_ref[...] = z - lse


# ---------------------------------------------------------------------------
# Precomputed structural (0/1) matrices -- depend only on the batch tile.
# ---------------------------------------------------------------------------
def _build_structural_constants(tb):
    vk1 = np.zeros((_K, tb * _H1, tb * _H0), np.float32)   # conv1 row shift
    v2k = np.zeros((_K, tb * _H2, tb * _P1), np.float32)   # conv2 row shift
    for kh in range(_K):
        for n in range(tb):
            for oh in range(_H1):
                vk1[kh, n * _H1 + oh, n * _H0 + oh + kh] = 1.0
            for u in range(_H2):
                v2k[kh, n * _H2 + u, n * _P1 + u + kh] = 1.0

    sw1 = np.zeros((2, _L1, _LP1), np.float32)              # pool1 lane select
    sw2 = np.zeros((2, _L2, _LP2), np.float32)              # pool2 lane select
    sh1 = np.zeros((2, tb * _P1, tb * _H1), np.float32)     # pool1 row select
    sh2 = np.zeros((2, tb * _P2, tb * _H2), np.float32)     # pool2 row select
    for d in range(2):
        for pw in range(_P1):
            for c in range(_C1):
                sw1[d, (2 * pw + d) * _C1 + c, pw * _C1 + c] = 1.0
        for t in range(_P2):
            for c in range(_C2):
                sw2[d, (2 * t + d) * _C2 + c, t * _C2 + c] = 1.0
        for n in range(tb):
            for ph in range(_P1):
                sh1[d, n * _P1 + ph, n * _H1 + 2 * ph + d] = 1.0
            for s in range(_P2):
                sh2[d, n * _P2 + s, n * _H2 + 2 * s + d] = 1.0

    ssel = np.zeros((_P2, tb, tb * _P2), np.float32)        # flatten row select
    for s in range(_P2):
        for n in range(tb):
            ssel[s, n, n * _P2 + s] = 1.0

    return dict(vk1=jnp.asarray(vk1), v2k=jnp.asarray(v2k),
                sw1=jnp.asarray(sw1), sw2=jnp.asarray(sw2),
                sh1=jnp.asarray(sh1), sh2=jnp.asarray(sh2),
                ssel=jnp.asarray(ssel))


# ---------------------------------------------------------------------------
# Pack model parameters into the kernel's matmul layouts.
# ---------------------------------------------------------------------------
def _pack_weights(params):
    w1 = params["conv1_w"].astype(jnp.float32)      # (10, 1, 5, 5)  OIHW
    w2 = params["conv2_w"].astype(jnp.float32)      # (20, 10, 5, 5) OIHW

    # Horizontal Toeplitz for conv1: T1[w_in, kh*240 + ow*10 + co]
    ind1 = (np.arange(_H0)[:, None, None] ==
            (np.arange(_H1)[None, :, None] +
             np.arange(_K)[None, None, :])).astype(np.float32)
    t1 = jnp.einsum("ioq,chq->ihoc", jnp.asarray(ind1),
                    w1[:, 0]).reshape(_H0, _K * _L1)

    # Horizontal Toeplitz for conv2: T2[j*10 + ci, kh*160 + v*20 + co]
    ind2 = (np.arange(_P1)[:, None, None] ==
            (np.arange(_H2)[None, :, None] +
             np.arange(_K)[None, None, :])).astype(np.float32)
    t2 = jnp.einsum("jvq,cihq->jihvc", jnp.asarray(ind2),
                    w2).reshape(_P1 * _C1, _K * _L2)

    # Biases broadcast once outside the kernel hot path (lane-tiled rows).
    b1r = jnp.tile(params["conv1_b"].astype(jnp.float32), _H1).reshape(1, _L1)
    b2r = jnp.tile(params["conv2_b"].astype(jnp.float32), _H2).reshape(1, _L2)

    # fc weights: torch flatten order f = c*16 + s*4 + t  ->  (s, t*20 + c, k)
    wfc = (params["fc_w"].astype(jnp.float32)
           .reshape(_C2, _P2, _P2, _NCLS)
           .transpose(1, 2, 0, 3)
           .reshape(_P2, _LP2, _NCLS))
    bfcr = params["fc_b"].astype(jnp.float32).reshape(1, _NCLS)
    return dict(t1=t1, t2=t2, b1r=b1r, b2r=b2r, wfc=wfc, bfcr=bfcr)


# ---------------------------------------------------------------------------
# Forward pass: one fused pallas_call gridded over batch tiles.
# ---------------------------------------------------------------------------
def net_cnn_forward(params, x, tb=_TB):
    n = x.shape[0]
    assert x.shape[1:] == (1, _H0, _H0), "net_CNN expects (N, 1, 28, 28) input"
    n_pad = ((n + tb - 1) // tb) * tb

    x3 = x.astype(jnp.float32).reshape(n, _H0, _H0)
    if n_pad != n:
        x3 = jnp.concatenate(
            [x3, jnp.zeros((n_pad - n, _H0, _H0), jnp.float32)], axis=0)
    x_rows = x3.reshape(n_pad * _H0, _H0)            # rows = (n, h), lanes = w

    sel = _build_structural_constants(tb)
    w = _pack_weights(params)

    operands = (x_rows,
                w["t1"], sel["vk1"], w["b1r"], sel["sw1"], sel["sh1"],
                w["t2"], sel["v2k"], w["b2r"], sel["sw2"], sel["sh2"],
                sel["ssel"], w["wfc"], w["bfcr"])

    def _resident(a):
        nd = a.ndim
        # Constant block index -> stays VMEM-resident across grid steps.
        return pl.BlockSpec(a.shape, lambda i, _nd=nd: (0,) * _nd)

    in_specs = [pl.BlockSpec((tb * _H0, _H0), lambda i: (i, 0))]
    in_specs += [_resident(a) for a in operands[1:]]

    out = pl.pallas_call(
        _fused_net_cnn_kernel,
        out_shape=jax.ShapeDtypeStruct((n_pad, _NCLS), jnp.float32),
        grid=(n_pad // tb,),
        in_specs=in_specs,
        out_specs=pl.BlockSpec((tb, _NCLS), lambda i: (i, 0)),
        compiler_params=pltpu.CompilerParams(
            dimension_semantics=("parallel",)),
    )(*operands)
    return out[:n]


# ---------------------------------------------------------------------------
# Parameters + pure-JAX reference (for correctness cross-check)
# ---------------------------------------------------------------------------
def init_params(key):
    k1, k2, k3, k4, k5, k6 = jax.random.split(key, 6)
    return {
        "conv1_w": jax.random.normal(k1, (10, 1, 5, 5), jnp.float32) * 0.1,
        "conv1_b": jax.random.normal(k2, (10,), jnp.float32) * 0.1,
        "conv2_w": jax.random.normal(k3, (20, 10, 5, 5), jnp.float32) * 0.05,
        "conv2_b": jax.random.normal(k4, (20,), jnp.float32) * 0.05,
        # NOTE: stored pre-transposed vs torch fc.weight (which is (10, 320)).
        "fc_w": jax.random.normal(k5, (320, 10), jnp.float32) * 0.05,
        "fc_b": jax.random.normal(k6, (10,), jnp.float32) * 0.05,
    }


def _maxpool2_ref(y):
    nb, c, h, w = y.shape
    return jnp.max(y.reshape(nb, c, h // 2, 2, w // 2, 2), axis=(3, 5))


def _reference_forward(params, x):
    hp = jax.lax.Precision.HIGHEST
    y = jax.lax.conv_general_dilated(
        x.astype(jnp.float32), params["conv1_w"], (1, 1), "VALID",
        dimension_numbers=("NCHW", "OIHW", "NCHW"), precision=hp)
    y = y + params["conv1_b"][None, :, None, None]
    y = jnp.maximum(_maxpool2_ref(y), 0.0)
    y = jax.lax.conv_general_dilated(
        y, params["conv2_w"], (1, 1), "VALID",
        dimension_numbers=("NCHW", "OIHW", "NCHW"), precision=hp)
    y = y + params["conv2_b"][None, :, None, None]
    y = jnp.maximum(_maxpool2_ref(y), 0.0)
    y = y.reshape(x.shape[0], -1)
    logits = jnp.dot(y, params["fc_w"], precision=hp) + params["fc_b"]
    return jax.nn.log_softmax(logits, axis=-1)


if __name__ == "__main__":
    key = jax.random.PRNGKey(0)
    pkey, xkey = jax.random.split(key)
    params = init_params(pkey)
    # 28x28 single-channel input is required so the flattened feature size is 320.
    x = jax.random.normal(xkey, (2, 1, 28, 28), jnp.float32)

    out = jax.jit(net_cnn_forward)(params, x)
    out = jax.block_until_ready(out)

    assert out.shape == (2, 10)
    assert bool(jnp.all(jnp.isfinite(out)))
    # log-softmax rows must (approximately) sum to 1 in prob space
    assert jnp.allclose(jnp.sum(jnp.exp(out), axis=-1), 1.0, atol=1e-4)

    # Cross-check against a pure-JAX reference (loose tolerance: the kernel's
    # MXU matmuls run at default (bf16-level) precision).
    ref = _reference_forward(params, x)
    max_err = float(jnp.max(jnp.abs(out - ref)))
    assert max_err < 2e-1, f"kernel/reference mismatch: max abs err = {max_err}"

    print("KERNEL_OK")
</pallas_src>

<mosaic_0001>
module attributes {stable_mosaic.version = 11 : i64} {
  func.func @_fused_net_cnn_kernel(%arg0: i32, %arg1: memref<224x28xf32, #tpu.memory_space<vmem>>, %arg2: memref<28x1200xf32, #tpu.memory_space<vmem>>, %arg3: memref<5x192x224xf32, #tpu.memory_space<vmem>>, %arg4: memref<1x240xf32, #tpu.memory_space<vmem>>, %arg5: memref<2x240x120xf32, #tpu.memory_space<vmem>>, %arg6: memref<2x96x192xf32, #tpu.memory_space<vmem>>, %arg7: memref<120x800xf32, #tpu.memory_space<vmem>>, %arg8: memref<5x64x96xf32, #tpu.memory_space<vmem>>, %arg9: memref<1x160xf32, #tpu.memory_space<vmem>>, %arg10: memref<2x160x80xf32, #tpu.memory_space<vmem>>, %arg11: memref<2x32x64xf32, #tpu.memory_space<vmem>>, %arg12: memref<4x8x32xf32, #tpu.memory_space<vmem>>, %arg13: memref<4x80x10xf32, #tpu.memory_space<vmem>>, %arg14: memref<1x10xf32, #tpu.memory_space<vmem>>, %arg15: memref<8x10xf32, #tpu.memory_space<vmem>>) attributes {dimension_semantics = [#tpu.dimension_semantics<parallel>], iteration_bounds = array<i64: 1>, scalar_prefetch = 0 : i64, scratch_operands = 0 : i64, tpu.core_type = #tpu.core_type<tc>, window_params = [{transform_indices = @transform_0, window_bounds = array<i64: 224, 28>}, {pipeline_mode = #tpu.pipeline_mode<synchronous>, transform_indices = @transform_1, window_bounds = array<i64: 28, 1200>}, {pipeline_mode = #tpu.pipeline_mode<synchronous>, transform_indices = @transform_2, window_bounds = array<i64: 5, 192, 224>}, {pipeline_mode = #tpu.pipeline_mode<synchronous>, transform_indices = @transform_3, window_bounds = array<i64: 1, 240>}, {pipeline_mode = #tpu.pipeline_mode<synchronous>, transform_indices = @transform_4, window_bounds = array<i64: 2, 240, 120>}, {pipeline_mode = #tpu.pipeline_mode<synchronous>, transform_indices = @transform_5, window_bounds = array<i64: 2, 96, 192>}, {pipeline_mode = #tpu.pipeline_mode<synchronous>, transform_indices = @transform_6, window_bounds = array<i64: 120, 800>}, {pipeline_mode = #tpu.pipeline_mode<synchronous>, transform_indices = @transform_7, window_bounds = array<i64: 5, 64, 96>}, {pipeline_mode = #tpu.pipeline_mode<synchronous>, transform_indices = @transform_8, window_bounds = array<i64: 1, 160>}, {pipeline_mode = #tpu.pipeline_mode<synchronous>, transform_indices = @transform_9, window_bounds = array<i64: 2, 160, 80>}, {pipeline_mode = #tpu.pipeline_mode<synchronous>, transform_indices = @transform_10, window_bounds = array<i64: 2, 32, 64>}, {pipeline_mode = #tpu.pipeline_mode<synchronous>, transform_indices = @transform_11, window_bounds = array<i64: 4, 8, 32>}, {pipeline_mode = #tpu.pipeline_mode<synchronous>, transform_indices = @transform_12, window_bounds = array<i64: 4, 80, 10>}, {pipeline_mode = #tpu.pipeline_mode<synchronous>, transform_indices = @transform_13, window_bounds = array<i64: 1, 10>}, {transform_indices = @transform_14, window_bounds = array<i64: 8, 10>}]} {
    %c0 = arith.constant 0 : index
    %c0_0 = arith.constant 0 : index
    %0 = vector.load %arg1[%c0, %c0_0] : memref<224x28xf32, #tpu.memory_space<vmem>>, vector<224x28xf32>
    %c0_1 = arith.constant 0 : index
    %c0_2 = arith.constant 0 : index
    %c0_3 = arith.constant 0 : index
    %1 = vector.load %arg3[%c0_1, %c0_2, %c0_3] : memref<5x192x224xf32, #tpu.memory_space<vmem>>, vector<1x192x224xf32>
    %2 = vector.shape_cast %1 : vector<1x192x224xf32> to vector<192x224xf32>
    %cst = arith.constant dense<0.000000e+00> : vector<192x28xf32>
    %3 = tpu.matmul %2, %0, %cst {dimension_numbers = #tpu.dot_dimension_numbers<[1], [0], [0], [1], [0, 0, 1, 1], [], []>} : vector<192x224xf32>, vector<224x28xf32>, vector<192x28xf32> -> vector<192x28xf32>
    %c0_4 = arith.constant 0 : index
    %c0_5 = arith.constant 0 : index
    %4 = vector.load %arg2[%c0_4, %c0_5] : memref<28x1200xf32, #tpu.memory_space<vmem>>, vector<28x240xf32>
    %cst_6 = arith.constant dense<0.000000e+00> : vector<192x240xf32>
    %5 = tpu.matmul %3, %4, %cst_6 {dimension_numbers = #tpu.dot_dimension_numbers<[1], [0], [0], [1], [0, 0, 1, 1], [], []>} : vector<192x28xf32>, vector<28x240xf32>, vector<192x240xf32> -> vector<192x240xf32>
    %c1 = arith.constant 1 : index
    %c0_7 = arith.constant 0 : index
    %c0_8 = arith.constant 0 : index
    %6 = vector.load %arg3[%c1, %c0_7, %c0_8] : memref<5x192x224xf32, #tpu.memory_space<vmem>>, vector<1x192x224xf32>
    %7 = vector.shape_cast %6 : vector<1x192x224xf32> to vector<192x224xf32>
    %cst_9 = arith.constant dense<0.000000e+00> : vector<192x28xf32>
    %8 = tpu.matmul %7, %0, %cst_9 {dimension_numbers = #tpu.dot_dimension_numbers<[1], [0], [0], [1], [0, 0, 1, 1], [], []>} : vector<192x224xf32>, vector<224x28xf32>, vector<192x28xf32> -> vector<192x28xf32>
    %c0_10 = arith.constant 0 : index
    %c240 = arith.constant 240 : index
    %9 = vector.load %arg2[%c0_10, %c240] : memref<28x1200xf32, #tpu.memory_space<vmem>>, vector<28x240xf32>
    %cst_11 = arith.constant dense<0.000000e+00> : vector<192x240xf32>
    %10 = tpu.matmul %8, %9, %cst_11 {dimension_numbers = #tpu.dot_dimension_numbers<[1], [0], [0], [1], [0, 0, 1, 1], [], []>} : vector<192x28xf32>, vector<28x240xf32>, vector<192x240xf32> -> vector<192x240xf32>
    %11 = arith.addf %5, %10 : vector<192x240xf32>
    %c2 = arith.constant 2 : index
    %c0_12 = arith.constant 0 : index
    %c0_13 = arith.constant 0 : index
    %12 = vector.load %arg3[%c2, %c0_12, %c0_13] : memref<5x192x224xf32, #tpu.memory_space<vmem>>, vector<1x192x224xf32>
    %13 = vector.shape_cast %12 : vector<1x192x224xf32> to vector<192x224xf32>
    %cst_14 = arith.constant dense<0.000000e+00> : vector<192x28xf32>
    %14 = tpu.matmul %13, %0, %cst_14 {dimension_numbers = #tpu.dot_dimension_numbers<[1], [0], [0], [1], [0, 0, 1, 1], [], []>} : vector<192x224xf32>, vector<224x28xf32>, vector<192x28xf32> -> vector<192x28xf32>
    %c0_15 = arith.constant 0 : index
    %c480 = arith.constant 480 : index
    %15 = vector.load %arg2[%c0_15, %c480] : memref<28x1200xf32, #tpu.memory_space<vmem>>, vector<28x240xf32>
    %cst_16 = arith.constant dense<0.000000e+00> : vector<192x240xf32>
    %16 = tpu.matmul %14, %15, %cst_16 {dimension_numbers = #tpu.dot_dimension_numbers<[1], [0], [0], [1], [0, 0, 1, 1], [], []>} : vector<192x28xf32>, vector<28x240xf32>, vector<192x240xf32> -> vector<192x240xf32>
    %17 = arith.addf %11, %16 : vector<192x240xf32>
    %c3 = arith.constant 3 : index
    %c0_17 = arith.constant 0 : index
    %c0_18 = arith.constant 0 : index
    %18 = vector.load %arg3[%c3, %c0_17, %c0_18] : memref<5x192x224xf32, #tpu.memory_space<vmem>>, vector<1x192x224xf32>
    %19 = vector.shape_cast %18 : vector<1x192x224xf32> to vector<192x224xf32>
    %cst_19 = arith.constant dense<0.000000e+00> : vector<192x28xf32>
    %20 = tpu.matmul %19, %0, %cst_19 {dimension_numbers = #tpu.dot_dimension_numbers<[1], [0], [0], [1], [0, 0, 1, 1], [], []>} : vector<192x224xf32>, vector<224x28xf32>, vector<192x28xf32> -> vector<192x28xf32>
    %c0_20 = arith.constant 0 : index
    %c720 = arith.constant 720 : index
    %21 = vector.load %arg2[%c0_20, %c720] : memref<28x1200xf32, #tpu.memory_space<vmem>>, vector<28x240xf32>
    %cst_21 = arith.constant dense<0.000000e+00> : vector<192x240xf32>
    %22 = tpu.matmul %20, %21, %cst_21 {dimension_numbers = #tpu.dot_dimension_numbers<[1], [0], [0], [1], [0, 0, 1, 1], [], []>} : vector<192x28xf32>, vector<28x240xf32>, vector<192x240xf32> -> vector<192x240xf32>
    %23 = arith.addf %17, %22 : vector<192x240xf32>
    %c4 = arith.constant 4 : index
    %c0_22 = arith.constant 0 : index
    %c0_23 = arith.constant 0 : index
    %24 = vector.load %arg3[%c4, %c0_22, %c0_23] : memref<5x192x224xf32, #tpu.memory_space<vmem>>, vector<1x192x224xf32>
    %25 = vector.shape_cast %24 : vector<1x192x224xf32> to vector<192x224xf32>
    %cst_24 = arith.constant dense<0.000000e+00> : vector<192x28xf32>
    %26 = tpu.matmul %25, %0, %cst_24 {dimension_numbers = #tpu.dot_dimension_numbers<[1], [0], [0], [1], [0, 0, 1, 1], [], []>} : vector<192x224xf32>, vector<224x28xf32>, vector<192x28xf32> -> vector<192x28xf32>
    %c0_25 = arith.constant 0 : index
    %c960 = arith.constant 960 : index
    %27 = vector.load %arg2[%c0_25, %c960] : memref<28x1200xf32, #tpu.memory_space<vmem>>, vector<28x240xf32>
    %cst_26 = arith.constant dense<0.000000e+00> : vector<192x240xf32>
    %28 = tpu.matmul %26, %27, %cst_26 {dimension_numbers = #tpu.dot_dimension_numbers<[1], [0], [0], [1], [0, 0, 1, 1], [], []>} : vector<192x28xf32>, vector<28x240xf32>, vector<192x240xf32> -> vector<192x240xf32>
    %29 = arith.addf %23, %28 : vector<192x240xf32>
    %c0_27 = arith.constant 0 : index
    %c0_28 = arith.constant 0 : index
    %30 = vector.load %arg4[%c0_27, %c0_28] : memref<1x240xf32, #tpu.memory_space<vmem>>, vector<1x240xf32>
    %31 = vector.broadcast %30 : vector<1x240xf32> to vector<192x240xf32>
    %32 = arith.addf %29, %31 : vector<192x240xf32>
    %c0_29 = arith.constant 0 : index
    %c0_30 = arith.constant 0 : index
    %c0_31 = arith.constant 0 : index
    %33 = vector.load %arg5[%c0_29, %c0_30, %c0_31] : memref<2x240x120xf32, #tpu.memory_space<vmem>>, vector<1x240x120xf32>
    %34 = vector.shape_cast %33 : vector<1x240x120xf32> to vector<240x120xf32>
    %cst_32 = arith.constant dense<0.000000e+00> : vector<192x120xf32>
    %35 = tpu.matmul %32, %34, %cst_32 {dimension_numbers = #tpu.dot_dimension_numbers<[1], [0], [0], [1], [0, 0, 1, 1], [], []>} : vector<192x240xf32>, vector<240x120xf32>, vector<192x120xf32> -> vector<192x120xf32>
    %c1_33 = arith.constant 1 : index
    %c0_34 = arith.constant 0 : index
    %c0_35 = arith.constant 0 : index
    %36 = vector.load %arg5[%c1_33, %c0_34, %c0_35] : memref<2x240x120xf32, #tpu.memory_space<vmem>>, vector<1x240x120xf32>
    %37 = vector.shape_cast %36 : vector<1x240x120xf32> to vector<240x120xf32>
    %cst_36 = arith.constant dense<0.000000e+00> : vector<192x120xf32>
    %38 = tpu.matmul %32, %37, %cst_36 {dimension_numbers = #tpu.dot_dimension_numbers<[1], [0], [0], [1], [0, 0, 1, 1], [], []>} : vector<192x240xf32>, vector<240x120xf32>, vector<192x120xf32> -> vector<192x120xf32>
    %39 = arith.maximumf %35, %38 : vector<192x120xf32>
    %c0_37 = arith.constant 0 : index
    %c0_38 = arith.constant 0 : index
    %c0_39 = arith.constant 0 : index
    %40 = vector.load %arg6[%c0_37, %c0_38, %c0_39] : memref<2x96x192xf32, #tpu.memory_space<vmem>>, vector<1x96x192xf32>
    %41 = vector.shape_cast %40 : vector<1x96x192xf32> to vector<96x192xf32>
    %cst_40 = arith.constant dense<0.000000e+00> : vector<96x120xf32>
    %42 = tpu.matmul %41, %39, %cst_40 {dimension_numbers = #tpu.dot_dimension_numbers<[1], [0], [0], [1], [0, 0, 1, 1], [], []>} : vector<96x192xf32>, vector<192x120xf32>, vector<96x120xf32> -> vector<96x120xf32>
    %c1_41 = arith.constant 1 : index
    %c0_42 = arith.constant 0 : index
    %c0_43 = arith.constant 0 : index
    %43 = vector.load %arg6[%c1_41, %c0_42, %c0_43] : memref<2x96x192xf32, #tpu.memory_space<vmem>>, vector<1x96x192xf32>
    %44 = vector.shape_cast %43 : vector<1x96x192xf32> to vector<96x192xf32>
    %cst_44 = arith.constant dense<0.000000e+00> : vector<96x120xf32>
    %45 = tpu.matmul %44, %39, %cst_44 {dimension_numbers = #tpu.dot_dimension_numbers<[1], [0], [0], [1], [0, 0, 1, 1], [], []>} : vector<96x192xf32>, vector<192x120xf32>, vector<96x120xf32> -> vector<96x120xf32>
    %46 = arith.maximumf %42, %45 : vector<96x120xf32>
    %cst_45 = arith.constant 0.000000e+00 : f32
    %47 = vector.broadcast %cst_45 : f32 to vector<96x120xf32>
    %48 = arith.maximumf %46, %47 : vector<96x120xf32>
    %c0_46 = arith.constant 0 : index
    %c0_47 = arith.constant 0 : index
    %c0_48 = arith.constant 0 : index
    %49 = vector.load %arg8[%c0_46, %c0_47, %c0_48] : memref<5x64x96xf32, #tpu.memory_space<vmem>>, vector<1x64x96xf32>
    %50 = vector.shape_cast %49 : vector<1x64x96xf32> to vector<64x96xf32>
    %cst_49 = arith.constant dense<0.000000e+00> : vector<64x120xf32>
    %51 = tpu.matmul %50, %48, %cst_49 {dimension_numbers = #tpu.dot_dimension_numbers<[1], [0], [0], [1], [0, 0, 1, 1], [], []>} : vector<64x96xf32>, vector<96x120xf32>, vector<64x120xf32> -> vector<64x120xf32>
    %c0_50 = arith.constant 0 : index
    %c0_51 = arith.constant 0 : index
    %52 = vector.load %arg7[%c0_50, %c0_51] : memref<120x800xf32, #tpu.memory_space<vmem>>, vector<120x160xf32>
    %cst_52 = arith.constant dense<0.000000e+00> : vector<64x160xf32>
    %53 = tpu.matmul %51, %52, %cst_52 {dimension_numbers = #tpu.dot_dimension_numbers<[1], [0], [0], [1], [0, 0, 1, 1], [], []>} : vector<64x120xf32>, vector<120x160xf32>, vector<64x160xf32> -> vector<64x160xf32>
    %c1_53 = arith.constant 1 : index
    %c0_54 = arith.constant 0 : index
    %c0_55 = arith.constant 0 : index
    %54 = vector.load %arg8[%c1_53, %c0_54, %c0_55] : memref<5x64x96xf32, #tpu.memory_space<vmem>>, vector<1x64x96xf32>
    %55 = vector.shape_cast %54 : vector<1x64x96xf32> to vector<64x96xf32>
    %cst_56 = arith.constant dense<0.000000e+00> : vector<64x120xf32>
    %56 = tpu.matmul %55, %48, %cst_56 {dimension_numbers = #tpu.dot_dimension_numbers<[1], [0], [0], [1], [0, 0, 1, 1], [], []>} : vector<64x96xf32>, vector<96x120xf32>, vector<64x120xf32> -> vector<64x120xf32>
    %c0_57 = arith.constant 0 : index
    %c160 = arith.constant 160 : index
    %57 = vector.load %arg7[%c0_57, %c160] : memref<120x800xf32, #tpu.memory_space<vmem>>, vector<120x160xf32>
    %cst_58 = arith.constant dense<0.000000e+00> : vector<64x160xf32>
    %58 = tpu.matmul %56, %57, %cst_58 {dimension_numbers = #tpu.dot_dimension_numbers<[1], [0], [0], [1], [0, 0, 1, 1], [], []>} : vector<64x120xf32>, vector<120x160xf32>, vector<64x160xf32> -> vector<64x160xf32>
    %59 = arith.addf %53, %58 : vector<64x160xf32>
    %c2_59 = arith.constant 2 : index
    %c0_60 = arith.constant 0 : index
    %c0_61 = arith.constant 0 : index
    %60 = vector.load %arg8[%c2_59, %c0_60, %c0_61] : memref<5x64x96xf32, #tpu.memory_space<vmem>>, vector<1x64x96xf32>
    %61 = vector.shape_cast %60 : vector<1x64x96xf32> to vector<64x96xf32>
    %cst_62 = arith.constant dense<0.000000e+00> : vector<64x120xf32>
    %62 = tpu.matmul %61, %48, %cst_62 {dimension_numbers = #tpu.dot_dimension_numbers<[1], [0], [0], [1], [0, 0, 1, 1], [], []>} : vector<64x96xf32>, vector<96x120xf32>, vector<64x120xf32> -> vector<64x120xf32>
    %c0_63 = arith.constant 0 : index
    %c320 = arith.constant 320 : index
    %63 = vector.load %arg7[%c0_63, %c320] : memref<120x800xf32, #tpu.memory_space<vmem>>, vector<120x160xf32>
    %cst_64 = arith.constant dense<0.000000e+00> : vector<64x160xf32>
    %64 = tpu.matmul %62, %63, %cst_64 {dimension_numbers = #tpu.dot_dimension_numbers<[1], [0], [0], [1], [0, 0, 1, 1], [], []>} : vector<64x120xf32>, vector<120x160xf32>, vector<64x160xf32> -> vector<64x160xf32>
    %65 = arith.addf %59, %64 : vector<64x160xf32>
    %c3_65 = arith.constant 3 : index
    %c0_66 = arith.constant 0 : index
    %c0_67 = arith.constant 0 : index
    %66 = vector.load %arg8[%c3_65, %c0_66, %c0_67] : memref<5x64x96xf32, #tpu.memory_space<vmem>>, vector<1x64x96xf32>
    %67 = vector.shape_cast %66 : vector<1x64x96xf32> to vector<64x96xf32>
    %cst_68 = arith.constant dense<0.000000e+00> : vector<64x120xf32>
    %68 = tpu.matmul %67, %48, %cst_68 {dimension_numbers = #tpu.dot_dimension_numbers<[1], [0], [0], [1], [0, 0, 1, 1], [], []>} : vector<64x96xf32>, vector<96x120xf32>, vector<64x120xf32> -> vector<64x120xf32>
    %c0_69 = arith.constant 0 : index
    %c480_70 = arith.constant 480 : index
    %69 = vector.load %arg7[%c0_69, %c480_70] : memref<120x800xf32, #tpu.memory_space<vmem>>, vector<120x160xf32>
    %cst_71 = arith.constant dense<0.000000e+00> : vector<64x160xf32>
    %70 = tpu.matmul %68, %69, %cst_71 {dimension_numbers = #tpu.dot_dimension_numbers<[1], [0], [0], [1], [0, 0, 1, 1], [], []>} : vector<64x120xf32>, vector<120x160xf32>, vector<64x160xf32> -> vector<64x160xf32>
    %71 = arith.addf %65, %70 : vector<64x160xf32>
    %c4_72 = arith.constant 4 : index
    %c0_73 = arith.constant 0 : index
    %c0_74 = arith.constant 0 : index
    %72 = vector.load %arg8[%c4_72, %c0_73, %c0_74] : memref<5x64x96xf32, #tpu.memory_space<vmem>>, vector<1x64x96xf32>
    %73 = vector.shape_cast %72 : vector<1x64x96xf32> to vector<64x96xf32>
    %cst_75 = arith.constant dense<0.000000e+00> : vector<64x120xf32>
    %74 = tpu.matmul %73, %48, %cst_75 {dimension_numbers = #tpu.dot_dimension_numbers<[1], [0], [0], [1], [0, 0, 1, 1], [], []>} : vector<64x96xf32>, vector<96x120xf32>, vector<64x120xf32> -> vector<64x120xf32>
    %c0_76 = arith.constant 0 : index
    %c640 = arith.constant 640 : index
    %75 = vector.load %arg7[%c0_76, %c640] : memref<120x800xf32, #tpu.memory_space<vmem>>, vector<120x160xf32>
    %cst_77 = arith.constant dense<0.000000e+00> : vector<64x160xf32>
    %76 = tpu.matmul %74, %75, %cst_77 {dimension_numbers = #tpu.dot_dimension_numbers<[1], [0], [0], [1], [0, 0, 1, 1], [], []>} : vector<64x120xf32>, vector<120x160xf32>, vector<64x160xf32> -> vector<64x160xf32>
    %77 = arith.addf %71, %76 : vector<64x160xf32>
    %c0_78 = arith.constant 0 : index
    %c0_79 = arith.constant 0 : index
    %78 = vector.load %arg9[%c0_78, %c0_79] : memref<1x160xf32, #tpu.memory_space<vmem>>, vector<1x160xf32>
    %79 = vector.broadcast %78 : vector<1x160xf32> to vector<64x160xf32>
    %80 = arith.addf %77, %79 : vector<64x160xf32>
    %c0_80 = arith.constant 0 : index
    %c0_81 = arith.constant 0 : index
    %c0_82 = arith.constant 0 : index
    %81 = vector.load %arg10[%c0_80, %c0_81, %c0_82] : memref<2x160x80xf32, #tpu.memory_space<vmem>>, vector<1x160x80xf32>
    %82 = vector.shape_cast %81 : vector<1x160x80xf32> to vector<160x80xf32>
    %cst_83 = arith.constant dense<0.000000e+00> : vector<64x80xf32>
    %83 = tpu.matmul %80, %82, %cst_83 {dimension_numbers = #tpu.dot_dimension_numbers<[1], [0], [0], [1], [0, 0, 1, 1], [], []>} : vector<64x160xf32>, vector<160x80xf32>, vector<64x80xf32> -> vector<64x80xf32>
    %c1_84 = arith.constant 1 : index
    %c0_85 = arith.constant 0 : index
    %c0_86 = arith.constant 0 : index
    %84 = vector.load %arg10[%c1_84, %c0_85, %c0_86] : memref<2x160x80xf32, #tpu.memory_space<vmem>>, vector<1x160x80xf32>
    %85 = vector.shape_cast %84 : vector<1x160x80xf32> to vector<160x80xf32>
    %cst_87 = arith.constant dense<0.000000e+00> : vector<64x80xf32>
    %86 = tpu.matmul %80, %85, %cst_87 {dimension_numbers = #tpu.dot_dimension_numbers<[1], [0], [0], [1], [0, 0, 1, 1], [], []>} : vector<64x160xf32>, vector<160x80xf32>, vector<64x80xf32> -> vector<64x80xf32>
    %87 = arith.maximumf %83, %86 : vector<64x80xf32>
    %c0_88 = arith.constant 0 : index
    %c0_89 = arith.constant 0 : index
    %c0_90 = arith.constant 0 : index
    %88 = vector.load %arg11[%c0_88, %c0_89, %c0_90] : memref<2x32x64xf32, #tpu.memory_space<vmem>>, vector<1x32x64xf32>
    %89 = vector.shape_cast %88 : vector<1x32x64xf32> to vector<32x64xf32>
    %cst_91 = arith.constant dense<0.000000e+00> : vector<32x80xf32>
    %90 = tpu.matmul %89, %87, %cst_91 {dimension_numbers = #tpu.dot_dimension_numbers<[1], [0], [0], [1], [0, 0, 1, 1], [], []>} : vector<32x64xf32>, vector<64x80xf32>, vector<32x80xf32> -> vector<32x80xf32>
    %c1_92 = arith.constant 1 : index
    %c0_93 = arith.constant 0 : index
    %c0_94 = arith.constant 0 : index
    %91 = vector.load %arg11[%c1_92, %c0_93, %c0_94] : memref<2x32x64xf32, #tpu.memory_space<vmem>>, vector<1x32x64xf32>
    %92 = vector.shape_cast %91 : vector<1x32x64xf32> to vector<32x64xf32>
    %cst_95 = arith.constant dense<0.000000e+00> : vector<32x80xf32>
    %93 = tpu.matmul %92, %87, %cst_95 {dimension_numbers = #tpu.dot_dimension_numbers<[1], [0], [0], [1], [0, 0, 1, 1], [], []>} : vector<32x64xf32>, vector<64x80xf32>, vector<32x80xf32> -> vector<32x80xf32>
    %94 = arith.maximumf %90, %93 : vector<32x80xf32>
    %cst_96 = arith.constant 0.000000e+00 : f32
    %95 = vector.broadcast %cst_96 : f32 to vector<32x80xf32>
    %96 = arith.maximumf %94, %95 : vector<32x80xf32>
    %c0_97 = arith.constant 0 : index
    %c0_98 = arith.constant 0 : index
    %c0_99 = arith.constant 0 : index
    %97 = vector.load %arg12[%c0_97, %c0_98, %c0_99] : memref<4x8x32xf32, #tpu.memory_space<vmem>>, vector<1x8x32xf32>
    %98 = vector.shape_cast %97 : vector<1x8x32xf32> to vector<8x32xf32>
    %cst_100 = arith.constant dense<0.000000e+00> : vector<8x80xf32>
    %99 = tpu.matmul %98, %96, %cst_100 {dimension_numbers = #tpu.dot_dimension_numbers<[1], [0], [0], [1], [0, 0, 1, 1], [], []>} : vector<8x32xf32>, vector<32x80xf32>, vector<8x80xf32> -> vector<8x80xf32>
    %c0_101 = arith.constant 0 : index
    %c0_102 = arith.constant 0 : index
    %c0_103 = arith.constant 0 : index
    %100 = vector.load %arg13[%c0_101, %c0_102, %c0_103] : memref<4x80x10xf32, #tpu.memory_space<vmem>>, vector<1x80x10xf32>
    %101 = vector.shape_cast %100 : vector<1x80x10xf32> to vector<80x10xf32>
    %cst_104 = arith.constant dense<0.000000e+00> : vector<8x10xf32>
    %102 = tpu.matmul %99, %101, %cst_104 {dimension_numbers = #tpu.dot_dimension_numbers<[1], [0], [0], [1], [0, 0, 1, 1], [], []>} : vector<8x80xf32>, vector<80x10xf32>, vector<8x10xf32> -> vector<8x10xf32>
    %c1_105 = arith.constant 1 : index
    %c0_106 = arith.constant 0 : index
    %c0_107 = arith.constant 0 : index
    %103 = vector.load %arg12[%c1_105, %c0_106, %c0_107] : memref<4x8x32xf32, #tpu.memory_space<vmem>>, vector<1x8x32xf32>
    %104 = vector.shape_cast %103 : vector<1x8x32xf32> to vector<8x32xf32>
    %cst_108 = arith.constant dense<0.000000e+00> : vector<8x80xf32>
    %105 = tpu.matmul %104, %96, %cst_108 {dimension_numbers = #tpu.dot_dimension_numbers<[1], [0], [0], [1], [0, 0, 1, 1], [], []>} : vector<8x32xf32>, vector<32x80xf32>, vector<8x80xf32> -> vector<8x80xf32>
    %c1_109 = arith.constant 1 : index
    %c0_110 = arith.constant 0 : index
    %c0_111 = arith.constant 0 : index
    %106 = vector.load %arg13[%c1_109, %c0_110, %c0_111] : memref<4x80x10xf32, #tpu.memory_space<vmem>>, vector<1x80x10xf32>
    %107 = vector.shape_cast %106 : vector<1x80x10xf32> to vector<80x10xf32>
    %cst_112 = arith.constant dense<0.000000e+00> : vector<8x10xf32>
    %108 = tpu.matmul %105, %107, %cst_112 {dimension_numbers = #tpu.dot_dimension_numbers<[1], [0], [0], [1], [0, 0, 1, 1], [], []>} : vector<8x80xf32>, vector<80x10xf32>, vector<8x10xf32> -> vector<8x10xf32>
    %109 = arith.addf %102, %108 : vector<8x10xf32>
    %c2_113 = arith.constant 2 : index
    %c0_114 = arith.constant 0 : index
    %c0_115 = arith.constant 0 : index
    %110 = vector.load %arg12[%c2_113, %c0_114, %c0_115] : memref<4x8x32xf32, #tpu.memory_space<vmem>>, vector<1x8x32xf32>
    %111 = vector.shape_cast %110 : vector<1x8x32xf32> to vector<8x32xf32>
    %cst_116 = arith.constant dense<0.000000e+00> : vector<8x80xf32>
    %112 = tpu.matmul %111, %96, %cst_116 {dimension_numbers = #tpu.dot_dimension_numbers<[1], [0], [0], [1], [0, 0, 1, 1], [], []>} : vector<8x32xf32>, vector<32x80xf32>, vector<8x80xf32> -> vector<8x80xf32>
    %c2_117 = arith.constant 2 : index
    %c0_118 = arith.constant 0 : index
    %c0_119 = arith.constant 0 : index
    %113 = vector.load %arg13[%c2_117, %c0_118, %c0_119] : memref<4x80x10xf32, #tpu.memory_space<vmem>>, vector<1x80x10xf32>
    %114 = vector.shape_cast %113 : vector<1x80x10xf32> to vector<80x10xf32>
    %cst_120 = arith.constant dense<0.000000e+00> : vector<8x10xf32>
    %115 = tpu.matmul %112, %114, %cst_120 {dimension_numbers = #tpu.dot_dimension_numbers<[1], [0], [0], [1], [0, 0, 1, 1], [], []>} : vector<8x80xf32>, vector<80x10xf32>, vector<8x10xf32> -> vector<8x10xf32>
    %116 = arith.addf %109, %115 : vector<8x10xf32>
    %c3_121 = arith.constant 3 : index
    %c0_122 = arith.constant 0 : index
    %c0_123 = arith.constant 0 : index
    %117 = vector.load %arg12[%c3_121, %c0_122, %c0_123] : memref<4x8x32xf32, #tpu.memory_space<vmem>>, vector<1x8x32xf32>
    %118 = vector.shape_cast %117 : vector<1x8x32xf32> to vector<8x32xf32>
    %cst_124 = arith.constant dense<0.000000e+00> : vector<8x80xf32>
    %119 = tpu.matmul %118, %96, %cst_124 {dimension_numbers = #tpu.dot_dimension_numbers<[1], [0], [0], [1], [0, 0, 1, 1], [], []>} : vector<8x32xf32>, vector<32x80xf32>, vector<8x80xf32> -> vector<8x80xf32>
    %c3_125 = arith.constant 3 : index
    %c0_126 = arith.constant 0 : index
    %c0_127 = arith.constant 0 : index
    %120 = vector.load %arg13[%c3_125, %c0_126, %c0_127] : memref<4x80x10xf32, #tpu.memory_space<vmem>>, vector<1x80x10xf32>
    %121 = vector.shape_cast %120 : vector<1x80x10xf32> to vector<80x10xf32>
    %cst_128 = arith.constant dense<0.000000e+00> : vector<8x10xf32>
    %122 = tpu.matmul %119, %121, %cst_128 {dimension_numbers = #tpu.dot_dimension_numbers<[1], [0], [0], [1], [0, 0, 1, 1], [], []>} : vector<8x80xf32>, vector<80x10xf32>, vector<8x10xf32> -> vector<8x10xf32>
    %123 = arith.addf %116, %122 : vector<8x10xf32>
    %c0_129 = arith.constant 0 : index
    %c0_130 = arith.constant 0 : index
    %124 = vector.load %arg14[%c0_129, %c0_130] : memref<1x10xf32, #tpu.memory_space<vmem>>, vector<1x10xf32>
    %125 = vector.broadcast %124 : vector<1x10xf32> to vector<8x10xf32>
    %126 = arith.addf %123, %125 : vector<8x10xf32>
    %cst_131 = arith.constant dense<0xFF800000> : vector<8xf32>
    %127 = vector.multi_reduction <maximumf>, %126, %cst_131 [1] : vector<8x10xf32> to vector<8xf32>
    %128 = vector.shape_cast %127 : vector<8xf32> to vector<8x1xf32>
    %129 = vector.broadcast %128 : vector<8x1xf32> to vector<8x10xf32>
    %130 = arith.subf %126, %129 : vector<8x10xf32>
    %131 = math.exp %130 : vector<8x10xf32>
    %cst_132 = arith.constant dense<0.000000e+00> : vector<8xf32>
    %132 = vector.multi_reduction <add>, %131, %cst_132 [1] : vector<8x10xf32> to vector<8xf32>
    %133 = vector.shape_cast %132 : vector<8xf32> to vector<8x1xf32>
    %134 = math.log %133 : vector<8x1xf32>
    %135 = vector.broadcast %134 : vector<8x1xf32> to vector<8x10xf32>
    %136 = arith.subf %130, %135 : vector<8x10xf32>
    %c0_133 = arith.constant 0 : index
    %c0_134 = arith.constant 0 : index
    %137 = vector.load %arg15[%c0_133, %c0_134] : memref<8x10xf32, #tpu.memory_space<vmem>>, vector<8x10xf32>
    tpu.vector_store %arg15[%c0_133, %c0_134], %136 {strides = array<i32>} : memref<8x10xf32, #tpu.memory_space<vmem>>, vector<8x10xf32>,
    return
  }
  func.func @transform_0(%arg0: i32) -> (i32, i32) {
    %c0_i32 = arith.constant 0 : i32
    %c0_i32_0 = arith.constant 0 : i32
    return %arg0, %c0_i32 : i32, i32
  }
  func.func @transform_1(%arg0: i32) -> (i32, i32) {
    %c0_i32 = arith.constant 0 : i32
    %c0_i32_0 = arith.constant 0 : i32
    %c0_i32_1 = arith.constant 0 : i32
    return %c0_i32, %c0_i32_0 : i32, i32
  }
  func.func @transform_2(%arg0: i32) -> (i32, i32, i32) {
    %c0_i32 = arith.constant 0 : i32
    %c0_i32_0 = arith.constant 0 : i32
    %c0_i32_1 = arith.constant 0 : i32
    %c0_i32_2 = arith.constant 0 : i32
    return %c0_i32, %c0_i32_0, %c0_i32_1 : i32, i32, i32
  }
  func.func @transform_3(%arg0: i32) -> (i32, i32) {
    %c0_i32 = arith.constant 0 : i32
    %c0_i32_0 = arith.constant 0 : i32
    %c0_i32_1 = arith.constant 0 : i32
    return %c0_i32, %c0_i32_0 : i32, i32
  }
  func.func @transform_4(%arg0: i32) -> (i32, i32, i32) {
    %c0_i32 = arith.constant 0 : i32
    %c0_i32_0 = arith.constant 0 : i32
    %c0_i32_1 = arith.constant 0 : i32
    %c0_i32_2 = arith.constant 0 : i32
    return %c0_i32, %c0_i32_0, %c0_i32_1 : i32, i32, i32
  }
  func.func @transform_5(%arg0: i32) -> (i32, i32, i32) {
    %c0_i32 = arith.constant 0 : i32
    %c0_i32_0 = arith.constant 0 : i32
    %c0_i32_1 = arith.constant 0 : i32
    %c0_i32_2 = arith.constant 0 : i32
    return %c0_i32, %c0_i32_0, %c0_i32_1 : i32, i32, i32
  }
  func.func @transform_6(%arg0: i32) -> (i32, i32) {
    %c0_i32 = arith.constant 0 : i32
    %c0_i32_0 = arith.constant 0 : i32
    %c0_i32_1 = arith.constant 0 : i32
    return %c0_i32, %c0_i32_0 : i32, i32
  }
  func.func @transform_7(%arg0: i32) -> (i32, i32, i32) {
    %c0_i32 = arith.constant 0 : i32
    %c0_i32_0 = arith.constant 0 : i32
    %c0_i32_1 = arith.constant 0 : i32
    %c0_i32_2 = arith.constant 0 : i32
    return %c0_i32, %c0_i32_0, %c0_i32_1 : i32, i32, i32
  }
  func.func @transform_8(%arg0: i32) -> (i32, i32) {
    %c0_i32 = arith.constant 0 : i32
    %c0_i32_0 = arith.constant 0 : i32
    %c0_i32_1 = arith.constant 0 : i32
    return %c0_i32, %c0_i32_0 : i32, i32
  }
  func.func @transform_9(%arg0: i32) -> (i32, i32, i32) {
    %c0_i32 = arith.constant 0 : i32
    %c0_i32_0 = arith.constant 0 : i32
    %c0_i32_1 = arith.constant 0 : i32
    %c0_i32_2 = arith.constant 0 : i32
    return %c0_i32, %c0_i32_0, %c0_i32_1 : i32, i32, i32
  }
  func.func @transform_10(%arg0: i32) -> (i32, i32, i32) {
    %c0_i32 = arith.constant 0 : i32
    %c0_i32_0 = arith.constant 0 : i32
    %c0_i32_1 = arith.constant 0 : i32
    %c0_i32_2 = arith.constant 0 : i32
    return %c0_i32, %c0_i32_0, %c0_i32_1 : i32, i32, i32
  }
  func.func @transform_11(%arg0: i32) -> (i32, i32, i32) {
    %c0_i32 = arith.constant 0 : i32
    %c0_i32_0 = arith.constant 0 : i32
    %c0_i32_1 = arith.constant 0 : i32
    %c0_i32_2 = arith.constant 0 : i32
    return %c0_i32, %c0_i32_0, %c0_i32_1 : i32, i32, i32
  }
  func.func @transform_12(%arg0: i32) -> (i32, i32, i32) {
    %c0_i32 = arith.constant 0 : i32
    %c0_i32_0 = arith.constant 0 : i32
    %c0_i32_1 = arith.constant 0 : i32
    %c0_i32_2 = arith.constant 0 : i32
    return %c0_i32, %c0_i32_0, %c0_i32_1 : i32, i32, i32
  }
  func.func @transform_13(%arg0: i32) -> (i32, i32) {
    %c0_i32 = arith.constant 0 : i32
    %c0_i32_0 = arith.constant 0 : i32
    %c0_i32_1 = arith.constant 0 : i32
    return %c0_i32, %c0_i32_0 : i32, i32
  }
  func.func @transform_14(%arg0: i32) -> (i32, i32) {
    %c0_i32 = arith.constant 0 : i32
    %c0_i32_0 = arith.constant 0 : i32
    return %arg0, %c0_i32 : i32, i32
  }
}

</mosaic_0001>

<bundles_post_ra>
// kernel: tile.13
= control target key start
LH: loop header
LB: loop body
LE: loop exit
PB: predicated region body
PF: predicated region fallthrough
CT: control target
= control target key end

     0   :  { %s34_s0 = inlined_call_operand.vmem [shape: f32[10], index: 0, kind: input, shape index: {}]   ;;  %s35_s1 = inlined_call_operand.vmem [shape: f32[24,10], index: 1, kind: output, shape index: {}]  }
   0x1   :  { %v4_v0 = vld [vmem:[%s34_s0] ss:$0 sm:$0xff] }
   0x2   :  { %5 = vst [vmem:[%s35_s1] sm:$0xff] %v4_v0  ;;  %10 = vst [vmem:[%s35_s1 + $0x8] sm:$0xff] %v4_v0 }
   0x3   :  { %11 = vst [vmem:[%s35_s1 + $0x10] sm:$0xff] %v4_v0 }

// kernel: tile.14
= control target key start
LH: loop header
LB: loop body
LE: loop exit
PB: predicated region body
PF: predicated region fallthrough
CT: control target
= control target key end

     0   :  { %vm9_vm0 = vcmask 64512   ;;  %s223_s12 = smov 120   ;;  %s224_s13 = smov 102   ;;  %vm3_vm1 = vcmask 80896   ;;  %vm13_vm2 = vcmask 15360   ;;  %vm16_vm3 = vcmask 1048512   ;;  %s337_s0 = inlined_call_operand.vmem [shape: f32[24,10], index: 0, kind: input, shape index: {}]   ;;  %s338_s1 = inlined_call_operand.vmem [shape: f32[1,240], index: 1, kind: output, shape index: {}]  }
   0x1   :  { %v175_v0 = vld [vmem:[%s337_s0 + $0xc] sm:$0x1]   ;;  %v178_v3 = vld [vmem:[%s337_s0 + $0x17] sm:$0x1]   ;;  %v177_v4 = vld [vmem:[%s337_s0 + $0xb] sm:$0x1]  }
   0x2   :  { %v176_v1 = vld [vmem:[%s337_s0 + $0xc] sm:$0x1]   ;;  %26 = vrot.lane.b32.xlu1 %v178_v3, %s224_s13  ;;  %v179_v5 = vld [vmem:[%s337_s0 + $0xa] sm:$0x1]   ;;  %s225_s18 = smov 110   ;;  %s226_s19 = smov 100  }
   0x3   :  { %v10_v2 = vsel %vm9_vm0, %v176_v1, %v175_v0  ;;  %v180_v6 = vld [vmem:[%s337_s0 + $0x16] sm:$0x1]   ;;  %v181_v7 = vld [vmem:[%s337_s0 + $0x9] sm:$0x1]   ;;  %s227_s24 = smov 92   ;;  %s228_s25 = smov 90  }
   0x4   :  { %11 = vrot.lane.b32.xlu0 %v10_v2, %s223_s12  ;;  %v182_v8 = vld [vmem:[%s337_s0 + $0x15] sm:$0x1]   ;;  %v183_v9 = vld [vmem:[%s337_s0 + $0x8] sm:$0x1]   ;;  %v2_v10 = vld [vmem:[%s337_s0] sm:$0x1]  }
   0x5   :  { %4 = vst.msk [vmem:[#allocation0] sm:$0x1] %vm3_vm1, %v2_v10   ;;  %s229_s3 = smov 82   ;;  %s230_s4 = smov 80   ;;  %v184_v11 = vld [vmem:[%s337_s0 + $0x14] sm:$0x1]  }
   0x6   :  { %33 = vrot.lane.b32.xlu1 %v179_v5, %s226_s19  ;;  %v185_v12 = vld [vmem:[%s337_s0 + $0x7] sm:$0x1]   ;;  %s231_s9 = smov 72   ;;  %s232_s10 = smov 70   ;;  %v186_v13 = vld [vmem:[%s337_s0 + $0x13] sm:$0x1]  }
   0x7   :  { %v187_v14 = vld [vmem:[%s337_s0 + $0x6] sm:$0x1]   ;;  %s233_s15 = smov 62   ;;  %s234_s16 = smov 60   ;;  %v188_v15 = vld [vmem:[%s337_s0 + $0x12] sm:$0x1]  }
   0x8   :  { %20 = vrot.lane.b32.xlu0 %v177_v4, %s225_s18  ;;  %v189_v16 = vld [vmem:[%s337_s0 + $0x5] sm:$0x1]   ;;  %s235_s21 = smov 52   ;;  %s236_s22 = smov 50   ;;  %v190_v17 = vld [vmem:[%s337_s0 + $0x11] sm:$0x1]  }
   0x9   :  { %v191_v18 = vld [vmem:[%s337_s0 + $0x4] sm:$0x1]   ;;  %s237_s27 = smov 42   ;;  %s238_s28 = smov 40   ;;  %v192_v19 = vld [vmem:[%s337_s0 + $0x10] sm:$0x1]  }
   0xa   :  { %46 = vrot.lane.b32.xlu1 %v181_v7, %s228_s25  ;;  %v193_v20 = vld [vmem:[%s337_s0 + $0x3] sm:$0x1]   ;;  %s240_s5 = smov 30   ;;  %v194_v21 = vld [vmem:[%s337_s0 + $0xf] sm:$0x1]   ;;  %s242_s11 = smov 20  }
   0xb   :  { %v195_v22 = vld [vmem:[%s337_s0 + $0x2] sm:$0x1]   ;;  %v196_v23 = vld [vmem:[%s337_s0 + $0xe] sm:$0x1]   ;;  %v197_v24 = vld [vmem:[%s337_s0 + $0x1] sm:$0x1]  }
   0xc   :  { %39 = vrot.lane.b32.xlu0 %v180_v6, %s227_s24  ;;  %s244_s17 = smov 10   ;;  %v198_v25 = vld [vmem:[%s337_s0 + $0xd] sm:$0x1]   ;;  %s245_s0 = smov 2   ;;  %vm28_vm4 = vcmask 917296   ;;  %vm22_vm5 = vcmask 982896  }
   0xd   :  { %vm35_vm6 = vcmask 900896   ;;  %vm41_vm7 = vcmask 835296   ;;  %vm48_vm8 = vcmask 818896   ;;  %vm54_vm9 = vcmask 753296  }
   0xe   :  { %59 = vrot.lane.b32.xlu1 %v183_v9, %s230_s4  ;;  %s239_s4 = smov 32   ;;  %vm61_vm10 = vcmask 736896   ;;  %vm67_vm11 = vcmask 671296   ;;  %vm74_vm12 = vcmask 654896   ;;  %vm80_vm13 = vcmask 589296  }
   0xf   :  { %vm87_vm14 = vcmask 572896   ;;  %vm93_vm15 = vcmask 507296   ;;  %vm100_vm0 = vcmask 490896   ;;  %vm106_vm1 = vcmask 425296  }
  0x10   :  { %52 = vrot.lane.b32.xlu0 %v182_v8, %s229_s3 }
  0x12   :  { %72 = vrot.lane.b32.xlu1 %v185_v12, %s232_s10  ;;  %s241_s10 = smov 22  }
  0x14   :  { %65 = vrot.lane.b32.xlu0 %v184_v11, %s231_s9 }
  0x16   :  { %85 = vrot.lane.b32.xlu1 %v187_v14, %s234_s16  ;;  %s243_s16 = smov 12  }
  0x18   :  { %78 = vrot.lane.b32.xlu0 %v186_v13, %s233_s15 }
  0x1a   :  { %98 = vrot.lane.b32.xlu1 %v189_v16, %s236_s22 }
  0x1c   :  { %91 = vrot.lane.b32.xlu0 %v188_v15, %s235_s21 }
  0x1e   :  { %111 = vrot.lane.b32.xlu1 %v191_v18, %s238_s28 }
  0x20   :  { %104 = vrot.lane.b32.xlu0 %v190_v17, %s237_s27 }
  0x22   :  { %124 = vrot.lane.b32.xlu1 %v193_v20, %s240_s5 }
  0x24   :  { %117 = vrot.lane.b32.xlu0 %v192_v19, %s239_s4 }
  0x26   :  { %137 = vrot.lane.b32.xlu1 %v195_v22, %s242_s11 }
  0x28   :  { %130 = vrot.lane.b32.xlu0 %v194_v21, %s241_s10 }
  0x2a   :  { %150 = vrot.lane.b32.xlu1 %v197_v24, %s244_s17 }
  0x2c   :  { %143 = vrot.lane.b32.xlu0 %v196_v23, %s243_s16 }
  0x30   :  { %156 = vrot.lane.b32.xlu0 %v198_v25, %s245_s0 }
  0x74   :  { %v27_v27 = vpop.permute.xlu1 %26  }
  0x76   :  { %v12_v26 = vpop.permute.xlu0 %11  }
  0x77   :  { %15 = vst.msk [vmem:[#allocation0 + $0x8] sm:$0x1] %vm13_vm2, %v12_v26   ;;  %vm113_vm2 = vcmask 408896  }
  0x78   :  { %17 = vst.msk [vmem:[#allocation0] sm:$0x1] %vm16_vm3, %v12_v26   ;;  %v34_v29 = vpop.permute.xlu1 %33   ;;  %vm119_vm3 = vcmask 343296  }
  0x79   :  { %30 = vst.msk [vmem:[#allocation0 + $0x8] sm:$0x1] %vm28_vm4, %v27_v27   ;;  %vm126_vm4 = vcmask 326896  }
  0x7a   :  { %v21_v28 = vpop.permute.xlu0 %20  }
  0x7b   :  { %23 = vst.msk [vmem:[#allocation0] sm:$0x1] %vm22_vm5, %v21_v28   ;;  %vm132_vm5 = vcmask 261296  }
  0x7c   :  { %36 = vst.msk [vmem:[#allocation0] sm:$0x1] %vm35_vm6, %v34_v29   ;;  %v47_v31 = vpop.permute.xlu1 %46   ;;  %vm139_vm6 = vcmask 244896  }
  0x7d   :  { %49 = vst.msk [vmem:[#allocation0] sm:$0x1] %vm48_vm8, %v47_v31   ;;  %vm152_vm8 = vcmask 162896  }
  0x7e   :  { %v40_v30 = vpop.permute.xlu0 %39  }
  0x7f   :  { %43 = vst.msk [vmem:[#allocation0 + $0x8] sm:$0x1] %vm41_vm7, %v40_v30   ;;  %vm145_vm7 = vcmask 179296  }
  0x80   :  { %v60_v33 = vpop.permute.xlu1 %59  }
  0x81   :  { %62 = vst.msk [vmem:[#allocation0] sm:$0x1] %vm61_vm10, %v60_v33  }
  0x82   :  { %v53_v32 = vpop.permute.xlu0 %52  }
  0x83   :  { %56 = vst.msk [vmem:[#allocation0 + $0x8] sm:$0x1] %vm54_vm9, %v53_v32   ;;  %vm158_vm9 = vcmask 97296  }
  0x84   :  { %v73_v35 = vpop.permute.xlu1 %72  }
  0x85   :  { %75 = vst.msk [vmem:[#allocation0] sm:$0x1] %vm74_vm12, %v73_v35  }
  0x86   :  { %v66_v34 = vpop.permute.xlu0 %65  }
  0x87   :  { %69 = vst.msk [vmem:[#allocation0 + $0x8] sm:$0x1] %vm67_vm11, %v66_v34  }
  0x88   :  { %v86_v37 = vpop.permute.xlu1 %85  }
  0x89   :  { %88 = vst.msk [vmem:[#allocation0] sm:$0x1] %vm87_vm14, %v86_v37  }
  0x8a   :  { %v79_v36 = vpop.permute.xlu0 %78  }
  0x8b   :  { %82 = vst.msk [vmem:[#allocation0 + $0x8] sm:$0x1] %vm80_vm13, %v79_v36  }
  0x8c   :  { %v99_v39 = vpop.permute.xlu1 %98  }
  0x8d   :  { %101 = vst.msk [vmem:[#allocation0] sm:$0x1] %vm100_vm0, %v99_v39  }
  0x8e   :  { %v92_v38 = vpop.permute.xlu0 %91  }
  0x8f   :  { %95 = vst.msk [vmem:[#allocation0 + $0x8] sm:$0x1] %vm93_vm15, %v92_v38  }
  0x90   :  { %v112_v41 = vpop.permute.xlu1 %111  }
  0x91   :  { %114 = vst.msk [vmem:[#allocation0] sm:$0x1] %vm113_vm2, %v112_v41  }
  0x92   :  { %v105_v40 = vpop.permute.xlu0 %104  }
  0x93   :  { %108 = vst.msk [vmem:[#allocation0 + $0x8] sm:$0x1] %vm106_vm1, %v105_v40  }
  0x94   :  { %v125_v43 = vpop.permute.xlu1 %124  }
  0x95   :  { %127 = vst.msk [vmem:[#allocation0] sm:$0x1] %vm126_vm4, %v125_v43  }
  0x96   :  { %v118_v42 = vpop.permute.xlu0 %117  }
  0x97   :  { %121 = vst.msk [vmem:[#allocation0 + $0x8] sm:$0x1] %vm119_vm3, %v118_v42  }
  0x98   :  { %v138_v45 = vpop.permute.xlu1 %137  }
  0x99   :  { %140 = vst.msk [vmem:[#allocation0] sm:$0x1] %vm139_vm6, %v138_v45  }
  0x9a   :  { %v131_v44 = vpop.permute.xlu0 %130  }
  0x9b   :  { %134 = vst.msk [vmem:[#allocation0 + $0x8] sm:$0x1] %vm132_vm5, %v131_v44  }
  0x9c   :  { %v151_v47 = vpop.permute.xlu1 %150  }
  0x9d   :  { %153 = vst.msk [vmem:[#allocation0] sm:$0x1] %vm152_vm8, %v151_v47  }
  0x9e   :  { %v144_v46 = vpop.permute.xlu0 %143  }
  0x9f   :  { %147 = vst.msk [vmem:[#allocation0 + $0x8] sm:$0x1] %vm145_vm7, %v144_v46  }
  0xa2   :  { %v157_v48 = vpop.permute.xlu0 %156  }
  0xa3   :  { %160 = vst.msk [vmem:[#allocation0 + $0x8] sm:$0x1] %vm158_vm9, %v157_v48  }
  0xa4   :  { %v165_v49 = vld [vmem:[#allocation0] sm:$0x1] }
  0xa5   :  { %168 = vst [vmem:[%s338_s1] sm:$0x1] %v165_v49 }
  0xaa   :  { %v170_v50 = vld [vmem:[#allocation0 + $0x8] sm:$0x1] }
  0xab   :  { %199 = vst [vmem:[%s338_s1 + $0x1] sm:$0x1] %v170_v50 }

// kernel: tile.18
= control target key start
LH: loop header
LB: loop body
LE: loop exit
PB: predicated region body
PF: predicated region fallthrough
CT: control target
= control target key end

     0   :  { %s22_s0 = inlined_call_operand.vmem [shape: f32[20], index: 0, kind: input, shape index: {}]   ;;  %s23_s1 = inlined_call_operand.vmem [shape: f32[8,20], index: 1, kind: output, shape index: {}]  }
   0x1   :  { %v4_v0 = vld [vmem:[%s22_s0] ss:$0 sm:$0xff] }
   0x2   :  { %5 = vst [vmem:[%s23_s1] sm:$0xff] %v4_v0 }

// kernel: tile.19
= control target key start
LH: loop header
LB: loop body
LE: loop exit
PB: predicated region body
PF: predicated region fallthrough
CT: control target
= control target key end

     0   :  { %vm9_vm0 = vcmask 64512   ;;  %s85_s12 = smov 120   ;;  %s86_s13 = smov 80   ;;  %vm3_vm1 = vcmask 162816   ;;  %vm13_vm2 = vcmask 97280   ;;  %vm16_vm3 = vcmask 1048512   ;;  %s135_s0 = inlined_call_operand.vmem [shape: f32[8,20], index: 0, kind: input, shape index: {}]   ;;  %s136_s1 = inlined_call_operand.vmem [shape: f32[1,160], index: 1, kind: output, shape index: {}]  }
   0x1   :  { %v69_v0 = vld [vmem:[%s135_s0 + $0x6] sm:$0x1]   ;;  %v72_v3 = vld [vmem:[%s135_s0 + $0x4] sm:$0x1]   ;;  %v71_v4 = vld [vmem:[%s135_s0 + $0x5] sm:$0x1]  }
   0x2   :  { %v70_v1 = vld [vmem:[%s135_s0 + $0x6] sm:$0x1]   ;;  %26 = vrot.lane.b32.xlu1 %v72_v3, %s86_s13  ;;  %v73_v5 = vld [vmem:[%s135_s0 + $0x3] sm:$0x1]   ;;  %v2_v6 = vld [vmem:[%s135_s0] sm:$0x1]  }
   0x3   :  { %v10_v2 = vsel %vm9_vm0, %v70_v1, %v69_v0  ;;  %4 = vst.msk [vmem:[#allocation0] sm:$0x1] %vm3_vm1, %v2_v6   ;;  %s87_s20 = smov 100   ;;  %s88_s21 = smov 60   ;;  %v74_v7 = vld [vmem:[%s135_s0 + $0x2] sm:$0x1]  }
   0x4   :  { %11 = vrot.lane.b32.xlu0 %v10_v2, %s85_s12  ;;  %v75_v8 = vld [vmem:[%s135_s0 + $0x1] sm:$0x1]   ;;  %s89_s26 = smov 40   ;;  %s90_s27 = smov 20   ;;  %v76_v9 = vld [vmem:[%s135_s0 + $0x7] sm:$0x1]  }
   0x5   :  { %s91_s0 = smov 12   ;;  %vm22_vm4 = vcmask 982816   ;;  %vm28_vm5 = vcmask 818816   ;;  %vm34_vm6 = vcmask 654816   ;;  %vm40_vm7 = vcmask 490816  }
   0x6   :  { %32 = vrot.lane.b32.xlu1 %v73_v5, %s88_s21  ;;  %vm46_vm8 = vcmask 326816   ;;  %vm52_vm9 = vcmask 261216  }
   0x8   :  { %20 = vrot.lane.b32.xlu0 %v71_v4, %s87_s20 }
   0xa   :  { %44 = vrot.lane.b32.xlu1 %v75_v8, %s90_s27 }
   0xc   :  { %38 = vrot.lane.b32.xlu0 %v74_v7, %s89_s26 }
  0x10   :  { %50 = vrot.lane.b32.xlu0 %v76_v9, %s91_s0 }
  0x74   :  { %v27_v11 = vpop.permute.xlu1 %26  }
  0x76   :  { %v12_v10 = vpop.permute.xlu0 %11  }
  0x77   :  { %15 = vst.msk [vmem:[#allocation0 + $0x8] sm:$0x1] %vm13_vm2, %v12_v10  }
  0x78   :  { %17 = vst.msk [vmem:[#allocation0] sm:$0x1] %vm16_vm3, %v12_v10   ;;  %v33_v13 = vpop.permute.xlu1 %32  }
  0x7a   :  { %v21_v12 = vpop.permute.xlu0 %20  }
  0x7b   :  { %23 = vst.msk [vmem:[#allocation0] sm:$0x1] %vm22_vm4, %v21_v12  }
  0x7c   :  { %29 = vst.msk [vmem:[#allocation0] sm:$0x1] %vm28_vm5, %v27_v11   ;;  %v45_v15 = vpop.permute.xlu1 %44  }
  0x7d   :  { %35 = vst.msk [vmem:[#allocation0] sm:$0x1] %vm34_vm6, %v33_v13  }
  0x7e   :  { %v39_v14 = vpop.permute.xlu0 %38  }
  0x7f   :  { %41 = vst.msk [vmem:[#allocation0] sm:$0x1] %vm40_vm7, %v39_v14  }
  0x80   :  { %47 = vst.msk [vmem:[#allocation0] sm:$0x1] %vm46_vm8, %v45_v15  }
  0x82   :  { %v51_v16 = vpop.permute.xlu0 %50  }
  0x83   :  { %54 = vst.msk [vmem:[#allocation0 + $0x8] sm:$0x1] %vm52_vm9, %v51_v16  }
  0x87   :  { %v59_v17 = vld [vmem:[#allocation0] sm:$0x1] }
  0x88   :  { %62 = vst [vmem:[%s136_s1] sm:$0x1] %v59_v17 }
  0x8a   :  { %v64_v18 = vld [vmem:[#allocation0 + $0x8] sm:$0x1] }
  0x8b   :  { %77 = vst [vmem:[%s136_s1 + $0x1] sm:$0x1] %v64_v18 }

// kernel: net_cnn_forward.1
= control target key start
LH: loop header
LB: loop body
LE: loop exit
PB: predicated region body
PF: predicated region fallthrough
CT: control target
= control target key end

     0   :  { %v13782_v0 = vmov 0.0   ;;  %vm123_vm0 = vcmask 785408   ;;  %s8950_s29 = smov 16   ;;  %vm831_vm1 = vcmask 1043456   ;;  %vm743_vm2 = vcmask 130048   ;;  %s8951_s30 = smov 32   ;;  %s13767_s0 = inlined_call_operand.vmem [shape: f32[224,28], index: 0, kind: input, shape index: {}]   ;;  %s13768_s2 = inlined_call_operand.vmem [shape: f32[5,192,224], index: 2, kind: input, shape index: {}]   ;;  %s13769_s1 = inlined_call_operand.vmem [shape: f32[28,1200], index: 1, kind: input, shape index: {}]   ;;  %s13770_s4 = inlined_call_operand.vmem [shape: f32[2,240,120], index: 4, kind: input, shape index: {}]   ;;  %s13771_s3 = inlined_call_operand.vmem [shape: f32[1,240], index: 3, kind: input, shape index: {}]   ;;  %s13772_s5 = inlined_call_operand.vmem [shape: f32[2,96,192], index: 5, kind: input, shape index: {}]   ;;  %s13773_s6 = inlined_call_operand.vmem [shape: f32[120,800], index: 6, kind: input, shape index: {}]   ;;  %s13774_s7 = inlined_call_operand.vmem [shape: f32[5,64,96], index: 7, kind: input, shape index: {}]   ;;  %s13775_s9 = inlined_call_operand.vmem [shape: f32[2,160,80], index: 9, kind: input, shape index: {}]   ;;  %s13776_s8 = inlined_call_operand.vmem [shape: f32[1,160], index: 8, kind: input, shape index: {}]   ;;  %s13777_s10 = inlined_call_operand.vmem [shape: f32[2,32,64], index: 10, kind: input, shape index: {}]   ;;  %s13778_s11 = inlined_call_operand.vmem [shape: f32[4,8,32], index: 11, kind: input, shape index: {}]   ;;  %s13779_s12 = inlined_call_operand.vmem [shape: f32[4,80,10], index: 12, kind: input, shape index: {}]   ;;  %s13780_s13 = inlined_call_operand.vmem [shape: f32[1,10], index: 13, kind: input, shape index: {}]   ;;  %s13781_s14 = inlined_call_operand.vmem [shape: f32[8,10], index: 14, kind: output, shape index: {}]  }
   0x1   :  { %196 = vmatprep.subr.mxu0 %v13782_v0  ;;  %510 = vmatprep.subr.mxu1 %v13782_v0  ;;  %v9036_v1 = vld [vmem:[%s13767_s0 + $0x78] sm:$0xff]  ;;  %v9041_v2 = vld [vmem:[%s13767_s0 + $0x70] sm:$0xff]  ;;  %v9050_v3 = vld [vmem:[%s13767_s0 + $0x68] sm:$0xff]  ;;  %vm758_vm3 = vcmask 228352   ;;  %s8952_s19 = smov 48   ;;  %vm1686_vm4 = vcmask 261120  }
   0x2   :  { %197 = vmatpush1.msra.mxu0 %v9036_v1  ;;  %511 = vmatpush1.msra.mxu1 %v9036_v1  ;;  %v9059_v4 = vld [vmem:[%s13767_s0 + $0x60] sm:$0xff]  ;;  %v9068_v5 = vld [vmem:[%s13767_s0 + $0x58] sm:$0xff]  ;;  %v9077_v6 = vld [vmem:[%s13767_s0 + $0x50] sm:$0xff]  ;;  %s8953_s25 = smov 64   ;;  %vm2388_vm5 = vcmask 392192   ;;  %vm3090_vm6 = vcmask 523264  }
   0x3   :  { %198 = vmatprep.subr.mxu0 %v13782_v0  ;;  %512 = vmatprep.subr.mxu1 %v13782_v0  ;;  %v9086_v7 = vld [vmem:[%s13767_s0 + $0x48] sm:$0xff]  ;;  %v9095_v8 = vld [vmem:[%s13767_s0 + $0x40] sm:$0xff]  ;;  %v9104_v9 = vld [vmem:[%s13767_s0 + $0x38] sm:$0xff]  ;;  %vm3528_vm7 = vcmask 916480   ;;  %s8954_s23 = smov 96   ;;  %vm4891_vm8 = vcmask 982016  }
   0x4   :  { %199 = vmatpush1.msra.mxu0 %v9041_v2  ;;  %513 = vmatpush1.msra.mxu1 %v9041_v2  ;;  %v9113_v10 = vld [vmem:[%s13767_s0 + $0x30] sm:$0xff]  ;;  %v9122_v11 = vld [vmem:[%s13767_s0 + $0x28] sm:$0xff]  ;;  %v9131_v12 = vld [vmem:[%s13767_s0 + $0x20] sm:$0xff]  ;;  %vm8955_vm9 = vmmov 0   ;;  %vm7091_vm10 = vcmask 654336   ;;  %vm7566_vm11 = vcmask 80896  }
   0x5   :  { %200 = vmatprep.subr.mxu0 %v13782_v0  ;;  %514 = vmatprep.subr.mxu1 %v13782_v0  ;;  %v9140_v13 = vld [vmem:[%s13767_s0 + $0x18] sm:$0xff]  ;;  %v9149_v14 = vld [vmem:[%s13767_s0 + $0x10] sm:$0xff]  ;;  %v9158_v15 = vld [vmem:[%s13767_s0 + $0x8] sm:$0xff] }
   0x6   :  { %201 = vmatpush1.msra.mxu0 %v9050_v3  ;;  %515 = vmatpush1.msra.mxu1 %v9050_v3  ;;  %v47_v16 = vld [vmem:[%s13767_s0] sm:$0xff]  ;;  %v74_v17 = vld [vmem:[%s13767_s0 + $0xd8] sm:$0xff]  ;;  %v73_v18 = vld [vmem:[%s13767_s0 + $0xd0] sm:$0xff] }
   0x7   :  { %202 = vmatprep.subr.mxu0 %v13782_v0  ;;  %516 = vmatprep.subr.mxu1 %v13782_v0  ;;  %v72_v19 = vld [vmem:[%s13767_s0 + $0xc8] sm:$0xff]  ;;  %v71_v20 = vld [vmem:[%s13767_s0 + $0xc0] sm:$0xff]  ;;  %v70_v21 = vld [vmem:[%s13767_s0 + $0xb8] sm:$0xff] }
   0x8   :  { %203 = vmatpush1.msra.mxu0 %v9059_v4  ;;  %517 = vmatpush1.msra.mxu1 %v9059_v4  ;;  %v69_v22 = vld [vmem:[%s13767_s0 + $0xb0] sm:$0xff]  ;;  %v68_v23 = vld [vmem:[%s13767_s0 + $0xa8] sm:$0xff]  ;;  %v67_v24 = vld [vmem:[%s13767_s0 + $0xa0] sm:$0xff] }
   0x9   :  { %204 = vmatprep.subr.mxu0 %v13782_v0  ;;  %518 = vmatprep.subr.mxu1 %v13782_v0  ;;  %v66_v25 = vld [vmem:[%s13767_s0 + $0x98] sm:$0xff]  ;;  %v65_v26 = vld [vmem:[%s13767_s0 + $0x90] sm:$0xff]  ;;  %v64_v27 = vld [vmem:[%s13767_s0 + $0x88] sm:$0xff] }
   0xa   :  { %205 = vmatpush1.msra.mxu0 %v9068_v5  ;;  %519 = vmatpush1.msra.mxu1 %v9068_v5  ;;  %v63_v28 = vld [vmem:[%s13767_s0 + $0x80] sm:$0xff]  ;;  %v76_v29 = vld [vmem:[%s13768_s2 + $0x8] sm:$0xff]  ;;  %v78_v33 = vld [vmem:[%s13768_s2 + $0x18] sm:$0xff] }
   0xb   :  { %206 = vmatprep.subr.mxu0 %v13782_v0  ;;  %520 = vmatprep.subr.mxu1 %v13782_v0  ;;  %v7609_v30 = vld [vmem:[%s13768_s2 + $0x188] sm:$0xff]  ;;  %v75_v31 = vld [vmem:[%s13768_s2] sm:$0xff]  ;;  %v7611_v34 = vld [vmem:[%s13768_s2 + $0x198] sm:$0xff] }
   0xc   :  { %207 = vmatpush1.msra.mxu0 %v9077_v6  ;;  %521 = vmatpush1.msra.mxu1 %v9077_v6  ;;  %v7608_v32 = vld [vmem:[%s13768_s2 + $0x180] sm:$0xff]  ;;  %v704_v36 = vld [vmem:[%s13769_s1 + $0xf8] sm:$0xf]  ;;  %v77_v37 = vld [vmem:[%s13768_s2 + $0x10] sm:$0xff] }
   0xd   :  { %208 = vmatprep.subr.mxu0 %v13782_v0  ;;  %522 = vmatprep.subr.mxu1 %v13782_v0  ;;  %v705_v35 = vld [vmem:[%s13769_s1 + $0x100] sm:$0xf]  ;;  %v7610_v38 = vld [vmem:[%s13768_s2 + $0x190] sm:$0xff]  ;;  %v80_v39 = vld [vmem:[%s13768_s2 + $0x28] sm:$0xff] }
   0xe   :  { %209 = vmatpush1.msra.mxu0 %v9086_v7  ;;  %523 = vmatpush1.msra.mxu1 %v9086_v7  ;;  %v7613_v40 = vld [vmem:[%s13768_s2 + $0x1a8] sm:$0xff]  ;;  %v702_v42 = vld [vmem:[%s13769_s1 + $0xb0] sm:$0xff]  ;;  %v79_v43 = vld [vmem:[%s13768_s2 + $0x20] sm:$0xff] }
   0xf   :  { %210 = vmatprep.subr.mxu0 %v13782_v0  ;;  %524 = vmatprep.subr.mxu1 %v13782_v0  ;;  %v706_v41 = vld [vmem:[%s13769_s1 + $0x108] sm:$0xf]  ;;  %v7612_v44 = vld [vmem:[%s13768_s2 + $0x1a0] sm:$0xff]  ;;  %v82_v45 = vld [vmem:[%s13768_s2 + $0x38] sm:$0xff] }
  0x10   :  { %211 = vmatpush1.msra.mxu0 %v9095_v8  ;;  %525 = vmatpush1.msra.mxu1 %v9095_v8  ;;  %v7615_v46 = vld [vmem:[%s13768_s2 + $0x1b8] sm:$0xff]  ;;  %v701_v48 = vld [vmem:[%s13769_s1 + $0xa8] sm:$0xff]  ;;  %v81_v50 = vld [vmem:[%s13768_s2 + $0x30] sm:$0xff] }
  0x11   :  { %212 = vmatprep.subr.mxu0 %v13782_v0  ;;  %526 = vmatprep.subr.mxu1 %v13782_v0  ;;  %v9298_v47 = vld [vmem:[%s13769_s1 + $0xb8] sm:$0xff]  ;;  %v7614_v51 = vld [vmem:[%s13768_s2 + $0x1b0] sm:$0xff]  ;;  %v84_v52 = vld [vmem:[%s13768_s2 + $0x48] sm:$0xff] }
  0x12   :  { %213 = vmatpush1.msra.mxu0 %v9104_v9  ;;  %527 = vmatpush1.msra.mxu1 %v9104_v9  ;;  %v388_v49 = vld [vmem:[%s13769_s1 + $0xf8] sm:$0xf]  ;;  %v7617_v53 = vld [vmem:[%s13768_s2 + $0x1c8] sm:$0xff]  ;;  %v699_v54 = vld [vmem:[%s13769_s1 + $0x60] sm:$0xff] }
  0x13   :  { %214 = vmatprep.subr.mxu0 %v13782_v0  ;;  %528 = vmatprep.subr.mxu1 %v13782_v0  ;;  %v9329_v55 = vld [vmem:[%s13769_s1 + $0x68] sm:$0xff]  ;;  %v387_v56 = vld [vmem:[%s13769_s1 + $0xf0] sm:$0xf]  ;;  %v83_v57 = vld [vmem:[%s13768_s2 + $0x40] sm:$0xff] }
  0x14   :  { %215 = vmatpush1.msra.mxu0 %v9113_v10  ;;  %529 = vmatpush1.msra.mxu1 %v9113_v10  ;;  %v7616_v58 = vld [vmem:[%s13768_s2 + $0x1c0] sm:$0xff]  ;;  %v86_v59 = vld [vmem:[%s13768_s2 + $0x58] sm:$0xff]  ;;  %v696_v62 = vld [vmem:[%s13769_s1 + $0x10] sm:$0xff] }
  0x15   :  { %216 = vmatprep.subr.mxu0 %v13782_v0  ;;  %530 = vmatprep.subr.mxu1 %v13782_v0  ;;  %v7619_v60 = vld [vmem:[%s13768_s2 + $0x1d8] sm:$0xff]  ;;  %v85_v63 = vld [vmem:[%s13768_s2 + $0x50] sm:$0xff] }
  0x16   :  { %217 = vmatpush1.msra.mxu0 %v9122_v11  ;;  %531 = vmatpush1.msra.mxu1 %v9122_v11  ;;  %v698_v61 = vld [vmem:[%s13769_s1 + $0x58] sm:$0xff] }
  0x17   :  { %218 = vmatprep.subr.mxu0 %v13782_v0  ;;  %532 = vmatprep.subr.mxu1 %v13782_v0 }
  0x18   :  { %219 = vmatpush1.msra.mxu0 %v9131_v12  ;;  %533 = vmatpush1.msra.mxu1 %v9131_v12 }
  0x19   :  { %220 = vmatprep.subr.mxu0 %v13782_v0  ;;  %534 = vmatprep.subr.mxu1 %v13782_v0 }
  0x1a   :  { %221 = vmatpush1.msra.mxu0 %v9140_v13  ;;  %535 = vmatpush1.msra.mxu1 %v9140_v13 }
  0x1b   :  { %222 = vmatprep.subr.mxu0 %v13782_v0  ;;  %536 = vmatprep.subr.mxu1 %v13782_v0 }
  0x1c   :  { %223 = vmatpush1.msra.mxu0 %v9149_v14  ;;  %537 = vmatpush1.msra.mxu1 %v9149_v14 }
  0x1d   :  { %224 = vmatprep.subr.mxu0 %v13782_v0  ;;  %538 = vmatprep.subr.mxu1 %v13782_v0 }
  0x1e   :  { %225 = vmatpush1.msra.mxu0 %v9158_v15  ;;  %539 = vmatpush1.msra.mxu1 %v9158_v15 }
  0x1f   :  { %226 = vmatprep.subr.mxu0 %v13782_v0  ;;  %540 = vmatprep.subr.mxu1 %v13782_v0 }
  0x20   :  { %227 = vmatpush1.msra.mxu0 %v47_v16  ;;  %541 = vmatpush1.msra.mxu1 %v47_v16  ;;  %v7618_v16 = vld [vmem:[%s13768_s2 + $0x1d0] sm:$0xff] }
  0x21   :  { %236 = vmatprep.subr.mxu0 %v13782_v0  ;;  %550 = vmatprep.subr.mxu1 %v13782_v0 }
  0x22   :  { %237 = vmatpush2.msra.mxu0 %v74_v17  ;;  %551 = vmatpush2.msra.mxu1 %v74_v17  ;;  %v88_v17 = vld [vmem:[%s13768_s2 + $0x68] sm:$0xff] }
  0x23   :  { %238 = vmatprep.subr.mxu0 %v13782_v0  ;;  %552 = vmatprep.subr.mxu1 %v13782_v0 }
  0x24   :  { %239 = vmatpush2.msra.mxu0 %v73_v18  ;;  %553 = vmatpush2.msra.mxu1 %v73_v18  ;;  %v7621_v18 = vld [vmem:[%s13768_s2 + $0x1e8] sm:$0xff] }
  0x25   :  { %240 = vmatprep.subr.mxu0 %v13782_v0  ;;  %554 = vmatprep.subr.mxu1 %v13782_v0 }
  0x26   :  { %241 = vmatpush2.msra.mxu0 %v72_v19  ;;  %555 = vmatpush2.msra.mxu1 %v72_v19  ;;  %v9378_v19 = vld [vmem:[%s13769_s1 + $0x18] sm:$0xff] }
  0x27   :  { %242 = vmatprep.subr.mxu0 %v13782_v0  ;;  %556 = vmatprep.subr.mxu1 %v13782_v0 }
  0x28   :  { %243 = vmatpush2.msra.mxu0 %v71_v20  ;;  %557 = vmatpush2.msra.mxu1 %v71_v20  ;;  %v695_v20 = vld [vmem:[%s13769_s1 + $0x8] sm:$0xff] }
  0x29   :  { %244 = vmatprep.subr.mxu0 %v13782_v0  ;;  %558 = vmatprep.subr.mxu1 %v13782_v0 }
  0x2a   :  { %245 = vmatpush2.msra.mxu0 %v70_v21  ;;  %559 = vmatpush2.msra.mxu1 %v70_v21  ;;  %v385_v21 = vld [vmem:[%s13769_s1 + $0xa0] sm:$0xff] }
  0x2b   :  { %246 = vmatprep.subr.mxu0 %v13782_v0  ;;  %560 = vmatprep.subr.mxu1 %v13782_v0 }
  0x2c   :  { %247 = vmatpush2.msra.mxu0 %v69_v22  ;;  %561 = vmatpush2.msra.mxu1 %v69_v22  ;;  %v87_v22 = vld [vmem:[%s13768_s2 + $0x60] sm:$0xff] }
  0x2d   :  { %248 = vmatprep.subr.mxu0 %v13782_v0  ;;  %562 = vmatprep.subr.mxu1 %v13782_v0 }
  0x2e   :  { %249 = vmatpush2.msra.mxu0 %v68_v23  ;;  %563 = vmatpush2.msra.mxu1 %v68_v23  ;;  %v7620_v23 = vld [vmem:[%s13768_s2 + $0x1e0] sm:$0xff] }
  0x2f   :  { %250 = vmatprep.subr.mxu0 %v13782_v0  ;;  %564 = vmatprep.subr.mxu1 %v13782_v0 }
  0x30   :  { %251 = vmatpush2.msra.mxu0 %v67_v24  ;;  %565 = vmatpush2.msra.mxu1 %v67_v24  ;;  %v90_v24 = vld [vmem:[%s13768_s2 + $0x78] sm:$0xff] }
  0x31   :  { %252 = vmatprep.subr.mxu0 %v13782_v0  ;;  %566 = vmatprep.subr.mxu1 %v13782_v0 }
  0x32   :  { %253 = vmatpush2.msra.mxu0 %v66_v25  ;;  %567 = vmatpush2.msra.mxu1 %v66_v25  ;;  %v7623_v25 = vld [vmem:[%s13768_s2 + $0x1f8] sm:$0xff] }
  0x33   :  { %254 = vmatprep.subr.mxu0 %v13782_v0  ;;  %568 = vmatprep.subr.mxu1 %v13782_v0 }
  0x34   :  { %255 = vmatpush2.msra.mxu0 %v65_v26  ;;  %569 = vmatpush2.msra.mxu1 %v65_v26  ;;  %v383_v26 = vld [vmem:[%s13769_s1 + $0x50] sm:$0xff] }
  0x35   :  { %256 = vmatprep.subr.mxu0 %v13782_v0  ;;  %570 = vmatprep.subr.mxu1 %v13782_v0 }
  0x36   :  { %257 = vmatpush2.msra.mxu0 %v64_v27  ;;  %571 = vmatpush2.msra.mxu1 %v64_v27  ;;  %v89_v27 = vld [vmem:[%s13768_s2 + $0x70] sm:$0xff] }
  0x37   :  { %258 = vmatprep.subr.mxu0 %v13782_v0  ;;  %572 = vmatprep.subr.mxu1 %v13782_v0 }
  0x38   :  { %259 = vmatpush2.msra.mxu0 %v63_v28  ;;  %7584 = vmatprep.mubr.msk.f32.mxu0 %vm123_vm0, %v76_v29  ;;  %v92_v29 = vld [vmem:[%s13768_s2 + $0x88] sm:$0xff] }
  0x39   :  { %573 = vmatpush2.msra.mxu1 %v63_v28  ;;  %7656 = vmatprep.mubr.msk.f32.mxu1 %vm123_vm0, %v7609_v30  ;;  %v7622_v28 = vld [vmem:[%s13768_s2 + $0x1f0] sm:$0xff]  ;;  %v7625_v30 = vld [vmem:[%s13768_s2 + $0x208] sm:$0xff] }
  0x3a   :  { %261 = vmatmul.mubr.f32.vlgmr.msra.gmra.mxu0 %v75_v31  ;;  %575 = vmatmul.mubr.f32.vlgmr.msra.gmra.mxu1 %v7608_v32  ;;  %v91_v31 = vld [vmem:[%s13768_s2 + $0x80] sm:$0xff] }
  0x3b   :  { %7585 = vmatprep.mubr.msk.f32.mxu0 %vm123_vm0, %v78_v33  ;;  %7657 = vmatprep.mubr.msk.f32.mxu1 %vm123_vm0, %v7611_v34  ;;  %v7624_v32 = vld [vmem:[%s13768_s2 + $0x200] sm:$0xff]  ;;  %v94_v33 = vld [vmem:[%s13768_s2 + $0x98] sm:$0xff] }
  0x3c   :  { %739 = vrot.lane.b32.xlu0 %v705_v35, %s8950_s29  ;;  %737 = vrot.lane.b32.xlu1 %v704_v36, %s8950_s29  ;;  %v7627_v34 = vld [vmem:[%s13768_s2 + $0x218] sm:$0xff]  ;;  %v93_v35 = vld [vmem:[%s13768_s2 + $0x90] sm:$0xff] }
  0x3d   :  { %7706 = vmatprep.subr.msk.mxu1 %vm831_vm1, %v388_v49  ;;  %v7626_v36 = vld [vmem:[%s13768_s2 + $0x210] sm:$0xff]  ;;  %v7632_v49 = vld [vmem:[%s13768_s2 + $0x240] sm:$0xff] }
  0x3e   :  { %266 = vmatmul.mubr.f32.gmra.mxu0 %v77_v37  ;;  %580 = vmatmul.mubr.f32.gmra.mxu1 %v7610_v38  ;;  %v96_v37 = vld [vmem:[%s13768_s2 + $0xa8] sm:$0xff] }
  0x3f   :  { %7586 = vmatprep.mubr.msk.f32.mxu0 %vm123_vm0, %v80_v39  ;;  %7658 = vmatprep.mubr.msk.f32.mxu1 %vm123_vm0, %v7613_v40  ;;  %v7629_v38 = vld [vmem:[%s13768_s2 + $0x228] sm:$0xff]  ;;  %v95_v39 = vld [vmem:[%s13768_s2 + $0xa0] sm:$0xff] }
  0x40   :  { %741 = vrot.lane.b32.xlu0 %v706_v41, %s8950_s29  ;;  %733 = vrot.lane.b32.xlu1 %v702_v42, %s8950_s29  ;;  %v7628_v40 = vld [vmem:[%s13768_s2 + $0x220] sm:$0xff]  ;;  %v98_v41 = vld [vmem:[%s13768_s2 + $0xb8] sm:$0xff] }
  0x41   :  { %7707 = vmatpush1.msk.msra.mxu1 %vm831_vm1, %v387_v56  ;;  %v7631_v42 = vld [vmem:[%s13768_s2 + $0x238] sm:$0xff]  ;;  %v7637_v56 = vld [vmem:[%s13768_s2 + $0x268] sm:$0xff] }
  0x42   :  { %271 = vmatmul.mubr.f32.gmra.mxu0 %v79_v43  ;;  %585 = vmatmul.mubr.f32.gmra.mxu1 %v7612_v44  ;;  %v97_v43 = vld [vmem:[%s13768_s2 + $0xb0] sm:$0xff] }
  0x43   :  { %7587 = vmatprep.mubr.msk.f32.mxu0 %vm123_vm0, %v82_v45  ;;  %7659 = vmatprep.mubr.msk.f32.mxu1 %vm123_vm0, %v7615_v46  ;;  %v7630_v44 = vld [vmem:[%s13768_s2 + $0x230] sm:$0xff]  ;;  %v100_v45 = vld [vmem:[%s13768_s2 + $0xc8] sm:$0xff] }
  0x44   :  { %735 = vrot.lane.b32.xlu0 %v9298_v47, %s8950_s29  ;;  %731 = vrot.lane.b32.xlu1 %v701_v48, %s8950_s29  ;;  %v7633_v46 = vld [vmem:[%s13768_s2 + $0x248] sm:$0xff] }
  0x45   :  { %1149 = vmatprep.subr.mxu1 %v701_v48  ;;  %v99_v48 = vld [vmem:[%s13768_s2 + $0xc0] sm:$0xff] }
  0x46   :  { %276 = vmatmul.mubr.f32.gmra.mxu0 %v81_v50  ;;  %590 = vmatmul.mubr.f32.gmra.mxu1 %v7614_v51  ;;  %v102_v50 = vld [vmem:[%s13768_s2 + $0xd8] sm:$0xff] }
  0x47   :  { %7588 = vmatprep.mubr.msk.f32.mxu0 %vm123_vm0, %v84_v52  ;;  %7660 = vmatprep.mubr.msk.f32.mxu1 %vm123_vm0, %v7617_v53  ;;  %v7635_v51 = vld [vmem:[%s13768_s2 + $0x258] sm:$0xff]  ;;  %v101_v52 = vld [vmem:[%s13768_s2 + $0xd0] sm:$0xff] }
  0x48   :  { %727 = vrot.lane.b32.xlu0 %v699_v54, %s8950_s29  ;;  %729 = vrot.lane.b32.xlu1 %v9329_v55, %s8950_s29  ;;  %v7634_v53 = vld [vmem:[%s13768_s2 + $0x250] sm:$0xff]  ;;  %v104_v54 = vld [vmem:[%s13768_s2 + $0xe8] sm:$0xff] }
  0x49   :  { %1150 = vmatpush1.msra.mxu1 %v385_v21  ;;  %v7643_v21 = vld [vmem:[%s13768_s2 + $0x298] sm:$0xff] }
  0x4a   :  { %281 = vmatmul.mubr.f32.gmra.mxu0 %v83_v57  ;;  %595 = vmatmul.mubr.f32.gmra.mxu1 %v7616_v58  ;;  %v103_v57 = vld [vmem:[%s13768_s2 + $0xe0] sm:$0xff] }
  0x4b   :  { %7589 = vmatprep.mubr.msk.f32.mxu0 %vm123_vm0, %v86_v59  ;;  %7661 = vmatprep.mubr.msk.f32.mxu1 %vm123_vm0, %v7619_v60  ;;  %v7636_v58 = vld [vmem:[%s13768_s2 + $0x260] sm:$0xff]  ;;  %v106_v59 = vld [vmem:[%s13768_s2 + $0xf8] sm:$0xff] }
  0x4c   :  { %725 = vrot.lane.b32.xlu0 %v698_v61, %s8950_s29  ;;  %721 = vrot.lane.b32.xlu1 %v696_v62, %s8950_s29  ;;  %v7639_v60 = vld [vmem:[%s13768_s2 + $0x278] sm:$0xff]  ;;  %v7638_v62 = vld [vmem:[%s13768_s2 + $0x270] sm:$0xff] }
  0x4d   :  { %1151 = vmatprep.subr.mxu1 %v698_v61  ;;  %v105_v61 = vld [vmem:[%s13768_s2 + $0xf0] sm:$0xff] }
  0x4e   :  { %286 = vmatmul.mubr.f32.gmra.mxu0 %v85_v63  ;;  %600 = vmatmul.mubr.f32.gmra.mxu1 %v7618_v16  ;;  %v108_v63 = vld [vmem:[%s13768_s2 + $0x108] sm:$0xff] }
  0x4f   :  { %7590 = vmatprep.mubr.msk.f32.mxu0 %vm123_vm0, %v88_v17  ;;  %7662 = vmatprep.mubr.msk.f32.mxu1 %vm123_vm0, %v7621_v18  ;;  %v7641_v16 = vld [vmem:[%s13768_s2 + $0x288] sm:$0xff]  ;;  %v107_v17 = vld [vmem:[%s13768_s2 + $0x100] sm:$0xff] }
  0x50   :  { %723 = vrot.lane.b32.xlu0 %v9378_v19, %s8950_s29  ;;  %719 = vrot.lane.b32.xlu1 %v695_v20, %s8950_s29  ;;  %v7640_v18 = vld [vmem:[%s13768_s2 + $0x280] sm:$0xff] }
  0x51   :  { %1152 = vmatpush1.msra.mxu1 %v383_v26  ;;  %v7645_v26 = vld [vmem:[%s13768_s2 + $0x2a8] sm:$0xff] }
  0x52   :  { %291 = vmatmul.mubr.f32.gmra.mxu0 %v87_v22  ;;  %605 = vmatmul.mubr.f32.gmra.mxu1 %v7620_v23  ;;  %v381_v22 = vld [vmem:[%s13769_s1] sm:$0xff]  ;;  %v109_v23 = vld [vmem:[%s13768_s2 + $0x110] sm:$0xff] }
  0x53   :  { %7591 = vmatprep.mubr.msk.f32.mxu0 %vm123_vm0, %v90_v24  ;;  %7663 = vmatprep.mubr.msk.f32.mxu1 %vm123_vm0, %v7623_v25  ;;  %v7642_v24 = vld [vmem:[%s13768_s2 + $0x290] sm:$0xff]  ;;  %v112_v25 = vld [vmem:[%s13768_s2 + $0x128] sm:$0xff] }
  0x54   :  { %1153 = vmatprep.subr.mxu1 %v695_v20  ;;  %v110_v20 = vld [vmem:[%s13768_s2 + $0x118] sm:$0xff] }
  0x55   :  { %1154 = vmatpush1.msra.mxu1 %v381_v22 }
  0x56   :  { %296 = vmatmul.mubr.f32.gmra.mxu0 %v89_v27  ;;  %610 = vmatmul.mubr.f32.gmra.mxu1 %v7622_v28  ;;  %v111_v27 = vld [vmem:[%s13768_s2 + $0x120] sm:$0xff] }
  0x57   :  { %7592 = vmatprep.mubr.msk.f32.mxu0 %vm123_vm0, %v92_v29  ;;  %7664 = vmatprep.mubr.msk.f32.mxu1 %vm123_vm0, %v7625_v30  ;;  %v7644_v28 = vld [vmem:[%s13768_s2 + $0x2a0] sm:$0xff]  ;;  %v114_v29 = vld [vmem:[%s13768_s2 + $0x138] sm:$0xff] }
  0x58   :  { %v7647_v30 = vld [vmem:[%s13768_s2 + $0x2b8] sm:$0xff] }
  0x5a   :  { %301 = vmatmul.mubr.f32.gmra.mxu0 %v91_v31  ;;  %615 = vmatmul.mubr.f32.gmra.mxu1 %v7624_v32  ;;  %v113_v31 = vld [vmem:[%s13768_s2 + $0x130] sm:$0xff] }
  0x5b   :  { %7593 = vmatprep.mubr.msk.f32.mxu0 %vm123_vm0, %v94_v33  ;;  %7665 = vmatprep.mubr.msk.f32.mxu1 %vm123_vm0, %v7627_v34  ;;  %v7646_v32 = vld [vmem:[%s13768_s2 + $0x2b0] sm:$0xff]  ;;  %v116_v33 = vld [vmem:[%s13768_s2 + $0x148] sm:$0xff] }
  0x5c   :  { %v7649_v34 = vld [vmem:[%s13768_s2 + $0x2c8] sm:$0xff] }
  0x5e   :  { %306 = vmatmul.mubr.f32.gmra.mxu0 %v93_v35  ;;  %620 = vmatmul.mubr.f32.gmra.mxu1 %v7626_v36  ;;  %v115_v35 = vld [vmem:[%s13768_s2 + $0x140] sm:$0xff] }
  0x5f   :  { %7594 = vmatprep.mubr.msk.f32.mxu0 %vm123_vm0, %v96_v37  ;;  %7666 = vmatprep.mubr.msk.f32.mxu1 %vm123_vm0, %v7629_v38  ;;  %v7648_v36 = vld [vmem:[%s13768_s2 + $0x2c0] sm:$0xff]  ;;  %v118_v37 = vld [vmem:[%s13768_s2 + $0x158] sm:$0xff] }
  0x60   :  { %v7651_v38 = vld [vmem:[%s13768_s2 + $0x2d8] sm:$0xff] }
  0x62   :  { %311 = vmatmul.mubr.f32.gmra.mxu0 %v95_v39  ;;  %625 = vmatmul.mubr.f32.gmra.mxu1 %v7628_v40  ;;  %v117_v39 = vld [vmem:[%s13768_s2 + $0x150] sm:$0xff] }
  0x63   :  { %7595 = vmatprep.mubr.msk.f32.mxu0 %vm123_vm0, %v98_v41  ;;  %7667 = vmatprep.mubr.msk.f32.mxu1 %vm123_vm0, %v7631_v42  ;;  %v7650_v40 = vld [vmem:[%s13768_s2 + $0x2d0] sm:$0xff]  ;;  %v120_v41 = vld [vmem:[%s13768_s2 + $0x168] sm:$0xff] }
  0x64   :  { %v7653_v42 = vld [vmem:[%s13768_s2 + $0x2e8] sm:$0xff] }
  0x66   :  { %316 = vmatmul.mubr.f32.gmra.mxu0 %v97_v43  ;;  %630 = vmatmul.mubr.f32.gmra.mxu1 %v7630_v44  ;;  %v119_v43 = vld [vmem:[%s13768_s2 + $0x160] sm:$0xff] }
  0x67   :  { %7596 = vmatprep.mubr.msk.f32.mxu0 %vm123_vm0, %v100_v45  ;;  %7668 = vmatprep.mubr.msk.f32.mxu1 %vm123_vm0, %v7633_v46  ;;  %v7652_v44 = vld [vmem:[%s13768_s2 + $0x2e0] sm:$0xff]  ;;  %v122_v45 = vld [vmem:[%s13768_s2 + $0x178] sm:$0xff] }
  0x68   :  { %v7655_v46 = vld [vmem:[%s13768_s2 + $0x2f8] sm:$0xff] }
  0x6a   :  { %321 = vmatmul.mubr.f32.gmra.mxu0 %v99_v48  ;;  %635 = vmatmul.mubr.f32.gmra.mxu1 %v7632_v49  ;;  %v121_v48 = vld [vmem:[%s13768_s2 + $0x170] sm:$0xff] }
  0x6b   :  { %7597 = vmatprep.mubr.msk.f32.mxu0 %vm123_vm0, %v102_v50  ;;  %7669 = vmatprep.mubr.msk.f32.mxu1 %vm123_vm0, %v7635_v51  ;;  %v7654_v49 = vld [vmem:[%s13768_s2 + $0x2f0] sm:$0xff] }
  0x6e   :  { %326 = vmatmul.mubr.f32.gmra.mxu0 %v101_v52  ;;  %640 = vmatmul.mubr.f32.gmra.mxu1 %v7634_v53 }
  0x6f   :  { %7598 = vmatprep.mubr.msk.f32.mxu0 %vm123_vm0, %v104_v54  ;;  %7670 = vmatprep.mubr.msk.f32.mxu1 %vm123_vm0, %v7637_v56 }
  0x72   :  { %331 = vmatmul.mubr.f32.gmra.mxu0 %v103_v57  ;;  %645 = vmatmul.mubr.f32.gmra.mxu1 %v7636_v58 }
  0x73   :  { %7599 = vmatprep.mubr.msk.f32.mxu0 %vm123_vm0, %v106_v59  ;;  %7671 = vmatprep.mubr.msk.f32.mxu1 %vm123_vm0, %v7639_v60 }
  0x76   :  { %336 = vmatmul.mubr.f32.gmra.mxu0 %v105_v61  ;;  %650 = vmatmul.mubr.f32.gmra.mxu1 %v7638_v62 }
  0x77   :  { %7600 = vmatprep.mubr.msk.f32.mxu0 %vm123_vm0, %v108_v63  ;;  %7672 = vmatprep.mubr.msk.f32.mxu1 %vm123_vm0, %v7641_v16 }
  0x7a   :  { %341 = vmatmul.mubr.f32.gmra.mxu0 %v107_v17  ;;  %655 = vmatmul.mubr.f32.gmra.mxu1 %v7640_v18 }
  0x7b   :  { %7601 = vmatprep.mubr.msk.f32.mxu0 %vm123_vm0, %v110_v20  ;;  %7673 = vmatprep.mubr.msk.f32.mxu1 %vm123_vm0, %v7643_v21 }
  0x7e   :  { %346 = vmatmul.mubr.f32.gmra.mxu0 %v109_v23  ;;  %660 = vmatmul.mubr.f32.gmra.mxu1 %v7642_v24  ;;  %v1648_v24 = vld [vmem:[%s13769_s1 + $0x110] sm:$0xf] }
  0x7f   :  { %7602 = vmatprep.mubr.msk.f32.mxu0 %vm123_vm0, %v112_v25  ;;  %7674 = vmatprep.mubr.msk.f32.mxu1 %vm123_vm0, %v7645_v26  ;;  %v1649_v25 = vld [vmem:[%s13769_s1 + $0x118] sm:$0xf]  ;;  %v1647_v26 = vld [vmem:[%s13769_s1 + $0x108] sm:$0xf] }
  0x80   :  { %1682 = vrot.lane.b32.xlu0 %v1648_v24, %s8951_s30  ;;  %1684 = vrot.lane.b32.xlu1 %v1649_v25, %s8951_s30 }
  0x82   :  { %351 = vmatmul.mubr.f32.gmra.mxu0 %v111_v27  ;;  %665 = vmatmul.mubr.f32.gmra.mxu1 %v7644_v28 }
  0x83   :  { %7603 = vmatprep.mubr.msk.f32.mxu0 %vm123_vm0, %v114_v29  ;;  %7675 = vmatprep.mubr.msk.f32.mxu1 %vm123_vm0, %v7647_v30 }
  0x84   :  { %1680 = vrot.lane.b32.xlu0 %v1647_v26, %s8951_s30 }
  0x86   :  { %356 = vmatmul.mubr.f32.gmra.mxu0 %v113_v31  ;;  %670 = vmatmul.mubr.f32.gmra.mxu1 %v7646_v32 }
  0x87   :  { %7604 = vmatprep.mubr.msk.f32.mxu0 %vm123_vm0, %v116_v33  ;;  %7676 = vmatprep.mubr.msk.f32.mxu1 %vm123_vm0, %v7649_v34 }
  0x8a   :  { %361 = vmatmul.mubr.f32.gmra.mxu0 %v115_v35  ;;  %675 = vmatmul.mubr.f32.gmra.mxu1 %v7648_v36 }
  0x8b   :  { %7605 = vmatprep.mubr.msk.f32.mxu0 %vm123_vm0, %v118_v37  ;;  %7677 = vmatprep.mubr.msk.f32.mxu1 %vm123_vm0, %v7651_v38 }
  0x8e   :  { %366 = vmatmul.mubr.f32.gmra.mxu0 %v117_v39  ;;  %680 = vmatmul.mubr.f32.gmra.mxu1 %v7650_v40 }
  0x8f   :  { %7606 = vmatprep.mubr.msk.f32.mxu0 %vm123_vm0, %v120_v41  ;;  %7678 = vmatprep.mubr.msk.f32.mxu1 %vm123_vm0, %v7653_v42  ;;  %v1645_v41 = vld [vmem:[%s13769_s1 + $0xc0] sm:$0xff] }
  0x90   :  { %1676 = vrot.lane.b32.xlu1 %v1645_v41, %s8951_s30 }
  0x92   :  { %371 = vmatmul.mubr.f32.gmra.mxu0 %v119_v43  ;;  %685 = vmatmul.mubr.f32.gmra.mxu1 %v7652_v44 }
  0x93   :  { %7607 = vmatprep.mubr.msk.f32.mxu0 %vm123_vm0, %v122_v45  ;;  %7679 = vmatprep.mubr.msk.f32.mxu1 %vm123_vm0, %v7655_v46 }
  0x94   :  { %1674 = vrot.lane.b32.xlu1 %v9298_v47, %s8951_s30 }
  0x96   :  { %376 = vmatmul.mubr.f32.gmra.mxu0 %v121_v48  ;;  %690 = vmatmul.mubr.f32.gmra.mxu1 %v7654_v49 }
  0x97   :  { %900 = vmatprep.mubr.f32.mxu0 %v13782_v0  ;;  %1187 = vmatprep.mubr.f32.mxu1 %v13782_v0 }
  0xae   :  { %v740_v50 = vpop.permute.xlu0 %739  ;;  %v738_v51 = vpop.permute.xlu1 %737 }
  0xaf   :  { %v750_v53 = vsel %vm743_vm2, %v738_v51, %v740_v50 }
  0xb2   :  { %v742_v52 = vpop.permute.xlu0 %741  ;;  %v734_v54 = vpop.permute.xlu1 %733 }
  0xb3   :  { %v751_v56 = vsel %vm743_vm2, %v740_v50, %v742_v52 }
  0xb4   :  { %7680 = vmatprep.subr.msk.mxu0 %vm831_vm1, %v751_v56  ;;  %v1642_v56 = vld [vmem:[%s13769_s1 + $0x70] sm:$0xff] }
  0xb5   :  { %7681 = vmatpush1.msk.msra.mxu0 %vm831_vm1, %v750_v53 }
  0xb6   :  { %v736_v57 = vpop.permute.xlu0 %735  ;;  %v732_v58 = vpop.permute.xlu1 %731 }
  0xb7   :  { %v748_v59 = vsel %vm743_vm2, %v732_v58, %v734_v54  ;;  %v749_v60 = vsel %vm743_vm2, %v734_v54, %v736_v57 }
  0xb8   :  { %862 = vmatprep.subr.mxu0 %v749_v60  ;;  %v1639_v60 = vld [vmem:[%s13769_s1 + $0x20] sm:$0xff] }
  0xb9   :  { %863 = vmatpush1.msra.mxu0 %v748_v59 }
  0xba   :  { %v728_v61 = vpop.permute.xlu0 %727  ;;  %v730_v62 = vpop.permute.xlu1 %729 }
  0xbb   :  { %v747_v63 = vsel %vm743_vm2, %v728_v61, %v730_v62 }
  0xbc   :  { %864 = vmatprep.subr.mxu0 %v747_v63 }
  0xbe   :  { %v726_v16 = vpop.permute.xlu0 %725  ;;  %v722_v17 = vpop.permute.xlu1 %721 }
  0xbf   :  { %v746_v18 = vsel %vm743_vm2, %v726_v16, %v728_v61 }
  0xc0   :  { %865 = vmatpush1.msra.mxu0 %v746_v18 }
  0xc2   :  { %v724_v20 = vpop.permute.xlu0 %723  ;;  %v720_v21 = vpop.permute.xlu1 %719 }
  0xc3   :  { %v744_v22 = vsel %vm743_vm2, %v720_v21, %v722_v17  ;;  %v745_v23 = vsel %vm743_vm2, %v722_v17, %v724_v20 }
  0xc4   :  { %866 = vmatprep.subr.mxu0 %v745_v23 }
  0xc5   :  { %867 = vmatpush1.msra.mxu0 %v744_v22 }
  0xc6   :  { %1453 = vmatprep.subr.mxu0 %v13782_v0 }
  0xfa   :  { %v262_v27 = vpop.f32.mrf.mxu0  ;;  %v576_v28 = vpop.f32.mrf.mxu1 }
  0xfb   :  { %7682 = vmatmul.mubr.msk.f32.vlgmr.msra.gmra.mxu0 %vm758_vm3, %v576_v28  ;;  %7708 = vmatmul.mubr.msk.f32.vlgmr.msra.gmra.mxu1 %vm758_vm3, %v262_v27 }
  0xfc   :  { %v264_v29 = vpop.f32.mrf.mxu0  ;;  %v578_v30 = vpop.f32.mrf.mxu1  ;;  %906 = vmatprep.mubr.f32.mxu0 %v13782_v0  ;;  %1193 = vmatprep.mubr.f32.mxu1 %v13782_v0 }
  0xfd   :  { %1454 = vmatpush1.msra.mxu0 %v9036_v1 }
  0xfe   :  { %v267_v31 = vpop.f32.mrf.mxu0  ;;  %v581_v32 = vpop.f32.mrf.mxu1  ;;  %1455 = vmatprep.subr.mxu0 %v13782_v0 }
  0xff   :  { %7683 = vmatmul.mubr.msk.f32.gmra.mxu0 %vm758_vm3, %v581_v32  ;;  %7709 = vmatmul.mubr.msk.f32.gmra.mxu1 %vm758_vm3, %v267_v31 }
 0x100   :  { %v269_v33 = vpop.f32.mrf.mxu0  ;;  %v583_v34 = vpop.f32.mrf.mxu1  ;;  %912 = vmatprep.mubr.f32.mxu0 %v13782_v0  ;;  %1199 = vmatprep.mubr.f32.mxu1 %v13782_v0 }
 0x101   :  { %1456 = vmatpush1.msra.mxu0 %v9041_v2 }
 0x102   :  { %v272_v35 = vpop.f32.mrf.mxu0  ;;  %v586_v36 = vpop.f32.mrf.mxu1  ;;  %1457 = vmatprep.subr.mxu0 %v13782_v0 }
 0x103   :  { %7684 = vmatmul.mubr.msk.f32.gmra.mxu0 %vm758_vm3, %v586_v36  ;;  %7710 = vmatmul.mubr.msk.f32.gmra.mxu1 %vm758_vm3, %v272_v35  ;;  %v9802_v35 = vld [vmem:[%s13767_s0] sm:$0xff] }
 0x104   :  { %v274_v1 = vpop.f32.mrf.mxu0  ;;  %v588_v37 = vpop.f32.mrf.mxu1  ;;  %918 = vmatprep.mubr.f32.mxu0 %v13782_v0  ;;  %1205 = vmatprep.mubr.f32.mxu1 %v13782_v0 }
 0x105   :  { %1458 = vmatpush1.msra.mxu0 %v9050_v3 }
 0x106   :  { %v277_v38 = vpop.f32.mrf.mxu0  ;;  %v591_v39 = vpop.f32.mrf.mxu1  ;;  %1459 = vmatprep.subr.mxu0 %v13782_v0 }
 0x107   :  { %7685 = vmatmul.mubr.msk.f32.gmra.mxu0 %vm758_vm3, %v591_v39  ;;  %7711 = vmatmul.mubr.msk.f32.gmra.mxu1 %vm758_vm3, %v277_v38  ;;  %v9813_v38 = vld [vmem:[%s13767_s0 + $0xd8] sm:$0xff] }
 0x108   :  { %v279_v2 = vpop.f32.mrf.mxu0  ;;  %v593_v40 = vpop.f32.mrf.mxu1  ;;  %924 = vmatprep.mubr.f32.mxu0 %v13782_v0  ;;  %1211 = vmatprep.mubr.f32.mxu1 %v13782_v0 }
 0x109   :  { %1460 = vmatpush1.msra.mxu0 %v9059_v4  ;;  %v9701_v4 = vld [vmem:[%s13769_s1 + $0xc8] sm:$0xff] }
 0x10a   :  { %v282_v3 = vpop.f32.mrf.mxu0  ;;  %v596_v42 = vpop.f32.mrf.mxu1  ;;  %1461 = vmatprep.subr.mxu0 %v13782_v0  ;;  %1678 = vrot.lane.b32.xlu0 %v9701_v4, %s8951_s30 }
 0x10b   :  { %7686 = vmatmul.mubr.msk.f32.gmra.mxu0 %vm758_vm3, %v596_v42  ;;  %7712 = vmatmul.mubr.msk.f32.gmra.mxu1 %vm758_vm3, %v282_v3  ;;  %v9824_v3 = vld [vmem:[%s13767_s0 + $0xd0] sm:$0xff] }
 0x10c   :  { %v284_v43 = vpop.f32.mrf.mxu0  ;;  %v598_v44 = vpop.f32.mrf.mxu1  ;;  %930 = vmatprep.mubr.f32.mxu0 %v13782_v0  ;;  %1217 = vmatprep.mubr.f32.mxu1 %v13782_v0 }
 0x10d   :  { %1462 = vmatpush1.msra.mxu0 %v9068_v5 }
 0x10e   :  { %v287_v45 = vpop.f32.mrf.mxu0  ;;  %v601_v46 = vpop.f32.mrf.mxu1  ;;  %1463 = vmatprep.subr.mxu0 %v13782_v0  ;;  %1670 = vrot.lane.b32.xlu0 %v1642_v56, %s8951_s30 }
 0x10f   :  { %7687 = vmatmul.mubr.msk.f32.gmra.mxu0 %vm758_vm3, %v601_v46  ;;  %7713 = vmatmul.mubr.msk.f32.gmra.mxu1 %vm758_vm3, %v287_v45  ;;  %v9835_v46 = vld [vmem:[%s13767_s0 + $0xc8] sm:$0xff] }
 0x110   :  { %v289_v48 = vpop.f32.mrf.mxu0  ;;  %v603_v49 = vpop.f32.mrf.mxu1  ;;  %936 = vmatprep.mubr.f32.mxu0 %v13782_v0  ;;  %1223 = vmatprep.mubr.f32.mxu1 %v13782_v0 }
 0x111   :  { %1464 = vmatpush1.msra.mxu0 %v9077_v6 }
 0x112   :  { %v292_v5 = vpop.f32.mrf.mxu0  ;;  %v606_v50 = vpop.f32.mrf.mxu1  ;;  %1465 = vmatprep.subr.mxu0 %v13782_v0  ;;  %1668 = vrot.lane.b32.xlu0 %v9329_v55, %s8951_s30 }
 0x113   :  { %7688 = vmatmul.mubr.msk.f32.gmra.mxu0 %vm758_vm3, %v606_v50  ;;  %7714 = vmatmul.mubr.msk.f32.gmra.mxu1 %vm758_vm3, %v292_v5 }
 0x114   :  { %v294_v47 = vpop.f32.mrf.mxu0  ;;  %v608_v51 = vpop.f32.mrf.mxu1  ;;  %942 = vmatprep.mubr.f32.mxu0 %v13782_v0  ;;  %1229 = vmatprep.mubr.f32.mxu1 %v13782_v0 }
 0x115   :  { %1466 = vmatpush1.msra.mxu0 %v9086_v7  ;;  %v9733_v7 = vld [vmem:[%s13769_s1 + $0x78] sm:$0xff]  ;;  %v9846_v47 = vld [vmem:[%s13767_s0 + $0xc0] sm:$0xff] }
 0x116   :  { %v297_v52 = vpop.f32.mrf.mxu0  ;;  %v611_v53 = vpop.f32.mrf.mxu1  ;;  %1467 = vmatprep.subr.mxu0 %v13782_v0  ;;  %1672 = vrot.lane.b32.xlu1 %v9733_v7, %s8951_s30 }
 0x117   :  { %7689 = vmatmul.mubr.msk.f32.gmra.mxu0 %vm758_vm3, %v611_v53  ;;  %7715 = vmatmul.mubr.msk.f32.gmra.mxu1 %vm758_vm3, %v297_v52 }
 0x118   :  { %v299_v6 = vpop.f32.mrf.mxu0  ;;  %v613_v54 = vpop.f32.mrf.mxu1  ;;  %948 = vmatprep.mubr.f32.mxu0 %v13782_v0  ;;  %1235 = vmatprep.mubr.f32.mxu1 %v13782_v0 }
 0x119   :  { %1468 = vmatpush1.msra.mxu0 %v9095_v8  ;;  %v9855_v54 = vld [vmem:[%s13767_s0 + $0xb8] sm:$0xff] }
 0x11a   :  { %v302_v57 = vpop.f32.mrf.mxu0  ;;  %v616_v58 = vpop.f32.mrf.mxu1  ;;  %1469 = vmatprep.subr.mxu0 %v13782_v0  ;;  %1664 = vrot.lane.b32.xlu1 %v1639_v60, %s8951_s30  ;;  %v2350_v60 = vld [vmem:[%s13769_s1 + $0x120] sm:$0xf] }
 0x11b   :  { %7690 = vmatmul.mubr.msk.f32.gmra.mxu0 %vm758_vm3, %v616_v58  ;;  %7716 = vmatmul.mubr.msk.f32.gmra.mxu1 %vm758_vm3, %v302_v57  ;;  %v9864_v58 = vld [vmem:[%s13767_s0 + $0xb0] sm:$0xff] }
 0x11c   :  { %v304_v59 = vpop.f32.mrf.mxu0  ;;  %v618_v8 = vpop.f32.mrf.mxu1  ;;  %954 = vmatprep.mubr.f32.mxu0 %v13782_v0  ;;  %1241 = vmatprep.mubr.f32.mxu1 %v13782_v0 }
 0x11d   :  { %1470 = vmatpush1.msra.mxu0 %v9104_v9  ;;  %v9757_v9 = vld [vmem:[%s13769_s1 + $0x28] sm:$0xff] }
 0x11e   :  { %v307_v61 = vpop.f32.mrf.mxu0  ;;  %v621_v62 = vpop.f32.mrf.mxu1  ;;  %1471 = vmatprep.subr.mxu0 %v13782_v0  ;;  %1666 = vrot.lane.b32.xlu0 %v9757_v9, %s8951_s30 }
 0x11f   :  { %7691 = vmatmul.mubr.msk.f32.gmra.mxu0 %vm758_vm3, %v621_v62  ;;  %7717 = vmatmul.mubr.msk.f32.gmra.mxu1 %vm758_vm3, %v307_v61  ;;  %v9877_v61 = vld [vmem:[%s13767_s0 + $0xa8] sm:$0xff] }
 0x120   :  { %v309_v63 = vpop.f32.mrf.mxu0  ;;  %v623_v16 = vpop.f32.mrf.mxu1  ;;  %960 = vmatprep.mubr.f32.mxu0 %v13782_v0  ;;  %1247 = vmatprep.mubr.f32.mxu1 %v13782_v0 }
 0x121   :  { %1472 = vmatpush1.msra.mxu0 %v9113_v10  ;;  %1662 = vrot.lane.b32.xlu1 %v9378_v19, %s8951_s30  ;;  %v9886_v16 = vld [vmem:[%s13767_s0 + $0xa0] sm:$0xff] }
 0x122   :  { %v312_v55 = vpop.f32.mrf.mxu0  ;;  %v626_v17 = vpop.f32.mrf.mxu1  ;;  %1473 = vmatprep.subr.mxu0 %v13782_v0  ;;  %2384 = vrot.lane.b32.xlu0 %v2350_v60, %s8952_s19  ;;  %v10103_v60 = vld [vmem:[%s13767_s0 + $0x10] sm:$0xff] }
 0x123   :  { %7692 = vmatmul.mubr.msk.f32.gmra.mxu0 %vm758_vm3, %v626_v17  ;;  %7718 = vmatmul.mubr.msk.f32.gmra.mxu1 %vm758_vm3, %v312_v55 }
 0x124   :  { %v314_v18 = vpop.f32.mrf.mxu0  ;;  %v628_v20 = vpop.f32.mrf.mxu1  ;;  %966 = vmatprep.mubr.f32.mxu0 %v13782_v0  ;;  %1253 = vmatprep.mubr.f32.mxu1 %v13782_v0 }
 0x125   :  { %1474 = vmatpush1.msra.mxu0 %v9122_v11  ;;  %v9895_v18 = vld [vmem:[%s13767_s0 + $0x98] sm:$0xff] }
 0x126   :  { %v317_v10 = vpop.f32.mrf.mxu0  ;;  %v631_v21 = vpop.f32.mrf.mxu1  ;;  %1475 = vmatprep.subr.mxu0 %v13782_v0 }
 0x127   :  { %7693 = vmatmul.mubr.msk.f32.gmra.mxu0 %vm758_vm3, %v631_v21  ;;  %7719 = vmatmul.mubr.msk.f32.gmra.mxu1 %vm758_vm3, %v317_v10  ;;  %v7733_v21 = vld [vmem:[%s13768_s2 + $0x308] sm:$0xff] }
 0x128   :  { %v319_v19 = vpop.f32.mrf.mxu0  ;;  %v633_v22 = vpop.f32.mrf.mxu1  ;;  %972 = vmatprep.mubr.f32.mxu0 %v13782_v0  ;;  %1259 = vmatprep.mubr.f32.mxu1 %v13782_v0 }
 0x129   :  { %1476 = vmatpush1.msra.mxu0 %v9131_v12  ;;  %v9907_v19 = vld [vmem:[%s13767_s0 + $0x90] sm:$0xff]  ;;  %v2351_v22 = vld [vmem:[%s13769_s1 + $0x128] sm:$0xf] }
 0x12a   :  { %v322_v23 = vpop.f32.mrf.mxu0  ;;  %v636_v24 = vpop.f32.mrf.mxu1  ;;  %1477 = vmatprep.subr.mxu0 %v13782_v0  ;;  %2386 = vrot.lane.b32.xlu1 %v2351_v22, %s8952_s19  ;;  %v7753_v22 = vld [vmem:[%s13768_s2 + $0x3a8] sm:$0xff] }
 0x12b   :  { %7694 = vmatmul.mubr.msk.f32.gmra.mxu0 %vm758_vm3, %v636_v24  ;;  %7720 = vmatmul.mubr.msk.f32.gmra.mxu1 %vm758_vm3, %v322_v23 }
 0x12c   :  { %v324_v11 = vpop.f32.mrf.mxu0  ;;  %v638_v25 = vpop.f32.mrf.mxu1  ;;  %978 = vmatprep.mubr.f32.mxu0 %v13782_v0  ;;  %1265 = vmatprep.mubr.f32.mxu1 %v13782_v0 }
 0x12d   :  { %1478 = vmatpush1.msra.mxu0 %v9140_v13  ;;  %v2349_v11 = vld [vmem:[%s13769_s1 + $0x118] sm:$0xf]  ;;  %v9922_v25 = vld [vmem:[%s13767_s0 + $0x88] sm:$0xff] }
 0x12e   :  { %v327_v26 = vpop.f32.mrf.mxu0  ;;  %v641_v27 = vpop.f32.mrf.mxu1  ;;  %1479 = vmatprep.subr.mxu0 %v13782_v0  ;;  %2382 = vrot.lane.b32.xlu0 %v2349_v11, %s8952_s19 }
 0x12f   :  { %7695 = vmatmul.mubr.msk.f32.gmra.mxu0 %vm758_vm3, %v641_v27  ;;  %7721 = vmatmul.mubr.msk.f32.gmra.mxu1 %vm758_vm3, %v327_v26  ;;  %v7732_v26 = vld [vmem:[%s13768_s2 + $0x300] sm:$0xff]  ;;  %v7735_v27 = vld [vmem:[%s13768_s2 + $0x318] sm:$0xff] }
 0x130   :  { %v329_v12 = vpop.f32.mrf.mxu0  ;;  %v643_v28 = vpop.f32.mrf.mxu1  ;;  %984 = vmatprep.mubr.f32.mxu0 %v13782_v0  ;;  %1271 = vmatprep.mubr.f32.mxu1 %v13782_v0 }
 0x131   :  { %1480 = vmatpush1.msra.mxu0 %v9149_v14  ;;  %v9937_v12 = vld [vmem:[%s13767_s0 + $0x80] sm:$0xff]  ;;  %v7734_v28 = vld [vmem:[%s13768_s2 + $0x310] sm:$0xff] }
 0x132   :  { %v332_v29 = vpop.f32.mrf.mxu0  ;;  %v646_v30 = vpop.f32.mrf.mxu1  ;;  %1481 = vmatprep.subr.mxu0 %v13782_v0 }
 0x133   :  { %7696 = vmatmul.mubr.msk.f32.gmra.mxu0 %vm758_vm3, %v646_v30  ;;  %7722 = vmatmul.mubr.msk.f32.gmra.mxu1 %vm758_vm3, %v332_v29  ;;  %v9949_v29 = vld [vmem:[%s13767_s0 + $0x78] sm:$0xff]  ;;  %v7737_v30 = vld [vmem:[%s13768_s2 + $0x328] sm:$0xff] }
 0x134   :  { %v334_v13 = vpop.f32.mrf.mxu0  ;;  %v648_v31 = vpop.f32.mrf.mxu1  ;;  %990 = vmatprep.mubr.f32.mxu0 %v13782_v0  ;;  %1277 = vmatprep.mubr.f32.mxu1 %v13782_v0 }
 0x135   :  { %1482 = vmatpush1.msra.mxu0 %v9158_v15  ;;  %v9960_v13 = vld [vmem:[%s13767_s0 + $0x70] sm:$0xff]  ;;  %v7736_v31 = vld [vmem:[%s13768_s2 + $0x320] sm:$0xff] }
 0x136   :  { %v337_v32 = vpop.f32.mrf.mxu0  ;;  %v651_v33 = vpop.f32.mrf.mxu1  ;;  %1483 = vmatprep.subr.mxu0 %v13782_v0 }
 0x137   :  { %7697 = vmatmul.mubr.msk.f32.gmra.mxu0 %vm758_vm3, %v651_v33  ;;  %7723 = vmatmul.mubr.msk.f32.gmra.mxu1 %vm758_vm3, %v337_v32  ;;  %v9971_v32 = vld [vmem:[%s13767_s0 + $0x68] sm:$0xff]  ;;  %v7739_v33 = vld [vmem:[%s13768_s2 + $0x338] sm:$0xff] }
 0x138   :  { %v339_v14 = vpop.f32.mrf.mxu0  ;;  %v653_v34 = vpop.f32.mrf.mxu1  ;;  %996 = vmatprep.mubr.f32.mxu0 %v13782_v0  ;;  %1283 = vmatprep.mubr.f32.mxu1 %v13782_v0 }
 0x139   :  { %1484 = vmatpush1.msra.mxu0 %v9802_v35  ;;  %v9981_v14 = vld [vmem:[%s13767_s0 + $0x60] sm:$0xff]  ;;  %v1683_v34 = vpop.permute.xlu0 %1682 }
 0x13a   :  { %v342_v15 = vpop.f32.mrf.mxu0  ;;  %v656_v36 = vpop.f32.mrf.mxu1  ;;  %1493 = vmatprep.subr.mxu0 %v13782_v0 }
 0x13b   :  { %7698 = vmatmul.mubr.msk.f32.gmra.mxu0 %vm758_vm3, %v656_v36  ;;  %7724 = vmatmul.mubr.msk.f32.gmra.mxu1 %vm758_vm3, %v342_v15  ;;  %v7738_v15 = vld [vmem:[%s13768_s2 + $0x330] sm:$0xff]  ;;  %v9992_v36 = vld [vmem:[%s13767_s0 + $0x58] sm:$0xff] }
 0x13c   :  { %v344_v1 = vpop.f32.mrf.mxu0  ;;  %v658_v37 = vpop.f32.mrf.mxu1  ;;  %1002 = vmatprep.mubr.f32.mxu0 %v13782_v0  ;;  %1289 = vmatprep.mubr.f32.mxu1 %v13782_v0 }
 0x13d   :  { %1494 = vmatpush2.msra.mxu0 %v9813_v38  ;;  %v7741_v1 = vld [vmem:[%s13768_s2 + $0x348] sm:$0xff]  ;;  %v10002_v37 = vld [vmem:[%s13767_s0 + $0x50] sm:$0xff] }
 0x13e   :  { %v347_v39 = vpop.f32.mrf.mxu0  ;;  %v661_v2 = vpop.f32.mrf.mxu1  ;;  %1495 = vmatprep.subr.mxu0 %v13782_v0 }
 0x13f   :  { %7699 = vmatmul.mubr.msk.f32.gmra.mxu0 %vm758_vm3, %v661_v2  ;;  %7725 = vmatmul.mubr.msk.f32.gmra.mxu1 %vm758_vm3, %v347_v39  ;;  %v1685_v39 = vpop.permute.xlu1 %1684 }
 0x140   :  { %v349_v40 = vpop.f32.mrf.mxu0  ;;  %v663_v41 = vpop.f32.mrf.mxu1  ;;  %1008 = vmatprep.mubr.f32.mxu0 %v13782_v0  ;;  %1295 = vmatprep.mubr.f32.mxu1 %v13782_v0  ;;  %v1694_v2 = vsel %vm1686_vm4, %v1683_v34, %v1685_v39 }
 0x141   :  { %1496 = vmatpush2.msra.mxu0 %v9824_v3  ;;  %v1681_v40 = vpop.permute.xlu0 %1680  ;;  %v2347_v41 = vld [vmem:[%s13769_s1 + $0xd0] sm:$0xff]  ;;  %7804 = vmatprep.subr.msk.mxu1 %vm831_vm1, %v1694_v2 }
 0x142   :  { %v352_v42 = vpop.f32.mrf.mxu0  ;;  %v666_v43 = vpop.f32.mrf.mxu1  ;;  %1497 = vmatprep.subr.mxu0 %v13782_v0  ;;  %2378 = vrot.lane.b32.xlu1 %v2347_v41, %s8952_s19  ;;  %v7758_v2 = vld [vmem:[%s13768_s2 + $0x3d0] sm:$0xff] }
 0x143   :  { %7700 = vmatmul.mubr.msk.f32.gmra.mxu0 %vm758_vm3, %v666_v43  ;;  %7726 = vmatmul.mubr.msk.f32.gmra.mxu1 %vm758_vm3, %v352_v42  ;;  %v7740_v42 = vld [vmem:[%s13768_s2 + $0x340] sm:$0xff]  ;;  %v10017_v43 = vld [vmem:[%s13767_s0 + $0x48] sm:$0xff] }
 0x144   :  { %v354_v44 = vpop.f32.mrf.mxu0  ;;  %v668_v45 = vpop.f32.mrf.mxu1  ;;  %1014 = vmatprep.mubr.f32.mxu0 %v13782_v0  ;;  %1301 = vmatprep.mubr.f32.mxu1 %v13782_v0 }
 0x145   :  { %1498 = vmatpush2.msra.mxu0 %v9835_v46  ;;  %v7743_v44 = vld [vmem:[%s13768_s2 + $0x358] sm:$0xff]  ;;  %v10028_v45 = vld [vmem:[%s13767_s0 + $0x40] sm:$0xff] }
 0x146   :  { %v357_v48 = vpop.f32.mrf.mxu0  ;;  %v671_v49 = vpop.f32.mrf.mxu1  ;;  %1499 = vmatprep.subr.mxu0 %v13782_v0  ;;  %2376 = vrot.lane.b32.xlu1 %v9701_v4, %s8952_s19  ;;  %v10093_v4 = vld [vmem:[%s13767_s0 + $0x18] sm:$0xff] }
 0x147   :  { %7701 = vmatmul.mubr.msk.f32.gmra.mxu0 %vm758_vm3, %v671_v49  ;;  %7727 = vmatmul.mubr.msk.f32.gmra.mxu1 %vm758_vm3, %v357_v48  ;;  %v1693_v48 = vsel %vm1686_vm4, %v1681_v40, %v1683_v34  ;;  %v10037_v49 = vld [vmem:[%s13769_s1 + $0xd8] sm:$0xff]  ;;  %v7756_v34 = vld [vmem:[%s13768_s2 + $0x3c0] sm:$0xff]  ;;  %v7761_v40 = vld [vmem:[%s13768_s2 + $0x3e8] sm:$0xff] }
 0x148   :  { %v359_v5 = vpop.f32.mrf.mxu0  ;;  %v673_v50 = vpop.f32.mrf.mxu1  ;;  %1020 = vmatprep.mubr.f32.mxu0 %v13782_v0  ;;  %1307 = vmatprep.mubr.f32.mxu1 %v13782_v0 }
 0x149   :  { %1500 = vmatpush2.msra.mxu0 %v9846_v47  ;;  %v7742_v5 = vld [vmem:[%s13768_s2 + $0x350] sm:$0xff]  ;;  %v10046_v50 = vld [vmem:[%s13767_s0 + $0x38] sm:$0xff]  ;;  %7805 = vmatpush1.msk.msra.mxu1 %vm831_vm1, %v1693_v48 }
 0x14a   :  { %v362_v51 = vpop.f32.mrf.mxu0  ;;  %v676_v52 = vpop.f32.mrf.mxu1  ;;  %1501 = vmatprep.subr.mxu0 %v13782_v0  ;;  %2380 = vrot.lane.b32.xlu0 %v10037_v49, %s8952_s19 }
 0x14b   :  { %7702 = vmatmul.mubr.msk.f32.gmra.mxu0 %vm758_vm3, %v676_v52  ;;  %7728 = vmatmul.mubr.msk.f32.gmra.mxu1 %vm758_vm3, %v362_v51  ;;  %v7745_v51 = vld [vmem:[%s13768_s2 + $0x368] sm:$0xff]  ;;  %v10057_v52 = vld [vmem:[%s13767_s0 + $0x30] sm:$0xff] }
 0x14c   :  { %v364_v53 = vpop.f32.mrf.mxu0  ;;  %v678_v6 = vpop.f32.mrf.mxu1  ;;  %1502 = vmatpush2.msra.mxu0 %v9855_v54  ;;  %1026 = vmatprep.mubr.f32.mxu0 %v13782_v0 }
 0x14d   :  { %1503 = vmatprep.subr.mxu0 %v13782_v0  ;;  %1313 = vmatprep.mubr.f32.mxu1 %v13782_v0  ;;  %v7744_v53 = vld [vmem:[%s13768_s2 + $0x360] sm:$0xff]  ;;  %v10070_v6 = vld [vmem:[%s13767_s0 + $0x28] sm:$0xff] }
 0x14e   :  { %v367_v56 = vpop.f32.mrf.mxu0  ;;  %v681_v57 = vpop.f32.mrf.mxu1  ;;  %1504 = vmatpush2.msra.mxu0 %v9864_v58 }
 0x14f   :  { %7703 = vmatmul.mubr.msk.f32.gmra.mxu0 %vm758_vm3, %v681_v57  ;;  %7729 = vmatmul.mubr.msk.f32.gmra.mxu1 %vm758_vm3, %v367_v56  ;;  %v7747_v56 = vld [vmem:[%s13768_s2 + $0x378] sm:$0xff]  ;;  %v10082_v57 = vld [vmem:[%s13767_s0 + $0x20] sm:$0xff] }
 0x150   :  { %1505 = vmatprep.subr.mxu0 %v13782_v0  ;;  %v369_v59 = vpop.f32.mrf.mxu0  ;;  %v683_v8 = vpop.f32.mrf.mxu1  ;;  %1032 = vmatprep.mubr.f32.mxu0 %v13782_v0 }
 0x151   :  { %1506 = vmatpush2.msra.mxu0 %v9877_v61  ;;  %1319 = vmatprep.mubr.f32.mxu1 %v13782_v0  ;;  %v7746_v59 = vld [vmem:[%s13768_s2 + $0x370] sm:$0xff]  ;;  %v7749_v8 = vld [vmem:[%s13768_s2 + $0x388] sm:$0xff] }
 0x152   :  { %1507 = vmatprep.subr.mxu0 %v13782_v0  ;;  %v372_v62 = vpop.f32.mrf.mxu0  ;;  %v686_v63 = vpop.f32.mrf.mxu1 }
 0x153   :  { %1508 = vmatpush2.msra.mxu0 %v9886_v16  ;;  %7730 = vmatmul.mubr.msk.f32.gmra.mxu1 %vm758_vm3, %v372_v62  ;;  %v7748_v62 = vld [vmem:[%s13768_s2 + $0x380] sm:$0xff] }
 0x154   :  { %7704 = vmatmul.mubr.msk.f32.gmra.mxu0 %vm758_vm3, %v686_v63  ;;  %1509 = vmatprep.subr.mxu0 %v13782_v0  ;;  %v374_v55 = vpop.f32.mrf.mxu0  ;;  %v688_v17 = vpop.f32.mrf.mxu1  ;;  %v10114_v63 = vld [vmem:[%s13767_s0 + $0x8] sm:$0xff] }
 0x155   :  { %1510 = vmatpush2.msra.mxu0 %v9895_v18  ;;  %1038 = vmatprep.mubr.f32.mxu0 %v13782_v0  ;;  %v7751_v55 = vld [vmem:[%s13768_s2 + $0x398] sm:$0xff]  ;;  %v2344_v17 = vld [vmem:[%s13769_s1 + $0x80] sm:$0xff] }
 0x156   :  { %1511 = vmatprep.subr.mxu0 %v13782_v0  ;;  %v377_v20 = vpop.f32.mrf.mxu0  ;;  %v691_v10 = vpop.f32.mrf.mxu1  ;;  %1325 = vmatprep.mubr.f32.mxu1 %v13782_v0 }
 0x157   :  { %1512 = vmatpush2.msra.mxu0 %v9907_v19  ;;  %7731 = vmatmul.mubr.msk.f32.gmra.mxu1 %vm758_vm3, %v377_v20  ;;  %v10129_v20 = vld [vmem:[%s13769_s1 + $0x88] sm:$0xff] }
 0x158   :  { %7705 = vmatmul.mubr.msk.f32.gmra.mxu0 %vm758_vm3, %v691_v10  ;;  %1513 = vmatprep.subr.mxu0 %v13782_v0  ;;  %v693_v23 = vpop.f32.mrf.mxu1  ;;  %v379_v24 = vpop.f32.mrf.mxu0 }
 0x159   :  { %1514 = vmatpush2.msra.mxu0 %v9922_v25  ;;  %7780 = vmatprep.mubr.msk.f32.mxu0 %vm123_vm0, %v7733_v21  ;;  %v1677_v10 = vpop.permute.xlu1 %1676  ;;  %v7750_v21 = vld [vmem:[%s13768_s2 + $0x390] sm:$0xff] }
 0x15a   :  { %1515 = vmatprep.subr.mxu0 %v13782_v0  ;;  %1841 = vmatprep.mubr.f32.mxu1 %v13782_v0  ;;  %v2341_v24 = vld [vmem:[%s13769_s1 + $0x30] sm:$0xff] }
 0x15b   :  { %1516 = vmatpush2.msra.mxu0 %v9937_v12  ;;  %2372 = vrot.lane.b32.xlu0 %v2344_v17, %s8952_s19  ;;  %v7767_v17 = vld [vmem:[%s13768_s2 + $0x418] sm:$0xff] }
 0x15c   :  { %1518 = vmatmul.mubr.f32.vlgmr.msra.gmra.mxu0 %v7732_v26  ;;  %2155 = vmatprep.subr.mxu0 %v13782_v0 }
 0x15d   :  { %7781 = vmatprep.mubr.msk.f32.mxu0 %vm123_vm0, %v7735_v27  ;;  %2156 = vmatpush1.msra.mxu0 %v9949_v29  ;;  %v1675_v11 = vpop.permute.xlu1 %1674  ;;  %v7752_v27 = vld [vmem:[%s13768_s2 + $0x3a0] sm:$0xff] }
 0x15e   :  { %2157 = vmatprep.subr.mxu0 %v13782_v0  ;;  %2374 = vrot.lane.b32.xlu1 %v10129_v20, %s8952_s19 }
 0x15f   :  { %2158 = vmatpush1.msra.mxu0 %v9960_v13  ;;  %2370 = vrot.lane.b32.xlu0 %v9733_v7, %s8952_s19  ;;  %v7755_v7 = vld [vmem:[%s13768_s2 + $0x3b8] sm:$0xff] }
 0x160   :  { %1523 = vmatmul.mubr.f32.gmra.mxu0 %v7734_v28  ;;  %2159 = vmatprep.subr.mxu0 %v13782_v0  ;;  %v1691_v28 = vsel %vm1686_vm4, %v1675_v11, %v1677_v10  ;;  %v7773_v11 = vld [vmem:[%s13768_s2 + $0x448] sm:$0xff] }
 0x161   :  { %7782 = vmatprep.mubr.msk.f32.mxu0 %vm123_vm0, %v7737_v30  ;;  %2160 = vmatpush1.msra.mxu0 %v9971_v32  ;;  %v10167_v30 = vld [vmem:[%s13769_s1 + $0x38] sm:$0xff] }
 0x162   :  { %2161 = vmatprep.subr.mxu0 %v13782_v0  ;;  %2366 = vrot.lane.b32.xlu1 %v2341_v24, %s8952_s19  ;;  %v7770_v24 = vld [vmem:[%s13768_s2 + $0x430] sm:$0xff] }
 0x163   :  { %2162 = vmatpush1.msra.mxu0 %v9981_v14  ;;  %2368 = vrot.lane.b32.xlu0 %v10167_v30, %s8952_s19 }
 0x164   :  { %1528 = vmatmul.mubr.f32.gmra.mxu0 %v7736_v31  ;;  %2163 = vmatprep.subr.mxu0 %v13782_v0  ;;  %v7754_v31 = vld [vmem:[%s13768_s2 + $0x3b0] sm:$0xff] }
 0x165   :  { %7783 = vmatprep.mubr.msk.f32.mxu0 %vm123_vm0, %v7739_v33  ;;  %2164 = vmatpush1.msra.mxu0 %v9992_v36  ;;  %v7757_v33 = vld [vmem:[%s13768_s2 + $0x3c8] sm:$0xff] }
 0x166   :  { %2165 = vmatprep.subr.mxu0 %v13782_v0  ;;  %2364 = vrot.lane.b32.xlu1 %v9757_v9, %s8952_s19 }
 0x167   :  { %2166 = vmatpush1.msra.mxu0 %v10002_v37 }
 0x168   :  { %1533 = vmatmul.mubr.f32.gmra.mxu0 %v7738_v15  ;;  %2167 = vmatprep.subr.mxu0 %v13782_v0  ;;  %v7759_v15 = vld [vmem:[%s13768_s2 + $0x3d8] sm:$0xff] }
 0x169   :  { %7784 = vmatprep.mubr.msk.f32.mxu0 %vm123_vm0, %v7741_v1  ;;  %2168 = vmatpush1.msra.mxu0 %v10017_v43 }
 0x16a   :  { %2169 = vmatprep.subr.mxu0 %v13782_v0 }
 0x16b   :  { %2170 = vmatpush1.msra.mxu0 %v10028_v45 }
 0x16c   :  { %1538 = vmatmul.mubr.f32.gmra.mxu0 %v7740_v42  ;;  %2171 = vmatprep.subr.mxu0 %v13782_v0  ;;  %v7760_v42 = vld [vmem:[%s13768_s2 + $0x3e0] sm:$0xff] }
 0x16d   :  { %7785 = vmatprep.mubr.msk.f32.mxu0 %vm123_vm0, %v7743_v44  ;;  %2172 = vmatpush1.msra.mxu0 %v10046_v50 }
 0x16e   :  { %2173 = vmatprep.subr.mxu0 %v13782_v0 }
 0x16f   :  { %2174 = vmatpush1.msra.mxu0 %v10057_v52 }
 0x170   :  { %1543 = vmatmul.mubr.f32.gmra.mxu0 %v7742_v5  ;;  %2175 = vmatprep.subr.mxu0 %v13782_v0  ;;  %v7763_v5 = vld [vmem:[%s13768_s2 + $0x3f8] sm:$0xff] }
 0x171   :  { %7786 = vmatprep.mubr.msk.f32.mxu0 %vm123_vm0, %v7745_v51  ;;  %2176 = vmatpush1.msra.mxu0 %v10070_v6  ;;  %v7762_v51 = vld [vmem:[%s13768_s2 + $0x3f0] sm:$0xff] }
 0x172   :  { %2177 = vmatprep.subr.mxu0 %v13782_v0 }
 0x173   :  { %2178 = vmatpush1.msra.mxu0 %v10082_v57 }
 0x174   :  { %1548 = vmatmul.mubr.f32.gmra.mxu0 %v7744_v53  ;;  %2179 = vmatprep.subr.mxu0 %v13782_v0 }
 0x175   :  { %7787 = vmatprep.mubr.msk.f32.mxu0 %vm123_vm0, %v7747_v56  ;;  %2180 = vmatpush1.msra.mxu0 %v10093_v4 }
 0x176   :  { %2181 = vmatprep.subr.mxu0 %v13782_v0 }
 0x177   :  { %2182 = vmatpush1.msra.mxu0 %v10103_v60 }
 0x178   :  { %1553 = vmatmul.mubr.f32.gmra.mxu0 %v7746_v59  ;;  %2183 = vmatprep.subr.mxu0 %v13782_v0  ;;  %v7765_v59 = vld [vmem:[%s13768_s2 + $0x408] sm:$0xff] }
 0x179   :  { %7788 = vmatprep.mubr.msk.f32.mxu0 %vm123_vm0, %v7749_v8  ;;  %2184 = vmatpush1.msra.mxu0 %v10114_v63 }
 0x17a   :  { %2185 = vmatprep.subr.mxu0 %v13782_v0 }
 0x17b   :  { %2186 = vmatpush1.msra.mxu0 %v9802_v35 }
 0x17c   :  { %1558 = vmatmul.mubr.f32.gmra.mxu0 %v7748_v62  ;;  %2195 = vmatprep.subr.mxu0 %v13782_v0  ;;  %v1679_v23 = vpop.permute.xlu0 %1678 }
 0x17d   :  { %7789 = vmatprep.mubr.msk.f32.mxu0 %vm123_vm0, %v7751_v55  ;;  %2196 = vmatpush2.msra.mxu0 %v9813_v38  ;;  %v1692_v26 = vsel %vm1686_vm4, %v1677_v10, %v1679_v23  ;;  %v7764_v55 = vld [vmem:[%s13768_s2 + $0x400] sm:$0xff]  ;;  %v7766_v10 = vld [vmem:[%s13768_s2 + $0x410] sm:$0xff]  ;;  %v7771_v23 = vld [vmem:[%s13768_s2 + $0x438] sm:$0xff] }
 0x17e   :  { %2197 = vmatprep.subr.mxu0 %v13782_v0  ;;  %1803 = vmatprep.subr.mxu1 %v1692_v26  ;;  %v7772_v26 = vld [vmem:[%s13768_s2 + $0x440] sm:$0xff] }
 0x17f   :  { %2198 = vmatpush2.msra.mxu0 %v9824_v3  ;;  %1804 = vmatpush1.msra.mxu1 %v1691_v28  ;;  %v7777_v28 = vld [vmem:[%s13768_s2 + $0x468] sm:$0xff] }
 0x180   :  { %1563 = vmatmul.mubr.f32.gmra.mxu0 %v7750_v21  ;;  %2199 = vmatprep.subr.mxu0 %v13782_v0  ;;  %v1671_v1 = vpop.permute.xlu0 %1670  ;;  %v7769_v21 = vld [vmem:[%s13768_s2 + $0x428] sm:$0xff] }
 0x181   :  { %7790 = vmatprep.mubr.msk.f32.mxu0 %vm123_vm0, %v7753_v22  ;;  %2200 = vmatpush2.msra.mxu0 %v9835_v46  ;;  %v7768_v22 = vld [vmem:[%s13768_s2 + $0x420] sm:$0xff] }
 0x182   :  { %2201 = vmatprep.subr.mxu0 %v13782_v0 }
 0x183   :  { %2202 = vmatpush2.msra.mxu0 %v9846_v47 }
 0x184   :  { %1568 = vmatmul.mubr.f32.gmra.mxu0 %v7752_v27  ;;  %2203 = vmatprep.subr.mxu0 %v13782_v0  ;;  %v1669_v9 = vpop.permute.xlu0 %1668  ;;  %v7775_v27 = vld [vmem:[%s13768_s2 + $0x458] sm:$0xff] }
 0x185   :  { %7791 = vmatprep.mubr.msk.f32.mxu0 %vm123_vm0, %v7755_v7  ;;  %2204 = vmatpush2.msra.mxu0 %v9855_v54  ;;  %v1689_v44 = vsel %vm1686_vm4, %v1669_v9, %v1671_v1  ;;  %v7774_v7 = vld [vmem:[%s13768_s2 + $0x450] sm:$0xff]  ;;  %v7833_v9 = vld [vmem:[%s13768_s2 + $0x498] sm:$0xff] }
 0x186   :  { %2205 = vmatprep.subr.mxu0 %v13782_v0 }
 0x187   :  { %2206 = vmatpush2.msra.mxu0 %v9864_v58 }
 0x188   :  { %1573 = vmatmul.mubr.f32.gmra.mxu0 %v7754_v31  ;;  %2207 = vmatprep.subr.mxu0 %v13782_v0  ;;  %v1673_v39 = vpop.permute.xlu1 %1672  ;;  %v7776_v31 = vld [vmem:[%s13768_s2 + $0x460] sm:$0xff] }
 0x189   :  { %7792 = vmatprep.mubr.msk.f32.mxu0 %vm123_vm0, %v7757_v33  ;;  %2208 = vmatpush2.msra.mxu0 %v9877_v61  ;;  %v1690_v48 = vsel %vm1686_vm4, %v1671_v1, %v1673_v39  ;;  %v3052_v33 = vld [vmem:[%s13769_s1 + $0x130] sm:$0xf]  ;;  %v3051_v39 = vld [vmem:[%s13769_s1 + $0x128] sm:$0xf] }
 0x18a   :  { %2209 = vmatprep.subr.mxu0 %v13782_v0  ;;  %1805 = vmatprep.subr.mxu1 %v1690_v48  ;;  %v7778_v1 = vld [vmem:[%s13768_s2 + $0x470] sm:$0xff] }
 0x18b   :  { %2210 = vmatpush2.msra.mxu0 %v9886_v16  ;;  %1806 = vmatpush1.msra.mxu1 %v1689_v44 }
 0x18c   :  { %1578 = vmatmul.mubr.f32.gmra.mxu0 %v7756_v34  ;;  %2211 = vmatprep.subr.mxu0 %v13782_v0  ;;  %v1665_v41 = vpop.permute.xlu1 %1664  ;;  %v7779_v34 = vld [vmem:[%s13768_s2 + $0x478] sm:$0xff] }
 0x18d   :  { %7793 = vmatprep.mubr.msk.f32.mxu0 %vm123_vm0, %v7759_v15  ;;  %2212 = vmatpush2.msra.mxu0 %v9895_v18  ;;  %v3053_v15 = vld [vmem:[%s13769_s1 + $0x138] sm:$0xf] }
 0x18e   :  { %2213 = vmatprep.subr.mxu0 %v13782_v0  ;;  %3086 = vrot.lane.b32.xlu0 %v3052_v33, %s8953_s25 }
 0x18f   :  { %2214 = vmatpush2.msra.mxu0 %v9907_v19  ;;  %3088 = vrot.lane.b32.xlu1 %v3053_v15, %s8953_s25 }
 0x190   :  { %1583 = vmatmul.mubr.f32.gmra.mxu0 %v7758_v2  ;;  %2215 = vmatprep.subr.mxu0 %v13782_v0  ;;  %v1667_v53 = vpop.permute.xlu0 %1666  ;;  %v7831_v2 = vld [vmem:[%s13768_s2 + $0x488] sm:$0xff] }
 0x191   :  { %7794 = vmatprep.mubr.msk.f32.mxu0 %vm123_vm0, %v7761_v40  ;;  %2216 = vmatpush2.msra.mxu0 %v9922_v25  ;;  %v1688_v62 = vsel %vm1686_vm4, %v1665_v41, %v1667_v53  ;;  %v7830_v40 = vld [vmem:[%s13768_s2 + $0x480] sm:$0xff]  ;;  %v7835_v53 = vld [vmem:[%s13768_s2 + $0x4a8] sm:$0xff] }
 0x192   :  { %2217 = vmatprep.subr.mxu0 %v13782_v0  ;;  %1807 = vmatprep.subr.mxu1 %v1688_v62 }
 0x193   :  { %2218 = vmatpush2.msra.mxu0 %v9937_v12  ;;  %v1663_v56 = vpop.permute.xlu1 %1662  ;;  %3084 = vrot.lane.b32.xlu0 %v3051_v39, %s8953_s25 }
 0x194   :  { %1588 = vmatmul.mubr.f32.gmra.mxu0 %v7760_v42  ;;  %2857 = vmatprep.subr.mxu0 %v13782_v0  ;;  %v1687_v8 = vsel %vm1686_vm4, %v1663_v56, %v1665_v41 }
 0x195   :  { %7795 = vmatprep.mubr.msk.f32.mxu0 %vm123_vm0, %v7763_v5  ;;  %1808 = vmatpush1.msra.mxu1 %v1687_v8 }
 0x198   :  { %1593 = vmatmul.mubr.f32.gmra.mxu0 %v7762_v51  ;;  %v7832_v51 = vld [vmem:[%s13768_s2 + $0x490] sm:$0xff] }
 0x199   :  { %7796 = vmatprep.mubr.msk.f32.mxu0 %vm123_vm0, %v7765_v59 }
 0x19c   :  { %1598 = vmatmul.mubr.f32.gmra.mxu0 %v7764_v55  ;;  %v2387_v15 = vpop.permute.xlu1 %2386 }
 0x19d   :  { %7797 = vmatprep.mubr.msk.f32.mxu0 %vm123_vm0, %v7767_v17 }
 0x1a0   :  { %1603 = vmatmul.mubr.f32.gmra.mxu0 %v7766_v10 }
 0x1a1   :  { %7798 = vmatprep.mubr.msk.f32.mxu0 %vm123_vm0, %v7769_v21 }
 0x1a4   :  { %1608 = vmatmul.mubr.f32.gmra.mxu0 %v7768_v22 }
 0x1a5   :  { %7799 = vmatprep.mubr.msk.f32.mxu0 %vm123_vm0, %v7771_v23 }
 0x1a8   :  { %1613 = vmatmul.mubr.f32.gmra.mxu0 %v7770_v24 }
 0x1a9   :  { %7800 = vmatprep.mubr.msk.f32.mxu0 %vm123_vm0, %v7773_v11 }
 0x1ac   :  { %1618 = vmatmul.mubr.f32.gmra.mxu0 %v7772_v26 }
 0x1ad   :  { %7801 = vmatprep.mubr.msk.f32.mxu0 %vm123_vm0, %v7775_v27 }
 0x1b0   :  { %1623 = vmatmul.mubr.f32.gmra.mxu0 %v7774_v7 }
 0x1b1   :  { %7802 = vmatprep.mubr.msk.f32.mxu0 %vm123_vm0, %v7777_v28  ;;  %v7841_v28 = vld [vmem:[%s13768_s2 + $0x4d8] sm:$0xff] }
 0x1b4   :  { %1628 = vmatmul.mubr.f32.gmra.mxu0 %v7776_v31 }
 0x1b5   :  { %7803 = vmatprep.mubr.msk.f32.mxu0 %vm123_vm0, %v7779_v34 }
 0x1b8   :  { %1633 = vmatmul.mubr.f32.gmra.mxu0 %v7778_v1  ;;  %v3050_v1 = vld [vmem:[%s13769_s1 + $0xe8] sm:$0xff] }
 0x1b9   :  { %7878 = vmatprep.mubr.msk.f32.mxu0 %vm123_vm0, %v7831_v2  ;;  %3082 = vrot.lane.b32.xlu0 %v3050_v1, %s8953_s25  ;;  %v7851_v1 = vld [vmem:[%s13768_s2 + $0x528] sm:$0xff] }
 0x1bb   :  { %v902_v41 = vpop.f32.mrf.mxu0  ;;  %v1189_v42 = vpop.f32.mrf.mxu1 }
 0x1bc   :  { %v10303_v44 = vadd.f32 %v1189_v42, %v902_v41  ;;  %2220 = vmatmul.mubr.f32.vlgmr.msra.gmra.mxu0 %v7830_v40 }
 0x1bd   :  { %v10305_v48 = vpop.f32.mrf.mxu0  ;;  %v10307_v5 = vpop.f32.mrf.mxu1  ;;  %7879 = vmatprep.mubr.msk.f32.mxu0 %vm123_vm0, %v7833_v9  ;;  %2858 = vmatpush1.msra.mxu0 %v9949_v29  ;;  %v7834_v29 = vld [vmem:[%s13768_s2 + $0x4a0] sm:$0xff]  ;;  %v7843_v9 = vld [vmem:[%s13768_s2 + $0x4e8] sm:$0xff] }
 0x1be   :  { %2859 = vmatprep.subr.mxu0 %v13782_v0 }
 0x1bf   :  { %v908_v56 = vpop.f32.mrf.mxu0  ;;  %v1195_v59 = vpop.f32.mrf.mxu1  ;;  %2860 = vmatpush1.msra.mxu0 %v9960_v13  ;;  %v7837_v13 = vld [vmem:[%s13768_s2 + $0x4b8] sm:$0xff] }
 0x1c0   :  { %v10319_v8 = vadd.f32 %v1195_v59, %v908_v56  ;;  %2225 = vmatmul.mubr.f32.gmra.mxu0 %v7832_v51  ;;  %2861 = vmatprep.subr.mxu0 %v13782_v0  ;;  %v7842_v56 = vld [vmem:[%s13768_s2 + $0x4e0] sm:$0xff] }
 0x1c1   :  { %v10322_v62 = vpop.f32.mrf.mxu0  ;;  %v10324_v55 = vpop.f32.mrf.mxu1  ;;  %7880 = vmatprep.mubr.msk.f32.mxu0 %vm123_vm0, %v7835_v53  ;;  %2862 = vmatpush1.msra.mxu0 %v9971_v32  ;;  %v7836_v32 = vld [vmem:[%s13768_s2 + $0x4b0] sm:$0xff] }
 0x1c2   :  { %2863 = vmatprep.subr.mxu0 %v13782_v0 }
 0x1c3   :  { %v914_v17 = vpop.f32.mrf.mxu0  ;;  %v1201_v10 = vpop.f32.mrf.mxu1  ;;  %2864 = vmatpush1.msra.mxu0 %v9981_v14  ;;  %v7839_v14 = vld [vmem:[%s13768_s2 + $0x4c8] sm:$0xff] }
 0x1c4   :  { %v10336_v21 = vadd.f32 %v1201_v10, %v914_v17  ;;  %2230 = vmatmul.mubr.f32.gmra.mxu0 %v7834_v29  ;;  %2865 = vmatprep.subr.mxu0 %v13782_v0  ;;  %v7844_v10 = vld [vmem:[%s13768_s2 + $0x4f0] sm:$0xff] }
 0x1c5   :  { %v10339_v22 = vpop.f32.mrf.mxu0  ;;  %v10341_v23 = vpop.f32.mrf.mxu1  ;;  %7881 = vmatprep.mubr.msk.f32.mxu0 %vm123_vm0, %v7837_v13  ;;  %2866 = vmatpush1.msra.mxu0 %v9992_v36  ;;  %v7838_v36 = vld [vmem:[%s13768_s2 + $0x4c0] sm:$0xff] }
 0x1c6   :  { %2867 = vmatprep.subr.mxu0 %v13782_v0 }
 0x1c7   :  { %v920_v24 = vpop.f32.mrf.mxu0  ;;  %v1207_v11 = vpop.f32.mrf.mxu1  ;;  %2868 = vmatpush1.msra.mxu0 %v10002_v37  ;;  %v3049_v37 = vld [vmem:[%s13769_s1 + $0xe0] sm:$0xff] }
 0x1c8   :  { %v10353_v26 = vadd.f32 %v1207_v11, %v920_v24  ;;  %2235 = vmatmul.mubr.f32.gmra.mxu0 %v7836_v32  ;;  %2869 = vmatprep.subr.mxu0 %v13782_v0 }
 0x1c9   :  { %v10356_v27 = vpop.f32.mrf.mxu0  ;;  %v10358_v7 = vpop.f32.mrf.mxu1  ;;  %7882 = vmatprep.mubr.msk.f32.mxu0 %vm123_vm0, %v7839_v14  ;;  %2870 = vmatpush1.msra.mxu0 %v10017_v43 }
 0x1ca   :  { %2871 = vmatprep.subr.mxu0 %v13782_v0  ;;  %3080 = vrot.lane.b32.xlu1 %v3049_v37, %s8953_s25  ;;  %v10377_v43 = vpop.permute.xlu0 %2384 }
 0x1cb   :  { %v926_v31 = vpop.f32.mrf.mxu0  ;;  %v1213_v33 = vpop.f32.mrf.mxu1  ;;  %2872 = vmatpush1.msra.mxu0 %v10028_v45  ;;  %v7840_v45 = vld [vmem:[%s13768_s2 + $0x4d0] sm:$0xff]  ;;  %v2396_v40 = vsel %vm2388_vm5, %v10377_v43, %v2387_v15 }
 0x1cc   :  { %v10374_v34 = vadd.f32 %v1213_v33, %v926_v31  ;;  %2240 = vmatmul.mubr.f32.gmra.mxu0 %v7838_v36  ;;  %2873 = vmatprep.subr.mxu0 %v13782_v0  ;;  %v3046_v36 = vld [vmem:[%s13769_s1 + $0x90] sm:$0xff] }
 0x1cd   :  { %v10382_v39 = vpop.f32.mrf.mxu0  ;;  %v10384_v2 = vpop.f32.mrf.mxu1  ;;  %7883 = vmatprep.mubr.msk.f32.mxu0 %vm123_vm0, %v7841_v28  ;;  %2874 = vmatpush1.msra.mxu0 %v10046_v50 }
 0x1ce   :  { %2875 = vmatprep.subr.mxu0 %v13782_v0  ;;  %7902 = vmatprep.subr.msk.mxu1 %vm831_vm1, %v2396_v40 }
 0x1cf   :  { %v932_v41 = vpop.f32.mrf.mxu0  ;;  %v1219_v42 = vpop.f32.mrf.mxu1  ;;  %2876 = vmatpush1.msra.mxu0 %v10057_v52  ;;  %v7845_v52 = vld [vmem:[%s13768_s2 + $0x4f8] sm:$0xff]  ;;  %3078 = vrot.lane.b32.xlu1 %v10037_v49, %s8953_s25  ;;  %v7847_v49 = vld [vmem:[%s13768_s2 + $0x508] sm:$0xff] }
 0x1d0   :  { %v10400_v51 = vadd.f32 %v1219_v42, %v932_v41  ;;  %2245 = vmatmul.mubr.f32.gmra.mxu0 %v7840_v45  ;;  %2877 = vmatprep.subr.mxu0 %v13782_v0 }
 0x1d1   :  { %v10403_v50 = vpop.f32.mrf.mxu0  ;;  %v10405_v53 = vpop.f32.mrf.mxu1  ;;  %7884 = vmatprep.mubr.msk.f32.mxu0 %vm123_vm0, %v7843_v9  ;;  %2878 = vmatpush1.msra.mxu0 %v10070_v6  ;;  %v3043_v9 = vld [vmem:[%s13769_s1 + $0x40] sm:$0xff] }
 0x1d2   :  { %2879 = vmatprep.subr.mxu0 %v13782_v0  ;;  %3074 = vrot.lane.b32.xlu0 %v3046_v36, %s8953_s25  ;;  %v7854_v36 = vld [vmem:[%s13768_s2 + $0x540] sm:$0xff] }
 0x1d3   :  { %v938_v59 = vpop.f32.mrf.mxu0  ;;  %v1225_v29 = vpop.f32.mrf.mxu1  ;;  %2880 = vmatpush1.msra.mxu0 %v10082_v57 }
 0x1d4   :  { %v10419_v13 = vadd.f32 %v1225_v29, %v938_v59  ;;  %2250 = vmatmul.mubr.f32.gmra.mxu0 %v7842_v56  ;;  %2881 = vmatprep.subr.mxu0 %v13782_v0  ;;  %v3044_v56 = vld [vmem:[%s13769_s1 + $0x48] sm:$0xff] }
 0x1d5   :  { %v10422_v17 = vpop.f32.mrf.mxu0  ;;  %v10424_v6 = vpop.f32.mrf.mxu1  ;;  %7885 = vmatprep.mubr.msk.f32.mxu0 %vm123_vm0, %v7845_v52  ;;  %2882 = vmatpush1.msra.mxu0 %v10093_v4  ;;  %v7846_v4 = vld [vmem:[%s13768_s2 + $0x500] sm:$0xff] }
 0x1d6   :  { %2883 = vmatprep.subr.mxu0 %v13782_v0  ;;  %3072 = vrot.lane.b32.xlu0 %v10129_v20, %s8953_s25  ;;  %v7853_v20 = vld [vmem:[%s13768_s2 + $0x538] sm:$0xff] }
 0x1d7   :  { %v944_v57 = vpop.f32.mrf.mxu0  ;;  %v1231_v32 = vpop.f32.mrf.mxu1  ;;  %2884 = vmatpush1.msra.mxu0 %v10103_v60  ;;  %v7849_v60 = vld [vmem:[%s13768_s2 + $0x518] sm:$0xff] }
 0x1d8   :  { %v10436_v14 = vadd.f32 %v1231_v32, %v944_v57  ;;  %2255 = vmatmul.mubr.f32.gmra.mxu0 %v7844_v10  ;;  %2885 = vmatprep.subr.mxu0 %v13782_v0 }
 0x1d9   :  { %v10439_v24 = vpop.f32.mrf.mxu0  ;;  %v10441_v11 = vpop.f32.mrf.mxu1  ;;  %7886 = vmatprep.mubr.msk.f32.mxu0 %vm123_vm0, %v7847_v49  ;;  %2886 = vmatpush1.msra.mxu0 %v10114_v63  ;;  %v3047_v63 = vld [vmem:[%s13769_s1 + $0x98] sm:$0xff]  ;;  %v7852_v49 = vld [vmem:[%s13768_s2 + $0x530] sm:$0xff] }
 0x1da   :  { %2887 = vmatprep.subr.mxu0 %v13782_v0  ;;  %3076 = vrot.lane.b32.xlu1 %v3047_v63, %s8953_s25 }
 0x1db   :  { %v950_v37 = vpop.f32.mrf.mxu0  ;;  %v1237_v28 = vpop.f32.mrf.mxu1  ;;  %2888 = vmatpush1.msra.mxu0 %v9802_v35  ;;  %v7848_v35 = vld [vmem:[%s13768_s2 + $0x510] sm:$0xff]  ;;  %3070 = vrot.lane.b32.xlu0 %v3044_v56, %s8953_s25 }
 0x1dc   :  { %v10460_v31 = vadd.f32 %v1237_v28, %v950_v37  ;;  %2260 = vmatmul.mubr.f32.gmra.mxu0 %v7846_v4  ;;  %2897 = vmatprep.subr.mxu0 %v13782_v0 }
 0x1dd   :  { %v10463_v33 = vpop.f32.mrf.mxu0  ;;  %v10465_v15 = vpop.f32.mrf.mxu1  ;;  %7887 = vmatprep.mubr.msk.f32.mxu0 %vm123_vm0, %v7849_v60  ;;  %2898 = vmatpush2.msra.mxu0 %v9813_v38 }
 0x1de   :  { %2899 = vmatprep.subr.mxu0 %v13782_v0  ;;  %3068 = vrot.lane.b32.xlu1 %v3043_v9, %s8953_s25 }
 0x1df   :  { %v956_v45 = vpop.f32.mrf.mxu0  ;;  %v1243_v40 = vpop.f32.mrf.mxu1  ;;  %2900 = vmatpush2.msra.mxu0 %v9824_v3  ;;  %v7850_v3 = vld [vmem:[%s13768_s2 + $0x520] sm:$0xff] }
 0x1e0   :  { %v10483_v38 = vadd.f32 %v1243_v40, %v956_v45  ;;  %2265 = vmatmul.mubr.f32.gmra.mxu0 %v7848_v35  ;;  %2901 = vmatprep.subr.mxu0 %v13782_v0 }
 0x1e1   :  { %v10486_v41 = vpop.f32.mrf.mxu0  ;;  %v10488_v42 = vpop.f32.mrf.mxu1  ;;  %7888 = vmatprep.mubr.msk.f32.mxu0 %vm123_vm0, %v7851_v1  ;;  %2902 = vmatpush2.msra.mxu0 %v9835_v46 }
 0x1e2   :  { %2903 = vmatprep.subr.mxu0 %v13782_v0  ;;  %3066 = vrot.lane.b32.xlu1 %v10167_v30, %s8953_s25 }
 0x1e3   :  { %v962_v52 = vpop.f32.mrf.mxu0  ;;  %v1249_v59 = vpop.f32.mrf.mxu1  ;;  %2904 = vmatpush2.msra.mxu0 %v9846_v47  ;;  %v7855_v47 = vld [vmem:[%s13768_s2 + $0x548] sm:$0xff] }
 0x1e4   :  { %v10505_v29 = vadd.f32 %v1249_v59, %v962_v52  ;;  %2270 = vmatmul.mubr.f32.gmra.mxu0 %v7850_v3  ;;  %2905 = vmatprep.subr.mxu0 %v13782_v0 }
 0x1e5   :  { %v10508_v46 = vpop.f32.mrf.mxu0  ;;  %v10510_v10 = vpop.f32.mrf.mxu1  ;;  %7889 = vmatprep.mubr.msk.f32.mxu0 %vm123_vm0, %v7853_v20  ;;  %2906 = vmatpush2.msra.mxu0 %v9855_v54 }
 0x1e6   :  { %2907 = vmatprep.subr.mxu0 %v13782_v0 }
 0x1e7   :  { %v968_v57 = vpop.f32.mrf.mxu0  ;;  %v1255_v32 = vpop.f32.mrf.mxu1  ;;  %2908 = vmatpush2.msra.mxu0 %v9864_v58  ;;  %v7857_v58 = vld [vmem:[%s13768_s2 + $0x558] sm:$0xff] }
 0x1e8   :  { %v10524_v4 = vadd.f32 %v1255_v32, %v968_v57  ;;  %2275 = vmatmul.mubr.f32.gmra.mxu0 %v7852_v49  ;;  %2909 = vmatprep.subr.mxu0 %v13782_v0 }
 0x1e9   :  { %v10527_v60 = vpop.f32.mrf.mxu0  ;;  %v10529_v54 = vpop.f32.mrf.mxu1  ;;  %7890 = vmatprep.mubr.msk.f32.mxu0 %vm123_vm0, %v7855_v47  ;;  %2910 = vmatpush2.msra.mxu0 %v9877_v61  ;;  %v7856_v61 = vld [vmem:[%s13768_s2 + $0x550] sm:$0xff]  ;;  %v7863_v47 = vld [vmem:[%s13768_s2 + $0x588] sm:$0xff] }
 0x1ea   :  { %2911 = vmatprep.subr.mxu0 %v13782_v0 }
 0x1eb   :  { %v974_v30 = vpop.f32.mrf.mxu0  ;;  %v1261_v37 = vpop.f32.mrf.mxu1  ;;  %2912 = vmatpush2.msra.mxu0 %v9886_v16  ;;  %v7859_v16 = vld [vmem:[%s13768_s2 + $0x568] sm:$0xff] }
 0x1ec   :  { %v10541_v28 = vadd.f32 %v1261_v37, %v974_v30  ;;  %2280 = vmatmul.mubr.f32.gmra.mxu0 %v7854_v36  ;;  %2913 = vmatprep.subr.mxu0 %v13782_v0  ;;  %v7862_v30 = vld [vmem:[%s13768_s2 + $0x580] sm:$0xff]  ;;  %v7865_v37 = vld [vmem:[%s13768_s2 + $0x598] sm:$0xff] }
 0x1ed   :  { %v10544_v63 = vpop.f32.mrf.mxu0  ;;  %v10546_v35 = vpop.f32.mrf.mxu1  ;;  %7891 = vmatprep.mubr.msk.f32.mxu0 %vm123_vm0, %v7857_v58  ;;  %2914 = vmatpush2.msra.mxu0 %v9895_v18  ;;  %v7858_v18 = vld [vmem:[%s13768_s2 + $0x560] sm:$0xff] }
 0x1ee   :  { %2915 = vmatprep.subr.mxu0 %v13782_v0 }
 0x1ef   :  { %v980_v1 = vpop.f32.mrf.mxu0  ;;  %v1267_v45 = vpop.f32.mrf.mxu1  ;;  %2916 = vmatpush2.msra.mxu0 %v9907_v19  ;;  %v7861_v19 = vld [vmem:[%s13768_s2 + $0x578] sm:$0xff] }
 0x1f0   :  { %v10558_v40 = vadd.f32 %v1267_v45, %v980_v1  ;;  %2285 = vmatmul.mubr.f32.gmra.mxu0 %v7856_v61  ;;  %2917 = vmatprep.subr.mxu0 %v13782_v0 }
 0x1f1   :  { %v10561_v9 = vpop.f32.mrf.mxu0  ;;  %v10563_v3 = vpop.f32.mrf.mxu1  ;;  %7892 = vmatprep.mubr.msk.f32.mxu0 %vm123_vm0, %v7859_v16  ;;  %2918 = vmatpush2.msra.mxu0 %v9922_v25  ;;  %v7860_v25 = vld [vmem:[%s13768_s2 + $0x570] sm:$0xff] }
 0x1f2   :  { %2919 = vmatprep.subr.mxu0 %v13782_v0 }
 0x1f3   :  { %v986_v20 = vpop.f32.mrf.mxu0  ;;  %v1273_v56 = vpop.f32.mrf.mxu1  ;;  %2920 = vmatpush2.msra.mxu0 %v9937_v12 }
 0x1f4   :  { %v10575_v52 = vadd.f32 %v1273_v56, %v986_v20  ;;  %2290 = vmatmul.mubr.f32.gmra.mxu0 %v7858_v18  ;;  %3601 = vmatprep.subr.mxu0 %v13782_v0  ;;  %v7867_v20 = vld [vmem:[%s13768_s2 + $0x5a8] sm:$0xff] }
 0x1f5   :  { %v10578_v59 = vpop.f32.mrf.mxu0  ;;  %v10580_v49 = vpop.f32.mrf.mxu1  ;;  %7893 = vmatprep.mubr.msk.f32.mxu0 %vm123_vm0, %v7861_v19  ;;  %v7864_v19 = vld [vmem:[%s13768_s2 + $0x590] sm:$0xff] }
 0x1f7   :  { %v992_v12 = vpop.f32.mrf.mxu0  ;;  %v1279_v57 = vpop.f32.mrf.mxu1 }
 0x1f8   :  { %v10589_v32 = vadd.f32 %v1279_v57, %v992_v12  ;;  %2295 = vmatmul.mubr.f32.gmra.mxu0 %v7860_v25 }
 0x1f9   :  { %v10591_v36 = vpop.f32.mrf.mxu0  ;;  %v10593_v58 = vpop.f32.mrf.mxu1  ;;  %7894 = vmatprep.mubr.msk.f32.mxu0 %vm123_vm0, %v7863_v47 }
 0x1fa   :  { %13786 = vst [vmem:[#allocation2_spill] sm:$0xff] %v10589_v32  ;;  %13787 = vst [vmem:[#allocation3_spill] sm:$0xff] %v10591_v36 }
 0x1fb   :  { %13788 = vst [vmem:[#allocation4_spill] sm:$0xff] %v10593_v58  ;;  %v998_v61 = vpop.f32.mrf.mxu0  ;;  %v1285_v16 = vpop.f32.mrf.mxu1 }
 0x1fc   :  { %v10602_v1 = vadd.f32 %v1285_v16, %v998_v61  ;;  %2300 = vmatmul.mubr.f32.gmra.mxu0 %v7862_v30  ;;  %v7866_v30 = vld [vmem:[%s13768_s2 + $0x5a0] sm:$0xff] }
 0x1fd   :  { %v10604_v45 = vpop.f32.mrf.mxu0  ;;  %v10606_v18 = vpop.f32.mrf.mxu1  ;;  %7895 = vmatprep.mubr.msk.f32.mxu0 %vm123_vm0, %v7865_v37  ;;  %v7869_v37 = vld [vmem:[%s13768_s2 + $0x5b8] sm:$0xff] }
 0x1fe   :  { %13789 = vst [vmem:[#allocation5_spill] sm:$0xff] %v10602_v1  ;;  %13790 = vst [vmem:[#allocation6_spill] sm:$0xff] %v10604_v45 }
 0x1ff   :  { %13791 = vst [vmem:[#allocation7_spill] sm:$0xff] %v10606_v18  ;;  %v1004_v56 = vpop.f32.mrf.mxu0  ;;  %v1291_v25 = vpop.f32.mrf.mxu1 }
 0x200   :  { %v10615_v47 = vadd.f32 %v1291_v25, %v1004_v56  ;;  %2305 = vmatmul.mubr.f32.gmra.mxu0 %v7864_v19  ;;  %v7871_v25 = vld [vmem:[%s13768_s2 + $0x5c8] sm:$0xff] }
 0x201   :  { %v10617_v12 = vpop.f32.mrf.mxu0  ;;  %v10619_v57 = vpop.f32.mrf.mxu1  ;;  %7896 = vmatprep.mubr.msk.f32.mxu0 %vm123_vm0, %v7867_v20  ;;  %v7868_v20 = vld [vmem:[%s13768_s2 + $0x5b0] sm:$0xff] }
 0x202   :  { %13792 = vst [vmem:[#allocation8_spill] sm:$0xff] %v10615_v47  ;;  %13793 = vst [vmem:[#allocation9_spill] sm:$0xff] %v10617_v12 }
 0x203   :  { %13794 = vst [vmem:[#allocation10_spill] sm:$0xff] %v10619_v57  ;;  %v1010_v61 = vpop.f32.mrf.mxu0  ;;  %v1297_v16 = vpop.f32.mrf.mxu1 }
 0x204   :  { %v10628_v0 = vadd.f32 %v1297_v16, %v1010_v61  ;;  %2310 = vmatmul.mubr.f32.gmra.mxu0 %v7866_v30  ;;  %v2383_v57 = vpop.permute.xlu0 %2382  ;;  %v2379_v30 = vpop.permute.xlu1 %2378 }
 0x205   :  { %v10630_v19 = vpop.f32.mrf.mxu0  ;;  %v10632_v56 = vpop.f32.mrf.mxu1  ;;  %7897 = vmatprep.mubr.msk.f32.mxu0 %vm123_vm0, %v7869_v37  ;;  %v7870_v37 = vld [vmem:[%s13768_s2 + $0x5c0] sm:$0xff] }
 0x206   :  { %13795 = vst [vmem:[#allocation11_spill] sm:$0xff] %v10628_v0  ;;  %13796 = vst [vmem:[#allocation12_spill] sm:$0xff] %v10630_v19  ;;  %v7873_v19 = vld [vmem:[%s13768_s2 + $0x5d8] sm:$0xff] }
 0x207   :  { %13797 = vst [vmem:[#allocation13_spill] sm:$0xff] %v10632_v56  ;;  %v1016_v12 = vpop.f32.mrf.mxu0  ;;  %v1303_v18 = vpop.f32.mrf.mxu1 }
 0x208   :  { %v10641_v61 = vadd.f32 %v1303_v18, %v1016_v12  ;;  %2315 = vmatmul.mubr.f32.gmra.mxu0 %v7868_v20  ;;  %v2381_v12 = vpop.permute.xlu0 %2380 }
 0x209   :  { %v10643_v16 = vpop.f32.mrf.mxu0  ;;  %v10645_v56 = vpop.f32.mrf.mxu1  ;;  %7898 = vmatprep.mubr.msk.f32.mxu0 %vm123_vm0, %v7871_v25  ;;  %v7872_v25 = vld [vmem:[%s13768_s2 + $0x5d0] sm:$0xff] }
 0x20a   :  { %13798 = vst [vmem:[#allocation14_spill] sm:$0xff] %v10641_v61  ;;  %13799 = vst [vmem:[#allocation15_spill] sm:$0xff] %v10643_v16  ;;  %v2377_v61 = vpop.permute.xlu1 %2376 }
 0x20b   :  { %13800 = vst [vmem:[#allocation16_spill] sm:$0xff] %v10645_v56  ;;  %v1022_v45 = vpop.f32.mrf.mxu0  ;;  %v1309_v0 = vpop.f32.mrf.mxu1  ;;  %v7875_v56 = vld [vmem:[%s13768_s2 + $0x5e8] sm:$0xff] }
 0x20c   :  { %v10654_v18 = vadd.f32 %v1309_v0, %v1022_v45  ;;  %2320 = vmatmul.mubr.f32.gmra.mxu0 %v7870_v37 }
 0x20d   :  { %v10656_v20 = vpop.f32.mrf.mxu0  ;;  %v10658_v16 = vpop.f32.mrf.mxu1  ;;  %7899 = vmatprep.mubr.msk.f32.mxu0 %vm123_vm0, %v7873_v19  ;;  %v7874_v19 = vld [vmem:[%s13768_s2 + $0x5e0] sm:$0xff] }
 0x20e   :  { %13801 = vst [vmem:[#allocation17_spill] sm:$0xff] %v10654_v18  ;;  %13802 = vst [vmem:[#allocation18_spill] sm:$0xff] %v10656_v20  ;;  %v2373_v18 = vpop.permute.xlu0 %2372 }
 0x20f   :  { %13803 = vst [vmem:[#allocation19_spill] sm:$0xff] %v10658_v16  ;;  %v1028_v47 = vpop.f32.mrf.mxu0  ;;  %v1315_v0 = vpop.f32.mrf.mxu1  ;;  %v7877_v16 = vld [vmem:[%s13768_s2 + $0x5f8] sm:$0xff] }
 0x210   :  { %v10667_v45 = vadd.f32 %v1315_v0, %v1028_v47  ;;  %2325 = vmatmul.mubr.f32.gmra.mxu0 %v7872_v25  ;;  %v2375_v47 = vpop.permute.xlu1 %2374 }
 0x211   :  { %v10669_v37 = vpop.f32.mrf.mxu0  ;;  %v10671_v20 = vpop.f32.mrf.mxu1  ;;  %7900 = vmatprep.mubr.msk.f32.mxu0 %vm123_vm0, %v7875_v56  ;;  %v7876_v56 = vld [vmem:[%s13768_s2 + $0x5f0] sm:$0xff] }
 0x212   :  { %13804 = vst [vmem:[#allocation20_spill] sm:$0xff] %v10667_v45  ;;  %13805 = vst [vmem:[#allocation21_spill] sm:$0xff] %v10669_v37  ;;  %v7929_v37 = vld [vmem:[%s13768_s2 + $0x608] sm:$0xff] }
 0x213   :  { %13806 = vst [vmem:[#allocation22_spill] sm:$0xff] %v10671_v20  ;;  %v1321_v1 = vpop.f32.mrf.mxu1 }
 0x214   :  { %v1034_v32 = vpop.f32.mrf.mxu0  ;;  %2330 = vmatmul.mubr.f32.gmra.mxu0 %v7874_v19  ;;  %v2371_v19 = vpop.permute.xlu0 %2370 }
 0x215   :  { %v10680_v25 = vadd.f32 %v1321_v1, %v1034_v32  ;;  %v10682_v0 = vpop.f32.mrf.mxu1  ;;  %7901 = vmatprep.mubr.msk.f32.mxu0 %vm123_vm0, %v7877_v16  ;;  %v7928_v1 = vld [vmem:[%s13768_s2 + $0x600] sm:$0xff] }
 0x216   :  { %13808 = vst [vmem:[#allocation24_spill] sm:$0xff] %v10682_v0  ;;  %v10688_v20 = vpop.f32.mrf.mxu0  ;;  %v7931_v0 = vld [vmem:[%s13768_s2 + $0x618] sm:$0xff] }
 0x217   :  { %13807 = vst [vmem:[#allocation23_spill] sm:$0xff] %v10680_v25  ;;  %13809 = vst [vmem:[#allocation25_spill] sm:$0xff] %v10688_v20  ;;  %v1327_v45 = vpop.f32.mrf.mxu1  ;;  %v2367_v20 = vpop.permute.xlu1 %2366  ;;  %v2395_v25 = vsel %vm2388_vm5, %v2383_v57, %v10377_v43  ;;  %v7933_v43 = vld [vmem:[%s13768_s2 + $0x628] sm:$0xff] }
 0x218   :  { %v1040_v58 = vpop.f32.mrf.mxu0  ;;  %2335 = vmatmul.mubr.f32.gmra.mxu0 %v7876_v56  ;;  %v2369_v57 = vpop.permute.xlu0 %2368 }
 0x219   :  { %v10693_v32 = vadd.f32 %v1327_v45, %v1040_v58  ;;  %7976 = vmatprep.mubr.msk.f32.mxu0 %vm123_vm0, %v7929_v37  ;;  %v2394_v58 = vsel %vm2388_vm5, %v2379_v30, %v2381_v12  ;;  %v7930_v45 = vld [vmem:[%s13768_s2 + $0x610] sm:$0xff]  ;;  %v2393_v37 = vsel %vm2388_vm5, %v2377_v61, %v2379_v30  ;;  %v2392_v12 = vsel %vm2388_vm5, %v2373_v18, %v2375_v47  ;;  %v7932_v61 = vld [vmem:[%s13768_s2 + $0x620] sm:$0xff]  ;;  %v7935_v47 = vld [vmem:[%s13768_s2 + $0x638] sm:$0xff] }
 0x21a   :  { %v10699_v16 = vpop.f32.mrf.mxu0  ;;  %v2390_v30 = vsel %vm2388_vm5, %v2367_v20, %v2369_v57 }
 0x21b   :  { %13810 = vst [vmem:[#allocation26_spill] sm:$0xff] %v10693_v32  ;;  %13811 = vst [vmem:[#allocation27_spill] sm:$0xff] %v10699_v16  ;;  %v13812_v32 = vmov 0.0  }
 0x21c   :  { %v1519_v56 = vpop.f32.mrf.mxu0  ;;  %2922 = vmatmul.mubr.f32.vlgmr.msra.gmra.mxu0 %v7928_v1  ;;  %v2391_v1 = vsel %vm2388_vm5, %v2371_v19, %v2373_v18 }
 0x21d   :  { %7806 = vmatmul.mubr.msk.f32.vlgmr.msra.gmra.mxu1 %vm758_vm3, %v1519_v56  ;;  %7977 = vmatprep.mubr.msk.f32.mxu0 %vm123_vm0, %v7931_v0  ;;  %v2365_v56 = vpop.permute.xlu1 %2364 }
 0x21e   :  { %v1521_v16 = vpop.f32.mrf.mxu0  ;;  %1847 = vmatprep.mubr.f32.mxu1 %v13812_v32  ;;  %7903 = vmatpush1.msk.msra.mxu1 %vm831_vm1, %v2395_v25  ;;  %v2389_v18 = vsel %vm2388_vm5, %v2365_v56, %v2367_v20  ;;  %v10740_v20 = vpop.permute.xlu0 %3086 }
 0x21f   :  { %2505 = vmatprep.subr.mxu1 %v2394_v58  ;;  %v7934_v16 = vld [vmem:[%s13768_s2 + $0x630] sm:$0xff] }
 0x220   :  { %v1524_v0 = vpop.f32.mrf.mxu0  ;;  %2927 = vmatmul.mubr.f32.gmra.mxu0 %v7930_v45  ;;  %2506 = vmatpush1.msra.mxu1 %v2393_v37  ;;  %v7937_v45 = vld [vmem:[%s13768_s2 + $0x648] sm:$0xff] }
 0x221   :  { %7807 = vmatmul.mubr.msk.f32.gmra.mxu1 %vm758_vm3, %v1524_v0  ;;  %7978 = vmatprep.mubr.msk.f32.mxu0 %vm123_vm0, %v7933_v43  ;;  %v3089_v37 = vpop.permute.xlu1 %3088 }
 0x222   :  { %v1526_v25 = vpop.f32.mrf.mxu0  ;;  %1853 = vmatprep.mubr.f32.mxu1 %v13812_v32  ;;  %2507 = vmatprep.subr.mxu1 %v2392_v12  ;;  %v3098_v57 = vsel %vm3090_vm6, %v10740_v20, %v3089_v37  ;;  %v7936_v12 = vld [vmem:[%s13768_s2 + $0x640] sm:$0xff] }
 0x223   :  { %2508 = vmatpush1.msra.mxu1 %v2391_v1  ;;  %v7939_v1 = vld [vmem:[%s13768_s2 + $0x658] sm:$0xff]  ;;  %v7941_v25 = vld [vmem:[%s13768_s2 + $0x668] sm:$0xff] }
 0x224   :  { %v1529_v19 = vpop.f32.mrf.mxu0  ;;  %2932 = vmatmul.mubr.f32.gmra.mxu0 %v7932_v61  ;;  %2509 = vmatprep.subr.mxu1 %v2390_v30  ;;  %v7938_v61 = vld [vmem:[%s13768_s2 + $0x650] sm:$0xff] }
 0x225   :  { %7808 = vmatmul.mubr.msk.f32.gmra.mxu1 %vm758_vm3, %v1529_v19  ;;  %7979 = vmatprep.mubr.msk.f32.mxu0 %vm123_vm0, %v7935_v47 }
 0x226   :  { %v1531_v58 = vpop.f32.mrf.mxu0  ;;  %1859 = vmatprep.mubr.f32.mxu1 %v13812_v32  ;;  %2510 = vmatpush1.msra.mxu1 %v2389_v18  ;;  %v7940_v18 = vld [vmem:[%s13768_s2 + $0x660] sm:$0xff] }
 0x227   :  { %8000 = vmatprep.subr.msk.mxu1 %vm831_vm1, %v3098_v57 }
 0x228   :  { %v1534_v43 = vpop.f32.mrf.mxu0  ;;  %2937 = vmatmul.mubr.f32.gmra.mxu0 %v7934_v16  ;;  %v7943_v16 = vld [vmem:[%s13768_s2 + $0x678] sm:$0xff] }
 0x229   :  { %7809 = vmatmul.mubr.msk.f32.gmra.mxu1 %vm758_vm3, %v1534_v43  ;;  %7980 = vmatprep.mubr.msk.f32.mxu0 %vm123_vm0, %v7937_v45  ;;  %v7942_v45 = vld [vmem:[%s13768_s2 + $0x670] sm:$0xff]  ;;  %v7945_v43 = vld [vmem:[%s13768_s2 + $0x688] sm:$0xff] }
 0x22a   :  { %v1536_v0 = vpop.f32.mrf.mxu0  ;;  %1865 = vmatprep.mubr.f32.mxu1 %v13812_v32 }
 0x22c   :  { %v1539_v56 = vpop.f32.mrf.mxu0  ;;  %2942 = vmatmul.mubr.f32.gmra.mxu0 %v7936_v12  ;;  %v7944_v12 = vld [vmem:[%s13768_s2 + $0x680] sm:$0xff] }
 0x22d   :  { %7810 = vmatmul.mubr.msk.f32.gmra.mxu1 %vm758_vm3, %v1539_v56  ;;  %7981 = vmatprep.mubr.msk.f32.mxu0 %vm123_vm0, %v7939_v1  ;;  %v7947_v1 = vld [vmem:[%s13768_s2 + $0x698] sm:$0xff] }
 0x22e   :  { %v1541_v30 = vpop.f32.mrf.mxu0  ;;  %1871 = vmatprep.mubr.f32.mxu1 %v13812_v32 }
 0x230   :  { %v1544_v47 = vpop.f32.mrf.mxu0  ;;  %2947 = vmatmul.mubr.f32.gmra.mxu0 %v7938_v61  ;;  %v7946_v61 = vld [vmem:[%s13768_s2 + $0x690] sm:$0xff] }
 0x231   :  { %7811 = vmatmul.mubr.msk.f32.gmra.mxu1 %vm758_vm3, %v1544_v47  ;;  %7982 = vmatprep.mubr.msk.f32.mxu0 %vm123_vm0, %v7941_v25  ;;  %v7949_v25 = vld [vmem:[%s13768_s2 + $0x6a8] sm:$0xff] }
 0x232   :  { %v1546_v19 = vpop.f32.mrf.mxu0  ;;  %1877 = vmatprep.mubr.f32.mxu1 %v13812_v32 }
 0x234   :  { %v1549_v58 = vpop.f32.mrf.mxu0  ;;  %2952 = vmatmul.mubr.f32.gmra.mxu0 %v7940_v18  ;;  %v7948_v18 = vld [vmem:[%s13768_s2 + $0x6a0] sm:$0xff] }
 0x235   :  { %7812 = vmatmul.mubr.msk.f32.gmra.mxu1 %vm758_vm3, %v1549_v58  ;;  %7983 = vmatprep.mubr.msk.f32.mxu0 %vm123_vm0, %v7943_v16  ;;  %v7951_v16 = vld [vmem:[%s13768_s2 + $0x6b8] sm:$0xff] }
 0x236   :  { %v1551_v37 = vpop.f32.mrf.mxu0  ;;  %1883 = vmatprep.mubr.f32.mxu1 %v13812_v32 }
 0x238   :  { %v1554_v57 = vpop.f32.mrf.mxu0  ;;  %2957 = vmatmul.mubr.f32.gmra.mxu0 %v7942_v45  ;;  %v7950_v45 = vld [vmem:[%s13768_s2 + $0x6b0] sm:$0xff] }
 0x239   :  { %7813 = vmatmul.mubr.msk.f32.gmra.mxu1 %vm758_vm3, %v1554_v57  ;;  %7984 = vmatprep.mubr.msk.f32.mxu0 %vm123_vm0, %v7945_v43  ;;  %v7953_v43 = vld [vmem:[%s13768_s2 + $0x6c8] sm:$0xff] }
 0x23a   :  { %v1556_v0 = vpop.f32.mrf.mxu0  ;;  %1889 = vmatprep.mubr.f32.mxu1 %v13812_v32 }
 0x23c   :  { %v1559_v56 = vpop.f32.mrf.mxu0  ;;  %2962 = vmatmul.mubr.f32.gmra.mxu0 %v7944_v12  ;;  %v7952_v12 = vld [vmem:[%s13768_s2 + $0x6c0] sm:$0xff] }
 0x23d   :  { %7814 = vmatmul.mubr.msk.f32.gmra.mxu1 %vm758_vm3, %v1559_v56  ;;  %7985 = vmatprep.mubr.msk.f32.mxu0 %vm123_vm0, %v7947_v1  ;;  %v7955_v1 = vld [vmem:[%s13768_s2 + $0x6d8] sm:$0xff] }
 0x23e   :  { %v1561_v30 = vpop.f32.mrf.mxu0  ;;  %1895 = vmatprep.mubr.f32.mxu1 %v13812_v32 }
 0x240   :  { %v1564_v47 = vpop.f32.mrf.mxu0  ;;  %2967 = vmatmul.mubr.f32.gmra.mxu0 %v7946_v61  ;;  %v7954_v61 = vld [vmem:[%s13768_s2 + $0x6d0] sm:$0xff] }
 0x241   :  { %7815 = vmatmul.mubr.msk.f32.gmra.mxu1 %vm758_vm3, %v1564_v47  ;;  %7986 = vmatprep.mubr.msk.f32.mxu0 %vm123_vm0, %v7949_v25  ;;  %v7957_v25 = vld [vmem:[%s13768_s2 + $0x6e8] sm:$0xff] }
 0x242   :  { %v1566_v19 = vpop.f32.mrf.mxu0  ;;  %1901 = vmatprep.mubr.f32.mxu1 %v13812_v32 }
 0x244   :  { %v1569_v58 = vpop.f32.mrf.mxu0  ;;  %2972 = vmatmul.mubr.f32.gmra.mxu0 %v7948_v18  ;;  %v7956_v18 = vld [vmem:[%s13768_s2 + $0x6e0] sm:$0xff] }
 0x245   :  { %7816 = vmatmul.mubr.msk.f32.gmra.mxu1 %vm758_vm3, %v1569_v58  ;;  %7987 = vmatprep.mubr.msk.f32.mxu0 %vm123_vm0, %v7951_v16  ;;  %v7959_v16 = vld [vmem:[%s13768_s2 + $0x6f8] sm:$0xff] }
 0x246   :  { %v1571_v37 = vpop.f32.mrf.mxu0  ;;  %1907 = vmatprep.mubr.f32.mxu1 %v13812_v32 }
 0x248   :  { %v1574_v57 = vpop.f32.mrf.mxu0  ;;  %2977 = vmatmul.mubr.f32.gmra.mxu0 %v7950_v45  ;;  %v7958_v45 = vld [vmem:[%s13768_s2 + $0x6f0] sm:$0xff] }
 0x249   :  { %7817 = vmatmul.mubr.msk.f32.gmra.mxu1 %vm758_vm3, %v1574_v57  ;;  %7988 = vmatprep.mubr.msk.f32.mxu0 %vm123_vm0, %v7953_v43  ;;  %v7961_v43 = vld [vmem:[%s13768_s2 + $0x708] sm:$0xff] }
 0x24a   :  { %v1576_v0 = vpop.f32.mrf.mxu0  ;;  %1913 = vmatprep.mubr.f32.mxu1 %v13812_v32 }
 0x24c   :  { %v1579_v56 = vpop.f32.mrf.mxu0  ;;  %2982 = vmatmul.mubr.f32.gmra.mxu0 %v7952_v12  ;;  %v7960_v12 = vld [vmem:[%s13768_s2 + $0x700] sm:$0xff] }
 0x24d   :  { %7818 = vmatmul.mubr.msk.f32.gmra.mxu1 %vm758_vm3, %v1579_v56  ;;  %7989 = vmatprep.mubr.msk.f32.mxu0 %vm123_vm0, %v7955_v1  ;;  %v7963_v1 = vld [vmem:[%s13768_s2 + $0x718] sm:$0xff] }
 0x24e   :  { %v1581_v30 = vpop.f32.mrf.mxu0  ;;  %1919 = vmatprep.mubr.f32.mxu1 %v13812_v32 }
 0x250   :  { %v1584_v47 = vpop.f32.mrf.mxu0  ;;  %2987 = vmatmul.mubr.f32.gmra.mxu0 %v7954_v61  ;;  %v7962_v61 = vld [vmem:[%s13768_s2 + $0x710] sm:$0xff] }
 0x251   :  { %7819 = vmatmul.mubr.msk.f32.gmra.mxu1 %vm758_vm3, %v1584_v47  ;;  %7990 = vmatprep.mubr.msk.f32.mxu0 %vm123_vm0, %v7957_v25  ;;  %v7965_v25 = vld [vmem:[%s13768_s2 + $0x728] sm:$0xff] }
 0x252   :  { %v1586_v19 = vpop.f32.mrf.mxu0  ;;  %1925 = vmatprep.mubr.f32.mxu1 %v13812_v32 }
 0x254   :  { %v1589_v58 = vpop.f32.mrf.mxu0  ;;  %2992 = vmatmul.mubr.f32.gmra.mxu0 %v7956_v18  ;;  %v7964_v18 = vld [vmem:[%s13768_s2 + $0x720] sm:$0xff] }
 0x255   :  { %7820 = vmatmul.mubr.msk.f32.gmra.mxu1 %vm758_vm3, %v1589_v58  ;;  %7991 = vmatprep.mubr.msk.f32.mxu0 %vm123_vm0, %v7959_v16  ;;  %v7967_v16 = vld [vmem:[%s13768_s2 + $0x738] sm:$0xff] }
 0x256   :  { %v1591_v37 = vpop.f32.mrf.mxu0  ;;  %1931 = vmatprep.mubr.f32.mxu1 %v13812_v32 }
 0x257   :  { %v3085_v37 = vpop.permute.xlu0 %3084 }
 0x258   :  { %v1594_v57 = vpop.f32.mrf.mxu0  ;;  %2997 = vmatmul.mubr.f32.gmra.mxu0 %v7958_v45  ;;  %v7966_v45 = vld [vmem:[%s13768_s2 + $0x730] sm:$0xff] }
 0x259   :  { %7821 = vmatmul.mubr.msk.f32.gmra.mxu1 %vm758_vm3, %v1594_v57  ;;  %7992 = vmatprep.mubr.msk.f32.mxu0 %vm123_vm0, %v7961_v43  ;;  %v7969_v57 = vld [vmem:[%s13768_s2 + $0x748] sm:$0xff] }
 0x25a   :  { %v1596_v0 = vpop.f32.mrf.mxu0  ;;  %1937 = vmatprep.mubr.f32.mxu1 %v13812_v32 }
 0x25c   :  { %v1599_v56 = vpop.f32.mrf.mxu0  ;;  %3002 = vmatmul.mubr.f32.gmra.mxu0 %v7960_v12  ;;  %v3081_v12 = vpop.permute.xlu1 %3080 }
 0x25d   :  { %7822 = vmatmul.mubr.msk.f32.gmra.mxu1 %vm758_vm3, %v1599_v56  ;;  %7993 = vmatprep.mubr.msk.f32.mxu0 %vm123_vm0, %v7963_v1  ;;  %v7968_v1 = vld [vmem:[%s13768_s2 + $0x740] sm:$0xff] }
 0x25e   :  { %v1601_v30 = vpop.f32.mrf.mxu0  ;;  %1943 = vmatprep.mubr.f32.mxu1 %v13812_v32 }
 0x25f   :  { %v3083_v30 = vpop.permute.xlu0 %3082 }
 0x260   :  { %v1604_v47 = vpop.f32.mrf.mxu0  ;;  %3007 = vmatmul.mubr.f32.gmra.mxu0 %v7962_v61  ;;  %v7971_v61 = vld [vmem:[%s13768_s2 + $0x758] sm:$0xff] }
 0x261   :  { %7823 = vmatmul.mubr.msk.f32.gmra.mxu1 %vm758_vm3, %v1604_v47  ;;  %7994 = vmatprep.mubr.msk.f32.mxu0 %vm123_vm0, %v7965_v25  ;;  %v3079_v47 = vpop.permute.xlu1 %3078 }
 0x262   :  { %v1606_v19 = vpop.f32.mrf.mxu0  ;;  %1949 = vmatprep.mubr.f32.mxu1 %v13812_v32 }
 0x264   :  { %v1609_v58 = vpop.f32.mrf.mxu0  ;;  %3012 = vmatmul.mubr.f32.gmra.mxu0 %v7964_v18  ;;  %v7970_v18 = vld [vmem:[%s13768_s2 + $0x750] sm:$0xff] }
 0x265   :  { %7824 = vmatmul.mubr.msk.f32.gmra.mxu1 %vm758_vm3, %v1609_v58  ;;  %7995 = vmatprep.mubr.msk.f32.mxu0 %vm123_vm0, %v7967_v16  ;;  %v7973_v16 = vld [vmem:[%s13768_s2 + $0x768] sm:$0xff] }
 0x266   :  { %v1611_v43 = vpop.f32.mrf.mxu0  ;;  %1955 = vmatprep.mubr.f32.mxu1 %v13812_v32 }
 0x267   :  { %v3075_v43 = vpop.permute.xlu0 %3074 }
 0x268   :  { %v1614_v0 = vpop.f32.mrf.mxu0  ;;  %3017 = vmatmul.mubr.f32.gmra.mxu0 %v7966_v45  ;;  %v7972_v45 = vld [vmem:[%s13768_s2 + $0x760] sm:$0xff] }
 0x269   :  { %7825 = vmatmul.mubr.msk.f32.gmra.mxu1 %vm758_vm3, %v1614_v0  ;;  %7996 = vmatprep.mubr.msk.f32.mxu0 %vm123_vm0, %v7969_v57  ;;  %v7975_v0 = vld [vmem:[%s13768_s2 + $0x778] sm:$0xff] }
 0x26a   :  { %v1616_v56 = vpop.f32.mrf.mxu0  ;;  %1961 = vmatprep.mubr.f32.mxu1 %v13812_v32 }
 0x26c   :  { %v1619_v25 = vpop.f32.mrf.mxu0  ;;  %3022 = vmatmul.mubr.f32.gmra.mxu0 %v7968_v1  ;;  %v3077_v1 = vpop.permute.xlu1 %3076 }
 0x26d   :  { %7826 = vmatmul.mubr.msk.f32.gmra.mxu1 %vm758_vm3, %v1619_v25  ;;  %7997 = vmatprep.mubr.msk.f32.mxu0 %vm123_vm0, %v7971_v61  ;;  %v7974_v61 = vld [vmem:[%s13768_s2 + $0x770] sm:$0xff] }
 0x26e   :  { %v1621_v19 = vpop.f32.mrf.mxu0  ;;  %1967 = vmatprep.mubr.f32.mxu1 %v13812_v32 }
 0x270   :  { %v1624_v58 = vpop.f32.mrf.mxu0  ;;  %3027 = vmatmul.mubr.f32.gmra.mxu0 %v7970_v18  ;;  %v3073_v18 = vpop.permute.xlu0 %3072 }
 0x271   :  { %7827 = vmatmul.mubr.msk.f32.gmra.mxu1 %vm758_vm3, %v1624_v58  ;;  %7998 = vmatprep.mubr.msk.f32.mxu0 %vm123_vm0, %v7973_v16  ;;  %v3069_v16 = vpop.permute.xlu1 %3068 }
 0x272   :  { %v1626_v57 = vpop.f32.mrf.mxu0  ;;  %1973 = vmatprep.mubr.f32.mxu1 %v13812_v32 }
 0x274   :  { %v1629_v56 = vpop.f32.mrf.mxu0  ;;  %3032 = vmatmul.mubr.f32.gmra.mxu0 %v7972_v45  ;;  %v3097_v45 = vsel %vm3090_vm6, %v3085_v37, %v10740_v20 }
 0x275   :  { %7828 = vmatmul.mubr.msk.f32.gmra.mxu1 %vm758_vm3, %v1629_v56  ;;  %7999 = vmatprep.mubr.msk.f32.mxu0 %vm123_vm0, %v7975_v0  ;;  %v3096_v0 = vsel %vm3090_vm6, %v3081_v12, %v3083_v30  ;;  %v3095_v56 = vsel %vm3090_vm6, %v3079_v47, %v3081_v12 }
 0x276   :  { %v1631_v25 = vpop.f32.mrf.mxu0  ;;  %1979 = vmatprep.mubr.f32.mxu1 %v13812_v32 }
 0x277   :  { %v3071_v25 = vpop.permute.xlu0 %3070 }
 0x278   :  { %v1634_v19 = vpop.f32.mrf.mxu0  ;;  %3037 = vmatmul.mubr.f32.gmra.mxu0 %v7974_v61  ;;  %v3094_v61 = vsel %vm3090_vm6, %v3075_v43, %v3077_v1  ;;  %v3092_v37 = vsel %vm3090_vm6, %v3069_v16, %v3071_v25 }
 0x279   :  { %7829 = vmatmul.mubr.msk.f32.gmra.mxu1 %vm758_vm3, %v1634_v19  ;;  %v3067_v19 = vpop.permute.xlu1 %3066 }
 0x27a   :  { %v1636_v58 = vpop.f32.mrf.mxu0  ;;  %2543 = vmatprep.mubr.f32.mxu1 %v13812_v32  ;;  %v3091_v12 = vsel %vm3090_vm6, %v3067_v19, %v3069_v16 }
 0x27b   :  { %v3093_v58 = vsel %vm3090_vm6, %v3073_v18, %v3075_v43 }
 0x27c   :  { %v2221_v57 = vpop.f32.mrf.mxu0 }
 0x27d   :  { %7904 = vmatmul.mubr.msk.f32.vlgmr.msra.gmra.mxu1 %vm758_vm3, %v2221_v57 }
 0x27e   :  { %v2223_v36 = vpop.f32.mrf.mxu0  ;;  %2549 = vmatprep.mubr.f32.mxu1 %v13812_v32  ;;  %8001 = vmatpush1.msk.msra.mxu1 %vm831_vm1, %v3097_v45 }
 0x27f   :  { %3207 = vmatprep.subr.mxu1 %v3096_v0 }
 0x280   :  { %v2226_v20 = vpop.f32.mrf.mxu0  ;;  %3208 = vmatpush1.msra.mxu1 %v3095_v56 }
 0x281   :  { %7905 = vmatmul.mubr.msk.f32.gmra.mxu1 %vm758_vm3, %v2226_v20  ;;  %3209 = vmatprep.subr.mxu1 %v3094_v61 }
 0x282   :  { %v2228_v36 = vpop.f32.mrf.mxu0  ;;  %2555 = vmatprep.mubr.f32.mxu1 %v13812_v32  ;;  %3210 = vmatpush1.msra.mxu1 %v3093_v58 }
 0x283   :  { %3211 = vmatprep.subr.mxu1 %v3092_v37 }
 0x284   :  { %v2231_v30 = vpop.f32.mrf.mxu0  ;;  %3212 = vmatpush1.msra.mxu1 %v3091_v12 }
 0x285   :  { %7906 = vmatmul.mubr.msk.f32.gmra.mxu1 %vm758_vm3, %v2231_v30  ;;  %3817 = vmatprep.subr.mxu1 %v13812_v32 }
 0x286   :  { %v2233_v47 = vpop.f32.mrf.mxu0  ;;  %2561 = vmatprep.mubr.f32.mxu1 %v13812_v32 }
 0x288   :  { %v2236_v43 = vpop.f32.mrf.mxu0 }
 0x289   :  { %7907 = vmatmul.mubr.msk.f32.gmra.mxu1 %vm758_vm3, %v2236_v43 }
 0x28a   :  { %v2238_v1 = vpop.f32.mrf.mxu0  ;;  %2567 = vmatprep.mubr.f32.mxu1 %v13812_v32 }
 0x28c   :  { %v2241_v18 = vpop.f32.mrf.mxu0 }
 0x28d   :  { %7908 = vmatmul.mubr.msk.f32.gmra.mxu1 %vm758_vm3, %v2241_v18 }
 0x28e   :  { %v2243_v16 = vpop.f32.mrf.mxu0  ;;  %2573 = vmatprep.mubr.f32.mxu1 %v13812_v32 }
 0x290   :  { %v2246_v45 = vpop.f32.mrf.mxu0 }
 0x291   :  { %7909 = vmatmul.mubr.msk.f32.gmra.mxu1 %vm758_vm3, %v2246_v45 }
 0x292   :  { %v2248_v57 = vpop.f32.mrf.mxu0  ;;  %2579 = vmatprep.mubr.f32.mxu1 %v13812_v32 }
 0x294   :  { %v2251_v0 = vpop.f32.mrf.mxu0 }
 0x295   :  { %7910 = vmatmul.mubr.msk.f32.gmra.mxu1 %vm758_vm3, %v2251_v0 }
 0x296   :  { %v2253_v56 = vpop.f32.mrf.mxu0  ;;  %2585 = vmatprep.mubr.f32.mxu1 %v13812_v32 }
 0x298   :  { %v2256_v25 = vpop.f32.mrf.mxu0 }
 0x299   :  { %7911 = vmatmul.mubr.msk.f32.gmra.mxu1 %vm758_vm3, %v2256_v25 }
 0x29a   :  { %v2258_v61 = vpop.f32.mrf.mxu0  ;;  %2591 = vmatprep.mubr.f32.mxu1 %v13812_v32 }
 0x29c   :  { %v2261_v19 = vpop.f32.mrf.mxu0 }
 0x29d   :  { %7912 = vmatmul.mubr.msk.f32.gmra.mxu1 %vm758_vm3, %v2261_v19 }
 0x29e   :  { %v2263_v58 = vpop.f32.mrf.mxu0  ;;  %2597 = vmatprep.mubr.f32.mxu1 %v13812_v32 }
 0x2a0   :  { %v2266_v20 = vpop.f32.mrf.mxu0 }
 0x2a1   :  { %7913 = vmatmul.mubr.msk.f32.gmra.mxu1 %vm758_vm3, %v2266_v20 }
 0x2a2   :  { %v2268_v37 = vpop.f32.mrf.mxu0  ;;  %2603 = vmatprep.mubr.f32.mxu1 %v13812_v32 }
 0x2a4   :  { %v2271_v12 = vpop.f32.mrf.mxu0 }
 0x2a5   :  { %7914 = vmatmul.mubr.msk.f32.gmra.mxu1 %vm758_vm3, %v2271_v12 }
 0x2a6   :  { %v2273_v36 = vpop.f32.mrf.mxu0  ;;  %2609 = vmatprep.mubr.f32.mxu1 %v13812_v32 }
 0x2a8   :  { %v2276_v30 = vpop.f32.mrf.mxu0 }
 0x2a9   :  { %7915 = vmatmul.mubr.msk.f32.gmra.mxu1 %vm758_vm3, %v2276_v30 }
 0x2aa   :  { %v2278_v47 = vpop.f32.mrf.mxu0  ;;  %2615 = vmatprep.mubr.f32.mxu1 %v13812_v32 }
 0x2ac   :  { %v2281_v43 = vpop.f32.mrf.mxu0 }
 0x2ad   :  { %7916 = vmatmul.mubr.msk.f32.gmra.mxu1 %vm758_vm3, %v2281_v43 }
 0x2ae   :  { %v2283_v1 = vpop.f32.mrf.mxu0  ;;  %2621 = vmatprep.mubr.f32.mxu1 %v13812_v32 }
 0x2b0   :  { %v2286_v18 = vpop.f32.mrf.mxu0 }
 0x2b1   :  { %7917 = vmatmul.mubr.msk.f32.gmra.mxu1 %vm758_vm3, %v2286_v18 }
 0x2b2   :  { %v2288_v16 = vpop.f32.mrf.mxu0  ;;  %2627 = vmatprep.mubr.f32.mxu1 %v13812_v32 }
 0x2b4   :  { %v2291_v45 = vpop.f32.mrf.mxu0 }
 0x2b5   :  { %7918 = vmatmul.mubr.msk.f32.gmra.mxu1 %vm758_vm3, %v2291_v45 }
 0x2b6   :  { %v2293_v57 = vpop.f32.mrf.mxu0  ;;  %2633 = vmatprep.mubr.f32.mxu1 %v13812_v32 }
 0x2b8   :  { %v2296_v0 = vpop.f32.mrf.mxu0 }
 0x2b9   :  { %7919 = vmatmul.mubr.msk.f32.gmra.mxu1 %vm758_vm3, %v2296_v0  ;;  %v10982_v0 = vpop.f32.mrf.mxu1 }
 0x2ba   :  { %v2298_v56 = vpop.f32.mrf.mxu0  ;;  %2639 = vmatprep.mubr.f32.mxu1 %v13812_v32  ;;  %13813 = vst [vmem:[#allocation28_spill] sm:$0xff] %v10982_v0 }
 0x2bc   :  { %v2301_v25 = vpop.f32.mrf.mxu0 }
 0x2bd   :  { %7920 = vmatmul.mubr.msk.f32.gmra.mxu1 %vm758_vm3, %v2301_v25 }
 0x2be   :  { %v2303_v61 = vpop.f32.mrf.mxu0  ;;  %2645 = vmatprep.mubr.f32.mxu1 %v13812_v32 }
 0x2bf   :  { %v1192_v61 = vadd.f32 %v10307_v5, %v10305_v48 }
 0x2c0   :  { %v2306_v19 = vpop.f32.mrf.mxu0 }
 0x2c1   :  { %7921 = vmatmul.mubr.msk.f32.gmra.mxu1 %vm758_vm3, %v2306_v19 }
 0x2c2   :  { %v2308_v58 = vpop.f32.mrf.mxu0  ;;  %2651 = vmatprep.mubr.f32.mxu1 %v13812_v32 }
 0x2c4   :  { %v2311_v20 = vpop.f32.mrf.mxu0 }
 0x2c5   :  { %7922 = vmatmul.mubr.msk.f32.gmra.mxu1 %vm758_vm3, %v2311_v20 }
 0x2c6   :  { %v2313_v37 = vpop.f32.mrf.mxu0  ;;  %2657 = vmatprep.mubr.f32.mxu1 %v13812_v32 }
 0x2c8   :  { %v2316_v12 = vpop.f32.mrf.mxu0 }
 0x2c9   :  { %7923 = vmatmul.mubr.msk.f32.gmra.mxu1 %vm758_vm3, %v2316_v12 }
 0x2ca   :  { %v2318_v36 = vpop.f32.mrf.mxu0  ;;  %2663 = vmatprep.mubr.f32.mxu1 %v13812_v32 }
 0x2cc   :  { %v2321_v30 = vpop.f32.mrf.mxu0 }
 0x2cd   :  { %7924 = vmatmul.mubr.msk.f32.gmra.mxu1 %vm758_vm3, %v2321_v30  ;;  %v1198_v30 = vadd.f32 %v10324_v55, %v10322_v62 }
 0x2ce   :  { %v2323_v47 = vpop.f32.mrf.mxu0  ;;  %2669 = vmatprep.mubr.f32.mxu1 %v13812_v32 }
 0x2d0   :  { %v2326_v43 = vpop.f32.mrf.mxu0 }
 0x2d1   :  { %7925 = vmatmul.mubr.msk.f32.gmra.mxu1 %vm758_vm3, %v2326_v43 }
 0x2d2   :  { %v2328_v1 = vpop.f32.mrf.mxu0  ;;  %2675 = vmatprep.mubr.f32.mxu1 %v13812_v32 }
 0x2d4   :  { %v2331_v18 = vpop.f32.mrf.mxu0 }
 0x2d5   :  { %7926 = vmatmul.mubr.msk.f32.gmra.mxu1 %vm758_vm3, %v2331_v18  ;;  %v1204_v18 = vadd.f32 %v10341_v23, %v10339_v22  ;;  %v8065_v22 = vld [vmem:[%s13770_s4 + $0x168] sm:$0xff] }
 0x2d6   :  { %v2333_v16 = vpop.f32.mrf.mxu0  ;;  %2681 = vmatprep.mubr.f32.mxu1 %v13812_v32 }
 0x2d8   :  { %v2336_v45 = vpop.f32.mrf.mxu0 }
 0x2d9   :  { %7927 = vmatmul.mubr.msk.f32.gmra.mxu1 %vm758_vm3, %v2336_v45 }
 0x2da   :  { %v2338_v57 = vpop.f32.mrf.mxu0  ;;  %3245 = vmatprep.mubr.f32.mxu1 %v13812_v32 }
 0x2dc   :  { %v2923_v56 = vpop.f32.mrf.mxu0 }
 0x2dd   :  { %v1843_v25 = vpop.f32.mrf.mxu1  ;;  %8002 = vmatmul.mubr.msk.f32.vlgmr.msra.gmra.mxu1 %vm758_vm3, %v2923_v56  ;;  %v3513_v56 = vld [vmem:[%s13770_s4 + $0x78] sm:$0xff] }
 0x2de   :  { %v10988_v19 = vadd.f32 %v1843_v25, %v10303_v44  ;;  %v2925_v58 = vpop.f32.mrf.mxu0  ;;  %3251 = vmatprep.mubr.f32.mxu1 %v13812_v32  ;;  %3602 = vmatpush1.msra.mxu0 %v3513_v56 }
 0x2df   :  { %v1845_v20 = vpop.f32.mrf.mxu1  ;;  %3818 = vmatpush1.msra.mxu1 %v8065_v22  ;;  %3603 = vmatprep.subr.mxu0 %v13812_v32  ;;  %v3512_v58 = vld [vmem:[%s13770_s4 + $0x70] sm:$0xff]  ;;  %v8061_v22 = vld [vmem:[%s13770_s4 + $0x148] sm:$0xff] }
 0x2e0   :  { %v10991_v37 = vadd.f32 %v1845_v20, %v1192_v61  ;;  %v2928_v12 = vpop.f32.mrf.mxu0  ;;  %v8064_v20 = vld [vmem:[%s13770_s4 + $0x160] sm:$0xff]  ;;  %3819 = vmatprep.subr.mxu1 %v13812_v32  ;;  %3604 = vmatpush1.msra.mxu0 %v3512_v58 }
 0x2e1   :  { %v1849_v36 = vpop.f32.mrf.mxu1  ;;  %8003 = vmatmul.mubr.msk.f32.gmra.mxu1 %vm758_vm3, %v2928_v12  ;;  %3605 = vmatprep.subr.mxu0 %v13812_v32  ;;  %v3511_v12 = vld [vmem:[%s13770_s4 + $0x68] sm:$0xff] }
 0x2e2   :  { %v10997_v47 = vadd.f32 %v1849_v36, %v10319_v8  ;;  %v2930_v48 = vpop.f32.mrf.mxu0  ;;  %3257 = vmatprep.mubr.f32.mxu1 %v13812_v32  ;;  %v8063_v36 = vld [vmem:[%s13770_s4 + $0x158] sm:$0xff]  ;;  %3820 = vmatpush1.msra.mxu1 %v8064_v20 }
 0x2e3   :  { %v1851_v44 = vpop.f32.mrf.mxu1  ;;  %3821 = vmatprep.subr.mxu1 %v13812_v32  ;;  %3606 = vmatpush1.msra.mxu0 %v3511_v12 }
 0x2e4   :  { %v11000_v5 = vadd.f32 %v1851_v44, %v1198_v30  ;;  %v2933_v43 = vpop.f32.mrf.mxu0  ;;  %v1216_v30 = vadd.f32 %v10384_v2, %v10382_v39  ;;  %3822 = vmatpush1.msra.mxu1 %v8063_v36  ;;  %3607 = vmatprep.subr.mxu0 %v13812_v32  ;;  %v3509_v2 = vld [vmem:[%s13770_s4 + $0x58] sm:$0xff] }
 0x2e5   :  { %v1855_v1 = vpop.f32.mrf.mxu1  ;;  %8004 = vmatmul.mubr.msk.f32.gmra.mxu1 %vm758_vm3, %v2933_v43  ;;  %3823 = vmatprep.subr.mxu1 %v13812_v32 }
 0x2e6   :  { %v11006_v16 = vadd.f32 %v1855_v1, %v10336_v21  ;;  %v2935_v62 = vpop.f32.mrf.mxu0  ;;  %3263 = vmatprep.mubr.f32.mxu1 %v13812_v32  ;;  %v1210_v21 = vadd.f32 %v10358_v7, %v10356_v27  ;;  %v3510_v1 = vld [vmem:[%s13770_s4 + $0x60] sm:$0xff] }
 0x2e7   :  { %v1857_v8 = vpop.f32.mrf.mxu1  ;;  %3608 = vmatpush1.msra.mxu0 %v3510_v1 }
 0x2e8   :  { %v11009_v55 = vadd.f32 %v1857_v8, %v1204_v18  ;;  %v2938_v45 = vpop.f32.mrf.mxu0  ;;  %v1222_v8 = vadd.f32 %v10405_v53, %v10403_v50  ;;  %3609 = vmatprep.subr.mxu0 %v13812_v32  ;;  %v8060_v53 = vld [vmem:[%s13770_s4 + $0x140] sm:$0xff] }
 0x2e9   :  { %v1861_v57 = vpop.f32.mrf.mxu1  ;;  %8005 = vmatmul.mubr.msk.f32.gmra.mxu1 %vm758_vm3, %v2938_v45  ;;  %3610 = vmatpush1.msra.mxu0 %v3509_v2  ;;  %v1240_v2 = vadd.f32 %v10465_v15, %v10463_v33  ;;  %v3503_v15 = vld [vmem:[%s13770_s4 + $0x28] sm:$0xff] }
 0x2ea   :  { %v11021_v23 = vadd.f32 %v1861_v57, %v10353_v26  ;;  %v2940_v25 = vpop.f32.mrf.mxu0  ;;  %3269 = vmatprep.mubr.f32.mxu1 %v13812_v32  ;;  %3611 = vmatprep.subr.mxu0 %v13812_v32 }
 0x2eb   :  { %v1863_v61 = vpop.f32.mrf.mxu1 }
 0x2ec   :  { %v11031_v27 = vadd.f32 %v1863_v61, %v1210_v21  ;;  %v2943_v26 = vpop.f32.mrf.mxu0  ;;  %v1228_v61 = vadd.f32 %v10424_v6, %v10422_v17  ;;  %v3506_v6 = vld [vmem:[%s13770_s4 + $0x40] sm:$0xff] }
 0x2ed   :  { %v1867_v7 = vpop.f32.mrf.mxu1  ;;  %8006 = vmatmul.mubr.msk.f32.gmra.mxu1 %vm758_vm3, %v2943_v26 }
 0x2ee   :  { %v11045_v48 = vadd.f32 %v1867_v7, %v10374_v34  ;;  %v2945_v44 = vpop.f32.mrf.mxu0  ;;  %3275 = vmatprep.mubr.f32.mxu1 %v13812_v32  ;;  %v8062_v34 = vld [vmem:[%s13770_s4 + $0x150] sm:$0xff]  ;;  %v3507_v7 = vld [vmem:[%s13770_s4 + $0x48] sm:$0xff] }
 0x2ef   :  { %v1869_v43 = vpop.f32.mrf.mxu1  ;;  %3824 = vmatpush1.msra.mxu1 %v8062_v34 }
 0x2f0   :  { %v11052_v18 = vadd.f32 %v1869_v43, %v1216_v30  ;;  %v2948_v62 = vpop.f32.mrf.mxu0  ;;  %3825 = vmatprep.subr.mxu1 %v13812_v32  ;;  %v1234_v30 = vadd.f32 %v10441_v11, %v10439_v24  ;;  %v8057_v11 = vld [vmem:[%s13770_s4 + $0x128] sm:$0xff] }
 0x2f1   :  { %v1873_v39 = vpop.f32.mrf.mxu1  ;;  %8007 = vmatmul.mubr.msk.f32.gmra.mxu1 %vm758_vm3, %v2948_v62  ;;  %v8058_v62 = vld [vmem:[%s13770_s4 + $0x130] sm:$0xff] }
 0x2f2   :  { %v11066_v45 = vadd.f32 %v1873_v39, %v10400_v51  ;;  %v2950_v57 = vpop.f32.mrf.mxu0  ;;  %3281 = vmatprep.mubr.f32.mxu1 %v13812_v32  ;;  %v3508_v51 = vld [vmem:[%s13770_s4 + $0x50] sm:$0xff]  ;;  %3826 = vmatpush1.msra.mxu1 %v8061_v22 }
 0x2f3   :  { %v1875_v56 = vpop.f32.mrf.mxu1  ;;  %3827 = vmatprep.subr.mxu1 %v13812_v32  ;;  %3612 = vmatpush1.msra.mxu0 %v3508_v51  ;;  %v3504_v22 = vld [vmem:[%s13770_s4 + $0x30] sm:$0xff] }
 0x2f4   :  { %v11073_v21 = vadd.f32 %v1875_v56, %v1222_v8  ;;  %v2953_v25 = vpop.f32.mrf.mxu0  ;;  %3828 = vmatpush1.msra.mxu1 %v8060_v53  ;;  %3613 = vmatprep.subr.mxu0 %v13812_v32 }
 0x2f5   :  { %v1879_v50 = vpop.f32.mrf.mxu1  ;;  %8008 = vmatmul.mubr.msk.f32.gmra.mxu1 %vm758_vm3, %v2953_v25  ;;  %3829 = vmatprep.subr.mxu1 %v13812_v32 }
 0x2f6   :  { %v11087_v58 = vadd.f32 %v1879_v50, %v10419_v13  ;;  %v2955_v20 = vpop.f32.mrf.mxu0  ;;  %3287 = vmatprep.mubr.f32.mxu1 %v13812_v32  ;;  %v8059_v13 = vld [vmem:[%s13770_s4 + $0x138] sm:$0xff]  ;;  %3614 = vmatpush1.msra.mxu0 %v3507_v7  ;;  %v1246_v50 = vadd.f32 %v10488_v42, %v10486_v41  ;;  %v8054_v42 = vld [vmem:[%s13770_s4 + $0x110] sm:$0xff] }
 0x2f7   :  { %v1881_v26 = vpop.f32.mrf.mxu1  ;;  %3830 = vmatpush1.msra.mxu1 %v8059_v13  ;;  %3615 = vmatprep.subr.mxu0 %v13812_v32  ;;  %v1252_v13 = vadd.f32 %v10510_v10, %v10508_v46  ;;  %v3500_v10 = vld [vmem:[%s13770_s4 + $0x10] sm:$0xff] }
 0x2f8   :  { %v11094_v12 = vadd.f32 %v1881_v26, %v1228_v61  ;;  %v2958_v36 = vpop.f32.mrf.mxu0  ;;  %3831 = vmatprep.subr.mxu1 %v13812_v32  ;;  %3616 = vmatpush1.msra.mxu0 %v3506_v6  ;;  %v8055_v26 = vld [vmem:[%s13770_s4 + $0x118] sm:$0xff] }
 0x2f9   :  { %v1885_v17 = vpop.f32.mrf.mxu1  ;;  %8009 = vmatmul.mubr.msk.f32.gmra.mxu1 %vm758_vm3, %v2958_v36  ;;  %3617 = vmatprep.subr.mxu0 %v13812_v32 }
 0x2fa   :  { %v11108_v44 = vadd.f32 %v1885_v17, %v10436_v14  ;;  %v2960_v43 = vpop.f32.mrf.mxu0  ;;  %3293 = vmatprep.mubr.f32.mxu1 %v13812_v32  ;;  %v3505_v14 = vld [vmem:[%s13770_s4 + $0x38] sm:$0xff]  ;;  %3832 = vmatpush1.msra.mxu1 %v8058_v62 }
 0x2fb   :  { %v1887_v1 = vpop.f32.mrf.mxu1  ;;  %3833 = vmatprep.subr.mxu1 %v13812_v32  ;;  %3618 = vmatpush1.msra.mxu0 %v3505_v14  ;;  %v3501_v43 = vld [vmem:[%s13770_s4 + $0x18] sm:$0xff] }
 0x2fc   :  { %v11115_v34 = vadd.f32 %v1887_v1, %v1234_v30  ;;  %v2963_v39 = vpop.f32.mrf.mxu0  ;;  %3834 = vmatpush1.msra.mxu1 %v8057_v11  ;;  %3619 = vmatprep.subr.mxu0 %v13812_v32 }
 0x2fd   :  { %v1891_v24 = vpop.f32.mrf.mxu1  ;;  %8010 = vmatmul.mubr.msk.f32.gmra.mxu1 %vm758_vm3, %v2963_v39  ;;  %3835 = vmatprep.subr.mxu1 %v13812_v32  ;;  %v1258_v39 = vadd.f32 %v10529_v54, %v10527_v60  ;;  %v8051_v54 = vld [vmem:[%s13770_s4 + $0xf8] sm:$0xff] }
 0x2fe   :  { %v11129_v8 = vadd.f32 %v1891_v24, %v10460_v31  ;;  %v2965_v57 = vpop.f32.mrf.mxu0  ;;  %3299 = vmatprep.mubr.f32.mxu1 %v13812_v32  ;;  %v8056_v31 = vld [vmem:[%s13770_s4 + $0x120] sm:$0xff]  ;;  %3620 = vmatpush1.msra.mxu0 %v3504_v22  ;;  %v1264_v22 = vadd.f32 %v10546_v35, %v10544_v63  ;;  %v3527_v35 = vld [vmem:[%s13770_s4 + $0xe8] sm:$0xff] }
 0x2ff   :  { %v1893_v56 = vpop.f32.mrf.mxu1  ;;  %3836 = vmatpush1.msra.mxu1 %v8056_v31  ;;  %3621 = vmatprep.subr.mxu0 %v13812_v32 }
 0x300   :  { %v11136_v25 = vadd.f32 %v1893_v56, %v1240_v2  ;;  %v2968_v51 = vpop.f32.mrf.mxu0  ;;  %3837 = vmatprep.subr.mxu1 %v13812_v32  ;;  %3622 = vmatpush1.msra.mxu0 %v3503_v15  ;;  %v8052_v2 = vld [vmem:[%s13770_s4 + $0x100] sm:$0xff] }
 0x301   :  { %v1897_v33 = vpop.f32.mrf.mxu1  ;;  %8011 = vmatmul.mubr.msk.f32.gmra.mxu1 %vm758_vm3, %v2968_v51  ;;  %3623 = vmatprep.subr.mxu0 %v13812_v32  ;;  %v3498_v15 = vld [vmem:[%s13770_s4] sm:$0xff] }
 0x302   :  { %v11150_v53 = vadd.f32 %v1897_v33, %v10483_v38  ;;  %v2970_v61 = vpop.f32.mrf.mxu0  ;;  %3305 = vmatprep.mubr.f32.mxu1 %v13812_v32  ;;  %v3502_v38 = vld [vmem:[%s13770_s4 + $0x20] sm:$0xff]  ;;  %3838 = vmatpush1.msra.mxu1 %v8055_v26 }
 0x303   :  { %v1899_v20 = vpop.f32.mrf.mxu1  ;;  %3839 = vmatprep.subr.mxu1 %v13812_v32  ;;  %3624 = vmatpush1.msra.mxu0 %v3502_v38 }
 0x304   :  { %v11157_v7 = vadd.f32 %v1899_v20, %v1246_v50  ;;  %v2973_v36 = vpop.f32.mrf.mxu0  ;;  %3840 = vmatpush1.msra.mxu1 %v8054_v42  ;;  %3625 = vmatprep.subr.mxu0 %v13812_v32  ;;  %v1270_v20 = vadd.f32 %v10563_v3, %v10561_v9  ;;  %v8078_v3 = vld [vmem:[%s13770_s4 + $0x1d0] sm:$0xff] }
 0x305   :  { %v1903_v41 = vpop.f32.mrf.mxu1  ;;  %8012 = vmatmul.mubr.msk.f32.gmra.mxu1 %vm758_vm3, %v2973_v36  ;;  %3841 = vmatprep.subr.mxu1 %v13812_v32 }
 0x306   :  { %v11171_v17 = vadd.f32 %v1903_v41, %v10505_v29  ;;  %v2975_v6 = vpop.f32.mrf.mxu0  ;;  %3311 = vmatprep.mubr.f32.mxu1 %v13812_v32  ;;  %v8053_v29 = vld [vmem:[%s13770_s4 + $0x108] sm:$0xff]  ;;  %3626 = vmatpush1.msra.mxu0 %v3501_v43  ;;  %v8079_v41 = vld [vmem:[%s13770_s4 + $0x1d8] sm:$0xff] }
 0x307   :  { %v1905_v30 = vpop.f32.mrf.mxu1  ;;  %3842 = vmatpush1.msra.mxu1 %v8053_v29  ;;  %3627 = vmatprep.subr.mxu0 %v13812_v32  ;;  %v1276_v6 = vadd.f32 %v10580_v49, %v10578_v59  ;;  %v3525_v29 = vld [vmem:[%s13770_s4 + $0xd8] sm:$0xff]  ;;  %v3524_v49 = vld [vmem:[%s13770_s4 + $0xd0] sm:$0xff] }
 0x308   :  { %v11178_v1 = vadd.f32 %v1905_v30, %v1252_v13  ;;  %v2978_v62 = vpop.f32.mrf.mxu0  ;;  %3843 = vmatprep.subr.mxu1 %v13812_v32  ;;  %3628 = vmatpush1.msra.mxu0 %v3500_v10 }
 0x309   :  { %v1909_v46 = vpop.f32.mrf.mxu1  ;;  %8013 = vmatmul.mubr.msk.f32.gmra.mxu1 %vm758_vm3, %v2978_v62  ;;  %3629 = vmatprep.subr.mxu0 %v13812_v32 }
 0x30a   :  { %v11192_v14 = vadd.f32 %v1909_v46, %v10524_v4  ;;  %v2980_v24 = vpop.f32.mrf.mxu0  ;;  %3317 = vmatprep.mubr.f32.mxu1 %v13812_v32  ;;  %v3499_v4 = vld [vmem:[%s13770_s4 + $0x8] sm:$0xff]  ;;  %3844 = vmatpush1.msra.mxu1 %v8052_v2  ;;  %v13816_v2 = vld [vmem:[#allocation2_spill] sm:$0xff] }
 0x30b   :  { %v1911_v11 = vpop.f32.mrf.mxu1  ;;  %3845 = vmatprep.subr.mxu1 %v13812_v32  ;;  %3630 = vmatpush1.msra.mxu0 %v3499_v4  ;;  %v13815_v24 = vld [vmem:[#allocation4_spill] sm:$0xff] }
 0x30c   :  { %v11199_v57 = vadd.f32 %v1911_v11, %v1258_v39  ;;  %v2983_v56 = vpop.f32.mrf.mxu0  ;;  %3846 = vmatpush1.msra.mxu1 %v8051_v54  ;;  %3631 = vmatprep.subr.mxu0 %v13812_v32  ;;  %v13814_v39 = vld [vmem:[#allocation3_spill] sm:$0xff]  ;;  %v8076_v54 = vld [vmem:[%s13770_s4 + $0x1c0] sm:$0xff] }
 0x30d   :  { %v1915_v60 = vpop.f32.mrf.mxu1  ;;  %8014 = vmatmul.mubr.msk.f32.gmra.mxu1 %vm758_vm3, %v2983_v56  ;;  %3847 = vmatprep.subr.mxu1 %v13812_v32  ;;  %v1282_v11 = vadd.f32 %v13815_v24, %v13814_v39 }
 0x30e   :  { %v11213_v51 = vadd.f32 %v1915_v60, %v10541_v28  ;;  %v2985_v31 = vpop.f32.mrf.mxu0  ;;  %3323 = vmatprep.mubr.f32.mxu1 %v13812_v32  ;;  %v8050_v28 = vld [vmem:[%s13770_s4 + $0xf0] sm:$0xff]  ;;  %3632 = vmatpush1.msra.mxu0 %v3498_v15 }
 0x30f   :  { %v1917_v33 = vpop.f32.mrf.mxu1  ;;  %3848 = vmatpush1.msra.mxu1 %v8050_v28  ;;  %3637 = vmatprep.subr.mxu0 %v13812_v32  ;;  %v13818_v28 = vld [vmem:[#allocation5_spill] sm:$0xff] }
 0x310   :  { %v11220_v50 = vadd.f32 %v1917_v33, %v1264_v22  ;;  %v2988_v61 = vpop.f32.mrf.mxu0  ;;  %3853 = vmatprep.subr.mxu1 %v13812_v32  ;;  %3638 = vmatpush2.msra.mxu0 %v3527_v35  ;;  %v3523_v33 = vld [vmem:[%s13770_s4 + $0xc8] sm:$0xff] }
 0x311   :  { %v1921_v63 = vpop.f32.mrf.mxu1  ;;  %8015 = vmatmul.mubr.msk.f32.gmra.mxu1 %vm758_vm3, %v2988_v61  ;;  %3639 = vmatprep.subr.mxu0 %v13812_v32  ;;  %v8075_v61 = vld [vmem:[%s13770_s4 + $0x1b8] sm:$0xff] }
 0x312   :  { %v11234_v26 = vadd.f32 %v1921_v63, %v10558_v40  ;;  %v2990_v36 = vpop.f32.mrf.mxu0  ;;  %3329 = vmatprep.mubr.f32.mxu1 %v13812_v32  ;;  %v3526_v40 = vld [vmem:[%s13770_s4 + $0xe0] sm:$0xff]  ;;  %3854 = vmatpush2.msra.mxu1 %v8079_v41  ;;  %v8074_v41 = vld [vmem:[%s13770_s4 + $0x1b0] sm:$0xff] }
 0x313   :  { %v1923_v38 = vpop.f32.mrf.mxu1  ;;  %3855 = vmatprep.subr.mxu1 %v13812_v32  ;;  %3640 = vmatpush2.msra.mxu0 %v3526_v40  ;;  %v3522_v36 = vld [vmem:[%s13770_s4 + $0xc0] sm:$0xff]  ;;  %v3521_v40 = vld [vmem:[%s13770_s4 + $0xb8] sm:$0xff] }
 0x314   :  { %v11241_v42 = vadd.f32 %v1923_v38, %v1270_v20  ;;  %v2993_v13 = vpop.f32.mrf.mxu0  ;;  %3856 = vmatpush2.msra.mxu1 %v8078_v3  ;;  %3641 = vmatprep.subr.mxu0 %v13812_v32 }
 0x315   :  { %v1927_v9 = vpop.f32.mrf.mxu1  ;;  %8016 = vmatmul.mubr.msk.f32.gmra.mxu1 %vm758_vm3, %v2993_v13  ;;  %3857 = vmatprep.subr.mxu1 %v13812_v32 }
 0x316   :  { %v11255_v30 = vadd.f32 %v1927_v9, %v10575_v52  ;;  %v2995_v43 = vpop.f32.mrf.mxu0  ;;  %3335 = vmatprep.mubr.f32.mxu1 %v13812_v32  ;;  %v8077_v52 = vld [vmem:[%s13770_s4 + $0x1c8] sm:$0xff]  ;;  %3642 = vmatpush2.msra.mxu0 %v3525_v29  ;;  %v13820_v9 = vld [vmem:[#allocation8_spill] sm:$0xff] }
 0x317   :  { %v1929_v62 = vpop.f32.mrf.mxu1  ;;  %3858 = vmatpush2.msra.mxu1 %v8077_v52  ;;  %3643 = vmatprep.subr.mxu0 %v13812_v32 }
 0x318   :  { %v11262_v46 = vadd.f32 %v1929_v62, %v1276_v6  ;;  %v2998_v10 = vpop.f32.mrf.mxu0  ;;  %3859 = vmatprep.subr.mxu1 %v13812_v32  ;;  %3644 = vmatpush2.msra.mxu0 %v3524_v49  ;;  %v8073_v62 = vld [vmem:[%s13770_s4 + $0x1a8] sm:$0xff] }
 0x319   :  { %v1933_v59 = vpop.f32.mrf.mxu1  ;;  %8017 = vmatmul.mubr.msk.f32.gmra.mxu1 %vm758_vm3, %v2998_v10  ;;  %3645 = vmatprep.subr.mxu0 %v13812_v32  ;;  %v3520_v10 = vld [vmem:[%s13770_s4 + $0xb0] sm:$0xff]  ;;  %v13822_v49 = vld [vmem:[#allocation11_spill] sm:$0xff] }
 0x31a   :  { %v11276_v56 = vadd.f32 %v1933_v59, %v13816_v2  ;;  %v3000_v4 = vpop.f32.mrf.mxu0  ;;  %3341 = vmatprep.mubr.f32.mxu1 %v13812_v32  ;;  %3860 = vmatpush2.msra.mxu1 %v8076_v54  ;;  %v8072_v59 = vld [vmem:[%s13770_s4 + $0x1a0] sm:$0xff]  ;;  %v3519_v2 = vld [vmem:[%s13770_s4 + $0xa8] sm:$0xff] }
 0x31b   :  { %v1935_v60 = vpop.f32.mrf.mxu1  ;;  %3861 = vmatprep.subr.mxu1 %v13812_v32  ;;  %3646 = vmatpush2.msra.mxu0 %v3523_v33  ;;  %v13824_v33 = vld [vmem:[#allocation14_spill] sm:$0xff] }
 0x31c   :  { %v11283_v22 = vadd.f32 %v1935_v60, %v1282_v11  ;;  %v3003_v31 = vpop.f32.mrf.mxu0  ;;  %3862 = vmatpush2.msra.mxu1 %v8075_v61  ;;  %3647 = vmatprep.subr.mxu0 %v13812_v32  ;;  %v8071_v60 = vld [vmem:[%s13770_s4 + $0x198] sm:$0xff] }
 0x31d   :  { %v1939_v15 = vpop.f32.mrf.mxu1  ;;  %8018 = vmatmul.mubr.msk.f32.gmra.mxu1 %vm758_vm3, %v3003_v31  ;;  %3863 = vmatprep.subr.mxu1 %v13812_v32  ;;  %v3518_v31 = vld [vmem:[%s13770_s4 + $0xa0] sm:$0xff] }
 0x31e   :  { %13817 = vst [vmem:[#allocation3_spill] sm:$0xff] %v11283_v22  ;;  %v11295_v63 = vadd.f32 %v1939_v15, %v13818_v28  ;;  %v3005_v35 = vpop.f32.mrf.mxu0  ;;  %3347 = vmatprep.mubr.f32.mxu1 %v13812_v32  ;;  %3648 = vmatpush2.msra.mxu0 %v3522_v36 }
 0x31f   :  { %v11298_v20 = vpop.f32.mrf.mxu1  ;;  %3864 = vmatpush2.msra.mxu1 %v8074_v41  ;;  %3649 = vmatprep.subr.mxu0 %v13812_v32  ;;  %v8070_v35 = vld [vmem:[%s13770_s4 + $0x190] sm:$0xff] }
 0x320   :  { %13819 = vst [vmem:[#allocation4_spill] sm:$0xff] %v11298_v20  ;;  %v3008_v38 = vpop.f32.mrf.mxu0  ;;  %3865 = vmatprep.subr.mxu1 %v13812_v32  ;;  %3650 = vmatpush2.msra.mxu0 %v3521_v40  ;;  %v13826_v40 = vld [vmem:[#allocation17_spill] sm:$0xff] }
 0x321   :  { %v1945_v13 = vpop.f32.mrf.mxu1  ;;  %8019 = vmatmul.mubr.msk.f32.gmra.mxu1 %vm758_vm3, %v3008_v38  ;;  %3651 = vmatprep.subr.mxu0 %v13812_v32  ;;  %v3517_v38 = vld [vmem:[%s13770_s4 + $0x98] sm:$0xff] }
 0x322   :  { %v11314_v3 = vadd.f32 %v1945_v13, %v13820_v9  ;;  %v3010_v6 = vpop.f32.mrf.mxu0  ;;  %3353 = vmatprep.mubr.f32.mxu1 %v13812_v32  ;;  %3866 = vmatpush2.msra.mxu1 %v8073_v62  ;;  %v8069_v13 = vld [vmem:[%s13770_s4 + $0x188] sm:$0xff] }
 0x323   :  { %v11317_v43 = vpop.f32.mrf.mxu1  ;;  %3867 = vmatprep.subr.mxu1 %v13812_v32  ;;  %3652 = vmatpush2.msra.mxu0 %v3520_v10 }
 0x324   :  { %13821 = vst [vmem:[#allocation2_spill] sm:$0xff] %v11317_v43  ;;  %v3013_v29 = vpop.f32.mrf.mxu0  ;;  %3868 = vmatpush2.msra.mxu1 %v8072_v59  ;;  %3653 = vmatprep.subr.mxu0 %v13812_v32 }
 0x325   :  { %v1951_v52 = vpop.f32.mrf.mxu1  ;;  %8020 = vmatmul.mubr.msk.f32.gmra.mxu1 %vm758_vm3, %v3013_v29  ;;  %3869 = vmatprep.subr.mxu1 %v13812_v32  ;;  %v3516_v29 = vld [vmem:[%s13770_s4 + $0x90] sm:$0xff] }
 0x326   :  { %v11333_v39 = vadd.f32 %v1951_v52, %v13822_v49  ;;  %v3015_v24 = vpop.f32.mrf.mxu0  ;;  %3359 = vmatprep.mubr.f32.mxu1 %v13812_v32  ;;  %3654 = vmatpush2.msra.mxu0 %v3519_v2  ;;  %v8068_v52 = vld [vmem:[%s13770_s4 + $0x180] sm:$0xff]  ;;  %v3515_v49 = vld [vmem:[%s13770_s4 + $0x88] sm:$0xff] }
 0x327   :  { %v11336_v11 = vpop.f32.mrf.mxu1  ;;  %3870 = vmatpush2.msra.mxu1 %v8071_v60  ;;  %3655 = vmatprep.subr.mxu0 %v13812_v32  ;;  %v13828_v24 = vld [vmem:[#allocation20_spill] sm:$0xff] }
 0x328   :  { %13823 = vst [vmem:[#allocation5_spill] sm:$0xff] %v11336_v11  ;;  %v3018_v4 = vpop.f32.mrf.mxu0  ;;  %3871 = vmatprep.subr.mxu1 %v13812_v32  ;;  %3656 = vmatpush2.msra.mxu0 %v3518_v31 }
 0x329   :  { %v1957_v54 = vpop.f32.mrf.mxu1  ;;  %8021 = vmatmul.mubr.msk.f32.gmra.mxu1 %vm758_vm3, %v3018_v4  ;;  %3657 = vmatprep.subr.mxu0 %v13812_v32 }
 0x32a   :  { %v11352_v15 = vadd.f32 %v1957_v54, %v13824_v33  ;;  %v3020_v61 = vpop.f32.mrf.mxu0  ;;  %3365 = vmatprep.mubr.f32.mxu1 %v13812_v32  ;;  %3872 = vmatpush2.msra.mxu1 %v8070_v35  ;;  %v8067_v54 = vld [vmem:[%s13770_s4 + $0x178] sm:$0xff]  ;;  %v3514_v33 = vld [vmem:[%s13770_s4 + $0x80] sm:$0xff]  ;;  %v8066_v35 = vld [vmem:[%s13770_s4 + $0x170] sm:$0xff] }
 0x32b   :  { %v11355_v28 = vpop.f32.mrf.mxu1  ;;  %3873 = vmatprep.subr.mxu1 %v13812_v32  ;;  %3658 = vmatpush2.msra.mxu0 %v3517_v38 }
 0x32c   :  { %13825 = vst [vmem:[#allocation8_spill] sm:$0xff] %v11355_v28  ;;  %v3023_v36 = vpop.f32.mrf.mxu0  ;;  %3874 = vmatpush2.msra.mxu1 %v8069_v13  ;;  %3659 = vmatprep.subr.mxu0 %v13812_v32 }
 0x32d   :  { %v1963_v41 = vpop.f32.mrf.mxu1  ;;  %8022 = vmatmul.mubr.msk.f32.gmra.mxu1 %vm758_vm3, %v3023_v36  ;;  %3875 = vmatprep.subr.mxu1 %v13812_v32  ;;  %v13830_v36 = vld [vmem:[#allocation23_spill] sm:$0xff] }
 0x32e   :  { %v11371_v9 = vadd.f32 %v1963_v41, %v13826_v40  ;;  %v3025_v6 = vpop.f32.mrf.mxu0  ;;  %3371 = vmatprep.mubr.f32.mxu1 %v13812_v32  ;;  %3660 = vmatpush2.msra.mxu0 %v3516_v29  ;;  %v13832_v29 = vld [vmem:[#allocation26_spill] sm:$0xff] }
 0x32f   :  { %v11374_v62 = vpop.f32.mrf.mxu1  ;;  %3876 = vmatpush2.msra.mxu1 %v8068_v52  ;;  %3661 = vmatprep.subr.mxu0 %v13812_v32 }
 0x330   :  { %13827 = vst [vmem:[#allocation11_spill] sm:$0xff] %v11374_v62  ;;  %v3028_v10 = vpop.f32.mrf.mxu0  ;;  %3877 = vmatprep.subr.mxu1 %v13812_v32  ;;  %3662 = vmatpush2.msra.mxu0 %v3515_v49 }
 0x331   :  { %v1969_v59 = vpop.f32.mrf.mxu1  ;;  %8023 = vmatmul.mubr.msk.f32.gmra.mxu1 %vm758_vm3, %v3028_v10  ;;  %3663 = vmatprep.subr.mxu0 %v13812_v32 }
 0x332   :  { %v11390_v2 = vadd.f32 %v1969_v59, %v13828_v24  ;;  %v3030_v4 = vpop.f32.mrf.mxu0  ;;  %3377 = vmatprep.mubr.f32.mxu1 %v13812_v32  ;;  %3878 = vmatpush2.msra.mxu1 %v8067_v54 }
 0x333   :  { %v11393_v60 = vpop.f32.mrf.mxu1  ;;  %3879 = vmatprep.subr.mxu1 %v13812_v32  ;;  %3664 = vmatpush2.msra.mxu0 %v3514_v33 }
 0x334   :  { %13829 = vst [vmem:[#allocation14_spill] sm:$0xff] %v11393_v60  ;;  %v3033_v31 = vpop.f32.mrf.mxu0  ;;  %3880 = vmatpush2.msra.mxu1 %v8066_v35  ;;  %4086 = vmatprep.subr.mxu0 %v13812_v32 }
 0x335   :  { %v1975_v61 = vpop.f32.mrf.mxu1  ;;  %8024 = vmatmul.mubr.msk.f32.gmra.mxu1 %vm758_vm3, %v3033_v31  ;;  %4272 = vmatprep.subr.mxu1 %v13812_v32 }
 0x336   :  { %v11409_v38 = vadd.f32 %v1975_v61, %v13830_v36  ;;  %v3035_v41 = vpop.f32.mrf.mxu0  ;;  %3383 = vmatprep.mubr.f32.mxu1 %v13812_v32 }
 0x337   :  { %v11412_v13 = vpop.f32.mrf.mxu1 }
 0x338   :  { %13831 = vst [vmem:[#allocation17_spill] sm:$0xff] %v11412_v13  ;;  %v3038_v40 = vpop.f32.mrf.mxu0 }
 0x339   :  { %v1981_v6 = vpop.f32.mrf.mxu1  ;;  %8025 = vmatmul.mubr.msk.f32.gmra.mxu1 %vm758_vm3, %v3038_v40 }
 0x33a   :  { %v11419_v10 = vadd.f32 %v1981_v6, %v13832_v29  ;;  %v3040_v52 = vpop.f32.mrf.mxu0 }
 0x33b   :  { %v11421_v59 = vpop.f32.mrf.mxu1 }
 0x33c   :  { %13833 = vst [vmem:[#allocation20_spill] sm:$0xff] %v11421_v59 }
 0x33d   :  { %v2545_v49 = vpop.f32.mrf.mxu1 }
 0x33e   :  { %v11424_v24 = vadd.f32 %v2545_v49, %v10988_v19 }
 0x33f   :  { %v11426_v4 = vpop.f32.mrf.mxu1 }
 0x341   :  { %v2551_v54 = vpop.f32.mrf.mxu1 }
 0x342   :  { %v11429_v31 = vadd.f32 %v2551_v54, %v10997_v47 }
 0x343   :  { %v11431_v33 = vpop.f32.mrf.mxu1 }
 0x345   :  { %v2557_v61 = vpop.f32.mrf.mxu1 }
 0x346   :  { %v11434_v35 = vadd.f32 %v2557_v61, %v11006_v16 }
 0x347   :  { %v11436_v36 = vpop.f32.mrf.mxu1 }
 0x349   :  { %v2563_v41 = vpop.f32.mrf.mxu1 }
 0x34a   :  { %v11439_v40 = vadd.f32 %v2563_v41, %v11021_v23 }
 0x34b   :  { %v11441_v19 = vpop.f32.mrf.mxu1 }
 0x34d   :  { %v2569_v6 = vpop.f32.mrf.mxu1 }
 0x34e   :  { %v11444_v29 = vadd.f32 %v2569_v6, %v11045_v48 }
 0x34f   :  { %v11446_v47 = vpop.f32.mrf.mxu1 }
 0x351   :  { %v2575_v52 = vpop.f32.mrf.mxu1 }
 0x352   :  { %v11449_v49 = vadd.f32 %v2575_v52, %v11066_v45 }
 0x353   :  { %v11451_v16 = vpop.f32.mrf.mxu1 }
 0x355   :  { %v2581_v54 = vpop.f32.mrf.mxu1 }
 0x356   :  { %v11454_v61 = vadd.f32 %v2581_v54, %v11087_v58 }
 0x357   :  { %v11456_v23 = vpop.f32.mrf.mxu1 }
 0x359   :  { %v2587_v41 = vpop.f32.mrf.mxu1 }
 0x35a   :  { %v11459_v32 = vadd.f32 %v2587_v41, %v11108_v44 }
 0x35b   :  { %v11461_v48 = vpop.f32.mrf.mxu1 }
 0x35d   :  { %v2593_v6 = vpop.f32.mrf.mxu1 }
 0x35e   :  { %v11464_v59 = vadd.f32 %v2593_v6, %v11129_v8 }
 0x35f   :  { %v11466_v45 = vpop.f32.mrf.mxu1 }
 0x361   :  { %v2599_v52 = vpop.f32.mrf.mxu1 }
 0x362   :  { %v11469_v0 = vadd.f32 %v2599_v52, %v11150_v53 }
 0x363   :  { %v11471_v58 = vpop.f32.mrf.mxu1 }
 0x365   :  { %v2605_v54 = vpop.f32.mrf.mxu1 }
 0x366   :  { %v11474_v13 = vadd.f32 %v2605_v54, %v11171_v17 }
 0x367   :  { %v11476_v44 = vpop.f32.mrf.mxu1 }
 0x369   :  { %v2611_v41 = vpop.f32.mrf.mxu1 }
 0x36a   :  { %v11479_v60 = vadd.f32 %v2611_v41, %v11192_v14 }
 0x36b   :  { %v11481_v8 = vpop.f32.mrf.mxu1 }
 0x36d   :  { %v2617_v6 = vpop.f32.mrf.mxu1 }
 0x36e   :  { %v11484_v62 = vadd.f32 %v2617_v6, %v11213_v51 }
 0x36f   :  { %v11486_v53 = vpop.f32.mrf.mxu1 }
 0x371   :  { %v2623_v52 = vpop.f32.mrf.mxu1 }
 0x372   :  { %v11489_v28 = vadd.f32 %v2623_v52, %v11234_v26 }
 0x373   :  { %v11491_v17 = vpop.f32.mrf.mxu1 }
 0x375   :  { %v2629_v54 = vpop.f32.mrf.mxu1 }
 0x376   :  { %v11494_v11 = vadd.f32 %v2629_v54, %v11255_v30 }
 0x377   :  { %v11496_v14 = vpop.f32.mrf.mxu1 }
 0x378   :  { %13834 = vst [vmem:[#allocation23_spill] sm:$0xff] %v11494_v11 }
 0x379   :  { %v2635_v41 = vpop.f32.mrf.mxu1 }
 0x37a   :  { %v11499_v43 = vadd.f32 %v2635_v41, %v11276_v56 }
 0x37b   :  { %v11501_v51 = vpop.f32.mrf.mxu1 }
 0x37c   :  { %13835 = vst [vmem:[#allocation26_spill] sm:$0xff] %v11499_v43 }
 0x37d   :  { %v2641_v6 = vpop.f32.mrf.mxu1 }
 0x37e   :  { %v11504_v20 = vadd.f32 %v2641_v6, %v11295_v63 }
 0x37f   :  { %v11506_v26 = vpop.f32.mrf.mxu1 }
 0x380   :  { %13836 = vst [vmem:[#allocation29_spill] sm:$0xff] %v11504_v20 }
 0x381   :  { %v2647_v52 = vpop.f32.mrf.mxu1 }
 0x382   :  { %v11509_v22 = vadd.f32 %v2647_v52, %v11314_v3 }
 0x383   :  { %v11511_v30 = vpop.f32.mrf.mxu1 }
 0x384   :  { %13837 = vst [vmem:[#allocation30_spill] sm:$0xff] %v11509_v22 }
 0x385   :  { %v2653_v54 = vpop.f32.mrf.mxu1 }
 0x386   :  { %v11514_v11 = vadd.f32 %v2653_v54, %v11333_v39  ;;  %v3440_v54 = vlaneseq }
 0x387   :  { %v11516_v56 = vpop.f32.mrf.mxu1 }
 0x388   :  { %13838 = vst [vmem:[#allocation31_spill] sm:$0xff] %v11514_v11  ;;  %13839 = vst [vmem:[#allocation32_spill] sm:$0xff] %v11516_v56 }
 0x389   :  { %v2659_v41 = vpop.f32.mrf.mxu1 }
 0x38a   :  { %v11519_v43 = vadd.f32 %v2659_v41, %v11352_v15  ;;  %v11538_v41 = vshrl.u32 %v3440_v54, 7 }
 0x38b   :  { %v11521_v63 = vpop.f32.mrf.mxu1 }
 0x38c   :  { %13840 = vst [vmem:[#allocation33_spill] sm:$0xff] %v11519_v43 }
 0x38d   :  { %v2665_v6 = vpop.f32.mrf.mxu1 }
 0x38e   :  { %v11524_v20 = vadd.f32 %v2665_v6, %v11371_v9  ;;  %v13785_v6 = vsub.s32 1, %v11538_v41 }
 0x38f   :  { %v11526_v3 = vpop.f32.mrf.mxu1 }
 0x390   :  { %13841 = vst [vmem:[#allocation34_spill] sm:$0xff] %v11524_v20 }
 0x391   :  { %v2671_v52 = vpop.f32.mrf.mxu1 }
 0x392   :  { %v11529_v22 = vadd.f32 %v2671_v52, %v11390_v2  ;;  %v3442_v2 = vsub.s32 0, %v11538_v41  ;;  %v3438_v52 = vld [vmem:[%s13771_s3] sm:$0x3] }
 0x393   :  { %v11531_v39 = vpop.f32.mrf.mxu1  ;;  %v11554_v54 = vrot.slane %v3438_v52, %v13785_v6 }
 0x394   :  { %13842 = vst [vmem:[#allocation35_spill] sm:$0xff] %v11529_v22  ;;  %13843 = vst [vmem:[#allocation36_spill] sm:$0xff] %v11531_v39 }
 0x395   :  { %v2677_v11 = vpop.f32.mrf.mxu1 }
 0x396   :  { %v11534_v56 = vadd.f32 %v2677_v11, %v11409_v38  ;;  %v2689_v38 = vadd.f32 %v11426_v4, %v10991_v37 }
 0x397   :  { %v11536_v15 = vpop.f32.mrf.mxu1 }
 0x398   :  { %13844 = vst [vmem:[#allocation37_spill] sm:$0xff] %v11534_v56  ;;  %13845 = vst [vmem:[#allocation38_spill] sm:$0xff] %v11536_v15  ;;  %v2691_v15 = vadd.f32 %v11431_v33, %v11000_v5 }
 0x399   :  { %v2683_v43 = vpop.f32.mrf.mxu1 }
 0x39a   :  { %v11541_v9 = vadd.f32 %v2683_v43, %v11419_v10  ;;  %v11559_v10 = vrot.slane %v3438_v52, %v3442_v2 }
 0x39b   :  { %v11544_v20 = vpop.f32.mrf.mxu1 }
 0x39c   :  { %13846 = vst [vmem:[#allocation39_spill] sm:$0xff] %v11541_v9  ;;  %13847 = vst [vmem:[#allocation40_spill] sm:$0xff] %v11544_v20 }
 0x39d   :  { %v3247_v11 = vpop.f32.mrf.mxu1 }
 0x39e   :  { %v3390_v43 = vadd.f32 %v3247_v11, %v11424_v24  ;;  %v2697_v11 = vadd.f32 %v11446_v47, %v11052_v18 }
 0x39f   :  { %v3249_v9 = vpop.f32.mrf.mxu1 }
 0x3a0   :  { %v3391_v20 = vadd.f32 %v3249_v9, %v2689_v38  ;;  %v3450_v37 = vadd.f32 %v11559_v10, %v3390_v43  ;;  %v2693_v9 = vadd.f32 %v11436_v36, %v11009_v55 }
 0x3a1   :  { %v3253_v56 = vpop.f32.mrf.mxu1 }
 0x3a2   :  { %v3451_v22 = vadd.f32 %v11554_v54, %v3391_v20  ;;  %v3392_v4 = vadd.f32 %v3253_v56, %v11429_v31 }
 0x3a3   :  { %v3255_v6 = vpop.f32.mrf.mxu1 }
 0x3a4   :  { %v3393_v39 = vadd.f32 %v3255_v6, %v2691_v15  ;;  %8026 = vmatprep.mubr.msk.f32.mxu0 %vm3528_vm7, %v3451_v22  ;;  %8080 = vmatprep.mubr.msk.f32.mxu1 %vm3528_vm7, %v3451_v22  ;;  %v3452_v20 = vadd.f32 %v11559_v10, %v3392_v4  ;;  %v2695_v22 = vadd.f32 %v11441_v19, %v11031_v27 }
 0x3a5   :  { %v3259_v24 = vpop.f32.mrf.mxu1  ;;  %3666 = vmatmul.mubr.f32.vlgmr.msra.gmra.mxu0 %v3450_v37  ;;  %3882 = vmatmul.mubr.f32.vlgmr.msra.gmra.mxu1 %v3450_v37  ;;  %v2699_v4 = vadd.f32 %v11451_v16, %v11073_v21 }
 0x3a6   :  { %v3453_v5 = vadd.f32 %v11554_v54, %v3393_v39  ;;  %v3394_v33 = vadd.f32 %v3259_v24, %v11434_v35 }
 0x3a7   :  { %v3261_v52 = vpop.f32.mrf.mxu1 }
 0x3a8   :  { %v3395_v31 = vadd.f32 %v3261_v52, %v2693_v9  ;;  %8027 = vmatprep.mubr.msk.f32.mxu0 %vm3528_vm7, %v3453_v5  ;;  %8081 = vmatprep.mubr.msk.f32.mxu1 %vm3528_vm7, %v3453_v5  ;;  %v3454_v36 = vadd.f32 %v11559_v10, %v3394_v33 }
 0x3a9   :  { %v3265_v56 = vpop.f32.mrf.mxu1  ;;  %3671 = vmatmul.mubr.f32.gmra.mxu0 %v3452_v20  ;;  %3887 = vmatmul.mubr.f32.gmra.mxu1 %v3452_v20  ;;  %v2701_v20 = vadd.f32 %v11456_v23, %v11094_v12 }
 0x3aa   :  { %v3455_v55 = vadd.f32 %v11554_v54, %v3395_v31  ;;  %v3396_v39 = vadd.f32 %v3265_v56, %v11439_v40  ;;  %v2703_v56 = vadd.f32 %v11461_v48, %v11115_v34 }
 0x3ab   :  { %v3267_v15 = vpop.f32.mrf.mxu1 }
 0x3ac   :  { %v3397_v35 = vadd.f32 %v3267_v15, %v2695_v22  ;;  %8028 = vmatprep.mubr.msk.f32.mxu0 %vm3528_vm7, %v3455_v55  ;;  %8082 = vmatprep.mubr.msk.f32.mxu1 %vm3528_vm7, %v3455_v55  ;;  %v3456_v19 = vadd.f32 %v11559_v10, %v3396_v39  ;;  %v2705_v39 = vadd.f32 %v11466_v45, %v11136_v25 }
 0x3ad   :  { %v3271_v6 = vpop.f32.mrf.mxu1  ;;  %3676 = vmatmul.mubr.f32.gmra.mxu0 %v3454_v36  ;;  %3892 = vmatmul.mubr.f32.gmra.mxu1 %v3454_v36 }
 0x3ae   :  { %v3457_v27 = vadd.f32 %v11554_v54, %v3397_v35  ;;  %v3398_v38 = vadd.f32 %v3271_v6, %v11444_v29 }
 0x3af   :  { %v3273_v43 = vpop.f32.mrf.mxu1 }
 0x3b0   :  { %v3399_v40 = vadd.f32 %v3273_v43, %v2697_v11  ;;  %8029 = vmatprep.mubr.msk.f32.mxu0 %vm3528_vm7, %v3457_v27  ;;  %8083 = vmatprep.mubr.msk.f32.mxu1 %vm3528_vm7, %v3457_v27  ;;  %v3458_v47 = vadd.f32 %v11559_v10, %v3398_v38  ;;  %v2707_v11 = vadd.f32 %v11471_v58, %v11157_v7 }
 0x3b1   :  { %v3277_v37 = vpop.f32.mrf.mxu1  ;;  %3681 = vmatmul.mubr.f32.gmra.mxu0 %v3456_v19  ;;  %3897 = vmatmul.mubr.f32.gmra.mxu1 %v3456_v19  ;;  %v2709_v43 = vadd.f32 %v11476_v44, %v11178_v1 }
 0x3b2   :  { %v3459_v18 = vadd.f32 %v11554_v54, %v3399_v40  ;;  %v3400_v24 = vadd.f32 %v3277_v37, %v11449_v49 }
 0x3b3   :  { %v3279_v9 = vpop.f32.mrf.mxu1 }
 0x3b4   :  { %v3401_v29 = vadd.f32 %v3279_v9, %v2699_v4  ;;  %8030 = vmatprep.mubr.msk.f32.mxu0 %vm3528_vm7, %v3459_v18  ;;  %8084 = vmatprep.mubr.msk.f32.mxu1 %vm3528_vm7, %v3459_v18  ;;  %v3460_v16 = vadd.f32 %v11559_v10, %v3400_v24  ;;  %v2711_v18 = vadd.f32 %v11481_v8, %v11199_v57 }
 0x3b5   :  { %v3283_v5 = vpop.f32.mrf.mxu1  ;;  %3686 = vmatmul.mubr.f32.gmra.mxu0 %v3458_v47  ;;  %3902 = vmatmul.mubr.f32.gmra.mxu1 %v3458_v47 }
 0x3b6   :  { %v3461_v21 = vadd.f32 %v11554_v54, %v3401_v29  ;;  %v3402_v33 = vadd.f32 %v3283_v5, %v11454_v61  ;;  %v2713_v29 = vadd.f32 %v11486_v53, %v11220_v50 }
 0x3b7   :  { %v3285_v52 = vpop.f32.mrf.mxu1 }
 0x3b8   :  { %v3403_v49 = vadd.f32 %v3285_v52, %v2701_v20  ;;  %8031 = vmatprep.mubr.msk.f32.mxu0 %vm3528_vm7, %v3461_v21  ;;  %8085 = vmatprep.mubr.msk.f32.mxu1 %vm3528_vm7, %v3461_v21  ;;  %v3462_v23 = vadd.f32 %v11559_v10, %v3402_v33 }
 0x3b9   :  { %v3289_v31 = vpop.f32.mrf.mxu1  ;;  %3691 = vmatmul.mubr.f32.gmra.mxu0 %v3460_v16  ;;  %3907 = vmatmul.mubr.f32.gmra.mxu1 %v3460_v16  ;;  %v2715_v16 = vadd.f32 %v11491_v17, %v11241_v42 }
 0x3ba   :  { %v3463_v12 = vadd.f32 %v11554_v54, %v3403_v49  ;;  %v3404_v22 = vadd.f32 %v3289_v31, %v11459_v32  ;;  %v2717_v31 = vadd.f32 %v11496_v14, %v11262_v46 }
 0x3bb   :  { %v3291_v55 = vpop.f32.mrf.mxu1 }
 0x3bc   :  { %v3405_v61 = vadd.f32 %v3291_v55, %v2703_v56  ;;  %8032 = vmatprep.mubr.msk.f32.mxu0 %vm3528_vm7, %v3463_v12  ;;  %8086 = vmatprep.mubr.msk.f32.mxu1 %vm3528_vm7, %v3463_v12  ;;  %v3464_v48 = vadd.f32 %v11559_v10, %v3404_v22  ;;  %v13848_v56 = vld [vmem:[#allocation23_spill] sm:$0xff]  ;;  %v13849_v55 = vld [vmem:[#allocation6_spill] sm:$0xff] }
 0x3bd   :  { %v3295_v36 = vpop.f32.mrf.mxu1  ;;  %3696 = vmatmul.mubr.f32.gmra.mxu0 %v3462_v23  ;;  %3912 = vmatmul.mubr.f32.gmra.mxu1 %v3462_v23 }
 0x3be   :  { %v3465_v34 = vadd.f32 %v11554_v54, %v3405_v61  ;;  %v3406_v15 = vadd.f32 %v3295_v36, %v11464_v59  ;;  %v13850_v61 = vld [vmem:[#allocation7_spill] sm:$0xff] }
 0x3bf   :  { %v3297_v35 = vpop.f32.mrf.mxu1  ;;  %v1288_v36 = vadd.f32 %v13850_v61, %v13849_v55 }
 0x3c0   :  { %v3407_v32 = vadd.f32 %v3297_v35, %v2705_v39  ;;  %8033 = vmatprep.mubr.msk.f32.mxu0 %vm3528_vm7, %v3465_v34  ;;  %8087 = vmatprep.mubr.msk.f32.mxu1 %vm3528_vm7, %v3465_v34  ;;  %v3466_v45 = vadd.f32 %v11559_v10, %v3406_v15  ;;  %v13851_v39 = vld [vmem:[#allocation3_spill] sm:$0xff] }
 0x3c1   :  { %v3301_v6 = vpop.f32.mrf.mxu1  ;;  %3701 = vmatmul.mubr.f32.gmra.mxu0 %v3464_v48  ;;  %3917 = vmatmul.mubr.f32.gmra.mxu1 %v3464_v48  ;;  %v2719_v46 = vadd.f32 %v11501_v51, %v13851_v39  ;;  %v13852_v48 = vld [vmem:[#allocation26_spill] sm:$0xff] }
 0x3c2   :  { %v3467_v25 = vadd.f32 %v11554_v54, %v3407_v32  ;;  %v3408_v27 = vadd.f32 %v3301_v6, %v11469_v0  ;;  %v13853_v32 = vld [vmem:[#allocation4_spill] sm:$0xff] }
 0x3c3   :  { %v3303_v19 = vpop.f32.mrf.mxu1  ;;  %v2019_v6 = vadd.f32 %v13853_v32, %v1288_v36  ;;  %v13869_v36 = vld [vmem:[#allocation33_spill] sm:$0xff]  ;;  %v13872_v32 = vld [vmem:[#allocation22_spill] sm:$0xff] }
 0x3c4   :  { %v3409_v59 = vadd.f32 %v3303_v19, %v2707_v11  ;;  %8034 = vmatprep.mubr.msk.f32.mxu0 %vm3528_vm7, %v3467_v25  ;;  %8088 = vmatprep.mubr.msk.f32.mxu1 %vm3528_vm7, %v3467_v25  ;;  %v3468_v58 = vadd.f32 %v11559_v10, %v3408_v27  ;;  %v13855_v27 = vld [vmem:[#allocation10_spill] sm:$0xff] }
 0x3c5   :  { %v3307_v38 = vpop.f32.mrf.mxu1  ;;  %3706 = vmatmul.mubr.f32.gmra.mxu0 %v3466_v45  ;;  %3922 = vmatmul.mubr.f32.gmra.mxu1 %v3466_v45  ;;  %v13854_v45 = vld [vmem:[#allocation9_spill] sm:$0xff]  ;;  %v2721_v19 = vadd.f32 %v11506_v26, %v2019_v6 }
 0x3c6   :  { %v3469_v7 = vadd.f32 %v11554_v54, %v3409_v59  ;;  %v3410_v40 = vadd.f32 %v3307_v38, %v11474_v13  ;;  %v1294_v51 = vadd.f32 %v13855_v27, %v13854_v45  ;;  %v13873_v45 = vld [vmem:[#allocation34_spill] sm:$0xff] }
 0x3c7   :  { %v3309_v37 = vpop.f32.mrf.mxu1 }
 0x3c8   :  { %v3411_v0 = vadd.f32 %v3309_v37, %v2709_v43  ;;  %8035 = vmatprep.mubr.msk.f32.mxu0 %vm3528_vm7, %v3469_v7  ;;  %8089 = vmatprep.mubr.msk.f32.mxu1 %vm3528_vm7, %v3469_v7  ;;  %v3470_v44 = vadd.f32 %v11559_v10, %v3410_v40  ;;  %v13856_v43 = vld [vmem:[#allocation29_spill] sm:$0xff]  ;;  %v13857_v40 = vld [vmem:[#allocation2_spill] sm:$0xff] }
 0x3c9   :  { %v3313_v4 = vpop.f32.mrf.mxu1  ;;  %3711 = vmatmul.mubr.f32.gmra.mxu0 %v3468_v58  ;;  %3927 = vmatmul.mubr.f32.gmra.mxu1 %v3468_v58  ;;  %v2021_v37 = vadd.f32 %v13857_v40, %v1294_v51  ;;  %v13877_v40 = vld [vmem:[#allocation36_spill] sm:$0xff] }
 0x3ca   :  { %v3471_v1 = vadd.f32 %v11554_v54, %v3411_v0  ;;  %v3412_v47 = vadd.f32 %v3313_v4, %v11479_v60 }
 0x3cb   :  { %v3315_v24 = vpop.f32.mrf.mxu1 }
 0x3cc   :  { %v3413_v13 = vadd.f32 %v3315_v24, %v2711_v18  ;;  %8036 = vmatprep.mubr.msk.f32.mxu0 %vm3528_vm7, %v3471_v1  ;;  %8090 = vmatprep.mubr.msk.f32.mxu1 %vm3528_vm7, %v3471_v1  ;;  %v3472_v8 = vadd.f32 %v11559_v10, %v3412_v47  ;;  %v13858_v18 = vld [vmem:[#allocation12_spill] sm:$0xff]  ;;  %v13859_v1 = vld [vmem:[#allocation13_spill] sm:$0xff] }
 0x3cd   :  { %v3319_v9 = vpop.f32.mrf.mxu1  ;;  %3716 = vmatmul.mubr.f32.gmra.mxu0 %v3470_v44  ;;  %3932 = vmatmul.mubr.f32.gmra.mxu1 %v3470_v44  ;;  %v1300_v26 = vadd.f32 %v13859_v1, %v13858_v18  ;;  %v2723_v44 = vadd.f32 %v11511_v30, %v2021_v37  ;;  %v13878_v18 = vld [vmem:[#allocation35_spill] sm:$0xff] }
 0x3ce   :  { %v3473_v57 = vadd.f32 %v11554_v54, %v3413_v13  ;;  %v3414_v5 = vadd.f32 %v3319_v9, %v11484_v62  ;;  %v13860_v13 = vld [vmem:[#allocation30_spill] sm:$0xff] }
 0x3cf   :  { %v3321_v20 = vpop.f32.mrf.mxu1 }
 0x3d0   :  { %v3415_v60 = vadd.f32 %v3321_v20, %v2713_v29  ;;  %8037 = vmatprep.mubr.msk.f32.mxu0 %vm3528_vm7, %v3473_v57  ;;  %8091 = vmatprep.mubr.msk.f32.mxu1 %vm3528_vm7, %v3473_v57  ;;  %v3474_v53 = vadd.f32 %v11559_v10, %v3414_v5  ;;  %v13861_v57 = vld [vmem:[#allocation5_spill] sm:$0xff] }
 0x3d1   :  { %v3325_v21 = vpop.f32.mrf.mxu1  ;;  %3721 = vmatmul.mubr.f32.gmra.mxu0 %v3472_v8  ;;  %3937 = vmatmul.mubr.f32.gmra.mxu1 %v3472_v8  ;;  %v2023_v8 = vadd.f32 %v13861_v57, %v1300_v26 }
 0x3d2   :  { %v3475_v50 = vadd.f32 %v11554_v54, %v3415_v60  ;;  %v3416_v33 = vadd.f32 %v3325_v21, %v11489_v28  ;;  %v13862_v60 = vld [vmem:[#allocation15_spill] sm:$0xff]  ;;  %v13863_v21 = vld [vmem:[#allocation16_spill] sm:$0xff] }
 0x3d3   :  { %v3327_v52 = vpop.f32.mrf.mxu1  ;;  %v1306_v30 = vadd.f32 %v13863_v21, %v13862_v60  ;;  %v13883_v21 = vld [vmem:[#allocation37_spill] sm:$0xff] }
 0x3d4   :  { %v3417_v62 = vadd.f32 %v3327_v52, %v2715_v16  ;;  %8038 = vmatprep.mubr.msk.f32.mxu0 %vm3528_vm7, %v3475_v50  ;;  %8092 = vmatprep.mubr.msk.f32.mxu1 %vm3528_vm7, %v3475_v50  ;;  %v3476_v17 = vadd.f32 %v11559_v10, %v3416_v33  ;;  %v13864_v16 = vld [vmem:[#allocation32_spill] sm:$0xff]  ;;  %v13865_v52 = vld [vmem:[#allocation31_spill] sm:$0xff] }
 0x3d5   :  { %v3331_v49 = vpop.f32.mrf.mxu1  ;;  %3726 = vmatmul.mubr.f32.gmra.mxu0 %v3474_v53  ;;  %3942 = vmatmul.mubr.f32.gmra.mxu1 %v3474_v53  ;;  %v2725_v50 = vadd.f32 %v13864_v16, %v2023_v8  ;;  %v13882_v8 = vld [vmem:[#allocation38_spill] sm:$0xff] }
 0x3d6   :  { %v3477_v42 = vadd.f32 %v11554_v54, %v3417_v62  ;;  %v3418_v12 = vadd.f32 %v3331_v49, %v13848_v56 }
 0x3d7   :  { %v3333_v23 = vpop.f32.mrf.mxu1 }
 0x3d8   :  { %v3419_v28 = vadd.f32 %v3333_v23, %v2717_v31  ;;  %8039 = vmatprep.mubr.msk.f32.mxu0 %vm3528_vm7, %v3477_v42  ;;  %8093 = vmatprep.mubr.msk.f32.mxu1 %vm3528_vm7, %v3477_v42  ;;  %v3478_v34 = vadd.f32 %v11559_v10, %v3418_v12  ;;  %v13866_v31 = vld [vmem:[#allocation8_spill] sm:$0xff]  ;;  %v13867_v12 = vld [vmem:[#allocation18_spill] sm:$0xff]  ;;  %v13868_v23 = vld [vmem:[#allocation19_spill] sm:$0xff] }
 0x3d9   :  { %v3337_v22 = vpop.f32.mrf.mxu1  ;;  %3731 = vmatmul.mubr.f32.gmra.mxu0 %v3476_v17  ;;  %3947 = vmatmul.mubr.f32.gmra.mxu1 %v3476_v17  ;;  %v2025_v42 = vadd.f32 %v13866_v31, %v1306_v30 }
 0x3da   :  { %v3479_v14 = vadd.f32 %v11554_v54, %v3419_v28  ;;  %v3420_v15 = vadd.f32 %v3337_v22, %v13852_v48  ;;  %v1312_v28 = vadd.f32 %v13868_v23, %v13867_v12 }
 0x3db   :  { %v3339_v35 = vpop.f32.mrf.mxu1  ;;  %v2727_v22 = vadd.f32 %v11521_v63, %v2025_v42 }
 0x3dc   :  { %v3421_v11 = vadd.f32 %v3339_v35, %v2719_v46  ;;  %8040 = vmatprep.mubr.msk.f32.mxu0 %vm3528_vm7, %v3479_v14  ;;  %8094 = vmatprep.mubr.msk.f32.mxu1 %vm3528_vm7, %v3479_v14  ;;  %v3480_v38 = vadd.f32 %v11559_v10, %v3420_v15  ;;  %v13870_v14 = vld [vmem:[#allocation11_spill] sm:$0xff]  ;;  %v13871_v35 = vld [vmem:[#allocation21_spill] sm:$0xff] }
 0x3dd   :  { %v3343_v25 = vpop.f32.mrf.mxu1  ;;  %3736 = vmatmul.mubr.f32.gmra.mxu0 %v3478_v34  ;;  %3952 = vmatmul.mubr.f32.gmra.mxu1 %v3478_v34  ;;  %v2027_v34 = vadd.f32 %v13870_v14, %v1312_v28  ;;  %v1318_v63 = vadd.f32 %v13872_v32, %v13871_v35 }
 0x3de   :  { %v3481_v59 = vadd.f32 %v11554_v54, %v3421_v11  ;;  %v3422_v7 = vadd.f32 %v3343_v25, %v13856_v43 }
 0x3df   :  { %v3345_v58 = vpop.f32.mrf.mxu1  ;;  %v2729_v6 = vadd.f32 %v11526_v3, %v2027_v34 }
 0x3e0   :  { %v3423_v0 = vadd.f32 %v3345_v58, %v2721_v19  ;;  %8041 = vmatprep.mubr.msk.f32.mxu0 %vm3528_vm7, %v3481_v59  ;;  %8095 = vmatprep.mubr.msk.f32.mxu1 %vm3528_vm7, %v3481_v59  ;;  %v3482_v24 = vadd.f32 %v11559_v10, %v3422_v7  ;;  %v13874_v19 = vld [vmem:[#allocation14_spill] sm:$0xff]  ;;  %v13875_v7 = vld [vmem:[#allocation25_spill] sm:$0xff]  ;;  %v13876_v58 = vld [vmem:[#allocation24_spill] sm:$0xff] }
 0x3e1   :  { %v3349_v4 = vpop.f32.mrf.mxu1  ;;  %3741 = vmatmul.mubr.f32.gmra.mxu0 %v3480_v38  ;;  %3957 = vmatmul.mubr.f32.gmra.mxu1 %v3480_v38  ;;  %v2029_v59 = vadd.f32 %v13874_v19, %v1318_v63  ;;  %v1324_v3 = vadd.f32 %v13876_v58, %v13875_v7 }
 0x3e2   :  { %v3483_v47 = vadd.f32 %v11554_v54, %v3423_v0  ;;  %v3424_v9 = vadd.f32 %v3349_v4, %v13860_v13 }
 0x3e3   :  { %v3351_v29 = vpop.f32.mrf.mxu1  ;;  %v2731_v37 = vadd.f32 %v13877_v40, %v2029_v59 }
 0x3e4   :  { %v3425_v5 = vadd.f32 %v3351_v29, %v2723_v44  ;;  %8042 = vmatprep.mubr.msk.f32.mxu0 %vm3528_vm7, %v3483_v47  ;;  %8096 = vmatprep.mubr.msk.f32.mxu1 %vm3528_vm7, %v3483_v47  ;;  %v3484_v33 = vadd.f32 %v11559_v10, %v3424_v9  ;;  %v13879_v44 = vld [vmem:[#allocation17_spill] sm:$0xff]  ;;  %v13880_v9 = vld [vmem:[#allocation27_spill] sm:$0xff]  ;;  %v13881_v29 = vld [vmem:[#allocation28_spill] sm:$0xff] }
 0x3e5   :  { %v3355_v20 = vpop.f32.mrf.mxu1  ;;  %3746 = vmatmul.mubr.f32.gmra.mxu0 %v3482_v24  ;;  %3962 = vmatmul.mubr.f32.gmra.mxu1 %v3482_v24  ;;  %v2031_v47 = vadd.f32 %v13879_v44, %v1324_v3  ;;  %v1330_v57 = vadd.f32 %v13881_v29, %v13880_v9  ;;  %v4752_v29 = vld [vmem:[%s13773_s6 + $0x2e0] sm:$0xff] }
 0x3e6   :  { %v3485_v53 = vadd.f32 %v11554_v54, %v3425_v5  ;;  %v3426_v62 = vadd.f32 %v3355_v20, %v13865_v52 }
 0x3e7   :  { %v3357_v49 = vpop.f32.mrf.mxu1  ;;  %v2733_v5 = vadd.f32 %v13882_v8, %v2031_v47  ;;  %v11771_v47 = vld [vmem:[%s13773_s6 + $0x318] sm:$0xff] }
 0x3e8   :  { %v3427_v17 = vadd.f32 %v3357_v49, %v2725_v50  ;;  %8043 = vmatprep.mubr.msk.f32.mxu0 %vm3528_vm7, %v3485_v53  ;;  %8097 = vmatprep.mubr.msk.f32.mxu1 %vm3528_vm7, %v3485_v53  ;;  %v3486_v61 = vadd.f32 %v11559_v10, %v3426_v62  ;;  %v13884_v50 = vld [vmem:[#allocation20_spill] sm:$0xff] }
 0x3e9   :  { %v3361_v56 = vpop.f32.mrf.mxu1  ;;  %3751 = vmatmul.mubr.f32.gmra.mxu0 %v3484_v33  ;;  %3967 = vmatmul.mubr.f32.gmra.mxu1 %v3484_v33  ;;  %v2033_v53 = vadd.f32 %v13884_v50, %v1330_v57  ;;  %v13885_v62 = vld [vmem:[#allocation40_spill] sm:$0xff]  ;;  %v11792_v57 = vld [vmem:[%s13773_s6 + $0x2e8] sm:$0xff] }
 0x3ea   :  { %v3487_v55 = vadd.f32 %v11554_v54, %v3427_v17  ;;  %v3428_v39 = vadd.f32 %v3361_v56, %v13869_v36  ;;  %v13886_v17 = vld [vmem:[#allocation39_spill] sm:$0xff]  ;;  %4842 = vrot.lane.b32.xlu0 %v11771_v47, %s8954_s23 }
 0x3eb   :  { %v3363_v46 = vpop.f32.mrf.mxu1  ;;  %v2735_v49 = vadd.f32 %v13885_v62, %v2033_v53  ;;  %v11822_v62 = vld [vmem:[%s13773_s6 + $0x278] sm:$0xff] }
 0x3ec   :  { %v3429_v48 = vadd.f32 %v3363_v46, %v2727_v22  ;;  %8044 = vmatprep.mubr.msk.f32.mxu0 %vm3528_vm7, %v3487_v55  ;;  %8098 = vmatprep.mubr.msk.f32.mxu1 %vm3528_vm7, %v3487_v55  ;;  %v3488_v25 = vadd.f32 %v11559_v10, %v3428_v39  ;;  %v4027_v55 = vld [vmem:[%s13772_s5 + $0x8] sm:$0xff] }
 0x3ed   :  { %v3367_v15 = vpop.f32.mrf.mxu1  ;;  %3756 = vmatmul.mubr.f32.gmra.mxu0 %v3486_v61  ;;  %3972 = vmatmul.mubr.f32.gmra.mxu1 %v3486_v61  ;;  %v8117_v61 = vld [vmem:[%s13772_s5 + $0xc8] sm:$0xff] }
 0x3ee   :  { %v3489_v11 = vadd.f32 %v11554_v54, %v3429_v48  ;;  %v3430_v27 = vadd.f32 %v3367_v15, %v13873_v45  ;;  %4838 = vrot.lane.b32.xlu0 %v4752_v29, %s8954_s23 }
 0x3ef   :  { %v3369_v51 = vpop.f32.mrf.mxu1 }
 0x3f0   :  { %v3431_v38 = vadd.f32 %v3369_v51, %v2729_v6  ;;  %8045 = vmatprep.mubr.msk.f32.mxu0 %vm3528_vm7, %v3489_v11  ;;  %8099 = vmatprep.mubr.msk.f32.mxu1 %vm3528_vm7, %v3489_v11  ;;  %v3490_v4 = vadd.f32 %v11559_v10, %v3430_v27 }
 0x3f1   :  { %v3373_v43 = vpop.f32.mrf.mxu1  ;;  %3761 = vmatmul.mubr.f32.gmra.mxu0 %v3488_v25  ;;  %3977 = vmatmul.mubr.f32.gmra.mxu1 %v3488_v25 }
 0x3f2   :  { %v3491_v0 = vadd.f32 %v11554_v54, %v3431_v38  ;;  %v3432_v1 = vadd.f32 %v3373_v43, %v13878_v18 }
 0x3f3   :  { %v3375_v26 = vpop.f32.mrf.mxu1 }
 0x3f4   :  { %v3433_v24 = vadd.f32 %v3375_v26, %v2731_v37  ;;  %8046 = vmatprep.mubr.msk.f32.mxu0 %vm3528_vm7, %v3491_v0  ;;  %8100 = vmatprep.mubr.msk.f32.mxu1 %vm3528_vm7, %v3491_v0  ;;  %v3492_v60 = vadd.f32 %v11559_v10, %v3432_v1 }
 0x3f5   :  { %v3379_v13 = vpop.f32.mrf.mxu1  ;;  %3766 = vmatmul.mubr.f32.gmra.mxu0 %v3490_v4  ;;  %3982 = vmatmul.mubr.f32.gmra.mxu1 %v3490_v4 }
 0x3f6   :  { %v3493_v20 = vadd.f32 %v11554_v54, %v3433_v24  ;;  %v3434_v30 = vadd.f32 %v3379_v13, %v13883_v21  ;;  %v11776_v24 = vld [vmem:[%s13773_s6 + $0x320] sm:$0xff]  ;;  %v4750_v21 = vld [vmem:[%s13773_s6 + $0x2a8] sm:$0xff] }
 0x3f7   :  { %v3381_v16 = vpop.f32.mrf.mxu1  ;;  %4844 = vrot.lane.b32.xlu1 %v11776_v24, %s8954_s23  ;;  %4834 = vrot.lane.b32.xlu0 %v4750_v21, %s8954_s23 }
 0x3f8   :  { %v3435_v33 = vadd.f32 %v3381_v16, %v2733_v5  ;;  %8047 = vmatprep.mubr.msk.f32.mxu0 %vm3528_vm7, %v3493_v20  ;;  %8101 = vmatprep.mubr.msk.f32.mxu1 %vm3528_vm7, %v3493_v20  ;;  %v3494_v42 = vadd.f32 %v11559_v10, %v3434_v30  ;;  %v11807_v30 = vld [vmem:[%s13773_s6 + $0x2b0] sm:$0xff] }
 0x3f9   :  { %v3385_v52 = vpop.f32.mrf.mxu1  ;;  %3771 = vmatmul.mubr.f32.gmra.mxu0 %v3492_v60  ;;  %3987 = vmatmul.mubr.f32.gmra.mxu1 %v3492_v60 }
 0x3fa   :  { %v3495_v31 = vadd.f32 %v11554_v54, %v3435_v33  ;;  %v3436_v56 = vadd.f32 %v3385_v52, %v13886_v17  ;;  %v4748_v52 = vld [vmem:[%s13773_s6 + $0x270] sm:$0xff] }
 0x3fb   :  { %v3387_v12 = vpop.f32.mrf.mxu1  ;;  %4840 = vrot.lane.b32.xlu1 %v11792_v57, %s8954_s23  ;;  %4830 = vrot.lane.b32.xlu0 %v4748_v52, %s8954_s23 }
 0x3fc   :  { %v3437_v23 = vadd.f32 %v3387_v12, %v2735_v49  ;;  %8048 = vmatprep.mubr.msk.f32.mxu0 %vm3528_vm7, %v3495_v31  ;;  %8102 = vmatprep.mubr.msk.f32.mxu1 %vm3528_vm7, %v3495_v31  ;;  %v3496_v22 = vadd.f32 %v11559_v10, %v3436_v56  ;;  %v4746_v56 = vld [vmem:[%s13773_s6 + $0x238] sm:$0xff]  ;;  %v11837_v12 = vld [vmem:[%s13773_s6 + $0x240] sm:$0xff] }
 0x3fd   :  { %3776 = vmatmul.mubr.f32.gmra.mxu0 %v3494_v42  ;;  %3992 = vmatmul.mubr.f32.gmra.mxu1 %v3494_v42 }
 0x3fe   :  { %v3497_v28 = vadd.f32 %v11554_v54, %v3437_v23 }
 0x3ff   :  { %4836 = vrot.lane.b32.xlu1 %v11807_v30, %s8954_s23  ;;  %4826 = vrot.lane.b32.xlu0 %v4746_v56, %s8954_s23 }
 0x400   :  { %8049 = vmatprep.mubr.msk.f32.mxu0 %vm3528_vm7, %v3497_v28  ;;  %8103 = vmatprep.mubr.msk.f32.mxu1 %vm3528_vm7, %v3497_v28 }
 0x401   :  { %3781 = vmatmul.mubr.f32.gmra.mxu0 %v3496_v22  ;;  %3997 = vmatmul.mubr.f32.gmra.mxu1 %v3496_v22 }
 0x402   :  { %8104 = vmatprep.mubr.msk.f32.mxu0 %vm3090_vm6, %v4027_v55  ;;  %8140 = vmatprep.mubr.msk.f32.mxu1 %vm3090_vm6, %v8117_v61  ;;  %v4744_v61 = vld [vmem:[%s13773_s6 + $0x200] sm:$0xff] }
 0x403   :  { %4832 = vrot.lane.b32.xlu1 %v11822_v62, %s8954_s23  ;;  %4822 = vrot.lane.b32.xlu0 %v4744_v61, %s8954_s23 }
 0x407   :  { %4828 = vrot.lane.b32.xlu1 %v11837_v12, %s8954_s23 }
 0x465   :  { %v3667_v54 = vpop.f32.mrf.mxu0  ;;  %v3883_v10 = vpop.f32.mrf.mxu1 }
 0x466   :  { %v11750_v36 = vmax.f32 %v3667_v54, %v3883_v10  ;;  %v11848_v54 = vld [vmem:[%s13773_s6 + $0x208] sm:$0xff] }
 0x467   :  { %v3669_v39 = vpop.f32.mrf.mxu0  ;;  %v3885_v46 = vpop.f32.mrf.mxu1  ;;  %4824 = vrot.lane.b32.xlu1 %v11848_v54, %s8954_s23 }
 0x469   :  { %v3672_v14 = vpop.f32.mrf.mxu0  ;;  %v3888_v34 = vpop.f32.mrf.mxu1 }
 0x46a   :  { %v11752_v48 = vmax.f32 %v3672_v14, %v3888_v34  ;;  %v4742_v34 = vld [vmem:[%s13773_s6 + $0x1c8] sm:$0xff] }
 0x46b   :  { %v3674_v15 = vpop.f32.mrf.mxu0  ;;  %v3890_v35 = vpop.f32.mrf.mxu1  ;;  %4818 = vrot.lane.b32.xlu0 %v4742_v34, %s8954_s23 }
 0x46c   :  { %v11859_v15 = vld [vmem:[%s13773_s6 + $0x1d0] sm:$0xff] }
 0x46d   :  { %v3677_v32 = vpop.f32.mrf.mxu0  ;;  %v3893_v63 = vpop.f32.mrf.mxu1  ;;  %4820 = vrot.lane.b32.xlu1 %v11859_v15, %s8954_s23 }
 0x46e   :  { %v11754_v6 = vmax.f32 %v3677_v32, %v3893_v63 }
 0x46f   :  { %v3679_v11 = vpop.f32.mrf.mxu0  ;;  %v3895_v25 = vpop.f32.mrf.mxu1 }
 0x470   :  { %v4740_v25 = vld [vmem:[%s13773_s6 + $0x190] sm:$0xff] }
 0x471   :  { %v3682_v45 = vpop.f32.mrf.mxu0  ;;  %v3898_v27 = vpop.f32.mrf.mxu1  ;;  %4814 = vrot.lane.b32.xlu0 %v4740_v25, %s8954_s23 }
 0x472   :  { %v11756_v51 = vmax.f32 %v3682_v45, %v3898_v27  ;;  %v11870_v45 = vld [vmem:[%s13773_s6 + $0x198] sm:$0xff] }
 0x473   :  { %v3684_v19 = vpop.f32.mrf.mxu0  ;;  %v3900_v59 = vpop.f32.mrf.mxu1  ;;  %4816 = vrot.lane.b32.xlu1 %v11870_v45, %s8954_s23 }
 0x475   :  { %v3687_v38 = vpop.f32.mrf.mxu0  ;;  %v3903_v43 = vpop.f32.mrf.mxu1 }
 0x476   :  { %v11758_v7 = vmax.f32 %v3687_v38, %v3903_v43  ;;  %v4738_v43 = vld [vmem:[%s13773_s6 + $0x158] sm:$0xff] }
 0x477   :  { %v3689_v58 = vpop.f32.mrf.mxu0  ;;  %v3905_v3 = vpop.f32.mrf.mxu1  ;;  %4810 = vrot.lane.b32.xlu0 %v4738_v43, %s8954_s23 }
 0x478   :  { %v11881_v58 = vld [vmem:[%s13773_s6 + $0x160] sm:$0xff] }
 0x479   :  { %v11760_v40 = vpop.f32.mrf.mxu0  ;;  %v11762_v37 = vpop.f32.mrf.mxu1  ;;  %4812 = vrot.lane.b32.xlu1 %v11881_v58, %s8954_s23 }
 0x47b   :  { %v3694_v0 = vpop.f32.mrf.mxu0  ;;  %v3910_v4 = vpop.f32.mrf.mxu1 }
 0x47d   :  { %v11764_v18 = vpop.f32.mrf.mxu0  ;;  %v11766_v1 = vpop.f32.mrf.mxu1 }
 0x47f   :  { %v3699_v26 = vpop.f32.mrf.mxu0  ;;  %v3915_v44 = vpop.f32.mrf.mxu1 }
 0x481   :  { %v11778_v13 = vpop.f32.mrf.mxu0  ;;  %v11780_v9 = vpop.f32.mrf.mxu1 }
 0x483   :  { %v3704_v8 = vpop.f32.mrf.mxu0  ;;  %v3920_v5 = vpop.f32.mrf.mxu1 }
 0x485   :  { %v11794_v20 = vpop.f32.mrf.mxu0  ;;  %v11796_v60 = vpop.f32.mrf.mxu1 }
 0x487   :  { %v3709_v16 = vpop.f32.mrf.mxu0  ;;  %v3925_v50 = vpop.f32.mrf.mxu1 }
 0x488   :  { %v13887_v50 = vmov 0.0  }
 0x489   :  { %v11809_v53 = vpop.f32.mrf.mxu0  ;;  %v11811_v33 = vpop.f32.mrf.mxu1 }
 0x48b   :  { %v3714_v49 = vpop.f32.mrf.mxu0  ;;  %v3930_v31 = vpop.f32.mrf.mxu1 }
 0x48d   :  { %v11824_v42 = vpop.f32.mrf.mxu0  ;;  %v11826_v17 = vpop.f32.mrf.mxu1 }
 0x48f   :  { %v3719_v23 = vpop.f32.mrf.mxu0  ;;  %v3935_v28 = vpop.f32.mrf.mxu1 }
 0x491   :  { %v3722_v22 = vpop.f32.mrf.mxu0  ;;  %v3938_v55 = vpop.f32.mrf.mxu1 }
 0x492   :  { %v4013_v61 = vmax.f32 %v3722_v22, %v3938_v55  ;;  %v4011_v22 = vmax.f32 %v11809_v53, %v11811_v33  ;;  %v4009_v53 = vmax.f32 %v11778_v13, %v11780_v9  ;;  %v4007_v13 = vmax.f32 %v11760_v40, %v11762_v37 }
 0x493   :  { %v3724_v10 = vpop.f32.mrf.mxu0  ;;  %v3940_v39 = vpop.f32.mrf.mxu1 }
 0x495   :  { %v3727_v46 = vpop.f32.mrf.mxu0  ;;  %v3943_v14 = vpop.f32.mrf.mxu1 }
 0x496   :  { %v4014_v56 = vmax.f32 %v3727_v46, %v3943_v14  ;;  %v4012_v46 = vmax.f32 %v11824_v42, %v11826_v17  ;;  %v4010_v42 = vmax.f32 %v11794_v20, %v11796_v60  ;;  %v4008_v20 = vmax.f32 %v11764_v18, %v11766_v1 }
 0x497   :  { %v3729_v35 = vpop.f32.mrf.mxu0  ;;  %v3945_v32 = vpop.f32.mrf.mxu1 }
 0x499   :  { %v3732_v63 = vpop.f32.mrf.mxu0  ;;  %v3948_v11 = vpop.f32.mrf.mxu1 }
 0x49a   :  { %v4015_v52 = vmax.f32 %v3732_v63, %v3948_v11 }
 0x49b   :  { %v3734_v27 = vpop.f32.mrf.mxu0  ;;  %v3950_v19 = vpop.f32.mrf.mxu1 }
 0x49d   :  { %v3737_v59 = vpop.f32.mrf.mxu0  ;;  %v3953_v38 = vpop.f32.mrf.mxu1 }
 0x49e   :  { %v4016_v5 = vmax.f32 %v3737_v59, %v3953_v38 }
 0x49f   :  { %v3739_v3 = vpop.f32.mrf.mxu0  ;;  %v3955_v0 = vpop.f32.mrf.mxu1 }
 0x4a1   :  { %v3742_v4 = vpop.f32.mrf.mxu0  ;;  %v3958_v26 = vpop.f32.mrf.mxu1 }
 0x4a2   :  { %v4017_v44 = vmax.f32 %v3742_v4, %v3958_v26 }
 0x4a3   :  { %v3744_v29 = vpop.f32.mrf.mxu0  ;;  %v3960_v8 = vpop.f32.mrf.mxu1 }
 0x4a4   :  { %4087 = vmatpush1.msra.mxu0 %v4017_v44  ;;  %4273 = vmatpush1.msra.mxu1 %v4017_v44  ;;  %v4026_v8 = vld [vmem:[%s13772_s5] sm:$0xff] }
 0x4a5   :  { %v11886_v21 = vpop.f32.mrf.mxu0  ;;  %v11888_v16 = vpop.f32.mrf.mxu1  ;;  %4088 = vmatprep.subr.mxu0 %v13887_v50  ;;  %4274 = vmatprep.subr.mxu1 %v13887_v50 }
 0x4a6   :  { %4089 = vmatpush1.msra.mxu0 %v4016_v5  ;;  %4275 = vmatpush1.msra.mxu1 %v4016_v5  ;;  %v4018_v29 = vmax.f32 %v11886_v21, %v11888_v16  ;;  %v8116_v5 = vld [vmem:[%s13772_s5 + $0xc0] sm:$0xff]  ;;  %v8119_v21 = vld [vmem:[%s13772_s5 + $0xd8] sm:$0xff] }
 0x4a7   :  { %v3749_v49 = vpop.f32.mrf.mxu0  ;;  %v3965_v31 = vpop.f32.mrf.mxu1  ;;  %4090 = vmatprep.subr.mxu0 %v13887_v50  ;;  %4276 = vmatprep.subr.mxu1 %v13887_v50  ;;  %v11993_v16 = vld [vmem:[%s13773_s6 + $0x120] sm:$0xff] }
 0x4a8   :  { %4091 = vmatpush1.msra.mxu0 %v4015_v52  ;;  %4277 = vmatpush1.msra.mxu1 %v4015_v52  ;;  %v4029_v52 = vld [vmem:[%s13772_s5 + $0x18] sm:$0xff]  ;;  %v11998_v49 = vld [vmem:[%s13773_s6 + $0x128] sm:$0xff]  ;;  %v4028_v31 = vld [vmem:[%s13772_s5 + $0x10] sm:$0xff] }
 0x4a9   :  { %v11894_v23 = vpop.f32.mrf.mxu0  ;;  %v11896_v28 = vpop.f32.mrf.mxu1  ;;  %4092 = vmatprep.subr.mxu0 %v13887_v50  ;;  %4278 = vmatprep.subr.mxu1 %v13887_v50 }
 0x4aa   :  { %4093 = vmatpush1.msra.mxu0 %v4014_v56  ;;  %4279 = vmatpush1.msra.mxu1 %v4014_v56  ;;  %v4019_v44 = vmax.f32 %v11894_v23, %v11896_v28  ;;  %v8118_v56 = vld [vmem:[%s13772_s5 + $0xd0] sm:$0xff]  ;;  %v4031_v23 = vld [vmem:[%s13772_s5 + $0x28] sm:$0xff] }
 0x4ab   :  { %v3754_v10 = vpop.f32.mrf.mxu0  ;;  %v3970_v39 = vpop.f32.mrf.mxu1  ;;  %4094 = vmatprep.subr.mxu0 %v13887_v50  ;;  %4280 = vmatprep.subr.mxu1 %v13887_v50  ;;  %v8121_v28 = vld [vmem:[%s13772_s5 + $0xe8] sm:$0xff] }
 0x4ac   :  { %4095 = vmatpush1.msra.mxu0 %v4013_v61  ;;  %4281 = vmatpush1.msra.mxu1 %v4013_v61  ;;  %v12021_v61 = vld [vmem:[%s13773_s6 + $0xe8] sm:$0xff]  ;;  %v12026_v10 = vld [vmem:[%s13773_s6 + $0xf0] sm:$0xff]  ;;  %v4030_v39 = vld [vmem:[%s13772_s5 + $0x20] sm:$0xff] }
 0x4ad   :  { %v11904_v14 = vpop.f32.mrf.mxu0  ;;  %v11906_v34 = vpop.f32.mrf.mxu1  ;;  %4096 = vmatprep.subr.mxu0 %v13887_v50  ;;  %4282 = vmatprep.subr.mxu1 %v13887_v50 }
 0x4ae   :  { %4097 = vmatpush1.msra.mxu0 %v4012_v46  ;;  %4283 = vmatpush1.msra.mxu1 %v4012_v46  ;;  %v4020_v26 = vmax.f32 %v11904_v14, %v11906_v34  ;;  %v8120_v46 = vld [vmem:[%s13772_s5 + $0xe0] sm:$0xff]  ;;  %v4033_v14 = vld [vmem:[%s13772_s5 + $0x38] sm:$0xff] }
 0x4af   :  { %v3759_v55 = vpop.f32.mrf.mxu0  ;;  %v3975_v35 = vpop.f32.mrf.mxu1  ;;  %4098 = vmatprep.subr.mxu0 %v13887_v50  ;;  %4284 = vmatprep.subr.mxu1 %v13887_v50  ;;  %v8123_v34 = vld [vmem:[%s13772_s5 + $0xf8] sm:$0xff] }
 0x4b0   :  { %4099 = vmatpush1.msra.mxu0 %v4011_v22  ;;  %4285 = vmatpush1.msra.mxu1 %v4011_v22  ;;  %v12049_v22 = vld [vmem:[%s13773_s6 + $0xb0] sm:$0xff]  ;;  %v12054_v55 = vld [vmem:[%s13773_s6 + $0xb8] sm:$0xff] }
 0x4b1   :  { %v11916_v17 = vpop.f32.mrf.mxu0  ;;  %v11918_v32 = vpop.f32.mrf.mxu1  ;;  %4100 = vmatprep.subr.mxu0 %v13887_v50  ;;  %4286 = vmatprep.subr.mxu1 %v13887_v50  ;;  %v4032_v35 = vld [vmem:[%s13772_s5 + $0x30] sm:$0xff] }
 0x4b2   :  { %4101 = vmatpush1.msra.mxu0 %v4010_v42  ;;  %4287 = vmatpush1.msra.mxu1 %v4010_v42  ;;  %v4021_v4 = vmax.f32 %v11916_v17, %v11918_v32  ;;  %v8122_v42 = vld [vmem:[%s13772_s5 + $0xf0] sm:$0xff]  ;;  %v4035_v17 = vld [vmem:[%s13772_s5 + $0x48] sm:$0xff] }
 0x4b3   :  { %v3764_v33 = vpop.f32.mrf.mxu0  ;;  %v3980_v63 = vpop.f32.mrf.mxu1  ;;  %4102 = vmatprep.subr.mxu0 %v13887_v50  ;;  %4288 = vmatprep.subr.mxu1 %v13887_v50  ;;  %v8125_v32 = vld [vmem:[%s13772_s5 + $0x108] sm:$0xff] }
 0x4b4   :  { %4103 = vmatpush1.msra.mxu0 %v4009_v53  ;;  %4289 = vmatpush1.msra.mxu1 %v4009_v53  ;;  %v12077_v53 = vld [vmem:[%s13773_s6 + $0x78] sm:$0xff]  ;;  %v12082_v33 = vld [vmem:[%s13773_s6 + $0x80] sm:$0xff] }
 0x4b5   :  { %v3767_v60 = vpop.f32.mrf.mxu0  ;;  %v3983_v11 = vpop.f32.mrf.mxu1  ;;  %4104 = vmatprep.subr.mxu0 %v13887_v50  ;;  %4290 = vmatprep.subr.mxu1 %v13887_v50  ;;  %v4034_v63 = vld [vmem:[%s13772_s5 + $0x40] sm:$0xff] }
 0x4b6   :  { %4105 = vmatpush1.msra.mxu0 %v4008_v20  ;;  %4291 = vmatpush1.msra.mxu1 %v4008_v20  ;;  %v8124_v20 = vld [vmem:[%s13772_s5 + $0x100] sm:$0xff] }
 0x4b7   :  { %v3769_v9 = vpop.f32.mrf.mxu0  ;;  %v3985_v25 = vpop.f32.mrf.mxu1  ;;  %4106 = vmatprep.subr.mxu0 %v13887_v50  ;;  %4292 = vmatprep.subr.mxu1 %v13887_v50 }
 0x4b8   :  { %4107 = vmatpush1.msra.mxu0 %v4007_v13  ;;  %4293 = vmatpush1.msra.mxu1 %v4007_v13  ;;  %v12105_v13 = vld [vmem:[%s13773_s6 + $0x40] sm:$0xff]  ;;  %v12110_v9 = vld [vmem:[%s13773_s6 + $0x48] sm:$0xff]  ;;  %v4036_v25 = vld [vmem:[%s13772_s5 + $0x50] sm:$0xff] }
 0x4b9   :  { %v3772_v18 = vpop.f32.mrf.mxu0  ;;  %v3988_v1 = vpop.f32.mrf.mxu1  ;;  %4108 = vmatprep.subr.mxu0 %v13887_v50  ;;  %4294 = vmatprep.subr.mxu1 %v13887_v50 }
 0x4ba   :  { %4109 = vmatpush1.msra.mxu0 %v11758_v7  ;;  %4295 = vmatpush1.msra.mxu1 %v11758_v7 }
 0x4bb   :  { %v3774_v40 = vpop.f32.mrf.mxu0  ;;  %v3990_v37 = vpop.f32.mrf.mxu1  ;;  %4110 = vmatprep.subr.mxu0 %v13887_v50  ;;  %4296 = vmatprep.subr.mxu1 %v13887_v50 }
 0x4bc   :  { %4111 = vmatpush1.msra.mxu0 %v11756_v51  ;;  %4297 = vmatpush1.msra.mxu1 %v11756_v51  ;;  %v8129_v40 = vld [vmem:[%s13772_s5 + $0x128] sm:$0xff] }
 0x4bd   :  { %v3777_v27 = vpop.f32.mrf.mxu0  ;;  %v3993_v19 = vpop.f32.mrf.mxu1  ;;  %4112 = vmatprep.subr.mxu0 %v13887_v50  ;;  %4298 = vmatprep.subr.mxu1 %v13887_v50  ;;  %v12133_v37 = vld [vmem:[%s13773_s6 + $0x8] sm:$0xff] }
 0x4be   :  { %4113 = vmatpush1.msra.mxu0 %v11754_v6  ;;  %4299 = vmatpush1.msra.mxu1 %v11754_v6  ;;  %v4024_v0 = vmax.f32 %v3777_v27, %v3993_v19  ;;  %v12138_v27 = vld [vmem:[%s13773_s6 + $0x10] sm:$0xff]  ;;  %v4038_v19 = vld [vmem:[%s13772_s5 + $0x60] sm:$0xff] }
 0x4bf   :  { %v3779_v7 = vpop.f32.mrf.mxu0  ;;  %v3995_v59 = vpop.f32.mrf.mxu1  ;;  %4114 = vmatprep.subr.mxu0 %v13887_v50  ;;  %4300 = vmatprep.subr.mxu1 %v13887_v50 }
 0x4c0   :  { %4115 = vmatpush1.msra.mxu0 %v11752_v48  ;;  %4301 = vmatpush1.msra.mxu1 %v11752_v48  ;;  %v4023_v48 = vmax.f32 %v3772_v18, %v3988_v1  ;;  %v8126_v18 = vld [vmem:[%s13772_s5 + $0x110] sm:$0xff]  ;;  %v4039_v1 = vld [vmem:[%s13772_s5 + $0x68] sm:$0xff]  ;;  %v8128_v7 = vld [vmem:[%s13772_s5 + $0x120] sm:$0xff] }
 0x4c1   :  { %v3782_v51 = vpop.f32.mrf.mxu0  ;;  %v3998_v38 = vpop.f32.mrf.mxu1  ;;  %4116 = vmatprep.subr.mxu0 %v13887_v50  ;;  %4302 = vmatprep.subr.mxu1 %v13887_v50  ;;  %v4041_v59 = vld [vmem:[%s13772_s5 + $0x78] sm:$0xff] }
 0x4c2   :  { %v4025_v43 = vmax.f32 %v3782_v51, %v3998_v38  ;;  %4117 = vmatpush1.msra.mxu0 %v11750_v36  ;;  %4303 = vmatpush1.msra.mxu1 %v11750_v36  ;;  %v4022_v36 = vmax.f32 %v3767_v60, %v3983_v11  ;;  %v4037_v60 = vld [vmem:[%s13772_s5 + $0x58] sm:$0xff]  ;;  %v4040_v38 = vld [vmem:[%s13772_s5 + $0x70] sm:$0xff] }
 0x4c3   :  { %v3784_v6 = vpop.f32.mrf.mxu0  ;;  %v4000_v3 = vpop.f32.mrf.mxu1  ;;  %4134 = vmatprep.subr.mxu0 %v13887_v50  ;;  %4320 = vmatprep.subr.mxu1 %v13887_v50  ;;  %v8127_v11 = vld [vmem:[%s13772_s5 + $0x118] sm:$0xff] }
 0x4c4   :  { %4135 = vmatpush2.msra.mxu0 %v4025_v43  ;;  %4321 = vmatpush2.msra.mxu1 %v4025_v43  ;;  %v8131_v51 = vld [vmem:[%s13772_s5 + $0x138] sm:$0xff]  ;;  %v8130_v43 = vld [vmem:[%s13772_s5 + $0x130] sm:$0xff]  ;;  %v4043_v6 = vld [vmem:[%s13772_s5 + $0x88] sm:$0xff] }
 0x4c5   :  { %4136 = vmatprep.subr.mxu0 %v13887_v50  ;;  %4322 = vmatprep.subr.mxu1 %v13887_v50  ;;  %v8133_v3 = vld [vmem:[%s13772_s5 + $0x148] sm:$0xff] }
 0x4c6   :  { %4137 = vmatpush2.msra.mxu0 %v4024_v0  ;;  %4323 = vmatpush2.msra.mxu1 %v4024_v0  ;;  %v4042_v0 = vld [vmem:[%s13772_s5 + $0x80] sm:$0xff] }
 0x4c7   :  { %4138 = vmatprep.subr.mxu0 %v13887_v50  ;;  %4324 = vmatprep.subr.mxu1 %v13887_v50 }
 0x4c8   :  { %4139 = vmatpush2.msra.mxu0 %v4023_v48  ;;  %4325 = vmatpush2.msra.mxu1 %v4023_v48  ;;  %v8132_v48 = vld [vmem:[%s13772_s5 + $0x140] sm:$0xff] }
 0x4c9   :  { %4140 = vmatprep.subr.mxu0 %v13887_v50  ;;  %4326 = vmatprep.subr.mxu1 %v13887_v50 }
 0x4ca   :  { %4141 = vmatpush2.msra.mxu0 %v4022_v36  ;;  %4327 = vmatpush2.msra.mxu1 %v4022_v36  ;;  %v4045_v36 = vld [vmem:[%s13772_s5 + $0x98] sm:$0xff] }
 0x4cb   :  { %4142 = vmatprep.subr.mxu0 %v13887_v50  ;;  %4328 = vmatprep.subr.mxu1 %v13887_v50 }
 0x4cc   :  { %4143 = vmatpush2.msra.mxu0 %v4021_v4  ;;  %4329 = vmatpush2.msra.mxu1 %v4021_v4  ;;  %v4044_v4 = vld [vmem:[%s13772_s5 + $0x90] sm:$0xff] }
 0x4cd   :  { %4144 = vmatprep.subr.mxu0 %v13887_v50  ;;  %4330 = vmatprep.subr.mxu1 %v13887_v50 }
 0x4ce   :  { %4145 = vmatpush2.msra.mxu0 %v4020_v26  ;;  %4331 = vmatpush2.msra.mxu1 %v4020_v26  ;;  %v8134_v26 = vld [vmem:[%s13772_s5 + $0x150] sm:$0xff] }
 0x4cf   :  { %4146 = vmatprep.subr.mxu0 %v13887_v50  ;;  %4332 = vmatprep.subr.mxu1 %v13887_v50 }
 0x4d0   :  { %4147 = vmatpush2.msra.mxu0 %v4019_v44  ;;  %4333 = vmatpush2.msra.mxu1 %v4019_v44  ;;  %v4047_v44 = vld [vmem:[%s13772_s5 + $0xa8] sm:$0xff] }
 0x4d1   :  { %4148 = vmatprep.subr.mxu0 %v13887_v50  ;;  %4334 = vmatprep.subr.mxu1 %v13887_v50 }
 0x4d2   :  { %4149 = vmatpush2.msra.mxu0 %v4018_v29  ;;  %4335 = vmatpush2.msra.mxu1 %v4018_v29  ;;  %v4046_v29 = vld [vmem:[%s13772_s5 + $0xa0] sm:$0xff] }
 0x4d3   :  { %4151 = vmatmul.mubr.f32.vlgmr.msra.gmra.mxu0 %v4026_v8  ;;  %4337 = vmatmul.mubr.f32.vlgmr.msra.gmra.mxu1 %v8116_v5  ;;  %v8136_v8 = vld [vmem:[%s13772_s5 + $0x160] sm:$0xff]  ;;  %v4049_v5 = vld [vmem:[%s13772_s5 + $0xb8] sm:$0xff] }
 0x4d4   :  { %8105 = vmatprep.mubr.msk.f32.mxu0 %vm3090_vm6, %v4029_v52  ;;  %8141 = vmatprep.mubr.msk.f32.mxu1 %vm3090_vm6, %v8119_v21  ;;  %v4048_v52 = vld [vmem:[%s13772_s5 + $0xb0] sm:$0xff] }
 0x4d5   :  { %4806 = vrot.lane.b32.xlu0 %v11993_v16, %s8954_s23  ;;  %4808 = vrot.lane.b32.xlu1 %v11998_v49, %s8954_s23  ;;  %v8138_v21 = vld [vmem:[%s13772_s5 + $0x170] sm:$0xff] }
 0x4d7   :  { %4156 = vmatmul.mubr.f32.gmra.mxu0 %v4028_v31  ;;  %4342 = vmatmul.mubr.f32.gmra.mxu1 %v8118_v56 }
 0x4d8   :  { %8106 = vmatprep.mubr.msk.f32.mxu0 %vm3090_vm6, %v4031_v23  ;;  %8142 = vmatprep.mubr.msk.f32.mxu1 %vm3090_vm6, %v8121_v28 }
 0x4d9   :  { %4802 = vrot.lane.b32.xlu0 %v12021_v61, %s8954_s23  ;;  %4804 = vrot.lane.b32.xlu1 %v12026_v10, %s8954_s23 }
 0x4db   :  { %4161 = vmatmul.mubr.f32.gmra.mxu0 %v4030_v39  ;;  %4347 = vmatmul.mubr.f32.gmra.mxu1 %v8120_v46 }
 0x4dc   :  { %8107 = vmatprep.mubr.msk.f32.mxu0 %vm3090_vm6, %v4033_v14  ;;  %8143 = vmatprep.mubr.msk.f32.mxu1 %vm3090_vm6, %v8123_v34 }
 0x4dd   :  { %4798 = vrot.lane.b32.xlu0 %v12049_v22, %s8954_s23  ;;  %4800 = vrot.lane.b32.xlu1 %v12054_v55, %s8954_s23 }
 0x4df   :  { %4166 = vmatmul.mubr.f32.gmra.mxu0 %v4032_v35  ;;  %4352 = vmatmul.mubr.f32.gmra.mxu1 %v8122_v42  ;;  %v12278_v35 = vpop.permute.xlu0 %4842  ;;  %v12280_v42 = vpop.permute.xlu1 %4844 }
 0x4e0   :  { %8108 = vmatprep.mubr.msk.f32.mxu0 %vm3090_vm6, %v4035_v17  ;;  %8144 = vmatprep.mubr.msk.f32.mxu1 %vm3090_vm6, %v8125_v32 }
 0x4e1   :  { %4794 = vrot.lane.b32.xlu0 %v12077_v53, %s8954_s23  ;;  %4796 = vrot.lane.b32.xlu1 %v12082_v33, %s8954_s23 }
 0x4e3   :  { %4171 = vmatmul.mubr.f32.gmra.mxu0 %v4034_v63  ;;  %4357 = vmatmul.mubr.f32.gmra.mxu1 %v8124_v20 }
 0x4e4   :  { %8109 = vmatprep.mubr.msk.f32.mxu0 %vm3090_vm6, %v4037_v60  ;;  %8145 = vmatprep.mubr.msk.f32.mxu1 %vm3090_vm6, %v8127_v11  ;;  %v12286_v11 = vpop.permute.xlu0 %4838 }
 0x4e5   :  { %4790 = vrot.lane.b32.xlu0 %v12105_v13, %s8954_s23  ;;  %4792 = vrot.lane.b32.xlu1 %v12110_v9, %s8954_s23 }
 0x4e7   :  { %4176 = vmatmul.mubr.f32.gmra.mxu0 %v4036_v25  ;;  %4362 = vmatmul.mubr.f32.gmra.mxu1 %v8126_v18 }
 0x4e8   :  { %8110 = vmatprep.mubr.msk.f32.mxu0 %vm3090_vm6, %v4039_v1  ;;  %8146 = vmatprep.mubr.msk.f32.mxu1 %vm3090_vm6, %v8129_v40 }
 0x4e9   :  { %4786 = vrot.lane.b32.xlu0 %v12133_v37, %s8954_s23  ;;  %4788 = vrot.lane.b32.xlu1 %v12138_v27, %s8954_s23 }
 0x4eb   :  { %4181 = vmatmul.mubr.f32.gmra.mxu0 %v4038_v19  ;;  %4367 = vmatmul.mubr.f32.gmra.mxu1 %v8128_v7  ;;  %v12298_v7 = vpop.permute.xlu0 %4834 }
 0x4ec   :  { %8111 = vmatprep.mubr.msk.f32.mxu0 %vm3090_vm6, %v4041_v59  ;;  %8147 = vmatprep.mubr.msk.f32.mxu1 %vm3090_vm6, %v8131_v51 }
 0x4ed   :  { %5420 = vrot.lane.b32.xlu0 %v11776_v24, %s8953_s25  ;;  %v8135_v24 = vld [vmem:[%s13772_s5 + $0x158] sm:$0xff] }
 0x4ef   :  { %4186 = vmatmul.mubr.f32.gmra.mxu0 %v4040_v38  ;;  %4372 = vmatmul.mubr.f32.gmra.mxu1 %v8130_v43 }
 0x4f0   :  { %8112 = vmatprep.mubr.msk.f32.mxu0 %vm3090_vm6, %v4043_v6  ;;  %8148 = vmatprep.mubr.msk.f32.mxu1 %vm3090_vm6, %v8133_v3 }
 0x4f1   :  { %5416 = vrot.lane.b32.xlu0 %v11792_v57, %s8953_s25  ;;  %v8137_v57 = vld [vmem:[%s13772_s5 + $0x168] sm:$0xff] }
 0x4f3   :  { %4191 = vmatmul.mubr.f32.gmra.mxu0 %v4042_v0  ;;  %4377 = vmatmul.mubr.f32.gmra.mxu1 %v8132_v48  ;;  %v12302_v48 = vpop.permute.xlu0 %4830 }
 0x4f4   :  { %8113 = vmatprep.mubr.msk.f32.mxu0 %vm3090_vm6, %v4045_v36  ;;  %8149 = vmatprep.mubr.msk.f32.mxu1 %vm3090_vm6, %v8135_v24 }
 0x4f5   :  { %5412 = vrot.lane.b32.xlu0 %v11807_v30, %s8953_s25  ;;  %v8139_v30 = vld [vmem:[%s13772_s5 + $0x178] sm:$0xff] }
 0x4f7   :  { %4196 = vmatmul.mubr.f32.gmra.mxu0 %v4044_v4  ;;  %4382 = vmatmul.mubr.f32.gmra.mxu1 %v8134_v26 }
 0x4f8   :  { %8114 = vmatprep.mubr.msk.f32.mxu0 %vm3090_vm6, %v4047_v44  ;;  %8150 = vmatprep.mubr.msk.f32.mxu1 %vm3090_vm6, %v8137_v57 }
 0x4f9   :  { %5408 = vrot.lane.b32.xlu0 %v11822_v62, %s8953_s25  ;;  %v8160_v62 = vld [vmem:[%s13774_s7 + $0x40] sm:$0xff] }
 0x4fb   :  { %4201 = vmatmul.mubr.f32.gmra.mxu0 %v4046_v29  ;;  %4387 = vmatmul.mubr.f32.gmra.mxu1 %v8136_v8  ;;  %v12306_v8 = vpop.permute.xlu0 %4826 }
 0x4fc   :  { %8115 = vmatprep.mubr.msk.f32.mxu0 %vm3090_vm6, %v4049_v5  ;;  %8151 = vmatprep.mubr.msk.f32.mxu1 %vm3090_vm6, %v8139_v30 }
 0x4fd   :  { %5404 = vrot.lane.b32.xlu0 %v11837_v12, %s8953_s25  ;;  %v4421_v12 = vld [vmem:[%s13774_s7] sm:$0xff] }
 0x4ff   :  { %4206 = vmatmul.mubr.f32.gmra.mxu0 %v4048_v52  ;;  %4392 = vmatmul.mubr.f32.gmra.mxu1 %v8138_v21 }
 0x500   :  { %8602 = vmatprep.mubr.msk.f32.mxu1 %vm123_vm0, %v8160_v62  ;;  %8566 = vmatprep.mubr.msk.f32.mxu0 %vm123_vm0, %v4421_v12 }
 0x501   :  { %5400 = vrot.lane.b32.xlu0 %v11848_v54, %s8953_s25 }
 0x505   :  { %5396 = vrot.lane.b32.xlu0 %v11859_v15, %s8953_s25 }
 0x509   :  { %5392 = vrot.lane.b32.xlu0 %v11870_v45, %s8953_s25 }
 0x50d   :  { %5388 = vrot.lane.b32.xlu0 %v11881_v58, %s8953_s25 }
 0x511   :  { %5384 = vrot.lane.b32.xlu0 %v11998_v49, %s8953_s25 }
 0x515   :  { %5380 = vrot.lane.b32.xlu0 %v12026_v10, %s8953_s25 }
 0x519   :  { %5376 = vrot.lane.b32.xlu0 %v12054_v55, %s8953_s25 }
 0x51d   :  { %5372 = vrot.lane.b32.xlu0 %v12082_v33, %s8953_s25 }
 0x521   :  { %5368 = vrot.lane.b32.xlu0 %v12110_v9, %s8953_s25  ;;  %v12288_v9 = vpop.permute.xlu1 %4840 }
 0x525   :  { %5364 = vrot.lane.b32.xlu0 %v12138_v27, %s8953_s25  ;;  %v12300_v59 = vpop.permute.xlu1 %4836 }
 0x529   :  { %v12304_v36 = vpop.permute.xlu1 %4832 }
 0x52d   :  { %v12308_v5 = vpop.permute.xlu1 %4828 }
 0x593   :  { %v12260_v54 = vpop.f32.mrf.mxu0  ;;  %v12262_v15 = vpop.f32.mrf.mxu1 }
 0x594   :  { %v4397_v45 = vmax.f32 %v12260_v54, %v12262_v15  ;;  %v4422_v54 = vld [vmem:[%s13774_s7 + $0x8] sm:$0xff]  ;;  %v8162_v15 = vld [vmem:[%s13774_s7 + $0x50] sm:$0xff] }
 0x595   :  { %v4154_v58 = vpop.f32.mrf.mxu0  ;;  %v4340_v49 = vpop.f32.mrf.mxu1 }
 0x596   :  { %v12310_v49 = vpop.permute.xlu0 %4822 }
 0x597   :  { %v12266_v31 = vpop.f32.mrf.mxu0  ;;  %v12268_v56 = vpop.f32.mrf.mxu1 }
 0x599   :  { %v4159_v23 = vpop.f32.mrf.mxu0  ;;  %v4345_v28 = vpop.f32.mrf.mxu1 }
 0x59a   :  { %v12312_v23 = vpop.permute.xlu1 %4824 }
 0x59b   :  { %v12270_v10 = vpop.f32.mrf.mxu0  ;;  %v12272_v39 = vpop.f32.mrf.mxu1 }
 0x59d   :  { %v4164_v46 = vpop.f32.mrf.mxu0  ;;  %v4350_v14 = vpop.f32.mrf.mxu1 }
 0x59f   :  { %v12274_v34 = vpop.f32.mrf.mxu0  ;;  %v12276_v55 = vpop.f32.mrf.mxu1 }
 0x5a1   :  { %v4169_v17 = vpop.f32.mrf.mxu0  ;;  %v4355_v32 = vpop.f32.mrf.mxu1 }
 0x5a3   :  { %v12282_v33 = vpop.f32.mrf.mxu0  ;;  %v12284_v63 = vpop.f32.mrf.mxu1 }
 0x5a5   :  { %v4174_v20 = vpop.f32.mrf.mxu0  ;;  %v4360_v60 = vpop.f32.mrf.mxu1 }
 0x5a7   :  { %v12290_v25 = vpop.f32.mrf.mxu0  ;;  %v12292_v18 = vpop.f32.mrf.mxu1 }
 0x5a9   :  { %v4179_v1 = vpop.f32.mrf.mxu0  ;;  %v4365_v40 = vpop.f32.mrf.mxu1 }
 0x5ab   :  { %v12294_v27 = vpop.f32.mrf.mxu0  ;;  %v12296_v19 = vpop.f32.mrf.mxu1 }
 0x5ad   :  { %v4184_v51 = vpop.f32.mrf.mxu0  ;;  %v4370_v38 = vpop.f32.mrf.mxu1 }
 0x5ae   :  { %v12320_v38 = vpop.permute.xlu0 %4818 }
 0x5af   :  { %v4187_v43 = vpop.f32.mrf.mxu0  ;;  %v4373_v6 = vpop.f32.mrf.mxu1 }
 0x5b1   :  { %v4189_v3 = vpop.f32.mrf.mxu0  ;;  %v4375_v0 = vpop.f32.mrf.mxu1 }
 0x5b2   :  { %v12322_v3 = vpop.permute.xlu1 %4820  ;;  %v4404_v0 = vmax.f32 %v4187_v43, %v4373_v6  ;;  %v4402_v43 = vmax.f32 %v12290_v25, %v12292_v18  ;;  %v4400_v25 = vmax.f32 %v12274_v34, %v12276_v55 }
 0x5b3   :  { %v4192_v24 = vpop.f32.mrf.mxu0  ;;  %v4378_v4 = vpop.f32.mrf.mxu1 }
 0x5b4   :  { %v4405_v40 = vmax.f32 %v4192_v24, %v4378_v4  ;;  %v4403_v24 = vmax.f32 %v12294_v27, %v12296_v19  ;;  %v12342_v6 = vmax.f32 %v4404_v0, 0.0  ;;  %v12346_v27 = vpop.permute.xlu0 %4814  ;;  %v12362_v18 = vmax.f32 %v4402_v43, 0.0  ;;  %v4428_v0 = vld [vmem:[%s13774_s7 + $0x38] sm:$0xff] }
 0x5b5   :  { %v4194_v26 = vpop.f32.mrf.mxu0  ;;  %v4380_v44 = vpop.f32.mrf.mxu1 }
 0x5b6   :  { %v12334_v4 = vmax.f32 %v4405_v40, 0.0  ;;  %v12348_v19 = vpop.permute.xlu1 %4816  ;;  %v4401_v44 = vmax.f32 %v12282_v33, %v12284_v63  ;;  %v4399_v33 = vmax.f32 %v12270_v10, %v12272_v39  ;;  %v4854_v40 = vsel %vm123_vm0, %v12320_v38, %v12322_v3 }
 0x5b7   :  { %v4197_v57 = vpop.f32.mrf.mxu0  ;;  %v4383_v29 = vpop.f32.mrf.mxu1 }
 0x5b8   :  { %v4406_v60 = vmax.f32 %v4197_v57, %v4383_v29  ;;  %v12354_v57 = vmax.f32 %v4403_v24, 0.0  ;;  %v12370_v63 = vmax.f32 %v4401_v44, 0.0  ;;  %v12374_v34 = vpop.permute.xlu0 %4810  ;;  %v4398_v29 = vmax.f32 %v12266_v31, %v12268_v56 }
 0x5b9   :  { %v4199_v30 = vpop.f32.mrf.mxu0  ;;  %v4385_v52 = vpop.f32.mrf.mxu1  ;;  %v12388_v10 = vmax.f32 %v4399_v33, 0.0  ;;  %v4853_v24 = vsel %vm123_vm0, %v12346_v27, %v12348_v19 }
 0x5ba   :  { %v12326_v26 = vmax.f32 %v4406_v60, 0.0  ;;  %v12376_v55 = vpop.permute.xlu1 %4812  ;;  %v12382_v30 = vmax.f32 %v4400_v25, 0.0  ;;  %v12394_v31 = vmax.f32 %v4398_v29, 0.0  ;;  %v12407_v52 = vmax.f32 %v4397_v45, 0.0 }
 0x5bb   :  { %v4202_v21 = vpop.f32.mrf.mxu0  ;;  %v4388_v62 = vpop.f32.mrf.mxu1  ;;  %v4860_v45 = vsel %vm123_vm0, %v12278_v35, %v12280_v42  ;;  %v4859_v35 = vsel %vm123_vm0, %v12286_v11, %v12288_v9  ;;  %v4586_v11 = vld [vmem:[%s13773_s6 + $0x310] sm:$0xff]  ;;  %v4855_v60 = vsel %vm123_vm0, %v12310_v49, %v12312_v23  ;;  %v4852_v38 = vsel %vm123_vm0, %v12374_v34, %v12376_v55 }
 0x5bc   :  { %v4407_v14 = vmax.f32 %v4202_v21, %v4388_v62  ;;  %v12398_v56 = vpop.permute.xlu0 %4806  ;;  %v8161_v21 = vld [vmem:[%s13774_s7 + $0x48] sm:$0xff]  ;;  %v4423_v62 = vld [vmem:[%s13774_s7 + $0x10] sm:$0xff] }
 0x5bd   :  { %v4204_v12 = vpop.f32.mrf.mxu0  ;;  %v4390_v58 = vpop.f32.mrf.mxu1 }
 0x5be   :  { %v12316_v51 = vmax.f32 %v4407_v14, 0.0  ;;  %v12400_v39 = vpop.permute.xlu1 %4808  ;;  %v4424_v14 = vld [vmem:[%s13774_s7 + $0x18] sm:$0xff] }
 0x5bf   :  { %v4207_v28 = vpop.f32.mrf.mxu0  ;;  %v4393_v46 = vpop.f32.mrf.mxu1 }
 0x5c0   :  { %v4408_v17 = vmax.f32 %v4207_v28, %v4393_v46  ;;  %v12434_v12 = vpop.permute.xlu0 %4802  ;;  %v8163_v28 = vld [vmem:[%s13774_s7 + $0x58] sm:$0xff]  ;;  %v4858_v46 = vsel %vm123_vm0, %v12298_v7, %v12300_v59 }
 0x5c1   :  { %v4209_v32 = vpop.f32.mrf.mxu0  ;;  %v4395_v20 = vpop.f32.mrf.mxu1 }
 0x5c2   :  { %v12314_v1 = vmax.f32 %v4408_v17, 0.0  ;;  %v12436_v58 = vpop.permute.xlu1 %4804  ;;  %v4857_v17 = vsel %vm123_vm0, %v12302_v48, %v12304_v36  ;;  %v8166_v32 = vld [vmem:[%s13774_s7 + $0x70] sm:$0xff]  ;;  %v4856_v48 = vsel %vm123_vm0, %v12306_v8, %v12308_v5  ;;  %v4426_v20 = vld [vmem:[%s13774_s7 + $0x28] sm:$0xff] }
 0x5c3   :  { %v4427_v8 = vld [vmem:[%s13774_s7 + $0x30] sm:$0xff] }
 0x5c4   :  { %8542 = vmatprep.subr.mxu0 %v12314_v1  ;;  %8578 = vmatprep.subr.mxu1 %v12314_v1 }
 0x5c5   :  { %8543 = vmatpush3.msra.mxu0 %v12314_v1  ;;  %8579 = vmatpush3.msra.mxu1 %v12314_v1 }
 0x5c6   :  { %8544 = vmatprep.subr.mxu0 %v12316_v51  ;;  %8580 = vmatprep.subr.mxu1 %v12316_v51  ;;  %v4801_v7 = vpop.permute.xlu1 %4800 }
 0x5c7   :  { %8545 = vmatpush3.msra.mxu0 %v12316_v51  ;;  %8581 = vmatpush3.msra.mxu1 %v12316_v51 }
 0x5c8   :  { %8546 = vmatprep.subr.mxu0 %v12326_v26  ;;  %8582 = vmatprep.subr.mxu1 %v12326_v26 }
 0x5c9   :  { %8547 = vmatpush3.msra.mxu0 %v12326_v26  ;;  %8583 = vmatpush3.msra.mxu1 %v12326_v26 }
 0x5ca   :  { %8548 = vmatprep.subr.mxu0 %v12334_v4  ;;  %8584 = vmatprep.subr.mxu1 %v12334_v4  ;;  %v4797_v49 = vpop.permute.xlu1 %4796 }
 0x5cb   :  { %8549 = vmatpush3.msra.mxu0 %v12334_v4  ;;  %8585 = vmatpush3.msra.mxu1 %v12334_v4 }
 0x5cc   :  { %8550 = vmatprep.subr.mxu0 %v12342_v6  ;;  %8586 = vmatprep.subr.mxu1 %v12342_v6 }
 0x5cd   :  { %8551 = vmatpush3.msra.mxu0 %v12342_v6  ;;  %8587 = vmatpush3.msra.mxu1 %v12342_v6 }
 0x5ce   :  { %8552 = vmatprep.subr.mxu0 %v12354_v57  ;;  %8588 = vmatprep.subr.mxu1 %v12354_v57  ;;  %v4793_v27 = vpop.permute.xlu1 %4792 }
 0x5cf   :  { %8553 = vmatpush3.msra.mxu0 %v12354_v57  ;;  %8589 = vmatpush3.msra.mxu1 %v12354_v57 }
 0x5d0   :  { %8554 = vmatprep.subr.mxu0 %v12362_v18  ;;  %8590 = vmatprep.subr.mxu1 %v12362_v18 }
 0x5d1   :  { %8555 = vmatpush3.msra.mxu0 %v12362_v18  ;;  %8591 = vmatpush3.msra.mxu1 %v12362_v18 }
 0x5d2   :  { %8556 = vmatprep.subr.mxu0 %v12370_v63  ;;  %8592 = vmatprep.subr.mxu1 %v12370_v63  ;;  %v4789_v34 = vpop.permute.xlu1 %4788 }
 0x5d3   :  { %8557 = vmatpush3.msra.mxu0 %v12370_v63  ;;  %8593 = vmatpush3.msra.mxu1 %v12370_v63 }
 0x5d4   :  { %8558 = vmatprep.subr.mxu0 %v12382_v30  ;;  %8594 = vmatprep.subr.mxu1 %v12382_v30 }
 0x5d5   :  { %8559 = vmatpush3.msra.mxu0 %v12382_v30  ;;  %8595 = vmatpush3.msra.mxu1 %v12382_v30 }
 0x5d6   :  { %8560 = vmatprep.subr.mxu0 %v12388_v10  ;;  %8596 = vmatprep.subr.mxu1 %v12388_v10 }
 0x5d7   :  { %8561 = vmatpush3.msra.mxu0 %v12388_v10  ;;  %8597 = vmatpush3.msra.mxu1 %v12388_v10 }
 0x5d8   :  { %8562 = vmatprep.subr.mxu0 %v12394_v31  ;;  %8598 = vmatprep.subr.mxu1 %v12394_v31 }
 0x5d9   :  { %8563 = vmatpush3.msra.mxu0 %v12394_v31  ;;  %8599 = vmatpush3.msra.mxu1 %v12394_v31 }
 0x5da   :  { %8564 = vmatprep.subr.mxu0 %v12407_v52  ;;  %8600 = vmatprep.subr.mxu1 %v12407_v52 }
 0x5db   :  { %8565 = vmatpush3.msra.mxu0 %v12407_v52  ;;  %8601 = vmatpush3.msra.mxu1 %v12407_v52 }
 0x5dc   :  { %8603 = vmatmul.mubr.msk.f32.vlgmr.msra.gmra.mxu1 %vm123_vm0, %v8161_v21  ;;  %4918 = vmatprep.subr.mxu0 %v12280_v42  ;;  %v8164_v42 = vld [vmem:[%s13774_s7 + $0x60] sm:$0xff] }
 0x5dd   :  { %8567 = vmatmul.mubr.msk.f32.vlgmr.msra.gmra.mxu0 %vm123_vm0, %v4422_v54  ;;  %8605 = vmatprep.mubr.msk.f32.mxu1 %vm123_vm0, %v8162_v15  ;;  %v4582_v21 = vld [vmem:[%s13773_s6 + $0x2a0] sm:$0xff]  ;;  %v8943_v54 = vld [vmem:[%s13773_s6 + $0x270] sm:$0xff]  ;;  %v4580_v15 = vld [vmem:[%s13773_s6 + $0x268] sm:$0xff] }
 0x5de   :  { %4919 = vmatpush1.msra.mxu0 %v4860_v45  ;;  %8569 = vmatprep.mubr.msk.f32.mxu0 %vm123_vm0, %v4423_v62  ;;  %v8944_v45 = vld [vmem:[%s13773_s6 + $0x238] sm:$0xff]  ;;  %v4578_v62 = vld [vmem:[%s13773_s6 + $0x230] sm:$0xff] }
 0x5df   :  { %4920 = vmatprep.subr.mxu0 %v12288_v9  ;;  %5055 = vmatprep.subr.mxu1 %v11771_v47  ;;  %v8165_v47 = vld [vmem:[%s13774_s7 + $0x68] sm:$0xff]  ;;  %v4799_v9 = vpop.permute.xlu0 %4798 }
 0x5e0   :  { %4921 = vmatpush1.msra.mxu0 %v4859_v35  ;;  %8606 = vmatmul.mubr.msk.f32.gmra.mxu1 %vm123_vm0, %v8163_v28  ;;  %v4849_v44 = vsel %vm123_vm0, %v4799_v9, %v4801_v7  ;;  %v8946_v35 = vld [vmem:[%s13773_s6 + $0x1c8] sm:$0xff]  ;;  %v4574_v28 = vld [vmem:[%s13773_s6 + $0x1c0] sm:$0xff] }
 0x5e1   :  { %4922 = vmatprep.subr.mxu0 %v12300_v59  ;;  %8608 = vmatprep.mubr.msk.f32.mxu1 %vm123_vm0, %v8164_v42  ;;  %v4425_v59 = vld [vmem:[%s13774_s7 + $0x20] sm:$0xff]  ;;  %v8947_v42 = vld [vmem:[%s13773_s6 + $0x190] sm:$0xff]  ;;  %v4564_v9 = vld [vmem:[%s13773_s6 + $0xa8] sm:$0xff] }
 0x5e2   :  { %4923 = vmatpush1.msra.mxu0 %v4858_v46  ;;  %5056 = vmatpush1.msra.mxu1 %v4586_v11  ;;  %v4572_v46 = vld [vmem:[%s13773_s6 + $0x188] sm:$0xff]  ;;  %v8948_v11 = vld [vmem:[%s13773_s6 + $0x158] sm:$0xff] }
 0x5e3   :  { %4924 = vmatprep.subr.mxu0 %v12304_v36  ;;  %8570 = vmatmul.mubr.msk.f32.gmra.mxu0 %vm123_vm0, %v4424_v14  ;;  %v8167_v36 = vld [vmem:[%s13774_s7 + $0x78] sm:$0xff]  ;;  %v4570_v14 = vld [vmem:[%s13773_s6 + $0x150] sm:$0xff] }
 0x5e4   :  { %4925 = vmatpush1.msra.mxu0 %v4857_v17  ;;  %8609 = vmatmul.mubr.msk.f32.gmra.mxu1 %vm123_vm0, %v8165_v47  ;;  %v4568_v17 = vld [vmem:[%s13773_s6 + $0x118] sm:$0xff]  ;;  %v4566_v47 = vld [vmem:[%s13773_s6 + $0xe0] sm:$0xff] }
 0x5e5   :  { %4926 = vmatprep.subr.mxu0 %v12308_v5  ;;  %8611 = vmatprep.mubr.msk.f32.mxu1 %vm123_vm0, %v8166_v32  ;;  %v4795_v5 = vpop.permute.xlu0 %4794  ;;  %v5325_v32 = vld [vmem:[%s13773_s6 + $0x248] sm:$0xff] }
 0x5e6   :  { %4927 = vmatpush1.msra.mxu0 %v4856_v48  ;;  %8572 = vmatprep.mubr.msk.f32.mxu0 %vm123_vm0, %v4425_v59  ;;  %v4848_v25 = vsel %vm123_vm0, %v4795_v5, %v4797_v49  ;;  %v5323_v48 = vld [vmem:[%s13773_s6 + $0x210] sm:$0xff]  ;;  %v5321_v59 = vld [vmem:[%s13773_s6 + $0x1d8] sm:$0xff]  ;;  %v5309_v5 = vld [vmem:[%s13773_s6 + $0x88] sm:$0xff] }
 0x5e7   :  { %4928 = vmatprep.subr.mxu0 %v12312_v23  ;;  %8573 = vmatmul.mubr.msk.f32.gmra.mxu0 %vm123_vm0, %v4426_v20  ;;  %v8941_v23 = vld [vmem:[%s13773_s6 + $0x2e0] sm:$0xff] }
 0x5e8   :  { %4929 = vmatpush1.msra.mxu0 %v4855_v60  ;;  %8612 = vmatmul.mubr.msk.f32.gmra.mxu1 %vm123_vm0, %v8167_v36  ;;  %v5319_v20 = vld [vmem:[%s13773_s6 + $0x1a0] sm:$0xff]  ;;  %v5317_v60 = vld [vmem:[%s13773_s6 + $0x168] sm:$0xff]  ;;  %v5315_v36 = vld [vmem:[%s13773_s6 + $0x130] sm:$0xff] }
 0x5e9   :  { %4930 = vmatprep.subr.mxu0 %v12322_v3  ;;  %8575 = vmatprep.mubr.msk.f32.mxu0 %vm123_vm0, %v4427_v8  ;;  %v4851_v3 = vsel %vm123_vm0, %v12398_v56, %v12400_v39  ;;  %v4791_v43 = vpop.permute.xlu0 %4790  ;;  %v4584_v56 = vld [vmem:[%s13773_s6 + $0x2d8] sm:$0xff] }
 0x5ea   :  { %4931 = vmatpush1.msra.mxu0 %v4854_v40  ;;  %5057 = vmatprep.subr.mxu1 %v8941_v23  ;;  %v5313_v8 = vld [vmem:[%s13773_s6 + $0xf8] sm:$0xff]  ;;  %v5311_v40 = vld [vmem:[%s13773_s6 + $0xc0] sm:$0xff] }
 0x5eb   :  { %4932 = vmatprep.subr.mxu0 %v12348_v19  ;;  %8576 = vmatmul.mubr.msk.f32.gmra.mxu0 %vm123_vm0, %v4428_v0  ;;  %v4850_v19 = vsel %vm123_vm0, %v12434_v12, %v12436_v58  ;;  %v8945_v12 = vld [vmem:[%s13773_s6 + $0x200] sm:$0xff]  ;;  %v5305_v0 = vld [vmem:[%s13773_s6 + $0x18] sm:$0xff] }
 0x5ec   :  { %4933 = vmatpush1.msra.mxu0 %v4853_v24  ;;  %4980 = vmatprep.mubr.f32.mxu0 %v13887_v50  ;;  %v5789_v24 = vld [vmem:[%s13773_s6 + $0x330] sm:$0xff]  ;;  %v5787_v23 = vld [vmem:[%s13773_s6 + $0x2f8] sm:$0xff] }
 0x5ed   :  { %4934 = vmatprep.subr.mxu0 %v12376_v55  ;;  %5117 = vmatprep.mubr.f32.mxu1 %v13887_v50  ;;  %v4787_v33 = vpop.permute.xlu0 %4786  ;;  %v4847_v55 = vsel %vm123_vm0, %v4791_v43, %v4793_v27  ;;  %v5781_v43 = vld [vmem:[%s13773_s6 + $0x250] sm:$0xff] }
 0x5ee   :  { %4935 = vmatpush1.msra.mxu0 %v4852_v38  ;;  %v4846_v29 = vsel %vm123_vm0, %v4787_v33, %v4789_v34  ;;  %5058 = vmatpush1.msra.mxu1 %v4584_v56  ;;  %v5785_v38 = vld [vmem:[%s13773_s6 + $0x2c0] sm:$0xff]  ;;  %v5773_v33 = vld [vmem:[%s13773_s6 + $0x170] sm:$0xff] }
 0x5ef   :  { %4936 = vmatprep.subr.mxu0 %v12400_v39  ;;  %v8942_v39 = vld [vmem:[%s13773_s6 + $0x2a8] sm:$0xff] }
 0x5f0   :  { %4937 = vmatpush1.msra.mxu0 %v4851_v3  ;;  %5059 = vmatprep.subr.mxu1 %v8942_v39  ;;  %v5783_v3 = vld [vmem:[%s13773_s6 + $0x288] sm:$0xff] }
 0x5f1   :  { %4938 = vmatprep.subr.mxu0 %v12436_v58  ;;  %5060 = vmatpush1.msra.mxu1 %v4582_v21  ;;  %v4576_v58 = vld [vmem:[%s13773_s6 + $0x1f8] sm:$0xff] }
 0x5f2   :  { %4939 = vmatpush1.msra.mxu0 %v4850_v19  ;;  %5061 = vmatprep.subr.mxu1 %v8943_v54  ;;  %v5777_v19 = vld [vmem:[%s13773_s6 + $0x1e0] sm:$0xff] }
 0x5f3   :  { %4940 = vmatprep.subr.mxu0 %v4801_v7  ;;  %5062 = vmatpush1.msra.mxu1 %v4580_v15  ;;  %v5327_v7 = vld [vmem:[%s13773_s6 + $0x280] sm:$0xff] }
 0x5f4   :  { %4941 = vmatpush1.msra.mxu0 %v4849_v44  ;;  %5063 = vmatprep.subr.mxu1 %v8944_v45  ;;  %v5775_v44 = vld [vmem:[%s13773_s6 + $0x1a8] sm:$0xff] }
 0x5f5   :  { %4942 = vmatprep.subr.mxu0 %v4797_v49  ;;  %5064 = vmatpush1.msra.mxu1 %v4578_v62  ;;  %v5307_v49 = vld [vmem:[%s13773_s6 + $0x50] sm:$0xff] }
 0x5f6   :  { %4943 = vmatpush1.msra.mxu0 %v4848_v25  ;;  %5065 = vmatprep.subr.mxu1 %v8945_v12  ;;  %v12710_v25 = vpop.permute.xlu0 %5420 }
 0x5f7   :  { %4944 = vmatprep.subr.mxu0 %v4793_v27  ;;  %5066 = vmatpush1.msra.mxu1 %v4576_v58  ;;  %v5779_v27 = vld [vmem:[%s13773_s6 + $0x218] sm:$0xff] }
 0x5f8   :  { %4945 = vmatpush1.msra.mxu0 %v4847_v55  ;;  %5067 = vmatprep.subr.mxu1 %v8946_v35  ;;  %v5771_v55 = vld [vmem:[%s13773_s6 + $0x138] sm:$0xff] }
 0x5f9   :  { %4946 = vmatprep.subr.mxu0 %v4789_v34  ;;  %5068 = vmatpush1.msra.mxu1 %v4574_v28 }
 0x5fa   :  { %4947 = vmatpush1.msra.mxu0 %v4846_v29  ;;  %5069 = vmatprep.subr.mxu1 %v8947_v42  ;;  %v12716_v34 = vpop.permute.xlu0 %5416  ;;  %v5769_v29 = vld [vmem:[%s13773_s6 + $0x100] sm:$0xff] }
 0x5fb   :  { %8614 = vmatprep.subr.mxu0 %v12314_v1  ;;  %5070 = vmatpush1.msra.mxu1 %v4572_v46 }
 0x5fc   :  { %5071 = vmatprep.subr.mxu1 %v8948_v11 }
 0x5fd   :  { %5072 = vmatpush1.msra.mxu1 %v4570_v14 }
 0x5fe   :  { %5073 = vmatprep.subr.mxu1 %v11993_v16  ;;  %v4562_v16 = vld [vmem:[%s13773_s6 + $0x70] sm:$0xff]  ;;  %v12726_v56 = vpop.permute.xlu0 %5412 }
 0x5ff   :  { %5074 = vmatpush1.msra.mxu1 %v4568_v17 }
 0x600   :  { %5075 = vmatprep.subr.mxu1 %v12021_v61  ;;  %v4560_v61 = vld [vmem:[%s13773_s6 + $0x38] sm:$0xff] }
 0x601   :  { %5076 = vmatpush1.msra.mxu1 %v4566_v47 }
 0x602   :  { %5077 = vmatprep.subr.mxu1 %v12049_v22  ;;  %v4558_v22 = vld [vmem:[%s13773_s6] sm:$0xff]  ;;  %v12734_v45 = vpop.permute.xlu0 %5408 }
 0x603   :  { %5078 = vmatpush1.msra.mxu1 %v4564_v9 }
 0x604   :  { %5079 = vmatprep.subr.mxu1 %v12077_v53  ;;  %v5333_v53 = vld [vmem:[%s13773_s6 + $0x328] sm:$0xff] }
 0x605   :  { %5080 = vmatpush1.msra.mxu1 %v4562_v16  ;;  %5422 = vrot.lane.b32.xlu1 %v5333_v53, %s8953_s25 }
 0x606   :  { %5081 = vmatprep.subr.mxu1 %v12105_v13  ;;  %5876 = vrot.lane.b32.xlu0 %v5333_v53, %s8951_s30  ;;  %v5331_v13 = vld [vmem:[%s13773_s6 + $0x2f0] sm:$0xff]  ;;  %v12748_v28 = vpop.permute.xlu0 %5404 }
 0x607   :  { %5082 = vmatpush1.msra.mxu1 %v4560_v61 }
 0x608   :  { %5083 = vmatprep.subr.mxu1 %v12133_v37  ;;  %v5329_v37 = vld [vmem:[%s13773_s6 + $0x2b8] sm:$0xff] }
 0x609   :  { %5084 = vmatpush1.msra.mxu1 %v4558_v22  ;;  %5418 = vrot.lane.b32.xlu1 %v5331_v13, %s8953_s25 }
 0x60a   :  { %5872 = vrot.lane.b32.xlu0 %v5331_v13, %s8951_s30  ;;  %v12762_v17 = vpop.permute.xlu0 %5400  ;;  %v5767_v13 = vld [vmem:[%s13773_s6 + $0xc8] sm:$0xff] }
 0x60d   :  { %5414 = vrot.lane.b32.xlu1 %v5329_v37, %s8953_s25 }
 0x60e   :  { %5868 = vrot.lane.b32.xlu0 %v5329_v37, %s8951_s30  ;;  %v12776_v22 = vpop.permute.xlu0 %5396 }
 0x611   :  { %5410 = vrot.lane.b32.xlu1 %v5327_v7, %s8953_s25 }
 0x612   :  { %5864 = vrot.lane.b32.xlu0 %v5327_v7, %s8951_s30 }
 0x615   :  { %5406 = vrot.lane.b32.xlu1 %v5325_v32, %s8953_s25 }
 0x616   :  { %5860 = vrot.lane.b32.xlu0 %v5325_v32, %s8951_s30 }
 0x619   :  { %5402 = vrot.lane.b32.xlu1 %v5323_v48, %s8953_s25 }
 0x61a   :  { %5856 = vrot.lane.b32.xlu0 %v5323_v48, %s8951_s30 }
 0x61d   :  { %5398 = vrot.lane.b32.xlu1 %v5321_v59, %s8953_s25 }
 0x61e   :  { %5852 = vrot.lane.b32.xlu0 %v5321_v59, %s8951_s30  ;;  %v8192_v59 = vld [vmem:[%s13774_s7 + $0x80] sm:$0xff] }
 0x621   :  { %5394 = vrot.lane.b32.xlu1 %v5319_v20, %s8953_s25 }
 0x622   :  { %5848 = vrot.lane.b32.xlu0 %v5319_v20, %s8951_s30  ;;  %v5765_v20 = vld [vmem:[%s13773_s6 + $0x90] sm:$0xff] }
 0x625   :  { %5390 = vrot.lane.b32.xlu1 %v5317_v60, %s8953_s25 }
 0x626   :  { %5844 = vrot.lane.b32.xlu0 %v5317_v60, %s8951_s30  ;;  %v12800_v60 = vpop.permute.xlu0 %5392 }
 0x629   :  { %5386 = vrot.lane.b32.xlu1 %v5315_v36, %s8953_s25 }
 0x62a   :  { %5840 = vrot.lane.b32.xlu0 %v5315_v36, %s8951_s30 }
 0x62d   :  { %5382 = vrot.lane.b32.xlu1 %v5313_v8, %s8953_s25 }
 0x62e   :  { %5836 = vrot.lane.b32.xlu0 %v5313_v8, %s8951_s30  ;;  %v8193_v8 = vld [vmem:[%s13774_s7 + $0x88] sm:$0xff] }
 0x631   :  { %5378 = vrot.lane.b32.xlu1 %v5311_v40, %s8953_s25 }
 0x632   :  { %5832 = vrot.lane.b32.xlu0 %v5311_v40, %s8951_s30 }
 0x635   :  { %5374 = vrot.lane.b32.xlu1 %v5309_v5, %s8953_s25 }
 0x636   :  { %5828 = vrot.lane.b32.xlu0 %v5309_v5, %s8951_s30  ;;  %v8194_v5 = vld [vmem:[%s13774_s7 + $0x90] sm:$0xff] }
 0x639   :  { %5370 = vrot.lane.b32.xlu1 %v5307_v49, %s8953_s25 }
 0x63a   :  { %5824 = vrot.lane.b32.xlu0 %v5307_v49, %s8951_s30  ;;  %v5763_v49 = vld [vmem:[%s13773_s6 + $0x58] sm:$0xff] }
 0x63d   :  { %5366 = vrot.lane.b32.xlu1 %v5305_v0, %s8953_s25 }
 0x63e   :  { %5820 = vrot.lane.b32.xlu0 %v5305_v0, %s8951_s30 }
 0x641   :  { %5878 = vrot.lane.b32.xlu1 %v5789_v24, %s8951_s30  ;;  %v5389_v24 = vpop.permute.xlu0 %5388 }
 0x645   :  { %5874 = vrot.lane.b32.xlu1 %v5787_v23, %s8951_s30  ;;  %v8195_v23 = vld [vmem:[%s13774_s7 + $0x98] sm:$0xff] }
 0x649   :  { %5870 = vrot.lane.b32.xlu1 %v5785_v38, %s8951_s30 }
 0x64d   :  { %5866 = vrot.lane.b32.xlu1 %v5783_v3, %s8951_s30  ;;  %v8196_v3 = vld [vmem:[%s13774_s7 + $0xa0] sm:$0xff] }
 0x651   :  { %5862 = vrot.lane.b32.xlu1 %v5781_v43, %s8951_s30  ;;  %v5761_v43 = vld [vmem:[%s13773_s6 + $0x20] sm:$0xff] }
 0x655   :  { %5858 = vrot.lane.b32.xlu1 %v5779_v27, %s8951_s30  ;;  %v8197_v27 = vld [vmem:[%s13774_s7 + $0xa8] sm:$0xff] }
 0x659   :  { %5854 = vrot.lane.b32.xlu1 %v5777_v19, %s8951_s30 }
 0x65d   :  { %5850 = vrot.lane.b32.xlu1 %v5775_v44, %s8951_s30  ;;  %v8198_v44 = vld [vmem:[%s13774_s7 + $0xb0] sm:$0xff] }
 0x661   :  { %5846 = vrot.lane.b32.xlu1 %v5773_v33, %s8951_s30 }
 0x665   :  { %5842 = vrot.lane.b32.xlu1 %v5771_v55, %s8951_s30 }
 0x669   :  { %5838 = vrot.lane.b32.xlu1 %v5769_v29, %s8951_s30  ;;  %v8216_v29 = vld [vmem:[%s13774_s7 + $0xc0] sm:$0xff] }
 0x66d   :  { %5834 = vrot.lane.b32.xlu1 %v5767_v13, %s8951_s30 }
 0x671   :  { %5830 = vrot.lane.b32.xlu1 %v5765_v20, %s8951_s30 }
 0x675   :  { %5826 = vrot.lane.b32.xlu1 %v5763_v49, %s8951_s30 }
 0x677   :  { %v5423_v11 = vpop.permute.xlu1 %5422 }
 0x678   :  { %v5438_v32 = vsel %vm3090_vm6, %v12710_v25, %v5423_v11  ;;  %5495 = vmatprep.subr.mxu1 %v5423_v11  ;;  %v5385_v25 = vpop.permute.xlu0 %5384 }
 0x679   :  { %5822 = vrot.lane.b32.xlu1 %v5761_v43, %s8951_s30 }
 0x67b   :  { %v5419_v9 = vpop.permute.xlu1 %5418 }
 0x67c   :  { %v5437_v36 = vsel %vm3090_vm6, %v12716_v34, %v5419_v9  ;;  %v8199_v34 = vld [vmem:[%s13774_s7 + $0xb8] sm:$0xff] }
 0x67f   :  { %v5415_v53 = vpop.permute.xlu1 %5414 }
 0x680   :  { %v5436_v0 = vsel %vm3090_vm6, %v12726_v56, %v5415_v53 }
 0x683   :  { %v5411_v48 = vpop.permute.xlu1 %5410 }
 0x684   :  { %v5435_v33 = vsel %vm3090_vm6, %v12734_v45, %v5411_v48 }
 0x687   :  { %v5407_v40 = vpop.permute.xlu1 %5406 }
 0x688   :  { %v5434_v56 = vsel %vm3090_vm6, %v12748_v28, %v5407_v40 }
 0x68b   :  { %v5403_v38 = vpop.permute.xlu1 %5402 }
 0x68f   :  { %v5399_v19 = vpop.permute.xlu1 %5398 }
 0x693   :  { %v5395_v55 = vpop.permute.xlu1 %5394 }
 0x694   :  { %v5431_v45 = vsel %vm3090_vm6, %v12800_v60, %v5395_v55 }
 0x69c   :  { %v8604_v39 = vpop.f32.mrf.mxu1 }
 0x69d   :  { %v8568_v21 = vpop.f32.mrf.mxu0 }
 0x69e   :  { %v4687_v54 = vpop.f32.mrf.mxu1 }
 0x69f   :  { %8176 = vmatmul.mubr.msk.f32.vlgmr.msra.gmra.mxu0 %vm4891_vm8, %v4687_v54  ;;  %v4519_v15 = vpop.f32.mrf.mxu0  ;;  %v5391_v54 = vpop.permute.xlu1 %5390 }
 0x6a0   :  { %8615 = vmatpush3.msra.mxu0 %v12314_v1  ;;  %4986 = vmatprep.mubr.f32.mxu0 %v13887_v50  ;;  %v8607_v62 = vpop.f32.mrf.mxu1 }
 0x6a1   :  { %8616 = vmatprep.subr.mxu0 %v12316_v51  ;;  %8184 = vmatmul.mubr.msk.f32.vlgmr.msra.gmra.mxu1 %vm4891_vm8, %v4519_v15  ;;  %v5432_v15 = vsel %vm3090_vm6, %v12776_v22, %v5399_v19 }
 0x6a2   :  { %8617 = vmatpush3.msra.mxu0 %v12316_v51  ;;  %5123 = vmatprep.mubr.f32.mxu1 %v13887_v50  ;;  %v4697_v58 = vpop.f32.mrf.mxu1 }
 0x6a3   :  { %8618 = vmatprep.subr.mxu0 %v12326_v26  ;;  %8177 = vmatmul.mubr.msk.f32.gmra.mxu0 %vm4891_vm8, %v8604_v39  ;;  %v8571_v12 = vpop.f32.mrf.mxu0  ;;  %v5381_v39 = vpop.permute.xlu0 %5380 }
 0x6a4   :  { %8619 = vmatpush3.msra.mxu0 %v12326_v26  ;;  %4992 = vmatprep.mubr.f32.mxu0 %v13887_v50  ;;  %v8610_v42 = vpop.f32.mrf.mxu1 }
 0x6a5   :  { %8620 = vmatprep.subr.mxu0 %v12334_v4  ;;  %8185 = vmatmul.mubr.msk.f32.gmra.mxu1 %vm4891_vm8, %v8568_v21  ;;  %v4529_v35 = vpop.f32.mrf.mxu0  ;;  %v5433_v21 = vsel %vm3090_vm6, %v12762_v17, %v5403_v38 }
 0x6a6   :  { %8621 = vmatpush3.msra.mxu0 %v12334_v4  ;;  %5129 = vmatprep.mubr.f32.mxu1 %v13887_v50  ;;  %v4707_v14 = vpop.f32.mrf.mxu1 }
 0x6a7   :  { %8622 = vmatprep.subr.mxu0 %v12342_v6  ;;  %8178 = vmatmul.mubr.msk.f32.gmra.mxu0 %vm4891_vm8, %v4697_v58  ;;  %v8574_v46 = vpop.f32.mrf.mxu0  ;;  %v5430_v58 = vsel %vm3090_vm6, %v5389_v24, %v5391_v54 }
 0x6a8   :  { %8623 = vmatpush3.msra.mxu0 %v12342_v6  ;;  %4998 = vmatprep.mubr.f32.mxu0 %v13887_v50  ;;  %v8613_v16 = vpop.f32.mrf.mxu1 }
 0x6a9   :  { %8624 = vmatprep.subr.mxu0 %v12354_v57  ;;  %8186 = vmatmul.mubr.msk.f32.gmra.mxu1 %vm4891_vm8, %v4529_v35  ;;  %v4539_v47 = vpop.f32.mrf.mxu0  ;;  %v8217_v35 = vld [vmem:[%s13774_s7 + $0xc8] sm:$0xff] }
 0x6aa   :  { %8625 = vmatpush3.msra.mxu0 %v12354_v57  ;;  %5135 = vmatprep.mubr.f32.mxu1 %v13887_v50  ;;  %v4717_v37 = vpop.f32.mrf.mxu1 }
 0x6ab   :  { %8626 = vmatprep.subr.mxu0 %v12362_v18  ;;  %8179 = vmatmul.mubr.msk.f32.gmra.mxu0 %vm4891_vm8, %v8607_v62  ;;  %v8577_v61 = vpop.f32.mrf.mxu0  ;;  %v5387_v62 = vpop.permute.xlu1 %5386 }
 0x6ac   :  { %8627 = vmatpush3.msra.mxu0 %v12362_v18  ;;  %5004 = vmatprep.mubr.f32.mxu0 %v13887_v50 }
 0x6ad   :  { %8628 = vmatprep.subr.mxu0 %v12370_v63  ;;  %8187 = vmatmul.mubr.msk.f32.gmra.mxu1 %vm4891_vm8, %v8571_v12  ;;  %v4549_v7 = vpop.f32.mrf.mxu0  ;;  %v5377_v12 = vpop.permute.xlu0 %5376 }
 0x6ae   :  { %8629 = vmatpush3.msra.mxu0 %v12370_v63  ;;  %5141 = vmatprep.mubr.f32.mxu1 %v13887_v50 }
 0x6af   :  { %8630 = vmatprep.subr.mxu0 %v12382_v30  ;;  %8180 = vmatmul.mubr.msk.f32.gmra.mxu0 %vm4891_vm8, %v4707_v14  ;;  %v5383_v28 = vpop.permute.xlu1 %5382  ;;  %v8219_v14 = vld [vmem:[%s13774_s7 + $0xd8] sm:$0xff] }
 0x6b0   :  { %8631 = vmatpush3.msra.mxu0 %v12382_v30  ;;  %5010 = vmatprep.mubr.f32.mxu0 %v13887_v50 }
 0x6b1   :  { %8632 = vmatprep.subr.mxu0 %v12388_v10  ;;  %8188 = vmatmul.mubr.msk.f32.gmra.mxu1 %vm4891_vm8, %v4539_v47  ;;  %v5373_v11 = vpop.permute.xlu0 %5372  ;;  %v8220_v47 = vld [vmem:[%s13774_s7 + $0xe0] sm:$0xff] }
 0x6b2   :  { %8633 = vmatpush3.msra.mxu0 %v12388_v10  ;;  %5147 = vmatprep.mubr.f32.mxu1 %v13887_v50 }
 0x6b3   :  { %8634 = vmatprep.subr.mxu0 %v12394_v31  ;;  %8181 = vmatmul.mubr.msk.f32.gmra.mxu0 %vm4891_vm8, %v8610_v42  ;;  %v8218_v42 = vld [vmem:[%s13774_s7 + $0xd0] sm:$0xff]  ;;  %v5379_v17 = vpop.permute.xlu1 %5378 }
 0x6b4   :  { %8635 = vmatpush3.msra.mxu0 %v12394_v31  ;;  %5016 = vmatprep.mubr.f32.mxu0 %v13887_v50  ;;  %v5427_v22 = vsel %vm3090_vm6, %v5377_v12, %v5379_v17 }
 0x6b5   :  { %8636 = vmatprep.subr.mxu0 %v12407_v52  ;;  %8189 = vmatmul.mubr.msk.f32.gmra.mxu1 %vm4891_vm8, %v8574_v46  ;;  %v5429_v46 = vsel %vm3090_vm6, %v5385_v25, %v5387_v62 }
 0x6b6   :  { %8637 = vmatpush3.msra.mxu0 %v12407_v52  ;;  %5153 = vmatprep.mubr.f32.mxu1 %v13887_v50 }
 0x6b7   :  { %8650 = vmatprep.subr.mxu0 %v12314_v1  ;;  %8182 = vmatmul.mubr.msk.f32.gmra.mxu0 %vm4891_vm8, %v4717_v37 }
 0x6b8   :  { %5022 = vmatprep.mubr.f32.mxu0 %v13887_v50  ;;  %5496 = vmatpush1.msra.mxu1 %v5438_v32 }
 0x6b9   :  { %8190 = vmatmul.mubr.msk.f32.gmra.mxu1 %vm4891_vm8, %v4549_v7  ;;  %5497 = vmatprep.subr.mxu1 %v5419_v9  ;;  %v5428_v9 = vsel %vm3090_vm6, %v5381_v39, %v5383_v28 }
 0x6ba   :  { %5159 = vmatprep.mubr.f32.mxu1 %v13887_v50  ;;  %5498 = vmatpush1.msra.mxu1 %v5437_v36 }
 0x6bb   :  { %8183 = vmatmul.mubr.msk.f32.gmra.mxu0 %vm4891_vm8, %v8613_v16  ;;  %5499 = vmatprep.subr.mxu1 %v5415_v53  ;;  %v5375_v16 = vpop.permute.xlu1 %5374 }
 0x6bc   :  { %8638 = vmatprep.mubr.msk.f32.mxu0 %vm123_vm0, %v8192_v59  ;;  %5500 = vmatpush1.msra.mxu1 %v5436_v0  ;;  %v5426_v13 = vsel %vm3090_vm6, %v5373_v11, %v5375_v16 }
 0x6bd   :  { %8191 = vmatmul.mubr.msk.f32.gmra.mxu1 %vm4891_vm8, %v8577_v61  ;;  %5501 = vmatprep.subr.mxu1 %v5411_v48  ;;  %v5369_v61 = vpop.permute.xlu0 %5368  ;;  %v8247_v48 = vld [vmem:[%s13774_s7 + $0x138] sm:$0xff] }
 0x6be   :  { %5557 = vmatprep.mubr.f32.mxu1 %v13887_v50  ;;  %5502 = vmatpush1.msra.mxu1 %v5435_v33 }
 0x6bf   :  { %8639 = vmatmul.mubr.msk.f32.vlgmr.msra.gmra.mxu0 %vm123_vm0, %v8193_v8  ;;  %5503 = vmatprep.subr.mxu1 %v5407_v40  ;;  %v5371_v53 = vpop.permute.xlu1 %5370 }
 0x6c0   :  { %8651 = vmatpush3.msra.mxu0 %v12314_v1  ;;  %8641 = vmatprep.mubr.msk.f32.mxu0 %vm123_vm0, %v8194_v5  ;;  %v5425_v37 = vsel %vm3090_vm6, %v5369_v61, %v5371_v53 }
 0x6c1   :  { %8652 = vmatprep.subr.mxu0 %v12316_v51  ;;  %5504 = vmatpush1.msra.mxu1 %v5434_v56 }
 0x6c2   :  { %8653 = vmatpush3.msra.mxu0 %v12316_v51  ;;  %5505 = vmatprep.subr.mxu1 %v5403_v38 }
 0x6c3   :  { %8654 = vmatprep.subr.mxu0 %v12326_v26  ;;  %8642 = vmatmul.mubr.msk.f32.gmra.mxu0 %vm123_vm0, %v8195_v23  ;;  %v5367_v7 = vpop.permute.xlu1 %5366 }
 0x6c4   :  { %8655 = vmatpush3.msra.mxu0 %v12326_v26  ;;  %8644 = vmatprep.mubr.msk.f32.mxu0 %vm123_vm0, %v8196_v3 }
 0x6c5   :  { %8656 = vmatprep.subr.mxu0 %v12334_v4  ;;  %5506 = vmatpush1.msra.mxu1 %v5433_v21 }
 0x6c6   :  { %8657 = vmatpush3.msra.mxu0 %v12334_v4  ;;  %5507 = vmatprep.subr.mxu1 %v5399_v19 }
 0x6c7   :  { %8658 = vmatprep.subr.mxu0 %v12342_v6  ;;  %8645 = vmatmul.mubr.msk.f32.gmra.mxu0 %vm123_vm0, %v8197_v27  ;;  %v12942_v32 = vpop.permute.xlu1 %5878 }
 0x6c8   :  { %8659 = vmatpush3.msra.mxu0 %v12342_v6  ;;  %8647 = vmatprep.mubr.msk.f32.mxu0 %vm123_vm0, %v8198_v44 }
 0x6c9   :  { %8660 = vmatprep.subr.mxu0 %v12354_v57  ;;  %5508 = vmatpush1.msra.mxu1 %v5432_v15 }
 0x6ca   :  { %8661 = vmatpush3.msra.mxu0 %v12354_v57  ;;  %5509 = vmatprep.subr.mxu1 %v5395_v55 }
 0x6cb   :  { %8662 = vmatprep.subr.mxu0 %v12362_v18  ;;  %8648 = vmatmul.mubr.msk.f32.gmra.mxu0 %vm123_vm0, %v8199_v34  ;;  %v12984_v60 = vpop.permute.xlu1 %5874 }
 0x6cc   :  { %8663 = vmatpush3.msra.mxu0 %v12362_v18  ;;  %8674 = vmatprep.mubr.msk.f32.mxu0 %vm123_vm0, %v8216_v29 }
 0x6cd   :  { %8664 = vmatprep.subr.mxu0 %v12370_v63  ;;  %5510 = vmatpush1.msra.mxu1 %v5431_v45 }
 0x6ce   :  { %8665 = vmatpush3.msra.mxu0 %v12370_v63  ;;  %5511 = vmatprep.subr.mxu1 %v5391_v54 }
 0x6cf   :  { %8666 = vmatprep.subr.mxu0 %v12382_v30  ;;  %5512 = vmatpush1.msra.mxu1 %v5430_v58  ;;  %v12988_v8 = vpop.permute.xlu1 %5870 }
 0x6d0   :  { %8667 = vmatpush3.msra.mxu0 %v12382_v30  ;;  %5513 = vmatprep.subr.mxu1 %v5387_v62 }
 0x6d1   :  { %8668 = vmatprep.subr.mxu0 %v12388_v10  ;;  %5514 = vmatpush1.msra.mxu1 %v5429_v46 }
 0x6d2   :  { %8669 = vmatpush3.msra.mxu0 %v12388_v10  ;;  %5515 = vmatprep.subr.mxu1 %v5383_v28 }
 0x6d3   :  { %8670 = vmatprep.subr.mxu0 %v12394_v31  ;;  %5516 = vmatpush1.msra.mxu1 %v5428_v9  ;;  %v12992_v5 = vpop.permute.xlu1 %5866 }
 0x6d4   :  { %8671 = vmatpush3.msra.mxu0 %v12394_v31  ;;  %5517 = vmatprep.subr.mxu1 %v5379_v17 }
 0x6d5   :  { %8672 = vmatprep.subr.mxu0 %v12407_v52  ;;  %5518 = vmatpush1.msra.mxu1 %v5427_v22 }
 0x6d6   :  { %8673 = vmatpush3.msra.mxu0 %v12407_v52  ;;  %5519 = vmatprep.subr.mxu1 %v5375_v16 }
 0x6d7   :  { %8686 = vmatprep.subr.mxu0 %v12314_v1  ;;  %8675 = vmatmul.mubr.msk.f32.vlgmr.msra.gmra.mxu0 %vm123_vm0, %v8217_v35  ;;  %v12996_v0 = vpop.permute.xlu1 %5862 }
 0x6d8   :  { %8687 = vmatpush3.msra.mxu0 %v12314_v1  ;;  %8677 = vmatprep.mubr.msk.f32.mxu0 %vm123_vm0, %v8218_v42  ;;  %v8221_v1 = vld [vmem:[%s13774_s7 + $0xe8] sm:$0xff] }
 0x6d9   :  { %8688 = vmatprep.subr.mxu0 %v12316_v51  ;;  %5520 = vmatpush1.msra.mxu1 %v5426_v13 }
 0x6da   :  { %8689 = vmatpush3.msra.mxu0 %v12316_v51  ;;  %v8222_v51 = vld [vmem:[%s13774_s7 + $0xf0] sm:$0xff]  ;;  %5521 = vmatprep.subr.mxu1 %v5371_v53 }
 0x6db   :  { %8690 = vmatprep.subr.mxu0 %v12326_v26  ;;  %8678 = vmatmul.mubr.msk.f32.gmra.mxu0 %vm123_vm0, %v8219_v14  ;;  %v13002_v27 = vpop.permute.xlu1 %5858 }
 0x6dc   :  { %8691 = vmatpush3.msra.mxu0 %v12326_v26  ;;  %8680 = vmatprep.mubr.msk.f32.mxu0 %vm123_vm0, %v8220_v47  ;;  %v8223_v26 = vld [vmem:[%s13774_s7 + $0xf8] sm:$0xff] }
 0x6dd   :  { %8692 = vmatprep.subr.mxu0 %v12334_v4  ;;  %5522 = vmatpush1.msra.mxu1 %v5425_v37 }
 0x6de   :  { %8693 = vmatpush3.msra.mxu0 %v12334_v4  ;;  %v8240_v4 = vld [vmem:[%s13774_s7 + $0x100] sm:$0xff]  ;;  %5523 = vmatprep.subr.mxu1 %v5367_v7 }
 0x6df   :  { %8694 = vmatprep.subr.mxu0 %v12342_v6  ;;  %8681 = vmatmul.mubr.msk.f32.gmra.mxu0 %vm123_vm0, %v8221_v1  ;;  %v13012_v54 = vpop.permute.xlu1 %5854 }
 0x6e0   :  { %8695 = vmatpush3.msra.mxu0 %v12342_v6  ;;  %8683 = vmatprep.mubr.msk.f32.mxu0 %vm123_vm0, %v8222_v51  ;;  %v5365_v6 = vpop.permute.xlu0 %5364 }
 0x6e1   :  { %8696 = vmatprep.subr.mxu0 %v12354_v57 }
 0x6e2   :  { %8697 = vmatpush3.msra.mxu0 %v12354_v57  ;;  %v5424_v57 = vsel %vm3090_vm6, %v5365_v6, %v5367_v7 }
 0x6e3   :  { %8698 = vmatprep.subr.mxu0 %v12362_v18  ;;  %8684 = vmatmul.mubr.msk.f32.gmra.mxu0 %vm123_vm0, %v8223_v26  ;;  %v13020_v11 = vpop.permute.xlu1 %5850 }
 0x6e4   :  { %8699 = vmatpush3.msra.mxu0 %v12362_v18  ;;  %8710 = vmatprep.mubr.msk.f32.mxu0 %vm123_vm0, %v8240_v4  ;;  %v8241_v18 = vld [vmem:[%s13774_s7 + $0x108] sm:$0xff]  ;;  %v12980_v59 = vpop.permute.xlu0 %5876 }
 0x6e5   :  { %8700 = vmatprep.subr.mxu0 %v12370_v63  ;;  %5524 = vmatpush1.msra.mxu1 %v5424_v57 }
 0x6e6   :  { %8701 = vmatpush3.msra.mxu0 %v12370_v63  ;;  %5951 = vmatprep.subr.mxu1 %v12942_v32  ;;  %v8242_v63 = vld [vmem:[%s13774_s7 + $0x110] sm:$0xff] }
 0x6e7   :  { %8702 = vmatprep.subr.mxu0 %v12382_v30  ;;  %v13030_v53 = vpop.permute.xlu1 %5846 }
 0x6e8   :  { %8703 = vmatpush3.msra.mxu0 %v12382_v30  ;;  %v8243_v30 = vld [vmem:[%s13774_s7 + $0x118] sm:$0xff]  ;;  %v12982_v20 = vpop.permute.xlu0 %5872 }
 0x6e9   :  { %8704 = vmatprep.subr.mxu0 %v12388_v10 }
 0x6ea   :  { %8705 = vmatpush3.msra.mxu0 %v12388_v10  ;;  %v8244_v10 = vld [vmem:[%s13774_s7 + $0x120] sm:$0xff] }
 0x6eb   :  { %8706 = vmatprep.subr.mxu0 %v12394_v31 }
 0x6ec   :  { %8707 = vmatpush3.msra.mxu0 %v12394_v31  ;;  %v8245_v31 = vld [vmem:[%s13774_s7 + $0x128] sm:$0xff]  ;;  %v12986_v36 = vpop.permute.xlu0 %5868 }
 0x6ed   :  { %8708 = vmatprep.subr.mxu0 %v12407_v52 }
 0x6ee   :  { %8709 = vmatpush3.msra.mxu0 %v12407_v52  ;;  %v8246_v52 = vld [vmem:[%s13774_s7 + $0x130] sm:$0xff] }
 0x6ef   :  { %8711 = vmatmul.mubr.msk.f32.vlgmr.msra.gmra.mxu0 %vm123_vm0, %v8241_v18  ;;  %6471 = vmatprep.subr.mxu0 %v13887_v50 }
 0x6f0   :  { %8713 = vmatprep.mubr.msk.f32.mxu0 %vm123_vm0, %v8242_v63  ;;  %v12990_v40 = vpop.permute.xlu0 %5864 }
 0x6f3   :  { %8714 = vmatmul.mubr.msk.f32.gmra.mxu0 %vm123_vm0, %v8243_v30 }
 0x6f4   :  { %8716 = vmatprep.mubr.msk.f32.mxu0 %vm123_vm0, %v8244_v10  ;;  %v12994_v49 = vpop.permute.xlu0 %5860 }
 0x6f7   :  { %8717 = vmatmul.mubr.msk.f32.gmra.mxu0 %vm123_vm0, %v8245_v31  ;;  %v5843_v31 = vpop.permute.xlu1 %5842 }
 0x6f8   :  { %8719 = vmatprep.mubr.msk.f32.mxu0 %vm123_vm0, %v8246_v52  ;;  %v13000_v43 = vpop.permute.xlu0 %5856 }
 0x6fb   :  { %8720 = vmatmul.mubr.msk.f32.gmra.mxu0 %vm123_vm0, %v8247_v48 }
 0x6fc   :  { %v13010_v21 = vpop.permute.xlu0 %5852 }
 0x700   :  { %v13018_v46 = vpop.permute.xlu0 %5848 }
 0x704   :  { %v13028_v26 = vpop.permute.xlu0 %5844 }
 0x708   :  { %v5841_v10 = vpop.permute.xlu0 %5840 }
 0x75f   :  { %v4982_v24 = vpop.f32.mrf.mxu0 }
 0x761   :  { %v4984_v23 = vpop.f32.mrf.mxu0  ;;  %v5119_v38 = vpop.f32.mrf.mxu1 }
 0x762   :  { %v12998_v3 = vadd.f32 %v5119_v38, %v4982_v24 }
 0x763   :  { %v4988_v19 = vpop.f32.mrf.mxu0  ;;  %v5121_v44 = vpop.f32.mrf.mxu1 }
 0x764   :  { %v13004_v25 = vadd.f32 %v5121_v44, %v4984_v23 }
 0x765   :  { %v4990_v33 = vpop.f32.mrf.mxu0  ;;  %v5125_v34 = vpop.f32.mrf.mxu1 }
 0x766   :  { %v13006_v55 = vadd.f32 %v5125_v34, %v4988_v19  ;;  %v5837_v34 = vpop.permute.xlu0 %5836 }
 0x767   :  { %v4994_v29 = vpop.f32.mrf.mxu0  ;;  %v5127_v56 = vpop.f32.mrf.mxu1 }
 0x768   :  { %v13008_v39 = vadd.f32 %v5127_v56, %v4990_v33  ;;  %v5839_v56 = vpop.permute.xlu1 %5838 }
 0x769   :  { %v4996_v15 = vpop.f32.mrf.mxu0  ;;  %v5131_v45 = vpop.f32.mrf.mxu1 }
 0x76a   :  { %v13014_v62 = vadd.f32 %v5131_v45, %v4994_v29  ;;  %v5893_v45 = vsel %vm1686_vm4, %v12982_v20, %v12984_v60  ;;  %v5891_v20 = vsel %vm1686_vm4, %v12990_v40, %v12992_v5 }
 0x76b   :  { %v5000_v12 = vpop.f32.mrf.mxu0  ;;  %v5133_v58 = vpop.f32.mrf.mxu1 }
 0x76c   :  { %v13016_v35 = vadd.f32 %v5133_v58, %v4996_v15  ;;  %v5894_v15 = vsel %vm1686_vm4, %v12980_v59, %v12942_v32  ;;  %v5892_v58 = vsel %vm1686_vm4, %v12986_v36, %v12988_v8  ;;  %v5833_v32 = vpop.permute.xlu0 %5832  ;;  %v5835_v59 = vpop.permute.xlu1 %5834  ;;  %v5890_v36 = vsel %vm1686_vm4, %v12994_v49, %v12996_v0 }
 0x76d   :  { %v5002_v28 = vpop.f32.mrf.mxu0  ;;  %v5137_v42 = vpop.f32.mrf.mxu1  ;;  %v5888_v49 = vsel %vm1686_vm4, %v13010_v21, %v13012_v54 }
 0x76e   :  { %v13022_v14 = vadd.f32 %v5137_v42, %v5000_v12  ;;  %v5885_v42 = vsel %vm1686_vm4, %v5841_v10, %v5843_v31  ;;  %v6240_v10 = vld [vmem:[%s13773_s6 + $0x2c8] sm:$0xff] }
 0x76f   :  { %v5006_v17 = vpop.f32.mrf.mxu0  ;;  %v5139_v47 = vpop.f32.mrf.mxu1 }
 0x770   :  { %v13024_v9 = vadd.f32 %v5139_v47, %v5002_v28  ;;  %v5829_v40 = vpop.permute.xlu0 %5828  ;;  %v5831_v28 = vpop.permute.xlu1 %5830 }
 0x771   :  { %v5008_v1 = vpop.f32.mrf.mxu0  ;;  %v5143_v16 = vpop.f32.mrf.mxu1  ;;  %v5882_v47 = vsel %vm1686_vm4, %v5829_v40, %v5831_v28  ;;  %v6225_v40 = vld [vmem:[%s13773_s6 + $0x110] sm:$0xff] }
 0x772   :  { %v13026_v51 = vadd.f32 %v5143_v16, %v5006_v17  ;;  %v5883_v17 = vsel %vm1686_vm4, %v5833_v32, %v5835_v59  ;;  %v6230_v32 = vld [vmem:[%s13773_s6 + $0x1b0] sm:$0xff] }
 0x773   :  { %v5012_v61 = vpop.f32.mrf.mxu0  ;;  %v5145_v22 = vpop.f32.mrf.mxu1 }
 0x774   :  { %v13032_v4 = vadd.f32 %v5145_v22, %v5008_v1  ;;  %v5825_v21 = vpop.permute.xlu0 %5824 }
 0x775   :  { %v5014_v13 = vpop.f32.mrf.mxu0  ;;  %v5149_v6 = vpop.f32.mrf.mxu1 }
 0x776   :  { %v13034_v37 = vadd.f32 %v5149_v6, %v5012_v61  ;;  %v6244_v6 = vld [vmem:[%s13773_s6 + $0x338] sm:$0xff] }
 0x777   :  { %v5018_v7 = vpop.f32.mrf.mxu0  ;;  %v5151_v57 = vpop.f32.mrf.mxu1 }
 0x778   :  { %v13036_v18 = vadd.f32 %v5151_v57, %v5014_v13  ;;  %v5821_v1 = vpop.permute.xlu0 %5820  ;;  %v6245_v13 = vld [vmem:[%s13773_s6 + $0x340] sm:$0xff]  ;;  %v6243_v57 = vld [vmem:[%s13773_s6 + $0x308] sm:$0xff] }
 0x779   :  { %v5020_v63 = vpop.f32.mrf.mxu0  ;;  %v5155_v30 = vpop.f32.mrf.mxu1 }
 0x77a   :  { %v13038_v52 = vadd.f32 %v5155_v30, %v5018_v7  ;;  %v6241_v30 = vld [vmem:[%s13773_s6 + $0x2d0] sm:$0xff] }
 0x77b   :  { %v5024_v48 = vpop.f32.mrf.mxu0  ;;  %v5157_v24 = vpop.f32.mrf.mxu1 }
 0x77c   :  { %v13040_v23 = vadd.f32 %v5157_v24, %v5020_v63  ;;  %v6242_v63 = vld [vmem:[%s13773_s6 + $0x300] sm:$0xff]  ;;  %v6238_v24 = vld [vmem:[%s13773_s6 + $0x290] sm:$0xff] }
 0x77d   :  { %v13042_v38 = vpop.f32.mrf.mxu0  ;;  %v5161_v19 = vpop.f32.mrf.mxu1 }
 0x77e   :  { %v13044_v44 = vadd.f32 %v5161_v19, %v5024_v48  ;;  %v6239_v48 = vld [vmem:[%s13773_s6 + $0x298] sm:$0xff]  ;;  %v6237_v19 = vld [vmem:[%s13773_s6 + $0x260] sm:$0xff] }
 0x77f   :  { %v8640_v33 = vpop.f32.mrf.mxu0 }
 0x781   :  { %v5265_v29 = vpop.f32.mrf.mxu0 }
 0x782   :  { %8208 = vmatmul.mubr.msk.f32.vlgmr.msra.gmra.mxu1 %vm4891_vm8, %v5265_v29  ;;  %v6235_v29 = vld [vmem:[%s13773_s6 + $0x228] sm:$0xff] }
 0x783   :  { %5563 = vmatprep.mubr.f32.mxu1 %v13887_v50  ;;  %5952 = vmatpush1.msra.mxu1 %v5894_v15  ;;  %v8643_v12 = vpop.f32.mrf.mxu0  ;;  %v6233_v15 = vld [vmem:[%s13773_s6 + $0x1f0] sm:$0xff] }
 0x784   :  { %5953 = vmatprep.subr.mxu1 %v12984_v60 }
 0x785   :  { %5954 = vmatpush1.msra.mxu1 %v5893_v45  ;;  %v5275_v60 = vpop.f32.mrf.mxu0  ;;  %v6232_v45 = vld [vmem:[%s13773_s6 + $0x1e8] sm:$0xff] }
 0x786   :  { %8209 = vmatmul.mubr.msk.f32.gmra.mxu1 %vm4891_vm8, %v8640_v33  ;;  %5955 = vmatprep.subr.mxu1 %v12988_v8  ;;  %v5889_v8 = vsel %vm1686_vm4, %v13000_v43, %v13002_v27  ;;  %v6236_v33 = vld [vmem:[%s13773_s6 + $0x258] sm:$0xff] }
 0x787   :  { %5569 = vmatprep.mubr.f32.mxu1 %v13887_v50  ;;  %5956 = vmatpush1.msra.mxu1 %v5892_v58  ;;  %v6231_v58 = vld [vmem:[%s13773_s6 + $0x1b8] sm:$0xff] }
 0x788   :  { %5957 = vmatprep.subr.mxu1 %v12992_v5  ;;  %v8646_v5 = vpop.f32.mrf.mxu0 }
 0x789   :  { %5958 = vmatpush1.msra.mxu1 %v5891_v20  ;;  %v6228_v20 = vld [vmem:[%s13773_s6 + $0x178] sm:$0xff] }
 0x78a   :  { %8210 = vmatmul.mubr.msk.f32.gmra.mxu1 %vm4891_vm8, %v5275_v60  ;;  %5959 = vmatprep.subr.mxu1 %v12996_v0  ;;  %v5887_v0 = vsel %vm1686_vm4, %v13018_v46, %v13020_v11  ;;  %v5285_v43 = vpop.f32.mrf.mxu0 }
 0x78b   :  { %5575 = vmatprep.mubr.f32.mxu1 %v13887_v50  ;;  %5960 = vmatpush1.msra.mxu1 %v5890_v36  ;;  %v6227_v36 = vld [vmem:[%s13773_s6 + $0x148] sm:$0xff] }
 0x78c   :  { %5961 = vmatprep.subr.mxu1 %v13002_v27  ;;  %v5886_v27 = vsel %vm1686_vm4, %v13028_v26, %v13030_v53  ;;  %v8649_v46 = vpop.f32.mrf.mxu0 }
 0x78d   :  { %5962 = vmatpush1.msra.mxu1 %v5889_v8  ;;  %v6226_v8 = vld [vmem:[%s13773_s6 + $0x140] sm:$0xff] }
 0x78e   :  { %8211 = vmatmul.mubr.msk.f32.gmra.mxu1 %vm4891_vm8, %v8643_v12  ;;  %5963 = vmatprep.subr.mxu1 %v13012_v54  ;;  %v5827_v54 = vpop.permute.xlu1 %5826  ;;  %v5295_v16 = vpop.f32.mrf.mxu0 }
 0x78f   :  { %5581 = vmatprep.mubr.f32.mxu1 %v13887_v50  ;;  %5964 = vmatpush1.msra.mxu1 %v5888_v49  ;;  %v5881_v22 = vsel %vm1686_vm4, %v5825_v21, %v5827_v54  ;;  %v6223_v49 = vld [vmem:[%s13773_s6 + $0xd8] sm:$0xff] }
 0x790   :  { %5965 = vmatprep.subr.mxu1 %v13020_v11  ;;  %v5884_v11 = vsel %vm1686_vm4, %v5837_v34, %v5839_v56 }
 0x791   :  { %5966 = vmatpush1.msra.mxu1 %v5887_v0  ;;  %v6222_v0 = vld [vmem:[%s13773_s6 + $0xd0] sm:$0xff] }
 0x792   :  { %8212 = vmatmul.mubr.msk.f32.gmra.mxu1 %vm4891_vm8, %v5285_v43  ;;  %5967 = vmatprep.subr.mxu1 %v13030_v53  ;;  %v5823_v61 = vpop.permute.xlu1 %5822  ;;  %v6221_v43 = vld [vmem:[%s13773_s6 + $0xa0] sm:$0xff] }
 0x793   :  { %5587 = vmatprep.mubr.f32.mxu1 %v13887_v50  ;;  %5968 = vmatpush1.msra.mxu1 %v5886_v27  ;;  %v5880_v26 = vsel %vm1686_vm4, %v5821_v1, %v5823_v61  ;;  %v6220_v27 = vld [vmem:[%s13773_s6 + $0x98] sm:$0xff] }
 0x794   :  { %5969 = vmatprep.subr.mxu1 %v5843_v31 }
 0x795   :  { %5970 = vmatpush1.msra.mxu1 %v5885_v42  ;;  %v6218_v42 = vld [vmem:[%s13773_s6 + $0x60] sm:$0xff] }
 0x796   :  { %8213 = vmatmul.mubr.msk.f32.gmra.mxu1 %vm4891_vm8, %v8646_v5  ;;  %5971 = vmatprep.subr.mxu1 %v5839_v56  ;;  %v6234_v56 = vld [vmem:[%s13773_s6 + $0x220] sm:$0xff]  ;;  %v6224_v5 = vld [vmem:[%s13773_s6 + $0x108] sm:$0xff] }
 0x797   :  { %5593 = vmatprep.mubr.f32.mxu1 %v13887_v50  ;;  %5972 = vmatpush1.msra.mxu1 %v5884_v11  ;;  %v8676_v53 = vpop.f32.mrf.mxu0  ;;  %v6216_v11 = vld [vmem:[%s13773_s6 + $0x28] sm:$0xff] }
 0x798   :  { %5973 = vmatprep.subr.mxu1 %v5835_v59  ;;  %v6229_v59 = vld [vmem:[%s13773_s6 + $0x180] sm:$0xff] }
 0x799   :  { %5974 = vmatpush1.msra.mxu1 %v5883_v17  ;;  %v5721_v7 = vpop.f32.mrf.mxu0 }
 0x79a   :  { %8214 = vmatmul.mubr.msk.f32.gmra.mxu1 %vm4891_vm8, %v5295_v16  ;;  %5975 = vmatprep.subr.mxu1 %v5831_v28 }
 0x79b   :  { %5599 = vmatprep.mubr.f32.mxu1 %v13887_v50  ;;  %5976 = vmatpush1.msra.mxu1 %v5882_v47  ;;  %v8679_v31 = vpop.f32.mrf.mxu0 }
 0x79c   :  { %5977 = vmatprep.subr.mxu1 %v5827_v54  ;;  %v6219_v54 = vld [vmem:[%s13773_s6 + $0x68] sm:$0xff] }
 0x79d   :  { %5978 = vmatpush1.msra.mxu1 %v5881_v22  ;;  %v5731_v34 = vpop.f32.mrf.mxu0 }
 0x79e   :  { %8215 = vmatmul.mubr.msk.f32.gmra.mxu1 %vm4891_vm8, %v8649_v46  ;;  %5979 = vmatprep.subr.mxu1 %v5823_v61  ;;  %v6217_v46 = vld [vmem:[%s13773_s6 + $0x30] sm:$0xff] }
 0x79f   :  { %5980 = vmatpush1.msra.mxu1 %v5880_v26  ;;  %6013 = vmatprep.mubr.f32.mxu1 %v13887_v50  ;;  %v8682_v12 = vpop.f32.mrf.mxu0 }
 0x7a0   :  { %6272 = vmatprep.subr.mxu1 %v6245_v13  ;;  %v6442_v13 = vld [vmem:[%s13775_s9 + $0x78] sm:$0xff] }
 0x7a1   :  { %v5741_v60 = vpop.f32.mrf.mxu0  ;;  %6472 = vmatpush1.msra.mxu0 %v6442_v13 }
 0x7a2   :  { %8232 = vmatmul.mubr.msk.f32.vlgmr.msra.gmra.mxu1 %vm4891_vm8, %v5721_v7  ;;  %v6441_v7 = vld [vmem:[%s13775_s9 + $0x70] sm:$0xff]  ;;  %6473 = vmatprep.subr.mxu0 %v13887_v50 }
 0x7a3   :  { %6019 = vmatprep.mubr.f32.mxu1 %v13887_v50  ;;  %6273 = vmatpush1.msra.mxu1 %v6244_v6  ;;  %v8685_v28 = vpop.f32.mrf.mxu0  ;;  %v8287_v6 = vld [vmem:[%s13775_s9 + $0x118] sm:$0xff] }
 0x7a4   :  { %6274 = vmatprep.subr.mxu1 %v6243_v57  ;;  %v8286_v57 = vld [vmem:[%s13775_s9 + $0x110] sm:$0xff]  ;;  %6474 = vmatpush1.msra.mxu0 %v6441_v7 }
 0x7a5   :  { %6275 = vmatpush1.msra.mxu1 %v6242_v63  ;;  %v5751_v21 = vpop.f32.mrf.mxu0  ;;  %v6440_v63 = vld [vmem:[%s13775_s9 + $0x68] sm:$0xff]  ;;  %6475 = vmatprep.subr.mxu0 %v13887_v50 }
 0x7a6   :  { %8233 = vmatmul.mubr.msk.f32.gmra.mxu1 %vm4891_vm8, %v8676_v53  ;;  %6276 = vmatprep.subr.mxu1 %v6241_v30  ;;  %v8285_v30 = vld [vmem:[%s13775_s9 + $0x108] sm:$0xff] }
 0x7a7   :  { %6025 = vmatprep.mubr.f32.mxu1 %v13887_v50  ;;  %6277 = vmatpush1.msra.mxu1 %v6240_v10  ;;  %v6439_v10 = vld [vmem:[%s13775_s9 + $0x60] sm:$0xff] }
 0x7a8   :  { %6278 = vmatprep.subr.mxu1 %v6239_v48  ;;  %6476 = vmatpush1.msra.mxu0 %v6440_v63  ;;  %v6438_v48 = vld [vmem:[%s13775_s9 + $0x58] sm:$0xff] }
 0x7a9   :  { %6279 = vmatpush1.msra.mxu1 %v6238_v24  ;;  %6477 = vmatprep.subr.mxu0 %v13887_v50  ;;  %v8283_v24 = vld [vmem:[%s13775_s9 + $0xf8] sm:$0xff] }
 0x7aa   :  { %8234 = vmatmul.mubr.msk.f32.gmra.mxu1 %vm4891_vm8, %v5731_v34  ;;  %6280 = vmatprep.subr.mxu1 %v6237_v19  ;;  %v6437_v19 = vld [vmem:[%s13775_s9 + $0x50] sm:$0xff]  ;;  %v6436_v34 = vld [vmem:[%s13775_s9 + $0x48] sm:$0xff] }
 0x7ab   :  { %6031 = vmatprep.mubr.f32.mxu1 %v13887_v50  ;;  %6281 = vmatpush1.msra.mxu1 %v6236_v33  ;;  %v8282_v33 = vld [vmem:[%s13775_s9 + $0xf0] sm:$0xff] }
 0x7ac   :  { %6282 = vmatprep.subr.mxu1 %v6235_v29  ;;  %6478 = vmatpush1.msra.mxu0 %v6439_v10  ;;  %v8281_v29 = vld [vmem:[%s13775_s9 + $0xe8] sm:$0xff] }
 0x7ad   :  { %6283 = vmatpush1.msra.mxu1 %v6234_v56  ;;  %6479 = vmatprep.subr.mxu0 %v13887_v50  ;;  %v6435_v56 = vld [vmem:[%s13775_s9 + $0x40] sm:$0xff] }
 0x7ae   :  { %8235 = vmatmul.mubr.msk.f32.gmra.mxu1 %vm4891_vm8, %v8679_v31  ;;  %6284 = vmatprep.subr.mxu1 %v6233_v15  ;;  %v8284_v31 = vld [vmem:[%s13775_s9 + $0x100] sm:$0xff] }
 0x7af   :  { %6037 = vmatprep.mubr.f32.mxu1 %v13887_v50  ;;  %6285 = vmatpush1.msra.mxu1 %v6232_v45  ;;  %v8712_v17 = vpop.f32.mrf.mxu0  ;;  %v8280_v15 = vld [vmem:[%s13775_s9 + $0xe0] sm:$0xff]  ;;  %v6434_v45 = vld [vmem:[%s13775_s9 + $0x38] sm:$0xff] }
 0x7b0   :  { %6286 = vmatprep.subr.mxu1 %v6231_v58  ;;  %6480 = vmatpush1.msra.mxu0 %v6438_v48  ;;  %v6433_v58 = vld [vmem:[%s13775_s9 + $0x30] sm:$0xff] }
 0x7b1   :  { %6287 = vmatpush1.msra.mxu1 %v6230_v32  ;;  %v6177_v47 = vpop.f32.mrf.mxu0  ;;  %6481 = vmatprep.subr.mxu0 %v13887_v50  ;;  %v8278_v32 = vld [vmem:[%s13775_s9 + $0xd0] sm:$0xff] }
 0x7b2   :  { %8236 = vmatmul.mubr.msk.f32.gmra.mxu1 %vm4891_vm8, %v5741_v60  ;;  %6288 = vmatprep.subr.mxu1 %v6229_v59  ;;  %v6432_v59 = vld [vmem:[%s13775_s9 + $0x28] sm:$0xff]  ;;  %v6431_v60 = vld [vmem:[%s13775_s9 + $0x20] sm:$0xff] }
 0x7b3   :  { %6043 = vmatprep.mubr.f32.mxu1 %v13887_v50  ;;  %6289 = vmatpush1.msra.mxu1 %v6228_v20  ;;  %v8715_v1 = vpop.f32.mrf.mxu0  ;;  %v8277_v20 = vld [vmem:[%s13775_s9 + $0xc8] sm:$0xff] }
 0x7b4   :  { %6290 = vmatprep.subr.mxu1 %v6227_v36  ;;  %6482 = vmatpush1.msra.mxu0 %v6437_v19  ;;  %v8276_v36 = vld [vmem:[%s13775_s9 + $0xc0] sm:$0xff] }
 0x7b5   :  { %6291 = vmatpush1.msra.mxu1 %v6226_v8  ;;  %v6187_v16 = vpop.f32.mrf.mxu0  ;;  %6483 = vmatprep.subr.mxu0 %v13887_v50  ;;  %v6430_v8 = vld [vmem:[%s13775_s9 + $0x18] sm:$0xff] }
 0x7b6   :  { %8237 = vmatmul.mubr.msk.f32.gmra.mxu1 %vm4891_vm8, %v8682_v12  ;;  %6292 = vmatprep.subr.mxu1 %v6225_v40  ;;  %v8279_v12 = vld [vmem:[%s13775_s9 + $0xd8] sm:$0xff] }
 0x7b7   :  { %6049 = vmatprep.mubr.f32.mxu1 %v13887_v50  ;;  %6293 = vmatpush1.msra.mxu1 %v6224_v5  ;;  %v8718_v61 = vpop.f32.mrf.mxu0  ;;  %v8275_v40 = vld [vmem:[%s13775_s9 + $0xb8] sm:$0xff]  ;;  %v6429_v5 = vld [vmem:[%s13775_s9 + $0x10] sm:$0xff] }
 0x7b8   :  { %6294 = vmatprep.subr.mxu1 %v6223_v49  ;;  %6484 = vmatpush1.msra.mxu0 %v6436_v34  ;;  %v6428_v49 = vld [vmem:[%s13775_s9 + $0x8] sm:$0xff] }
 0x7b9   :  { %6295 = vmatpush1.msra.mxu1 %v6222_v0  ;;  %v6197_v22 = vpop.f32.mrf.mxu0  ;;  %6485 = vmatprep.subr.mxu0 %v13887_v50  ;;  %v8273_v0 = vld [vmem:[%s13775_s9 + $0xa8] sm:$0xff] }
 0x7ba   :  { %8238 = vmatmul.mubr.msk.f32.gmra.mxu1 %vm4891_vm8, %v5751_v21  ;;  %6296 = vmatprep.subr.mxu1 %v6221_v43  ;;  %v6427_v43 = vld [vmem:[%s13775_s9] sm:$0xff]  ;;  %v6446_v21 = vld [vmem:[%s13775_s9 + $0x98] sm:$0xff] }
 0x7bb   :  { %6055 = vmatprep.mubr.f32.mxu1 %v13887_v50  ;;  %6297 = vmatpush1.msra.mxu1 %v6220_v27  ;;  %v8721_v26 = vpop.f32.mrf.mxu0  ;;  %v8272_v27 = vld [vmem:[%s13775_s9 + $0xa0] sm:$0xff] }
 0x7bc   :  { %6298 = vmatprep.subr.mxu1 %v6219_v54  ;;  %6486 = vmatpush1.msra.mxu0 %v6435_v56  ;;  %v8291_v54 = vld [vmem:[%s13775_s9 + $0x138] sm:$0xff] }
 0x7bd   :  { %6299 = vmatpush1.msra.mxu1 %v6218_v42  ;;  %v6207_v53 = vpop.f32.mrf.mxu0  ;;  %6487 = vmatprep.subr.mxu0 %v13887_v50  ;;  %v6445_v42 = vld [vmem:[%s13775_s9 + $0x90] sm:$0xff] }
 0x7be   :  { %8239 = vmatmul.mubr.msk.f32.gmra.mxu1 %vm4891_vm8, %v8685_v28  ;;  %6300 = vmatprep.subr.mxu1 %v6217_v46  ;;  %v8274_v28 = vld [vmem:[%s13775_s9 + $0xb0] sm:$0xff] }
 0x7bf   :  { %6301 = vmatpush1.msra.mxu1 %v6216_v11  ;;  %6334 = vmatprep.mubr.f32.mxu1 %v13887_v50  ;;  %v8290_v46 = vld [vmem:[%s13775_s9 + $0x130] sm:$0xff]  ;;  %v6444_v11 = vld [vmem:[%s13775_s9 + $0x88] sm:$0xff] }
 0x7c0   :  { %6597 = vmatprep.subr.mxu1 %v13887_v50  ;;  %6488 = vmatpush1.msra.mxu0 %v6434_v45 }
 0x7c1   :  { %6489 = vmatprep.subr.mxu0 %v13887_v50 }
 0x7c2   :  { %8256 = vmatmul.mubr.msk.f32.vlgmr.msra.gmra.mxu1 %vm4891_vm8, %v6177_v47  ;;  %6490 = vmatpush1.msra.mxu0 %v6433_v58  ;;  %v6443_v47 = vld [vmem:[%s13775_s9 + $0x80] sm:$0xff] }
 0x7c3   :  { %6340 = vmatprep.mubr.f32.mxu1 %v13887_v50  ;;  %6598 = vmatpush1.msra.mxu1 %v8287_v6 }
 0x7c4   :  { %6599 = vmatprep.subr.mxu1 %v13887_v50  ;;  %6491 = vmatprep.subr.mxu0 %v13887_v50 }
 0x7c5   :  { %6600 = vmatpush1.msra.mxu1 %v8286_v57  ;;  %6492 = vmatpush1.msra.mxu0 %v6432_v59 }
 0x7c6   :  { %8257 = vmatmul.mubr.msk.f32.gmra.mxu1 %vm4891_vm8, %v8712_v17  ;;  %6601 = vmatprep.subr.mxu1 %v13887_v50  ;;  %v8289_v17 = vld [vmem:[%s13775_s9 + $0x128] sm:$0xff] }
 0x7c7   :  { %6346 = vmatprep.mubr.f32.mxu1 %v13887_v50  ;;  %6602 = vmatpush1.msra.mxu1 %v8285_v30 }
 0x7c8   :  { %6603 = vmatprep.subr.mxu1 %v13887_v50  ;;  %6493 = vmatprep.subr.mxu0 %v13887_v50 }
 0x7c9   :  { %6604 = vmatpush1.msra.mxu1 %v8284_v31  ;;  %6494 = vmatpush1.msra.mxu0 %v6431_v60 }
 0x7ca   :  { %8258 = vmatmul.mubr.msk.f32.gmra.mxu1 %vm4891_vm8, %v6187_v16  ;;  %6605 = vmatprep.subr.mxu1 %v13887_v50  ;;  %v13384_v16 = vpop.f32.mrf.mxu1 }
 0x7cb   :  { %6352 = vmatprep.mubr.f32.mxu1 %v13887_v50  ;;  %6606 = vmatpush1.msra.mxu1 %v8283_v24 }
 0x7cc   :  { %6607 = vmatprep.subr.mxu1 %v13887_v50  ;;  %6495 = vmatprep.subr.mxu0 %v13887_v50 }
 0x7cd   :  { %6608 = vmatpush1.msra.mxu1 %v8282_v33  ;;  %6496 = vmatpush1.msra.mxu0 %v6430_v8 }
 0x7ce   :  { %8259 = vmatmul.mubr.msk.f32.gmra.mxu1 %vm4891_vm8, %v8715_v1  ;;  %6609 = vmatprep.subr.mxu1 %v13887_v50  ;;  %v8288_v1 = vld [vmem:[%s13775_s9 + $0x120] sm:$0xff] }
 0x7cf   :  { %6358 = vmatprep.mubr.f32.mxu1 %v13887_v50  ;;  %6610 = vmatpush1.msra.mxu1 %v8281_v29 }
 0x7d0   :  { %6611 = vmatprep.subr.mxu1 %v13887_v50  ;;  %6497 = vmatprep.subr.mxu0 %v13887_v50 }
 0x7d1   :  { %6612 = vmatpush1.msra.mxu1 %v8280_v15  ;;  %6498 = vmatpush1.msra.mxu0 %v6429_v5 }
 0x7d2   :  { %8260 = vmatmul.mubr.msk.f32.gmra.mxu1 %vm4891_vm8, %v6197_v22  ;;  %6613 = vmatprep.subr.mxu1 %v13887_v50 }
 0x7d3   :  { %6364 = vmatprep.mubr.f32.mxu1 %v13887_v50  ;;  %6614 = vmatpush1.msra.mxu1 %v8279_v12 }
 0x7d4   :  { %6615 = vmatprep.subr.mxu1 %v13887_v50  ;;  %6499 = vmatprep.subr.mxu0 %v13887_v50 }
 0x7d5   :  { %6616 = vmatpush1.msra.mxu1 %v8278_v32  ;;  %6500 = vmatpush1.msra.mxu0 %v6428_v49 }
 0x7d6   :  { %8261 = vmatmul.mubr.msk.f32.gmra.mxu1 %vm4891_vm8, %v8718_v61  ;;  %6617 = vmatprep.subr.mxu1 %v13887_v50 }
 0x7d7   :  { %6370 = vmatprep.mubr.f32.mxu1 %v13887_v50  ;;  %6618 = vmatpush1.msra.mxu1 %v8277_v20 }
 0x7d8   :  { %6619 = vmatprep.subr.mxu1 %v13887_v50  ;;  %6501 = vmatprep.subr.mxu0 %v13887_v50 }
 0x7d9   :  { %6620 = vmatpush1.msra.mxu1 %v8276_v36  ;;  %6502 = vmatpush1.msra.mxu0 %v6427_v43  ;;  %v6399_v43 = vld [vmem:[%s13776_s8] sm:$0x3] }
 0x7da   :  { %8262 = vmatmul.mubr.msk.f32.gmra.mxu1 %vm4891_vm8, %v6207_v53  ;;  %6621 = vmatprep.subr.mxu1 %v13887_v50 }
 0x7db   :  { %6376 = vmatprep.mubr.f32.mxu1 %v13887_v50  ;;  %6622 = vmatpush1.msra.mxu1 %v8275_v40 }
 0x7dc   :  { %6623 = vmatprep.subr.mxu1 %v13887_v50  ;;  %6527 = vmatprep.subr.mxu0 %v13887_v50 }
 0x7dd   :  { %6624 = vmatpush1.msra.mxu1 %v8274_v28  ;;  %6528 = vmatpush2.msra.mxu0 %v6446_v21 }
 0x7de   :  { %8263 = vmatmul.mubr.msk.f32.gmra.mxu1 %vm4891_vm8, %v8721_v26  ;;  %6625 = vmatprep.subr.mxu1 %v13887_v50 }
 0x7df   :  { %6626 = vmatpush1.msra.mxu1 %v8273_v0  ;;  %6529 = vmatprep.subr.mxu0 %v13887_v50 }
 0x7e0   :  { %6627 = vmatprep.subr.mxu1 %v13887_v50  ;;  %6530 = vmatpush2.msra.mxu0 %v6445_v42  ;;  %v13888_v42 = vsub.s32 1, %v11538_v41 }
 0x7e1   :  { %6628 = vmatpush1.msra.mxu1 %v8272_v27  ;;  %6531 = vmatprep.subr.mxu0 %v13887_v50 }
 0x7e2   :  { %6653 = vmatprep.subr.mxu1 %v13887_v50  ;;  %6532 = vmatpush2.msra.mxu0 %v6444_v11 }
 0x7e3   :  { %6654 = vmatpush2.msra.mxu1 %v8291_v54  ;;  %6533 = vmatprep.subr.mxu0 %v13887_v50 }
 0x7e4   :  { %6655 = vmatprep.subr.mxu1 %v13887_v50  ;;  %6534 = vmatpush2.msra.mxu0 %v6443_v47 }
 0x7e5   :  { %6656 = vmatpush2.msra.mxu1 %v8290_v46  ;;  %v13423_v46 = vrot.slane %v6399_v43, %v13888_v42 }
 0x7e6   :  { %6657 = vmatprep.subr.mxu1 %v13887_v50 }
 0x7e7   :  { %6658 = vmatpush2.msra.mxu1 %v8289_v17 }
 0x7e8   :  { %6659 = vmatprep.subr.mxu1 %v13887_v50 }
 0x7e9   :  { %6660 = vmatpush2.msra.mxu1 %v8288_v1 }
 0x7ea   :  { %8766 = vmatprep.subr.mxu1 %v13887_v50 }
 0x842   :  { %v5559_v61 = vpop.f32.mrf.mxu1 }
 0x843   :  { %v5606_v28 = vadd.f32 %v5559_v61, %v12998_v3  ;;  %v13428_v3 = vrot.slane %v6399_v43, %v3442_v2 }
 0x844   :  { %v5561_v22 = vpop.f32.mrf.mxu1 }
 0x845   :  { %v5607_v0 = vadd.f32 %v5561_v22, %v13004_v25 }
 0x846   :  { %v5565_v26 = vpop.f32.mrf.mxu1 }
 0x847   :  { %v5608_v11 = vadd.f32 %v5565_v26, %v13006_v55 }
 0x848   :  { %v5567_v53 = vpop.f32.mrf.mxu1 }
 0x849   :  { %v5609_v25 = vadd.f32 %v5567_v53, %v13008_v39 }
 0x84a   :  { %v5571_v13 = vpop.f32.mrf.mxu1 }
 0x84c   :  { %v5573_v6 = vpop.f32.mrf.mxu1 }
 0x84d   :  { %v5611_v26 = vadd.f32 %v5573_v6, %v13016_v35 }
 0x84e   :  { %v5577_v7 = vpop.f32.mrf.mxu1 }
 0x850   :  { %v5579_v57 = vpop.f32.mrf.mxu1 }
 0x851   :  { %v5613_v35 = vadd.f32 %v5579_v57, %v13024_v9 }
 0x852   :  { %v13386_v63 = vpop.f32.mrf.mxu1 }
 0x854   :  { %v13388_v30 = vpop.f32.mrf.mxu1 }
 0x855   :  { %v5615_v9 = vadd.f32 %v13388_v30, %v13032_v4 }
 0x856   :  { %v13390_v10 = vpop.f32.mrf.mxu1 }
 0x858   :  { %v13392_v31 = vpop.f32.mrf.mxu1 }
 0x859   :  { %v5617_v30 = vadd.f32 %v13392_v31, %v13036_v18 }
 0x85a   :  { %v13394_v48 = vpop.f32.mrf.mxu1 }
 0x85c   :  { %v13396_v24 = vpop.f32.mrf.mxu1 }
 0x85e   :  { %v13398_v19 = vpop.f32.mrf.mxu1 }
 0x860   :  { %v13400_v33 = vpop.f32.mrf.mxu1 }
 0x862   :  { %v6015_v34 = vpop.f32.mrf.mxu1 }
 0x863   :  { %v6062_v27 = vadd.f32 %v6015_v34, %v5606_v28  ;;  %v5610_v28 = vadd.f32 %v5571_v13, %v13014_v62  ;;  %v5612_v62 = vadd.f32 %v5577_v7, %v13022_v14  ;;  %v5614_v14 = vadd.f32 %v13386_v63, %v13026_v51 }
 0x864   :  { %v6017_v29 = vpop.f32.mrf.mxu1  ;;  %v5616_v63 = vadd.f32 %v13390_v10, %v13034_v37  ;;  %v5618_v10 = vadd.f32 %v13394_v48, %v13038_v52  ;;  %v5164_v52 = vadd.f32 %v13384_v16, %v13042_v38 }
 0x865   :  { %v6063_v54 = vadd.f32 %v6017_v29, %v5607_v0 }
 0x866   :  { %v6021_v56 = vpop.f32.mrf.mxu1 }
 0x867   :  { %v6064_v61 = vadd.f32 %v6021_v56, %v5608_v11 }
 0x868   :  { %v6023_v15 = vpop.f32.mrf.mxu1 }
 0x869   :  { %v6065_v34 = vadd.f32 %v6023_v15, %v5609_v25 }
 0x86a   :  { %v6027_v45 = vpop.f32.mrf.mxu1 }
 0x86b   :  { %v6066_v2 = vadd.f32 %v6027_v45, %v5610_v28 }
 0x86c   :  { %v6029_v12 = vpop.f32.mrf.mxu1 }
 0x86d   :  { %v6067_v53 = vadd.f32 %v6029_v12, %v5611_v26 }
 0x86e   :  { %v6033_v58 = vpop.f32.mrf.mxu1 }
 0x86f   :  { %v6068_v45 = vadd.f32 %v6033_v58, %v5612_v62 }
 0x870   :  { %v6035_v32 = vpop.f32.mrf.mxu1 }
 0x871   :  { %v6069_v12 = vadd.f32 %v6035_v32, %v5613_v35 }
 0x872   :  { %v6039_v59 = vpop.f32.mrf.mxu1 }
 0x873   :  { %v6070_v58 = vadd.f32 %v6039_v59, %v5614_v14 }
 0x874   :  { %v13402_v20 = vpop.f32.mrf.mxu1 }
 0x875   :  { %v6071_v32 = vadd.f32 %v13402_v20, %v5615_v9 }
 0x876   :  { %v13404_v60 = vpop.f32.mrf.mxu1 }
 0x877   :  { %v6072_v59 = vadd.f32 %v13404_v60, %v5616_v63 }
 0x878   :  { %v13406_v36 = vpop.f32.mrf.mxu1 }
 0x87a   :  { %v13408_v8 = vpop.f32.mrf.mxu1 }
 0x87b   :  { %v6074_v60 = vadd.f32 %v13408_v8, %v5618_v10 }
 0x87c   :  { %v13410_v40 = vpop.f32.mrf.mxu1 }
 0x87e   :  { %v13412_v5 = vpop.f32.mrf.mxu1 }
 0x880   :  { %v13415_v49 = vpop.f32.mrf.mxu1 }
 0x882   :  { %v6336_v21 = vpop.f32.mrf.mxu1 }
 0x883   :  { %v6383_v17 = vadd.f32 %v6336_v21, %v6062_v27 }
 0x884   :  { %v6338_v47 = vpop.f32.mrf.mxu1 }
 0x885   :  { %v6384_v1 = vadd.f32 %v6338_v47, %v6063_v54  ;;  %v6411_v0 = vadd.f32 %v13428_v3, %v6383_v17 }
 0x886   :  { %v6342_v22 = vpop.f32.mrf.mxu1 }
 0x887   :  { %v6412_v29 = vadd.f32 %v13423_v46, %v6384_v1  ;;  %v6385_v42 = vadd.f32 %v6342_v22, %v6064_v61  ;;  %v6073_v61 = vadd.f32 %v13406_v36, %v5617_v30 }
 0x888   :  { %v6344_v55 = vpop.f32.mrf.mxu1 }
 0x889   :  { %v6386_v41 = vadd.f32 %v6344_v55, %v6065_v34  ;;  %8264 = vmatprep.mubr.msk.f32.mxu0 %vm1686_vm4, %v6412_v29  ;;  %8292 = vmatprep.mubr.msk.f32.mxu1 %vm1686_vm4, %v6412_v29  ;;  %v6413_v13 = vadd.f32 %v13428_v3, %v6385_v42  ;;  %v5619_v34 = vadd.f32 %v13396_v24, %v13040_v23 }
 0x88a   :  { %v6348_v39 = vpop.f32.mrf.mxu1  ;;  %6536 = vmatmul.mubr.f32.vlgmr.msra.gmra.mxu0 %v6411_v0  ;;  %6662 = vmatmul.mubr.f32.vlgmr.msra.gmra.mxu1 %v6411_v0  ;;  %v5620_v23 = vadd.f32 %v13398_v19, %v13044_v44  ;;  %v5621_v55 = vadd.f32 %v13400_v33, %v5164_v52  ;;  %v8304_v52 = vld [vmem:[%s13777_s10 + $0x20] sm:$0xff] }
 0x88b   :  { %v6414_v56 = vadd.f32 %v13423_v46, %v6386_v41  ;;  %v6387_v15 = vadd.f32 %v6348_v39, %v6066_v2  ;;  %v6075_v48 = vadd.f32 %v13410_v40, %v5619_v34 }
 0x88c   :  { %v6350_v43 = vpop.f32.mrf.mxu1  ;;  %v6076_v38 = vadd.f32 %v13412_v5, %v5620_v23  ;;  %v6077_v40 = vadd.f32 %v13415_v49, %v5621_v55  ;;  %v6710_v49 = vld [vmem:[%s13777_s10] sm:$0xff]  ;;  %v8307_v23 = vld [vmem:[%s13777_s10 + $0x38] sm:$0xff] }
 0x88d   :  { %v6388_v6 = vadd.f32 %v6350_v43, %v6067_v53  ;;  %8265 = vmatprep.mubr.msk.f32.mxu0 %vm1686_vm4, %v6414_v56  ;;  %8293 = vmatprep.mubr.msk.f32.mxu1 %vm1686_vm4, %v6414_v56  ;;  %v6415_v7 = vadd.f32 %v13428_v3, %v6387_v15 }
 0x88e   :  { %v6354_v27 = vpop.f32.mrf.mxu1  ;;  %6541 = vmatmul.mubr.f32.gmra.mxu0 %v6413_v13  ;;  %6667 = vmatmul.mubr.f32.gmra.mxu1 %v6413_v13 }
 0x88f   :  { %v6416_v21 = vadd.f32 %v13423_v46, %v6388_v6  ;;  %v6389_v54 = vadd.f32 %v6354_v27, %v6068_v45 }
 0x890   :  { %v6356_v11 = vpop.f32.mrf.mxu1 }
 0x891   :  { %v6390_v57 = vadd.f32 %v6356_v11, %v6069_v12  ;;  %8266 = vmatprep.mubr.msk.f32.mxu0 %vm1686_vm4, %v6416_v21  ;;  %8294 = vmatprep.mubr.msk.f32.mxu1 %vm1686_vm4, %v6416_v21  ;;  %v6417_v47 = vadd.f32 %v13428_v3, %v6389_v54 }
 0x892   :  { %v6360_v17 = vpop.f32.mrf.mxu1  ;;  %6546 = vmatmul.mubr.f32.gmra.mxu0 %v6415_v7  ;;  %6672 = vmatmul.mubr.f32.gmra.mxu1 %v6415_v7 }
 0x893   :  { %v6418_v51 = vadd.f32 %v13423_v46, %v6390_v57  ;;  %v6391_v25 = vadd.f32 %v6360_v17, %v6070_v58 }
 0x894   :  { %v6362_v4 = vpop.f32.mrf.mxu1 }
 0x895   :  { %v6392_v1 = vadd.f32 %v6362_v4, %v6071_v32  ;;  %8267 = vmatprep.mubr.msk.f32.mxu0 %vm1686_vm4, %v6418_v51  ;;  %8295 = vmatprep.mubr.msk.f32.mxu1 %vm1686_vm4, %v6418_v51  ;;  %v6419_v22 = vadd.f32 %v13428_v3, %v6391_v25 }
 0x896   :  { %v6366_v20 = vpop.f32.mrf.mxu1  ;;  %6551 = vmatmul.mubr.f32.gmra.mxu0 %v6417_v47  ;;  %6677 = vmatmul.mubr.f32.gmra.mxu1 %v6417_v47 }
 0x897   :  { %v6420_v37 = vadd.f32 %v13423_v46, %v6392_v1  ;;  %v6393_v18 = vadd.f32 %v6366_v20, %v6072_v59 }
 0x898   :  { %v6368_v31 = vpop.f32.mrf.mxu1 }
 0x899   :  { %v6394_v29 = vadd.f32 %v6368_v31, %v6073_v61  ;;  %8268 = vmatprep.mubr.msk.f32.mxu0 %vm1686_vm4, %v6420_v37  ;;  %8296 = vmatprep.mubr.msk.f32.mxu1 %vm1686_vm4, %v6420_v37  ;;  %v6421_v24 = vadd.f32 %v13428_v3, %v6393_v18 }
 0x89a   :  { %v6372_v36 = vpop.f32.mrf.mxu1  ;;  %6556 = vmatmul.mubr.f32.gmra.mxu0 %v6419_v22  ;;  %6682 = vmatmul.mubr.f32.gmra.mxu1 %v6419_v22 }
 0x89b   :  { %v6422_v28 = vadd.f32 %v13423_v46, %v6394_v29  ;;  %v6395_v0 = vadd.f32 %v6372_v36, %v6074_v60  ;;  %v6711_v29 = vld [vmem:[%s13777_s10 + $0x8] sm:$0xff]  ;;  %v6712_v60 = vld [vmem:[%s13777_s10 + $0x10] sm:$0xff]  ;;  %v6713_v36 = vld [vmem:[%s13777_s10 + $0x18] sm:$0xff] }
 0x89c   :  { %v6374_v42 = vpop.f32.mrf.mxu1 }
 0x89d   :  { %v6396_v8 = vadd.f32 %v6374_v42, %v6075_v48  ;;  %8269 = vmatprep.mubr.msk.f32.mxu0 %vm1686_vm4, %v6422_v28  ;;  %8297 = vmatprep.mubr.msk.f32.mxu1 %vm1686_vm4, %v6422_v28  ;;  %v6423_v19 = vadd.f32 %v13428_v3, %v6395_v0  ;;  %v8305_v48 = vld [vmem:[%s13777_s10 + $0x28] sm:$0xff]  ;;  %v8306_v28 = vld [vmem:[%s13777_s10 + $0x30] sm:$0xff] }
 0x89e   :  { %v6378_v16 = vpop.f32.mrf.mxu1  ;;  %6561 = vmatmul.mubr.f32.gmra.mxu0 %v6421_v24  ;;  %6687 = vmatmul.mubr.f32.gmra.mxu1 %v6421_v24 }
 0x89f   :  { %v6424_v44 = vadd.f32 %v13423_v46, %v6396_v8  ;;  %v6397_v26 = vadd.f32 %v6378_v16, %v6076_v38 }
 0x8a0   :  { %v6380_v41 = vpop.f32.mrf.mxu1 }
 0x8a1   :  { %v6398_v2 = vadd.f32 %v6380_v41, %v6077_v40  ;;  %8270 = vmatprep.mubr.msk.f32.mxu0 %vm1686_vm4, %v6424_v44  ;;  %8298 = vmatprep.mubr.msk.f32.mxu1 %vm1686_vm4, %v6424_v44  ;;  %v6425_v5 = vadd.f32 %v13428_v3, %v6397_v26 }
 0x8a2   :  { %6566 = vmatmul.mubr.f32.gmra.mxu0 %v6423_v19  ;;  %6692 = vmatmul.mubr.f32.gmra.mxu1 %v6423_v19 }
 0x8a3   :  { %v6426_v33 = vadd.f32 %v13423_v46, %v6398_v2 }
 0x8a5   :  { %8271 = vmatprep.mubr.msk.f32.mxu0 %vm1686_vm4, %v6426_v33  ;;  %8299 = vmatprep.mubr.msk.f32.mxu1 %vm1686_vm4, %v6426_v33 }
 0x8a6   :  { %6571 = vmatmul.mubr.f32.gmra.mxu0 %v6425_v5  ;;  %6697 = vmatmul.mubr.f32.gmra.mxu1 %v6425_v5 }
 0x8a7   :  { %8738 = vmatprep.mubr.msk.f32.mxu0 %vm3090_vm6, %v6710_v49  ;;  %8774 = vmatprep.mubr.msk.f32.mxu1 %vm8955_vm9, %v13887_v50 }
 0x94a   :  { %v6537_v39 = vpop.f32.mrf.mxu0  ;;  %v6663_v53 = vpop.f32.mrf.mxu1 }
 0x94b   :  { %v6702_v34 = vmax.f32 %v6537_v39, %v6663_v53  ;;  %v8313_v39 = vld [vmem:[%s13778_s11 + $0x8] sm:$0xff]  ;;  %v6921_v53 = vld [vmem:[%s13778_s11] sm:$0xff] }
 0x94c   :  { %v6539_v56 = vpop.f32.mrf.mxu0  ;;  %v6665_v62 = vpop.f32.mrf.mxu1 }
 0x94d   :  { %v8324_v56 = vld [vmem:[%s13779_s12 + $0x98] sm:$0xff]  ;;  %v8323_v62 = vld [vmem:[%s13779_s12 + $0x90] sm:$0xff] }
 0x94e   :  { %v6542_v13 = vpop.f32.mrf.mxu0  ;;  %v6668_v46 = vpop.f32.mrf.mxu1 }
 0x94f   :  { %v6703_v31 = vmax.f32 %v6542_v13, %v6668_v46  ;;  %v8322_v13 = vld [vmem:[%s13779_s12 + $0x88] sm:$0xff]  ;;  %v8321_v46 = vld [vmem:[%s13779_s12 + $0x80] sm:$0xff] }
 0x950   :  { %v6544_v15 = vpop.f32.mrf.mxu0  ;;  %v6670_v3 = vpop.f32.mrf.mxu1 }
 0x951   :  { %v8320_v15 = vld [vmem:[%s13779_s12 + $0x78] sm:$0xff]  ;;  %v8319_v3 = vld [vmem:[%s13779_s12 + $0x70] sm:$0xff] }
 0x952   :  { %v6547_v43 = vpop.f32.mrf.mxu0  ;;  %v6673_v35 = vpop.f32.mrf.mxu1 }
 0x953   :  { %v6704_v18 = vmax.f32 %v6547_v43, %v6673_v35  ;;  %v8318_v43 = vld [vmem:[%s13779_s12 + $0x68] sm:$0xff]  ;;  %v8317_v35 = vld [vmem:[%s13779_s12 + $0x60] sm:$0xff] }
 0x954   :  { %v6549_v6 = vpop.f32.mrf.mxu0  ;;  %v6675_v45 = vpop.f32.mrf.mxu1 }
 0x955   :  { %v8316_v6 = vld [vmem:[%s13779_s12 + $0x58] sm:$0xff]  ;;  %v8315_v45 = vld [vmem:[%s13779_s12 + $0x50] sm:$0xff] }
 0x956   :  { %v6552_v27 = vpop.f32.mrf.mxu0  ;;  %v6678_v12 = vpop.f32.mrf.mxu1 }
 0x957   :  { %v6705_v22 = vmax.f32 %v6552_v27, %v6678_v12  ;;  %v7004_v27 = vld [vmem:[%s13779_s12 + $0x48] sm:$0xff]  ;;  %v7003_v12 = vld [vmem:[%s13779_s12 + $0x40] sm:$0xff] }
 0x958   :  { %v6554_v21 = vpop.f32.mrf.mxu0  ;;  %v6680_v14 = vpop.f32.mrf.mxu1 }
 0x959   :  { %v7002_v21 = vld [vmem:[%s13779_s12 + $0x38] sm:$0xff]  ;;  %v7001_v14 = vld [vmem:[%s13779_s12 + $0x30] sm:$0xff] }
 0x95a   :  { %v6557_v7 = vpop.f32.mrf.mxu0  ;;  %v6683_v54 = vpop.f32.mrf.mxu1 }
 0x95b   :  { %v6706_v10 = vmax.f32 %v6557_v7, %v6683_v54  ;;  %v7000_v7 = vld [vmem:[%s13779_s12 + $0x28] sm:$0xff]  ;;  %v6999_v54 = vld [vmem:[%s13779_s12 + $0x20] sm:$0xff] }
 0x95c   :  { %v6559_v11 = vpop.f32.mrf.mxu0  ;;  %v6685_v9 = vpop.f32.mrf.mxu1 }
 0x95d   :  { %v6998_v11 = vld [vmem:[%s13779_s12 + $0x18] sm:$0xff]  ;;  %v6997_v9 = vld [vmem:[%s13779_s12 + $0x10] sm:$0xff] }
 0x95e   :  { %v6562_v57 = vpop.f32.mrf.mxu0  ;;  %v6688_v58 = vpop.f32.mrf.mxu1 }
 0x95f   :  { %v6707_v37 = vmax.f32 %v6562_v57, %v6688_v58  ;;  %v6996_v57 = vld [vmem:[%s13779_s12 + $0x8] sm:$0xff]  ;;  %v6995_v58 = vld [vmem:[%s13779_s12] sm:$0xff] }
 0x960   :  { %v6564_v17 = vpop.f32.mrf.mxu0  ;;  %v6690_v32 = vpop.f32.mrf.mxu1 }
 0x962   :  { %v6567_v51 = vpop.f32.mrf.mxu0  ;;  %v6693_v63 = vpop.f32.mrf.mxu1 }
 0x963   :  { %v6708_v61 = vmax.f32 %v6567_v51, %v6693_v63  ;;  %v8338_v51 = vld [vmem:[%s13779_s12 + $0xe8] sm:$0xff] }
 0x964   :  { %v6569_v47 = vpop.f32.mrf.mxu0  ;;  %v6695_v25 = vpop.f32.mrf.mxu1 }
 0x965   :  { %v8337_v47 = vld [vmem:[%s13779_s12 + $0xe0] sm:$0xff] }
 0x966   :  { %v6572_v4 = vpop.f32.mrf.mxu0  ;;  %v6698_v30 = vpop.f32.mrf.mxu1 }
 0x967   :  { %v6709_v1 = vmax.f32 %v6572_v4, %v6698_v30  ;;  %v8336_v4 = vld [vmem:[%s13779_s12 + $0xd8] sm:$0xff]  ;;  %v8327_v30 = vld [vmem:[%s13778_s11 + $0x10] sm:$0xff] }
 0x968   :  { %v6574_v59 = vpop.f32.mrf.mxu0  ;;  %v6700_v20 = vpop.f32.mrf.mxu1 }
 0x969   :  { %8722 = vmatprep.subr.mxu0 %v6709_v1  ;;  %v8334_v59 = vld [vmem:[%s13779_s12 + $0xc8] sm:$0xff]  ;;  %v8333_v20 = vld [vmem:[%s13779_s12 + $0xc0] sm:$0xff] }
 0x96a   :  { %8723 = vmatpush3.msra.mxu0 %v6709_v1 }
 0x96b   :  { %8724 = vmatprep.subr.mxu0 %v6708_v61 }
 0x96c   :  { %8725 = vmatpush3.msra.mxu0 %v6708_v61 }
 0x96d   :  { %8726 = vmatprep.subr.mxu0 %v6707_v37 }
 0x96e   :  { %8727 = vmatpush3.msra.mxu0 %v6707_v37 }
 0x96f   :  { %8728 = vmatprep.subr.mxu0 %v6706_v10 }
 0x970   :  { %8729 = vmatpush3.msra.mxu0 %v6706_v10 }
 0x971   :  { %8730 = vmatprep.subr.mxu0 %v6705_v22 }
 0x972   :  { %8731 = vmatpush3.msra.mxu0 %v6705_v22 }
 0x973   :  { %8732 = vmatprep.subr.mxu0 %v6704_v18 }
 0x974   :  { %8733 = vmatpush3.msra.mxu0 %v6704_v18 }
 0x975   :  { %8734 = vmatprep.subr.mxu0 %v6703_v31 }
 0x976   :  { %8735 = vmatpush3.msra.mxu0 %v6703_v31 }
 0x977   :  { %8736 = vmatprep.subr.mxu0 %v6702_v34 }
 0x978   :  { %8737 = vmatpush3.msra.mxu0 %v6702_v34 }
 0x979   :  { %8744 = vmatprep.subr.mxu0 %v6709_v1  ;;  %8739 = vmatmul.mubr.msk.f32.vlgmr.msra.gmra.mxu0 %vm3090_vm6, %v6711_v29  ;;  %v8330_v29 = vld [vmem:[%s13779_s12 + $0xa8] sm:$0xff] }
 0x97a   :  { %8745 = vmatpush3.msra.mxu0 %v6709_v1  ;;  %8741 = vmatprep.mubr.msk.f32.mxu0 %vm3090_vm6, %v6712_v60  ;;  %v8335_v1 = vld [vmem:[%s13779_s12 + $0xd0] sm:$0xff]  ;;  %v8347_v60 = vld [vmem:[%s13779_s12 + $0x118] sm:$0xff] }
 0x97b   :  { %8746 = vmatprep.subr.mxu0 %v6708_v61 }
 0x97c   :  { %8747 = vmatpush3.msra.mxu0 %v6708_v61  ;;  %v8340_v61 = vld [vmem:[%s13778_s11 + $0x18] sm:$0xff] }
 0x97d   :  { %8748 = vmatprep.subr.mxu0 %v6707_v37  ;;  %8742 = vmatmul.mubr.msk.f32.gmra.mxu0 %vm3090_vm6, %v6713_v36  ;;  %v8329_v36 = vld [vmem:[%s13779_s12 + $0xa0] sm:$0xff] }
 0x97e   :  { %8749 = vmatpush3.msra.mxu0 %v6707_v37  ;;  %8760 = vmatprep.mubr.msk.f32.mxu0 %vm3090_vm6, %v8304_v52  ;;  %v8351_v37 = vld [vmem:[%s13779_s12 + $0x138] sm:$0xff]  ;;  %v8346_v52 = vld [vmem:[%s13779_s12 + $0x110] sm:$0xff] }
 0x97f   :  { %8750 = vmatprep.subr.mxu0 %v6706_v10 }
 0x980   :  { %8751 = vmatpush3.msra.mxu0 %v6706_v10  ;;  %v8332_v10 = vld [vmem:[%s13779_s12 + $0xb8] sm:$0xff] }
 0x981   :  { %8752 = vmatprep.subr.mxu0 %v6705_v22 }
 0x982   :  { %8753 = vmatpush3.msra.mxu0 %v6705_v22  ;;  %v8350_v22 = vld [vmem:[%s13779_s12 + $0x130] sm:$0xff] }
 0x983   :  { %8754 = vmatprep.subr.mxu0 %v6704_v18 }
 0x984   :  { %8755 = vmatpush3.msra.mxu0 %v6704_v18  ;;  %v8349_v18 = vld [vmem:[%s13779_s12 + $0x128] sm:$0xff] }
 0x985   :  { %8756 = vmatprep.subr.mxu0 %v6703_v31 }
 0x986   :  { %8757 = vmatpush3.msra.mxu0 %v6703_v31  ;;  %v8331_v31 = vld [vmem:[%s13779_s12 + $0xb0] sm:$0xff] }
 0x987   :  { %8758 = vmatprep.subr.mxu0 %v6702_v34 }
 0x988   :  { %8759 = vmatpush3.msra.mxu0 %v6702_v34  ;;  %v8348_v34 = vld [vmem:[%s13779_s12 + $0x120] sm:$0xff] }
 0x989   :  { %8761 = vmatmul.mubr.msk.f32.vlgmr.msra.gmra.mxu0 %vm3090_vm6, %v8305_v48  ;;  %8777 = vmatprep.subr.mxu0 %v13887_v50  ;;  %v8345_v48 = vld [vmem:[%s13779_s12 + $0x108] sm:$0xff] }
 0x98a   :  { %8763 = vmatprep.mubr.msk.f32.mxu0 %vm3090_vm6, %v8306_v28  ;;  %v8344_v28 = vld [vmem:[%s13779_s12 + $0x100] sm:$0xff] }
 0x98d   :  { %8764 = vmatmul.mubr.msk.f32.gmra.mxu0 %vm3090_vm6, %v8307_v23  ;;  %v8343_v23 = vld [vmem:[%s13779_s12 + $0xf8] sm:$0xff] }
 0x98e   :  { %8785 = vmatprep.mubr.msk.f32.mxu0 %vm8955_vm9, %v13887_v50 }
 0xa39   :  { %v8740_v24 = vpop.f32.mrf.mxu0 }
 0xa3b   :  { %v6792_v0 = vpop.f32.mrf.mxu0 }
 0xa3d   :  { %v8743_v42 = vpop.f32.mrf.mxu0 }
 0xa3f   :  { %v6802_v55 = vpop.f32.mrf.mxu0 }
 0xa49   :  { %v8762_v8 = vpop.f32.mrf.mxu0 }
 0xa4a   :  { %v6914_v19 = vmax.f32 %v8740_v24, %v8762_v8  ;;  %v8342_v24 = vld [vmem:[%s13779_s12 + $0xf0] sm:$0xff] }
 0xa4b   :  { %v6894_v38 = vpop.f32.mrf.mxu0 }
 0xa4c   :  { %v6913_v2 = vmax.f32 %v6792_v0, %v6894_v38  ;;  %v13536_v5 = vmax.f32 %v6914_v19, 0.0 }
 0xa4d   :  { %v8765_v16 = vpop.f32.mrf.mxu0 }
 0xa4e   :  { %v6916_v40 = vmax.f32 %v8743_v42, %v8765_v16  ;;  %v13542_v49 = vmax.f32 %v6913_v2, 0.0 }
 0xa4f   :  { %v6904_v44 = vpop.f32.mrf.mxu0 }
 0xa50   :  { %v13528_v26 = vmax.f32 %v6916_v40, 0.0  ;;  %v6915_v41 = vmax.f32 %v6802_v55, %v6904_v44 }
 0xa52   :  { %v13530_v33 = vmax.f32 %v6915_v41, 0.0  ;;  %8778 = vmatpush3.msra.mxu0 %v13528_v26  ;;  %8767 = vmatpush3.msra.mxu1 %v13528_v26 }
 0xa53   :  { %8779 = vmatprep.subr.mxu0 %v13887_v50  ;;  %8768 = vmatprep.subr.mxu1 %v13887_v50 }
 0xa54   :  { %8780 = vmatpush3.msra.mxu0 %v13530_v33  ;;  %8769 = vmatpush3.msra.mxu1 %v13530_v33 }
 0xa55   :  { %8781 = vmatprep.subr.mxu0 %v13887_v50  ;;  %8770 = vmatprep.subr.mxu1 %v13887_v50 }
 0xa56   :  { %8782 = vmatpush3.msra.mxu0 %v13536_v5  ;;  %8771 = vmatpush3.msra.mxu1 %v13536_v5 }
 0xa57   :  { %8783 = vmatprep.subr.mxu0 %v13887_v50  ;;  %8772 = vmatprep.subr.mxu1 %v13887_v50 }
 0xa58   :  { %8784 = vmatpush3.msra.mxu0 %v13542_v49  ;;  %8773 = vmatpush3.msra.mxu1 %v13542_v49 }
 0xa59   :  { %8786 = vmatmul.mubr.msk.f32.vlgmr.msra.gmra.mxu0 %vm1686_vm4, %v8313_v39  ;;  %8775 = vmatmul.mubr.msk.f32.vlgmr.msra.gmra.mxu1 %vm1686_vm4, %v6921_v53 }
 0xa5a   :  { %8788 = vmatprep.subr.mxu1 %v13887_v50  ;;  %8808 = vmatprep.mubr.msk.f32.mxu1 %vm8955_vm9, %v13887_v50 }
 0xa5b   :  { %8789 = vmatpush3.msra.mxu1 %v8324_v56  ;;  %8811 = vmatprep.subr.mxu0 %v13887_v50 }
 0xa5c   :  { %8790 = vmatprep.subr.mxu1 %v13887_v50  ;;  %8831 = vmatprep.mubr.msk.f32.mxu0 %vm8955_vm9, %v13887_v50 }
 0xa5d   :  { %8791 = vmatpush3.msra.mxu1 %v8323_v62  ;;  %8812 = vmatpush3.msra.mxu0 %v7004_v27 }
 0xa5e   :  { %8792 = vmatprep.subr.mxu1 %v13887_v50  ;;  %8813 = vmatprep.subr.mxu0 %v13887_v50 }
 0xa5f   :  { %8793 = vmatpush3.msra.mxu1 %v8322_v13  ;;  %8814 = vmatpush3.msra.mxu0 %v7003_v12 }
 0xa60   :  { %8794 = vmatprep.subr.mxu1 %v13887_v50  ;;  %8815 = vmatprep.subr.mxu0 %v13887_v50 }
 0xa61   :  { %8795 = vmatpush3.msra.mxu1 %v8321_v46  ;;  %8816 = vmatpush3.msra.mxu0 %v7002_v21 }
 0xa62   :  { %8796 = vmatprep.subr.mxu1 %v13887_v50  ;;  %8817 = vmatprep.subr.mxu0 %v13887_v50 }
 0xa63   :  { %8797 = vmatpush3.msra.mxu1 %v8320_v15  ;;  %8818 = vmatpush3.msra.mxu0 %v7001_v14 }
 0xa64   :  { %8798 = vmatprep.subr.mxu1 %v13887_v50  ;;  %8819 = vmatprep.subr.mxu0 %v13887_v50 }
 0xa65   :  { %8799 = vmatpush3.msra.mxu1 %v8319_v3  ;;  %8820 = vmatpush3.msra.mxu0 %v7000_v7 }
 0xa66   :  { %8800 = vmatprep.subr.mxu1 %v13887_v50  ;;  %8821 = vmatprep.subr.mxu0 %v13887_v50 }
 0xa67   :  { %8801 = vmatpush3.msra.mxu1 %v8318_v43  ;;  %8822 = vmatpush3.msra.mxu0 %v6999_v54 }
 0xa68   :  { %8802 = vmatprep.subr.mxu1 %v13887_v50  ;;  %8823 = vmatprep.subr.mxu0 %v13887_v50 }
 0xa69   :  { %8803 = vmatpush3.msra.mxu1 %v8317_v35  ;;  %8824 = vmatpush3.msra.mxu0 %v6998_v11 }
 0xa6a   :  { %8804 = vmatprep.subr.mxu1 %v13887_v50  ;;  %8825 = vmatprep.subr.mxu0 %v13887_v50 }
 0xa6b   :  { %8805 = vmatpush3.msra.mxu1 %v8316_v6  ;;  %8826 = vmatpush3.msra.mxu0 %v6997_v9 }
 0xa6c   :  { %8806 = vmatprep.subr.mxu1 %v13887_v50  ;;  %8827 = vmatprep.subr.mxu0 %v13887_v50 }
 0xa6d   :  { %8807 = vmatpush3.msra.mxu1 %v8315_v45  ;;  %8828 = vmatpush3.msra.mxu0 %v6996_v57 }
 0xa6e   :  { %8834 = vmatprep.subr.mxu1 %v13887_v50  ;;  %8829 = vmatprep.subr.mxu0 %v13887_v50 }
 0xa6f   :  { %8830 = vmatpush3.msra.mxu0 %v6995_v58 }
 0xa70   :  { %8845 = vmatprep.subr.mxu0 %v13887_v50 }
 0xb19   :  { %v7076_v17 = vpop.f32.mrf.mxu0  ;;  %v6991_v32 = vpop.f32.mrf.mxu1 }
 0xb1a   :  { %8809 = vmatmul.mubr.msk.f32.vlgmr.msra.gmra.mxu1 %vm7091_vm10, %v7076_v17  ;;  %8832 = vmatmul.mubr.msk.f32.vlgmr.msra.gmra.mxu0 %vm7091_vm10, %v6991_v32 }
 0xb1b   :  { %8835 = vmatpush3.msra.mxu1 %v13528_v26  ;;  %8842 = vmatprep.mubr.msk.f32.mxu1 %vm8955_vm9, %v13887_v50  ;;  %v8787_v63 = vpop.f32.mrf.mxu0  ;;  %v8776_v25 = vpop.f32.mrf.mxu1 }
 0xb1c   :  { %8836 = vmatprep.subr.mxu1 %v13887_v50  ;;  %8846 = vmatpush3.msra.mxu0 %v8338_v51 }
 0xb1d   :  { %8837 = vmatpush3.msra.mxu1 %v13530_v33  ;;  %8847 = vmatprep.subr.mxu0 %v13887_v50 }
 0xb1e   :  { %8838 = vmatprep.subr.mxu1 %v13887_v50  ;;  %8848 = vmatpush3.msra.mxu0 %v8337_v47 }
 0xb1f   :  { %8839 = vmatpush3.msra.mxu1 %v13536_v5  ;;  %8849 = vmatprep.subr.mxu0 %v13887_v50 }
 0xb20   :  { %8840 = vmatprep.subr.mxu1 %v13887_v50  ;;  %8850 = vmatpush3.msra.mxu0 %v8336_v4 }
 0xb21   :  { %8841 = vmatpush3.msra.mxu1 %v13542_v49  ;;  %8851 = vmatprep.subr.mxu0 %v13887_v50 }
 0xb22   :  { %8843 = vmatmul.mubr.msk.f32.vlgmr.msra.gmra.mxu1 %vm1686_vm4, %v8327_v30  ;;  %8868 = vmatprep.subr.mxu1 %v13887_v50 }
 0xb23   :  { %8869 = vmatpush3.msra.mxu1 %v13528_v26  ;;  %8876 = vmatprep.mubr.msk.f32.mxu1 %vm8955_vm9, %v13887_v50 }
 0xb24   :  { %8870 = vmatprep.subr.mxu1 %v13887_v50  ;;  %8852 = vmatpush3.msra.mxu0 %v8335_v1 }
 0xb25   :  { %8871 = vmatpush3.msra.mxu1 %v13530_v33  ;;  %8853 = vmatprep.subr.mxu0 %v13887_v50  ;;  %v8353_v33 = vld [vmem:[%s13780_s13] ss:$0 sm:$0xff] }
 0xb26   :  { %8872 = vmatprep.subr.mxu1 %v13887_v50  ;;  %8854 = vmatpush3.msra.mxu0 %v8334_v59 }
 0xb27   :  { %8873 = vmatpush3.msra.mxu1 %v13536_v5  ;;  %8855 = vmatprep.subr.mxu0 %v13887_v50 }
 0xb28   :  { %8874 = vmatprep.subr.mxu1 %v13887_v50  ;;  %8856 = vmatpush3.msra.mxu0 %v8333_v20 }
 0xb29   :  { %8875 = vmatpush3.msra.mxu1 %v13542_v49  ;;  %8857 = vmatprep.subr.mxu0 %v13887_v50 }
 0xb2a   :  { %8877 = vmatmul.mubr.msk.f32.vlgmr.msra.gmra.mxu1 %vm1686_vm4, %v8340_v61  ;;  %8879 = vmatprep.subr.mxu1 %v13887_v50 }
 0xb2b   :  { %8880 = vmatpush3.msra.mxu1 %v8351_v37  ;;  %8858 = vmatpush3.msra.mxu0 %v8332_v10 }
 0xb2c   :  { %8881 = vmatprep.subr.mxu1 %v13887_v50  ;;  %8859 = vmatprep.subr.mxu0 %v13887_v50 }
 0xb2d   :  { %8882 = vmatpush3.msra.mxu1 %v8350_v22  ;;  %8865 = vmatprep.mubr.msk.f32.mxu0 %vm8955_vm9, %v13887_v50 }
 0xb2e   :  { %8883 = vmatprep.subr.mxu1 %v13887_v50  ;;  %8899 = vmatprep.mubr.msk.f32.mxu1 %vm8955_vm9, %v13887_v50 }
 0xb2f   :  { %8884 = vmatpush3.msra.mxu1 %v8349_v18  ;;  %8860 = vmatpush3.msra.mxu0 %v8331_v31 }
 0xb30   :  { %8885 = vmatprep.subr.mxu1 %v13887_v50  ;;  %8861 = vmatprep.subr.mxu0 %v13887_v50 }
 0xb31   :  { %8886 = vmatpush3.msra.mxu1 %v8348_v34  ;;  %8862 = vmatpush3.msra.mxu0 %v8330_v29 }
 0xb32   :  { %8887 = vmatprep.subr.mxu1 %v13887_v50  ;;  %8863 = vmatprep.subr.mxu0 %v13887_v50 }
 0xb33   :  { %8888 = vmatpush3.msra.mxu1 %v8347_v60  ;;  %8864 = vmatpush3.msra.mxu0 %v8329_v36 }
 0xb34   :  { %8889 = vmatprep.subr.mxu1 %v13887_v50 }
 0xb35   :  { %8890 = vmatpush3.msra.mxu1 %v8346_v52 }
 0xb36   :  { %8891 = vmatprep.subr.mxu1 %v13887_v50 }
 0xb37   :  { %8892 = vmatpush3.msra.mxu1 %v8345_v48 }
 0xb38   :  { %8893 = vmatprep.subr.mxu1 %v13887_v50 }
 0xb39   :  { %8894 = vmatpush3.msra.mxu1 %v8344_v28 }
 0xb3a   :  { %8895 = vmatprep.subr.mxu1 %v13887_v50 }
 0xb3b   :  { %8896 = vmatpush3.msra.mxu1 %v8343_v23 }
 0xb3c   :  { %8897 = vmatprep.subr.mxu1 %v13887_v50 }
 0xb3d   :  { %8898 = vmatpush3.msra.mxu1 %v8342_v24 }
 0xbda   :  { %v7161_v0 = vpop.f32.mrf.mxu1  ;;  %v7234_v42 = vpop.f32.mrf.mxu0 }
 0xbdb   :  { %v7235_v55 = vadd.f32 %v7234_v42, %v7161_v0 }
 0xbdc   :  { %v8810_v8 = vpop.f32.mrf.mxu1  ;;  %v8833_v38 = vpop.f32.mrf.mxu0 }
 0xbe2   :  { %v7309_v16 = vpop.f32.mrf.mxu1 }
 0xbe3   :  { %8866 = vmatmul.mubr.msk.f32.vlgmr.msra.gmra.mxu0 %vm7091_vm10, %v7309_v16 }
 0xbe4   :  { %v8844_v40 = vpop.f32.mrf.mxu1 }
 0xbea   :  { %v7469_v44 = vpop.f32.mrf.mxu1 }
 0xbeb   :  { %8900 = vmatmul.mubr.msk.f32.vlgmr.msra.gmra.mxu1 %vm7091_vm10, %v7469_v44 }
 0xbec   :  { %v8878_v19 = vpop.f32.mrf.mxu1 }
 0xca3   :  { %v7393_v26 = vpop.f32.mrf.mxu0 }
 0xca4   :  { %v7397_v41 = vadd.f32 %v7393_v26, %v7235_v55 }
 0xca5   :  { %v8867_v50 = vpop.f32.mrf.mxu0 }
 0xcab   :  { %v7553_v2 = vpop.f32.mrf.mxu1 }
 0xcac   :  { %v7557_v5 = vadd.f32 %v7553_v2, %v7397_v41 }
 0xcad   :  { %v8901_v49 = vpop.f32.mrf.mxu1 }
 0xcae   :  { %v7565_v39 = vadd.f32 %v8353_v33, %v7557_v5 }
 0xcb0   :  { %v7567_v53 = vsel %vm7566_vm11, %v7565_v39, -inf }
 0xcb1   :  { %7568 = vmax.xlane.f32.xlu0 %v7567_v53 }
 0xd3a   :  { %v7569_v56 = vpop.xlane.xlu0 %7568 }
 0xd3b   :  { %v7570_v62 = vsub.f32 %v7565_v39, %v7569_v56 }
 0xd3d   :  { %v7571_v13 = vmul.f32 1.442695, %v7570_v62 }
 0xd3f   :  { %8909 = vpow2.f32 %v7571_v13 }
 0xd4c   :  { %v8910_v46 = vpop.eup %8909 }
 0xd4d   :  { %v7573_v15 = vsel %vm7566_vm11, %v8910_v46, 0.0 }
 0xd4e   :  { %7574 = vadd.xlane.f32.xlu1 %v7573_v15 }
 0xdd7   :  { %v7575_v3 = vpop.xlane.xlu1 %7574 }
 0xdd8   :  { %8911 = vlog2.f32 %v7575_v3 }
 0xde5   :  { %v8912_v43 = vpop.eup %8911 }
 0xde6   :  { %v7577_v35 = vmul.f32 0.6931472, %v8912_v43 }
 0xde8   :  { %v7578_v6 = vsub.f32 %v7570_v62, %v7577_v35 }
 0xdea   :  { %7579 = vst.msk [vmem:[%s13781_s14] sm:$0xff] %vm7566_vm11, %v7578_v6 }

</bundles_post_ra>
